<compile_context>
chip_gen: v7x
topology: tpu7x:2x2x1
jax: 0.10.0
libtpu: 0.0.40
codegen_flags: <defaults>
</compile_context>

<pallas_src>
import functools

import jax
import jax.numpy as jnp
from jax.experimental import pallas as pl
from jax.experimental.pallas import tpu as pltpu


_LANE = 128
_VMEM_LIMIT = 64 * 1024 * 1024


def _round_up(v, m):
    return (v + m - 1) // m * m


def _pick_row_tile(hw):
    for c in (512, 256, 128, 64, 32, 16, 8):
        if hw % c == 0:
            return c
    return hw


# ----------------------------------------------------------------------------
# Kernel 1: generic fused (x @ w) + bias (+ ReLU), K-tiled with f32 accumulator
# ----------------------------------------------------------------------------
def _mm_bias_act_kernel(x_ref, w_ref, b_ref, o_ref, acc_ref, *, act):
    @pl.when(pl.program_id(2) == 0)
    def _init():
        acc_ref[...] = jnp.zeros_like(acc_ref)

    acc_ref[...] += jnp.dot(x_ref[...], w_ref[...],
                            preferred_element_type=jnp.float32)

    @pl.when(pl.program_id(2) == pl.num_programs(2) - 1)
    def _finalize():
        y = acc_ref[...] + b_ref[...]
        if act:
            y = jnp.maximum(y, 0.0)
        o_ref[...] = y.astype(o_ref.dtype)


def matmul_bias_act(x2d, w, bias, *, act=True, out_dtype=jnp.bfloat16):
    """act?((x2d @ w) + bias).  x2d: (M, K), w: (K, C), bias: (C,).  C % 128 == 0."""
    M, K = x2d.shape
    C = w.shape[1]
    # --- row tiling: pad M, never use a whole-M block ---
    tm = 256 if M >= 256 else _round_up(M, 8)
    Mp = _round_up(M, tm)
    if Mp != M:
        x2d = jnp.pad(x2d, ((0, Mp - M), (0, 0)))
    # --- reduction tiling: single block when small, 512-wide (zero-padded) when big ---
    if K > 1024:
        tk = 512
        Kp = _round_up(K, tk)
        if Kp != K:
            x2d = jnp.pad(x2d, ((0, 0), (0, Kp - K)))
            w = jnp.pad(w, ((0, Kp - K), (0, 0)))
    else:
        tk, Kp = K, K
    tn = 256 if C % 256 == 0 else _LANE
    b2 = bias.reshape(1, C).astype(jnp.float32)

    out = pl.pallas_call(
        functools.partial(_mm_bias_act_kernel, act=act),
        out_shape=jax.ShapeDtypeStruct((Mp, C), out_dtype),
        grid=(Mp // tm, C // tn, Kp // tk),
        in_specs=[
            pl.BlockSpec((tm, tk), lambda i, j, k: (i, k)),
            pl.BlockSpec((tk, tn), lambda i, j, k: (k, j)),
            pl.BlockSpec((1, tn), lambda i, j, k: (0, j)),
        ],
        out_specs=pl.BlockSpec((tm, tn), lambda i, j, k: (i, j)),
        scratch_shapes=[pltpu.VMEM((tm, tn), jnp.float32)],
        compiler_params=pltpu.CompilerParams(
            dimension_semantics=("parallel", "parallel", "arbitrary"),
            vmem_limit_bytes=_VMEM_LIMIT),
    )(x2d, w, b2)
    return out[:M] if Mp != M else out


# ----------------------------------------------------------------------------
# Kernel 2: fused dilated 3x3 conv + folded BN + ReLU (no im2col in HBM)
# ----------------------------------------------------------------------------
def _dconv3x3_kernel(x_ref, w_ref, b_ref, o_ref, acc_ref, *, d, off, th, W):
    kh = pl.program_id(2)

    @pl.when(kh == 0)
    def _init():
        acc_ref[...] = jnp.zeros_like(acc_ref)

    # Unroll the 3 kw taps; accumulate them locally and touch the VMEM
    # accumulator once per row (1 RMW instead of 3).
    for r in range(th):                              # output rows of this tile
        part = None
        for kw in range(3):
            wk = w_ref[0, kw]                        # (Cin, Cp)
            c0 = off + kw * d                        # static column offset
            xs = x_ref[0, r, c0:c0 + W, :]           # (W, Cin) shifted row slice
            p = jnp.dot(xs, wk, preferred_element_type=jnp.float32)
            part = p if part is None else part + p
        acc_ref[r] += part

    @pl.when(kh == pl.num_programs(2) - 1)
    def _finalize():
        y = acc_ref[...] + b_ref[...]                # (th, W, Cp) + (1, 1, Cp)
        o_ref[0] = jnp.maximum(y, 0.0).astype(o_ref.dtype)


def conv3x3_dilated_bn_relu(xpad, w, bias, *, d, dmax, H, W, th):
    """xpad: (N, Hp+2*dmax, W+2*dmax, Cin) bf16 (one shared zero-padded copy),
    w: (3, 3, Cin, Cp) bf16 (BN scale folded), bias: (Cp,) f32."""
    N, _, Wp, Cin = xpad.shape
    Cp = w.shape[-1]
    Hp = xpad.shape[1] - 2 * dmax
    off = dmax - d
    assert d % th == 0 and off % th == 0 and Hp % th == 0
    d_t, off_t = d // th, off // th
    b3 = bias.reshape(1, 1, Cp).astype(jnp.float32)

    out = pl.pallas_call(
        functools.partial(_dconv3x3_kernel, d=d, off=off, th=th, W=W),
        out_shape=jax.ShapeDtypeStruct((N, Hp, W, Cp), jnp.bfloat16),
        grid=(N, Hp // th, 3),
        in_specs=[
            pl.BlockSpec((1, th, Wp, Cin),
                         lambda n, i, kh: (n, i + kh * d_t + off_t, 0, 0)),
            pl.BlockSpec((1, 3, Cin, Cp), lambda n, i, kh: (kh, 0, 0, 0)),
            pl.BlockSpec((1, 1, Cp), lambda n, i, kh: (0, 0, 0)),
        ],
        out_specs=pl.BlockSpec((1, th, W, Cp), lambda n, i, kh: (n, i, 0, 0)),
        scratch_shapes=[pltpu.VMEM((th, W, Cp), jnp.float32)],
        compiler_params=pltpu.CompilerParams(
            dimension_semantics=("parallel", "parallel", "arbitrary"),
            vmem_limit_bytes=_VMEM_LIMIT),
    )(xpad, w, b3)
    return out[:, :H] if Hp != H else out


# ----------------------------------------------------------------------------
# Kernel 3: concat-free final 1x1 conv, with the pooled-branch bilinear
# upsample folded in (the upsampled tensor and the concat never hit HBM)
# ----------------------------------------------------------------------------
def _c5_fused_kernel(wup_ref, z0_ref, x1_ref, x2_ref, x3_ref, x4_ref,
                     w1_ref, w2_ref, w3_ref, w4_ref, b_ref, o_ref):
    # pooled branch: z0 already carries its c5 weight slice; upsample = matmul
    acc = jnp.dot(wup_ref[...], z0_ref[0], preferred_element_type=jnp.float32)
    acc += jnp.dot(x1_ref[0], w1_ref[...], preferred_element_type=jnp.float32)
    acc += jnp.dot(x2_ref[0], w2_ref[...], preferred_element_type=jnp.float32)
    acc += jnp.dot(x3_ref[0], w3_ref[...], preferred_element_type=jnp.float32)
    acc += jnp.dot(x4_ref[0], w4_ref[...], preferred_element_type=jnp.float32)
    o_ref[0] = jnp.maximum(acc + b_ref[...], 0.0).astype(o_ref.dtype)


def conv1x1_c5_fused(wup, z0, xs, w5, bias):
    """wup: (H*W, 4) f32 bilinear weights; z0: (N, 4, Cp) f32 (= relu(pool-conv) @ W5[0]);
    xs: 4 branch outputs (N, H*W, Cp) bf16; w5: (5, Cp, Cp) bf16; bias: (Cp,) f32."""
    N, HW, Cp = xs[0].shape
    tm = _pick_row_tile(HW)
    b2 = bias.reshape(1, Cp).astype(jnp.float32)
    branch_spec = pl.BlockSpec((1, tm, Cp), lambda n, i: (n, i, 0))
    w_spec = pl.BlockSpec((Cp, Cp), lambda n, i: (0, 0))
    return pl.pallas_call(
        _c5_fused_kernel,
        out_shape=jax.ShapeDtypeStruct((N, HW, Cp), jnp.float32),
        grid=(N, HW // tm),
        in_specs=[
            pl.BlockSpec((tm, 4), lambda n, i: (i, 0)),
            pl.BlockSpec((1, 4, Cp), lambda n, i: (n, 0, 0)),
            branch_spec, branch_spec, branch_spec, branch_spec,
            w_spec, w_spec, w_spec, w_spec,
            pl.BlockSpec((1, Cp), lambda n, i: (0, 0)),
        ],
        out_specs=pl.BlockSpec((1, tm, Cp), lambda n, i: (n, i, 0)),
        compiler_params=pltpu.CompilerParams(
            dimension_semantics=("parallel", "parallel"),
            vmem_limit_bytes=_VMEM_LIMIT),
    )(wup, z0, xs[0], xs[1], xs[2], xs[3], w5[1], w5[2], w5[3], w5[4], b2)


# ----------------------------------------------------------------------------
# Full ASPP forward
# ----------------------------------------------------------------------------
def aspp_forward(x_nchw, f, out_c):
    x = jnp.transpose(x_nchw, (0, 2, 3, 1)).astype(jnp.bfloat16)   # NCHW -> NHWC
    N, H, W, Cin = x.shape
    assert H % 2 == 0 and W % 2 == 0 and H > 1 and W > 1
    Cp = f["c1"]["w"].shape[-1]

    # pooled branch: AdaptiveAvgPool2d((2,2)) -> 1x1 conv + BN + ReLU
    pooled = x.astype(jnp.float32).reshape(N, 2, H // 2, 2, W // 2, Cin).mean(axis=(2, 4))
    y0 = matmul_bias_act(pooled.reshape(N * 4, Cin).astype(jnp.bfloat16),
                         f["avg"]["w"], f["avg"]["b"],
                         act=True, out_dtype=jnp.bfloat16)               # (N*4, Cp)
    # fold branch 0 straight into c5: z0 = relu(...) @ W5[branch0]
    z0 = matmul_bias_act(y0, f["c5"]["w"][0], jnp.zeros((Cp,), jnp.float32),
                         act=False, out_dtype=jnp.float32).reshape(N, 4, Cp)

    # 1x1 branch
    x1 = matmul_bias_act(x.reshape(N * H * W, Cin), f["c1"]["w"], f["c1"]["b"],
                         act=True, out_dtype=jnp.bfloat16).reshape(N, H * W, Cp)

    # dilated 3x3 branches: one shared zero-padded copy of x, fused conv kernels.
    # th must divide every dilation {6,12,18} and every offset {12,6,0}: th | 6.
    dmax = 18
    th = 6 if H >= 6 else 2
    Hp = _round_up(H, th)
    xpad = jnp.pad(x, ((0, 0), (dmax, dmax + (Hp - H)), (dmax, dmax), (0, 0)))
    x2 = conv3x3_dilated_bn_relu(xpad, f["c2"]["w"], f["c2"]["b"],
                                 d=6, dmax=dmax, H=H, W=W, th=th).reshape(N, H * W, Cp)
    x3 = conv3x3_dilated_bn_relu(xpad, f["c3"]["w"], f["c3"]["b"],
                                 d=12, dmax=dmax, H=H, W=W, th=th).reshape(N, H * W, Cp)
    x4 = conv3x3_dilated_bn_relu(xpad, f["c4"]["w"], f["c4"]["b"],
                                 d=18, dmax=dmax, H=H, W=W, th=th).reshape(N, H * W, Cp)

    # bilinear (align_corners=True) interpolation weights for the pooled branch
    ty = jnp.arange(H, dtype=jnp.float32) / (H - 1)
    tx = jnp.arange(W, dtype=jnp.float32) / (W - 1)
    Rh = jnp.stack([1.0 - ty, ty], axis=1)                               # (H, 2)
    Rw = jnp.stack([1.0 - tx, tx], axis=1)                               # (W, 2)
    wup = jnp.einsum("hi,wj->hwij", Rh, Rw).reshape(H * W, 4)            # (H*W, 4)

    out = conv1x1_c5_fused(wup, z0, [x1, x2, x3, x4], f["c5"]["w"], f["c5"]["b"])
    out = out.reshape(N, H, W, Cp)[..., :out_c]
    return jnp.transpose(out, (0, 3, 1, 2))                              # NHWC -> NCHW


# ----------------------------------------------------------------------------
# Parameter init (Conv HWIO + eval-mode folded BatchNorm) and folding
# ----------------------------------------------------------------------------
def init_conv_bn(key, kh, kw, cin, cout):
    k1, k2, k3, k4, k5 = jax.random.split(key, 5)
    w = 0.1 * jax.random.normal(k1, (kh, kw, cin, cout), jnp.float32)
    gamma = 0.5 + jax.random.uniform(k2, (cout,), jnp.float32)
    beta = 0.1 * jax.random.normal(k3, (cout,), jnp.float32)
    r_mean = 0.1 * jax.random.normal(k4, (cout,), jnp.float32)
    r_var = 0.5 + jax.random.uniform(k5, (cout,), jnp.float32)
    scale = gamma * jax.lax.rsqrt(r_var + 1e-5)
    bias = beta - r_mean * scale
    return {"w": w, "scale": scale, "bias": bias}


def fold_params(params, in_c, out_c):
    """Fold BN scale into conv weights, pad out-channels to a lane multiple (128),
    cast weights to bf16 (the f32 bias stays in the kernel epilogue)."""
    Cp = _round_up(out_c, _LANE)
    pad = Cp - out_c

    def fold(p):
        return p["w"] * p["scale"][None, None, None, :]

    def pad_b(p):
        return jnp.pad(p["bias"], (0, pad)).astype(jnp.float32)

    f = {}
    for name in ("avg", "c1"):
        w = jnp.pad(fold(params[name]), ((0, 0), (0, 0), (0, 0), (0, pad)))
        f[name] = {"w": w.reshape(in_c, Cp).astype(jnp.bfloat16), "b": pad_b(params[name])}
    for name in ("c2", "c3", "c4"):
        w = jnp.pad(fold(params[name]), ((0, 0), (0, 0), (0, 0), (0, pad)))
        f[name] = {"w": w.astype(jnp.bfloat16), "b": pad_b(params[name])}
    w5 = fold(params["c5"]).reshape(5, out_c, out_c)          # grouped by branch
    w5p = jnp.zeros((5, Cp, Cp), jnp.float32).at[:, :out_c, :out_c].set(w5)
    f["c5"] = {"w": w5p.astype(jnp.bfloat16), "b": pad_b(params["c5"])}
    return f


# ----------------------------------------------------------------------------
# Pure-JAX reference (lax.conv_general_dilated) on the same folded/bf16 weights
# ----------------------------------------------------------------------------
def aspp_reference(x_nchw, f, in_c, out_c):
    Cp = f["c1"]["w"].shape[-1]
    x = jnp.transpose(x_nchw, (0, 2, 3, 1)).astype(jnp.bfloat16).astype(jnp.float32)
    N, H, W, _ = x.shape

    def conv(xin, w4d, b, d=1, pad=0, relu=True):
        y = jax.lax.conv_general_dilated(
            xin, w4d.astype(jnp.float32), (1, 1), ((pad, pad), (pad, pad)),
            rhs_dilation=(d, d), dimension_numbers=("NHWC", "HWIO", "NHWC"),
            precision=jax.lax.Precision.HIGHEST) + b
        return jnp.maximum(y, 0.0) if relu else y

    def r(v):  # mirror the bf16 storage of intermediates in the kernel path
        return v.astype(jnp.bfloat16).astype(jnp.float32)

    pooled = r(x.reshape(N, 2, H // 2, 2, W // 2, in_c).mean(axis=(2, 4)))
    y0 = r(conv(pooled, f["avg"]["w"].reshape(1, 1, in_c, Cp), f["avg"]["b"]))
    ty = jnp.arange(H, dtype=jnp.float32) / (H - 1)
    tx = jnp.arange(W, dtype=jnp.float32) / (W - 1)
    Rh = jnp.stack([1.0 - ty, ty], axis=1)
    Rw = jnp.stack([1.0 - tx, tx], axis=1)
    x0 = jnp.einsum("hi,wj,nijc->nhwc", Rh, Rw, y0,
                    precision=jax.lax.Precision.HIGHEST)
    x1 = r(conv(x, f["c1"]["w"].reshape(1, 1, in_c, Cp), f["c1"]["b"]))
    x2 = r(conv(x, f["c2"]["w"], f["c2"]["b"], d=6, pad=6))
    x3 = r(conv(x, f["c3"]["w"], f["c3"]["b"], d=12, pad=12))
    x4 = r(conv(x, f["c4"]["w"], f["c4"]["b"], d=18, pad=18))
    xc = jnp.concatenate([x0, x1, x2, x3, x4], axis=-1)
    w5 = f["c5"]["w"].reshape(1, 1, 5 * Cp, Cp)
    out = conv(xc, w5, f["c5"]["b"])
    return jnp.transpose(out[..., :out_c], (0, 3, 1, 2))


if __name__ == "__main__":
    key = jax.random.PRNGKey(0)
    kx, kp = jax.random.split(key)
    in_c, out_c = 4, 8
    N, H, W = 2, 16, 16

    x = jax.random.normal(kx, (N, in_c, H, W), jnp.float32)     # NCHW, like PyTorch

    ks = jax.random.split(kp, 6)
    params = {
        "avg": init_conv_bn(ks[0], 1, 1, in_c, out_c),
        "c1":  init_conv_bn(ks[1], 1, 1, in_c, out_c),
        "c2":  init_conv_bn(ks[2], 3, 3, in_c, out_c),
        "c3":  init_conv_bn(ks[3], 3, 3, in_c, out_c),
        "c4":  init_conv_bn(ks[4], 3, 3, in_c, out_c),
        "c5":  init_conv_bn(ks[5], 1, 1, out_c * 5, out_c),
    }
    fparams = fold_params(params, in_c, out_c)

    fwd = jax.jit(aspp_forward, static_argnums=(2,))
    out = jax.block_until_ready(fwd(x, fparams, out_c))

    ref = aspp_reference(x, fparams, in_c, out_c)
    assert out.shape == (N, out_c, H, W), out.shape
    max_err = float(jnp.max(jnp.abs(out - ref)))
    assert jnp.allclose(out, ref, atol=1e-2, rtol=1e-2), max_err
    print("KERNEL_OK")
</pallas_src>

<mosaic_0001>
module attributes {stable_mosaic.version = 11 : i64} {
  func.func @_mm_bias_act_kernel(%arg0: i32, %arg1: i32, %arg2: i32, %arg3: memref<8x4xbf16, #tpu.memory_space<vmem>>, %arg4: memref<4x128xbf16, #tpu.memory_space<vmem>>, %arg5: memref<1x128xf32, #tpu.memory_space<vmem>>, %arg6: memref<8x128xbf16, #tpu.memory_space<vmem>>, %arg7: memref<8x128xf32, #tpu.memory_space<vmem>>) attributes {dimension_semantics = [#tpu.dimension_semantics<parallel>, #tpu.dimension_semantics<parallel>, #tpu.dimension_semantics<arbitrary>], iteration_bounds = array<i64: 1, 1, 1>, scalar_prefetch = 0 : i64, scratch_operands = 1 : i64, tpu.core_type = #tpu.core_type<tc>, window_params = [{transform_indices = @transform_0, window_bounds = array<i64: 8, 4>}, {transform_indices = @transform_1, window_bounds = array<i64: 4, 128>}, {transform_indices = @transform_2, window_bounds = array<i64: 1, 128>}, {transform_indices = @transform_3, window_bounds = array<i64: 8, 128>}]} {
    %c0_i32 = arith.constant 0 : i32
    %0 = arith.cmpi eq, %arg2, %c0_i32 : i32
    %1 = arith.extui %0 : i1 to i32
    %c0_i32_0 = arith.constant 0 : i32
    %2 = arith.cmpi ne, %1, %c0_i32_0 : i32
    scf.if %2 {
      %cst_10 = arith.constant 0.000000e+00 : f32
      %12 = vector.broadcast %cst_10 : f32 to vector<8x128xf32>
      %c0_11 = arith.constant 0 : index
      %c0_12 = arith.constant 0 : index
      %13 = vector.load %arg7[%c0_11, %c0_12] : memref<8x128xf32, #tpu.memory_space<vmem>>, vector<8x128xf32>
      tpu.vector_store %arg7[%c0_11, %c0_12], %12 {strides = array<i32>} : memref<8x128xf32, #tpu.memory_space<vmem>>, vector<8x128xf32>,
    } else {
    }
    %c0 = arith.constant 0 : index
    %c0_1 = arith.constant 0 : index
    %3 = vector.load %arg7[%c0, %c0_1] : memref<8x128xf32, #tpu.memory_space<vmem>>, vector<8x128xf32>
    %c0_2 = arith.constant 0 : index
    %c0_3 = arith.constant 0 : index
    %4 = vector.load %arg3[%c0_2, %c0_3] : memref<8x4xbf16, #tpu.memory_space<vmem>>, vector<8x4xbf16>
    %c0_4 = arith.constant 0 : index
    %c0_5 = arith.constant 0 : index
    %5 = vector.load %arg4[%c0_4, %c0_5] : memref<4x128xbf16, #tpu.memory_space<vmem>>, vector<4x128xbf16>
    %cst = arith.constant dense<0.000000e+00> : vector<8x128xf32>
    %6 = tpu.matmul %4, %5, %cst {dimension_numbers = #tpu.dot_dimension_numbers<[1], [0], [0], [1], [0, 0, 1, 1], [], []>} : vector<8x4xbf16>, vector<4x128xbf16>, vector<8x128xf32> -> vector<8x128xf32>
    %7 = arith.addf %3, %6 : vector<8x128xf32>
    %c0_6 = arith.constant 0 : index
    %c0_7 = arith.constant 0 : index
    %8 = vector.load %arg7[%c0_6, %c0_7] : memref<8x128xf32, #tpu.memory_space<vmem>>, vector<8x128xf32>
    tpu.vector_store %arg7[%c0_6, %c0_7], %7 {strides = array<i32>} : memref<8x128xf32, #tpu.memory_space<vmem>>, vector<8x128xf32>,
    %c0_i32_8 = arith.constant 0 : i32
    %9 = arith.cmpi eq, %arg2, %c0_i32_8 : i32
    %10 = arith.extui %9 : i1 to i32
    %c0_i32_9 = arith.constant 0 : i32
    %11 = arith.cmpi ne, %10, %c0_i32_9 : i32
    scf.if %11 {
      %c0_10 = arith.constant 0 : index
      %c0_11 = arith.constant 0 : index
      %12 = vector.load %arg7[%c0_10, %c0_11] : memref<8x128xf32, #tpu.memory_space<vmem>>, vector<8x128xf32>
      %c0_12 = arith.constant 0 : index
      %c0_13 = arith.constant 0 : index
      %13 = vector.load %arg5[%c0_12, %c0_13] : memref<1x128xf32, #tpu.memory_space<vmem>>, vector<1x128xf32>
      %14 = vector.broadcast %13 : vector<1x128xf32> to vector<8x128xf32>
      %15 = arith.addf %12, %14 : vector<8x128xf32>
      %cst_14 = arith.constant 0.000000e+00 : f32
      %16 = vector.broadcast %cst_14 : f32 to vector<8x128xf32>
      %17 = arith.maximumf %15, %16 : vector<8x128xf32>
      %18 = arith.truncf %17 : vector<8x128xf32> to vector<8x128xbf16>
      %c0_15 = arith.constant 0 : index
      %c0_16 = arith.constant 0 : index
      %19 = vector.load %arg6[%c0_15, %c0_16] : memref<8x128xbf16, #tpu.memory_space<vmem>>, vector<8x128xbf16>
      tpu.vector_store %arg6[%c0_15, %c0_16], %18 {strides = array<i32>} : memref<8x128xbf16, #tpu.memory_space<vmem>>, vector<8x128xbf16>,
    } else {
    }
    return
  }
  func.func @transform_0(%arg0: i32, %arg1: i32, %arg2: i32) -> (i32, i32) {
    %c0_i32 = arith.constant 0 : i32
    return %arg0, %arg2 : i32, i32
  }
  func.func @transform_1(%arg0: i32, %arg1: i32, %arg2: i32) -> (i32, i32) {
    %c0_i32 = arith.constant 0 : i32
    return %arg2, %arg1 : i32, i32
  }
  func.func @transform_2(%arg0: i32, %arg1: i32, %arg2: i32) -> (i32, i32) {
    %c0_i32 = arith.constant 0 : i32
    %c0_i32_0 = arith.constant 0 : i32
    return %c0_i32, %arg1 : i32, i32
  }
  func.func @transform_3(%arg0: i32, %arg1: i32, %arg2: i32) -> (i32, i32) {
    %c0_i32 = arith.constant 0 : i32
    return %arg0, %arg1 : i32, i32
  }
}

module attributes {stable_mosaic.version = 11 : i64} {
  func.func @_mm_bias_act_kernel(%arg0: i32, %arg1: i32, %arg2: i32, %arg3: memref<8x128xbf16, #tpu.memory_space<vmem>>, %arg4: memref<128x128xbf16, #tpu.memory_space<vmem>>, %arg5: memref<1x128xf32, #tpu.memory_space<vmem>>, %arg6: memref<8x128xf32, #tpu.memory_space<vmem>>, %arg7: memref<8x128xf32, #tpu.memory_space<vmem>>) attributes {dimension_semantics = [#tpu.dimension_semantics<parallel>, #tpu.dimension_semantics<parallel>, #tpu.dimension_semantics<arbitrary>], iteration_bounds = array<i64: 1, 1, 1>, scalar_prefetch = 0 : i64, scratch_operands = 1 : i64, tpu.core_type = #tpu.core_type<tc>, window_params = [{transform_indices = @transform_0, window_bounds = array<i64: 8, 128>}, {transform_indices = @transform_1, window_bounds = array<i64: 128, 128>}, {transform_indices = @transform_2, window_bounds = array<i64: 1, 128>}, {transform_indices = @transform_3, window_bounds = array<i64: 8, 128>}]} {
    %c0_i32 = arith.constant 0 : i32
    %0 = arith.cmpi eq, %arg2, %c0_i32 : i32
    %1 = arith.extui %0 : i1 to i32
    %c0_i32_0 = arith.constant 0 : i32
    %2 = arith.cmpi ne, %1, %c0_i32_0 : i32
    scf.if %2 {
      %cst_10 = arith.constant 0.000000e+00 : f32
      %12 = vector.broadcast %cst_10 : f32 to vector<8x128xf32>
      %c0_11 = arith.constant 0 : index
      %c0_12 = arith.constant 0 : index
      %13 = vector.load %arg7[%c0_11, %c0_12] : memref<8x128xf32, #tpu.memory_space<vmem>>, vector<8x128xf32>
      tpu.vector_store %arg7[%c0_11, %c0_12], %12 {strides = array<i32>} : memref<8x128xf32, #tpu.memory_space<vmem>>, vector<8x128xf32>,
    } else {
    }
    %c0 = arith.constant 0 : index
    %c0_1 = arith.constant 0 : index
    %3 = vector.load %arg7[%c0, %c0_1] : memref<8x128xf32, #tpu.memory_space<vmem>>, vector<8x128xf32>
    %c0_2 = arith.constant 0 : index
    %c0_3 = arith.constant 0 : index
    %4 = vector.load %arg3[%c0_2, %c0_3] : memref<8x128xbf16, #tpu.memory_space<vmem>>, vector<8x128xbf16>
    %c0_4 = arith.constant 0 : index
    %c0_5 = arith.constant 0 : index
    %5 = vector.load %arg4[%c0_4, %c0_5] : memref<128x128xbf16, #tpu.memory_space<vmem>>, vector<128x128xbf16>
    %cst = arith.constant dense<0.000000e+00> : vector<8x128xf32>
    %6 = tpu.matmul %4, %5, %cst {dimension_numbers = #tpu.dot_dimension_numbers<[1], [0], [0], [1], [0, 0, 1, 1], [], []>} : vector<8x128xbf16>, vector<128x128xbf16>, vector<8x128xf32> -> vector<8x128xf32>
    %7 = arith.addf %3, %6 : vector<8x128xf32>
    %c0_6 = arith.constant 0 : index
    %c0_7 = arith.constant 0 : index
    %8 = vector.load %arg7[%c0_6, %c0_7] : memref<8x128xf32, #tpu.memory_space<vmem>>, vector<8x128xf32>
    tpu.vector_store %arg7[%c0_6, %c0_7], %7 {strides = array<i32>} : memref<8x128xf32, #tpu.memory_space<vmem>>, vector<8x128xf32>,
    %c0_i32_8 = arith.constant 0 : i32
    %9 = arith.cmpi eq, %arg2, %c0_i32_8 : i32
    %10 = arith.extui %9 : i1 to i32
    %c0_i32_9 = arith.constant 0 : i32
    %11 = arith.cmpi ne, %10, %c0_i32_9 : i32
    scf.if %11 {
      %c0_10 = arith.constant 0 : index
      %c0_11 = arith.constant 0 : index
      %12 = vector.load %arg7[%c0_10, %c0_11] : memref<8x128xf32, #tpu.memory_space<vmem>>, vector<8x128xf32>
      %c0_12 = arith.constant 0 : index
      %c0_13 = arith.constant 0 : index
      %13 = vector.load %arg5[%c0_12, %c0_13] : memref<1x128xf32, #tpu.memory_space<vmem>>, vector<1x128xf32>
      %14 = vector.broadcast %13 : vector<1x128xf32> to vector<8x128xf32>
      %15 = arith.addf %12, %14 : vector<8x128xf32>
      %c0_14 = arith.constant 0 : index
      %c0_15 = arith.constant 0 : index
      %16 = vector.load %arg6[%c0_14, %c0_15] : memref<8x128xf32, #tpu.memory_space<vmem>>, vector<8x128xf32>
      tpu.vector_store %arg6[%c0_14, %c0_15], %15 {strides = array<i32>} : memref<8x128xf32, #tpu.memory_space<vmem>>, vector<8x128xf32>,
    } else {
    }
    return
  }
  func.func @transform_0(%arg0: i32, %arg1: i32, %arg2: i32) -> (i32, i32) {
    %c0_i32 = arith.constant 0 : i32
    return %arg0, %arg2 : i32, i32
  }
  func.func @transform_1(%arg0: i32, %arg1: i32, %arg2: i32) -> (i32, i32) {
    %c0_i32 = arith.constant 0 : i32
    return %arg2, %arg1 : i32, i32
  }
  func.func @transform_2(%arg0: i32, %arg1: i32, %arg2: i32) -> (i32, i32) {
    %c0_i32 = arith.constant 0 : i32
    %c0_i32_0 = arith.constant 0 : i32
    return %c0_i32, %arg1 : i32, i32
  }
  func.func @transform_3(%arg0: i32, %arg1: i32, %arg2: i32) -> (i32, i32) {
    %c0_i32 = arith.constant 0 : i32
    return %arg0, %arg1 : i32, i32
  }
}

module attributes {stable_mosaic.version = 11 : i64} {
  func.func @_dconv3x3_kernel(%arg0: i32, %arg1: i32, %arg2: i32, %arg3: memref<1x6x52x4xbf16, #tpu.memory_space<vmem>>, %arg4: memref<1x3x4x128xbf16, #tpu.memory_space<vmem>>, %arg5: memref<1x1x128xf32, #tpu.memory_space<vmem>>, %arg6: memref<1x6x16x128xbf16, #tpu.memory_space<vmem>>, %arg7: memref<6x16x128xf32, #tpu.memory_space<vmem>>) attributes {dimension_semantics = [#tpu.dimension_semantics<parallel>, #tpu.dimension_semantics<parallel>, #tpu.dimension_semantics<arbitrary>], iteration_bounds = array<i64: 2, 3, 3>, scalar_prefetch = 0 : i64, scratch_operands = 1 : i64, tpu.core_type = #tpu.core_type<tc>, window_params = [{transform_indices = @transform_0, window_bounds = array<i64: 1, 6, 52, 4>}, {transform_indices = @transform_1, window_bounds = array<i64: 1, 3, 4, 128>}, {pipeline_mode = #tpu.pipeline_mode<synchronous>, transform_indices = @transform_2, window_bounds = array<i64: 1, 1, 128>}, {transform_indices = @transform_3, window_bounds = array<i64: 1, 6, 16, 128>}]} {
    %c0_i32 = arith.constant 0 : i32
    %0 = arith.cmpi eq, %arg2, %c0_i32 : i32
    %1 = arith.extui %0 : i1 to i32
    %c0_i32_0 = arith.constant 0 : i32
    %2 = arith.cmpi ne, %1, %c0_i32_0 : i32
    scf.if %2 {
      %cst_190 = arith.constant 0.000000e+00 : f32
      %144 = vector.broadcast %cst_190 : f32 to vector<6x16x128xf32>
      %c0_191 = arith.constant 0 : index
      %c0_192 = arith.constant 0 : index
      %c0_193 = arith.constant 0 : index
      %145 = vector.load %arg7[%c0_191, %c0_192, %c0_193] : memref<6x16x128xf32, #tpu.memory_space<vmem>>, vector<6x16x128xf32>
      tpu.vector_store %arg7[%c0_191, %c0_192, %c0_193], %144 {strides = array<i32>} : memref<6x16x128xf32, #tpu.memory_space<vmem>>, vector<6x16x128xf32>,
    } else {
    }
    %c0 = arith.constant 0 : index
    %c0_1 = arith.constant 0 : index
    %c0_2 = arith.constant 0 : index
    %c0_3 = arith.constant 0 : index
    %3 = vector.load %arg4[%c0, %c0_1, %c0_2, %c0_3] : memref<1x3x4x128xbf16, #tpu.memory_space<vmem>>, vector<1x1x4x128xbf16>
    %4 = vector.shape_cast %3 : vector<1x1x4x128xbf16> to vector<4x128xbf16>
    %c0_4 = arith.constant 0 : index
    %c0_5 = arith.constant 0 : index
    %c12 = arith.constant 12 : index
    %c0_6 = arith.constant 0 : index
    %5 = vector.load %arg3[%c0_4, %c0_5, %c12, %c0_6] : memref<1x6x52x4xbf16, #tpu.memory_space<vmem>>, vector<1x1x16x4xbf16>
    %6 = vector.shape_cast %5 : vector<1x1x16x4xbf16> to vector<16x4xbf16>
    %cst = arith.constant dense<0.000000e+00> : vector<16x128xf32>
    %7 = tpu.matmul %6, %4, %cst {dimension_numbers = #tpu.dot_dimension_numbers<[1], [0], [0], [1], [0, 0, 1, 1], [], []>} : vector<16x4xbf16>, vector<4x128xbf16>, vector<16x128xf32> -> vector<16x128xf32>
    %c0_7 = arith.constant 0 : index
    %c1 = arith.constant 1 : index
    %c0_8 = arith.constant 0 : index
    %c0_9 = arith.constant 0 : index
    %8 = vector.load %arg4[%c0_7, %c1, %c0_8, %c0_9] : memref<1x3x4x128xbf16, #tpu.memory_space<vmem>>, vector<1x1x4x128xbf16>
    %9 = vector.shape_cast %8 : vector<1x1x4x128xbf16> to vector<4x128xbf16>
    %c0_10 = arith.constant 0 : index
    %c0_11 = arith.constant 0 : index
    %c18 = arith.constant 18 : index
    %c0_12 = arith.constant 0 : index
    %10 = vector.load %arg3[%c0_10, %c0_11, %c18, %c0_12] : memref<1x6x52x4xbf16, #tpu.memory_space<vmem>>, vector<1x1x16x4xbf16>
    %11 = vector.shape_cast %10 : vector<1x1x16x4xbf16> to vector<16x4xbf16>
    %cst_13 = arith.constant dense<0.000000e+00> : vector<16x128xf32>
    %12 = tpu.matmul %11, %9, %cst_13 {dimension_numbers = #tpu.dot_dimension_numbers<[1], [0], [0], [1], [0, 0, 1, 1], [], []>} : vector<16x4xbf16>, vector<4x128xbf16>, vector<16x128xf32> -> vector<16x128xf32>
    %13 = arith.addf %7, %12 : vector<16x128xf32>
    %c0_14 = arith.constant 0 : index
    %c2 = arith.constant 2 : index
    %c0_15 = arith.constant 0 : index
    %c0_16 = arith.constant 0 : index
    %14 = vector.load %arg4[%c0_14, %c2, %c0_15, %c0_16] : memref<1x3x4x128xbf16, #tpu.memory_space<vmem>>, vector<1x1x4x128xbf16>
    %15 = vector.shape_cast %14 : vector<1x1x4x128xbf16> to vector<4x128xbf16>
    %c0_17 = arith.constant 0 : index
    %c0_18 = arith.constant 0 : index
    %c24 = arith.constant 24 : index
    %c0_19 = arith.constant 0 : index
    %16 = vector.load %arg3[%c0_17, %c0_18, %c24, %c0_19] : memref<1x6x52x4xbf16, #tpu.memory_space<vmem>>, vector<1x1x16x4xbf16>
    %17 = vector.shape_cast %16 : vector<1x1x16x4xbf16> to vector<16x4xbf16>
    %cst_20 = arith.constant dense<0.000000e+00> : vector<16x128xf32>
    %18 = tpu.matmul %17, %15, %cst_20 {dimension_numbers = #tpu.dot_dimension_numbers<[1], [0], [0], [1], [0, 0, 1, 1], [], []>} : vector<16x4xbf16>, vector<4x128xbf16>, vector<16x128xf32> -> vector<16x128xf32>
    %19 = arith.addf %13, %18 : vector<16x128xf32>
    %c0_21 = arith.constant 0 : index
    %c0_22 = arith.constant 0 : index
    %c0_23 = arith.constant 0 : index
    %20 = vector.load %arg7[%c0_21, %c0_22, %c0_23] : memref<6x16x128xf32, #tpu.memory_space<vmem>>, vector<1x16x128xf32>
    %21 = vector.shape_cast %20 : vector<1x16x128xf32> to vector<16x128xf32>
    %22 = arith.addf %21, %19 : vector<16x128xf32>
    %c0_24 = arith.constant 0 : index
    %c0_25 = arith.constant 0 : index
    %c0_26 = arith.constant 0 : index
    %23 = vector.load %arg7[%c0_24, %c0_25, %c0_26] : memref<6x16x128xf32, #tpu.memory_space<vmem>>, vector<1x16x128xf32>
    %24 = vector.shape_cast %23 : vector<1x16x128xf32> to vector<16x128xf32>
    %25 = vector.shape_cast %22 : vector<16x128xf32> to vector<1x16x128xf32>
    tpu.vector_store %arg7[%c0_24, %c0_25, %c0_26], %25 {strides = array<i32>} : memref<6x16x128xf32, #tpu.memory_space<vmem>>, vector<1x16x128xf32>,
    %c0_27 = arith.constant 0 : index
    %c0_28 = arith.constant 0 : index
    %c0_29 = arith.constant 0 : index
    %c0_30 = arith.constant 0 : index
    %26 = vector.load %arg4[%c0_27, %c0_28, %c0_29, %c0_30] : memref<1x3x4x128xbf16, #tpu.memory_space<vmem>>, vector<1x1x4x128xbf16>
    %27 = vector.shape_cast %26 : vector<1x1x4x128xbf16> to vector<4x128xbf16>
    %c0_31 = arith.constant 0 : index
    %c1_32 = arith.constant 1 : index
    %c12_33 = arith.constant 12 : index
    %c0_34 = arith.constant 0 : index
    %28 = vector.load %arg3[%c0_31, %c1_32, %c12_33, %c0_34] : memref<1x6x52x4xbf16, #tpu.memory_space<vmem>>, vector<1x1x16x4xbf16>
    %29 = vector.shape_cast %28 : vector<1x1x16x4xbf16> to vector<16x4xbf16>
    %cst_35 = arith.constant dense<0.000000e+00> : vector<16x128xf32>
    %30 = tpu.matmul %29, %27, %cst_35 {dimension_numbers = #tpu.dot_dimension_numbers<[1], [0], [0], [1], [0, 0, 1, 1], [], []>} : vector<16x4xbf16>, vector<4x128xbf16>, vector<16x128xf32> -> vector<16x128xf32>
    %c0_36 = arith.constant 0 : index
    %c1_37 = arith.constant 1 : index
    %c0_38 = arith.constant 0 : index
    %c0_39 = arith.constant 0 : index
    %31 = vector.load %arg4[%c0_36, %c1_37, %c0_38, %c0_39] : memref<1x3x4x128xbf16, #tpu.memory_space<vmem>>, vector<1x1x4x128xbf16>
    %32 = vector.shape_cast %31 : vector<1x1x4x128xbf16> to vector<4x128xbf16>
    %c0_40 = arith.constant 0 : index
    %c1_41 = arith.constant 1 : index
    %c18_42 = arith.constant 18 : index
    %c0_43 = arith.constant 0 : index
    %33 = vector.load %arg3[%c0_40, %c1_41, %c18_42, %c0_43] : memref<1x6x52x4xbf16, #tpu.memory_space<vmem>>, vector<1x1x16x4xbf16>
    %34 = vector.shape_cast %33 : vector<1x1x16x4xbf16> to vector<16x4xbf16>
    %cst_44 = arith.constant dense<0.000000e+00> : vector<16x128xf32>
    %35 = tpu.matmul %34, %32, %cst_44 {dimension_numbers = #tpu.dot_dimension_numbers<[1], [0], [0], [1], [0, 0, 1, 1], [], []>} : vector<16x4xbf16>, vector<4x128xbf16>, vector<16x128xf32> -> vector<16x128xf32>
    %36 = arith.addf %30, %35 : vector<16x128xf32>
    %c0_45 = arith.constant 0 : index
    %c2_46 = arith.constant 2 : index
    %c0_47 = arith.constant 0 : index
    %c0_48 = arith.constant 0 : index
    %37 = vector.load %arg4[%c0_45, %c2_46, %c0_47, %c0_48] : memref<1x3x4x128xbf16, #tpu.memory_space<vmem>>, vector<1x1x4x128xbf16>
    %38 = vector.shape_cast %37 : vector<1x1x4x128xbf16> to vector<4x128xbf16>
    %c0_49 = arith.constant 0 : index
    %c1_50 = arith.constant 1 : index
    %c24_51 = arith.constant 24 : index
    %c0_52 = arith.constant 0 : index
    %39 = vector.load %arg3[%c0_49, %c1_50, %c24_51, %c0_52] : memref<1x6x52x4xbf16, #tpu.memory_space<vmem>>, vector<1x1x16x4xbf16>
    %40 = vector.shape_cast %39 : vector<1x1x16x4xbf16> to vector<16x4xbf16>
    %cst_53 = arith.constant dense<0.000000e+00> : vector<16x128xf32>
    %41 = tpu.matmul %40, %38, %cst_53 {dimension_numbers = #tpu.dot_dimension_numbers<[1], [0], [0], [1], [0, 0, 1, 1], [], []>} : vector<16x4xbf16>, vector<4x128xbf16>, vector<16x128xf32> -> vector<16x128xf32>
    %42 = arith.addf %36, %41 : vector<16x128xf32>
    %c1_54 = arith.constant 1 : index
    %c0_55 = arith.constant 0 : index
    %c0_56 = arith.constant 0 : index
    %43 = vector.load %arg7[%c1_54, %c0_55, %c0_56] : memref<6x16x128xf32, #tpu.memory_space<vmem>>, vector<1x16x128xf32>
    %44 = vector.shape_cast %43 : vector<1x16x128xf32> to vector<16x128xf32>
    %45 = arith.addf %44, %42 : vector<16x128xf32>
    %c1_57 = arith.constant 1 : index
    %c0_58 = arith.constant 0 : index
    %c0_59 = arith.constant 0 : index
    %46 = vector.load %arg7[%c1_57, %c0_58, %c0_59] : memref<6x16x128xf32, #tpu.memory_space<vmem>>, vector<1x16x128xf32>
    %47 = vector.shape_cast %46 : vector<1x16x128xf32> to vector<16x128xf32>
    %48 = vector.shape_cast %45 : vector<16x128xf32> to vector<1x16x128xf32>
    tpu.vector_store %arg7[%c1_57, %c0_58, %c0_59], %48 {strides = array<i32>} : memref<6x16x128xf32, #tpu.memory_space<vmem>>, vector<1x16x128xf32>,
    %c0_60 = arith.constant 0 : index
    %c0_61 = arith.constant 0 : index
    %c0_62 = arith.constant 0 : index
    %c0_63 = arith.constant 0 : index
    %49 = vector.load %arg4[%c0_60, %c0_61, %c0_62, %c0_63] : memref<1x3x4x128xbf16, #tpu.memory_space<vmem>>, vector<1x1x4x128xbf16>
    %50 = vector.shape_cast %49 : vector<1x1x4x128xbf16> to vector<4x128xbf16>
    %c0_64 = arith.constant 0 : index
    %c2_65 = arith.constant 2 : index
    %c12_66 = arith.constant 12 : index
    %c0_67 = arith.constant 0 : index
    %51 = vector.load %arg3[%c0_64, %c2_65, %c12_66, %c0_67] : memref<1x6x52x4xbf16, #tpu.memory_space<vmem>>, vector<1x1x16x4xbf16>
    %52 = vector.shape_cast %51 : vector<1x1x16x4xbf16> to vector<16x4xbf16>
    %cst_68 = arith.constant dense<0.000000e+00> : vector<16x128xf32>
    %53 = tpu.matmul %52, %50, %cst_68 {dimension_numbers = #tpu.dot_dimension_numbers<[1], [0], [0], [1], [0, 0, 1, 1], [], []>} : vector<16x4xbf16>, vector<4x128xbf16>, vector<16x128xf32> -> vector<16x128xf32>
    %c0_69 = arith.constant 0 : index
    %c1_70 = arith.constant 1 : index
    %c0_71 = arith.constant 0 : index
    %c0_72 = arith.constant 0 : index
    %54 = vector.load %arg4[%c0_69, %c1_70, %c0_71, %c0_72] : memref<1x3x4x128xbf16, #tpu.memory_space<vmem>>, vector<1x1x4x128xbf16>
    %55 = vector.shape_cast %54 : vector<1x1x4x128xbf16> to vector<4x128xbf16>
    %c0_73 = arith.constant 0 : index
    %c2_74 = arith.constant 2 : index
    %c18_75 = arith.constant 18 : index
    %c0_76 = arith.constant 0 : index
    %56 = vector.load %arg3[%c0_73, %c2_74, %c18_75, %c0_76] : memref<1x6x52x4xbf16, #tpu.memory_space<vmem>>, vector<1x1x16x4xbf16>
    %57 = vector.shape_cast %56 : vector<1x1x16x4xbf16> to vector<16x4xbf16>
    %cst_77 = arith.constant dense<0.000000e+00> : vector<16x128xf32>
    %58 = tpu.matmul %57, %55, %cst_77 {dimension_numbers = #tpu.dot_dimension_numbers<[1], [0], [0], [1], [0, 0, 1, 1], [], []>} : vector<16x4xbf16>, vector<4x128xbf16>, vector<16x128xf32> -> vector<16x128xf32>
    %59 = arith.addf %53, %58 : vector<16x128xf32>
    %c0_78 = arith.constant 0 : index
    %c2_79 = arith.constant 2 : index
    %c0_80 = arith.constant 0 : index
    %c0_81 = arith.constant 0 : index
    %60 = vector.load %arg4[%c0_78, %c2_79, %c0_80, %c0_81] : memref<1x3x4x128xbf16, #tpu.memory_space<vmem>>, vector<1x1x4x128xbf16>
    %61 = vector.shape_cast %60 : vector<1x1x4x128xbf16> to vector<4x128xbf16>
    %c0_82 = arith.constant 0 : index
    %c2_83 = arith.constant 2 : index
    %c24_84 = arith.constant 24 : index
    %c0_85 = arith.constant 0 : index
    %62 = vector.load %arg3[%c0_82, %c2_83, %c24_84, %c0_85] : memref<1x6x52x4xbf16, #tpu.memory_space<vmem>>, vector<1x1x16x4xbf16>
    %63 = vector.shape_cast %62 : vector<1x1x16x4xbf16> to vector<16x4xbf16>
    %cst_86 = arith.constant dense<0.000000e+00> : vector<16x128xf32>
    %64 = tpu.matmul %63, %61, %cst_86 {dimension_numbers = #tpu.dot_dimension_numbers<[1], [0], [0], [1], [0, 0, 1, 1], [], []>} : vector<16x4xbf16>, vector<4x128xbf16>, vector<16x128xf32> -> vector<16x128xf32>
    %65 = arith.addf %59, %64 : vector<16x128xf32>
    %c2_87 = arith.constant 2 : index
    %c0_88 = arith.constant 0 : index
    %c0_89 = arith.constant 0 : index
    %66 = vector.load %arg7[%c2_87, %c0_88, %c0_89] : memref<6x16x128xf32, #tpu.memory_space<vmem>>, vector<1x16x128xf32>
    %67 = vector.shape_cast %66 : vector<1x16x128xf32> to vector<16x128xf32>
    %68 = arith.addf %67, %65 : vector<16x128xf32>
    %c2_90 = arith.constant 2 : index
    %c0_91 = arith.constant 0 : index
    %c0_92 = arith.constant 0 : index
    %69 = vector.load %arg7[%c2_90, %c0_91, %c0_92] : memref<6x16x128xf32, #tpu.memory_space<vmem>>, vector<1x16x128xf32>
    %70 = vector.shape_cast %69 : vector<1x16x128xf32> to vector<16x128xf32>
    %71 = vector.shape_cast %68 : vector<16x128xf32> to vector<1x16x128xf32>
    tpu.vector_store %arg7[%c2_90, %c0_91, %c0_92], %71 {strides = array<i32>} : memref<6x16x128xf32, #tpu.memory_space<vmem>>, vector<1x16x128xf32>,
    %c0_93 = arith.constant 0 : index
    %c0_94 = arith.constant 0 : index
    %c0_95 = arith.constant 0 : index
    %c0_96 = arith.constant 0 : index
    %72 = vector.load %arg4[%c0_93, %c0_94, %c0_95, %c0_96] : memref<1x3x4x128xbf16, #tpu.memory_space<vmem>>, vector<1x1x4x128xbf16>
    %73 = vector.shape_cast %72 : vector<1x1x4x128xbf16> to vector<4x128xbf16>
    %c0_97 = arith.constant 0 : index
    %c3 = arith.constant 3 : index
    %c12_98 = arith.constant 12 : index
    %c0_99 = arith.constant 0 : index
    %74 = vector.load %arg3[%c0_97, %c3, %c12_98, %c0_99] : memref<1x6x52x4xbf16, #tpu.memory_space<vmem>>, vector<1x1x16x4xbf16>
    %75 = vector.shape_cast %74 : vector<1x1x16x4xbf16> to vector<16x4xbf16>
    %cst_100 = arith.constant dense<0.000000e+00> : vector<16x128xf32>
    %76 = tpu.matmul %75, %73, %cst_100 {dimension_numbers = #tpu.dot_dimension_numbers<[1], [0], [0], [1], [0, 0, 1, 1], [], []>} : vector<16x4xbf16>, vector<4x128xbf16>, vector<16x128xf32> -> vector<16x128xf32>
    %c0_101 = arith.constant 0 : index
    %c1_102 = arith.constant 1 : index
    %c0_103 = arith.constant 0 : index
    %c0_104 = arith.constant 0 : index
    %77 = vector.load %arg4[%c0_101, %c1_102, %c0_103, %c0_104] : memref<1x3x4x128xbf16, #tpu.memory_space<vmem>>, vector<1x1x4x128xbf16>
    %78 = vector.shape_cast %77 : vector<1x1x4x128xbf16> to vector<4x128xbf16>
    %c0_105 = arith.constant 0 : index
    %c3_106 = arith.constant 3 : index
    %c18_107 = arith.constant 18 : index
    %c0_108 = arith.constant 0 : index
    %79 = vector.load %arg3[%c0_105, %c3_106, %c18_107, %c0_108] : memref<1x6x52x4xbf16, #tpu.memory_space<vmem>>, vector<1x1x16x4xbf16>
    %80 = vector.shape_cast %79 : vector<1x1x16x4xbf16> to vector<16x4xbf16>
    %cst_109 = arith.constant dense<0.000000e+00> : vector<16x128xf32>
    %81 = tpu.matmul %80, %78, %cst_109 {dimension_numbers = #tpu.dot_dimension_numbers<[1], [0], [0], [1], [0, 0, 1, 1], [], []>} : vector<16x4xbf16>, vector<4x128xbf16>, vector<16x128xf32> -> vector<16x128xf32>
    %82 = arith.addf %76, %81 : vector<16x128xf32>
    %c0_110 = arith.constant 0 : index
    %c2_111 = arith.constant 2 : index
    %c0_112 = arith.constant 0 : index
    %c0_113 = arith.constant 0 : index
    %83 = vector.load %arg4[%c0_110, %c2_111, %c0_112, %c0_113] : memref<1x3x4x128xbf16, #tpu.memory_space<vmem>>, vector<1x1x4x128xbf16>
    %84 = vector.shape_cast %83 : vector<1x1x4x128xbf16> to vector<4x128xbf16>
    %c0_114 = arith.constant 0 : index
    %c3_115 = arith.constant 3 : index
    %c24_116 = arith.constant 24 : index
    %c0_117 = arith.constant 0 : index
    %85 = vector.load %arg3[%c0_114, %c3_115, %c24_116, %c0_117] : memref<1x6x52x4xbf16, #tpu.memory_space<vmem>>, vector<1x1x16x4xbf16>
    %86 = vector.shape_cast %85 : vector<1x1x16x4xbf16> to vector<16x4xbf16>
    %cst_118 = arith.constant dense<0.000000e+00> : vector<16x128xf32>
    %87 = tpu.matmul %86, %84, %cst_118 {dimension_numbers = #tpu.dot_dimension_numbers<[1], [0], [0], [1], [0, 0, 1, 1], [], []>} : vector<16x4xbf16>, vector<4x128xbf16>, vector<16x128xf32> -> vector<16x128xf32>
    %88 = arith.addf %82, %87 : vector<16x128xf32>
    %c3_119 = arith.constant 3 : index
    %c0_120 = arith.constant 0 : index
    %c0_121 = arith.constant 0 : index
    %89 = vector.load %arg7[%c3_119, %c0_120, %c0_121] : memref<6x16x128xf32, #tpu.memory_space<vmem>>, vector<1x16x128xf32>
    %90 = vector.shape_cast %89 : vector<1x16x128xf32> to vector<16x128xf32>
    %91 = arith.addf %90, %88 : vector<16x128xf32>
    %c3_122 = arith.constant 3 : index
    %c0_123 = arith.constant 0 : index
    %c0_124 = arith.constant 0 : index
    %92 = vector.load %arg7[%c3_122, %c0_123, %c0_124] : memref<6x16x128xf32, #tpu.memory_space<vmem>>, vector<1x16x128xf32>
    %93 = vector.shape_cast %92 : vector<1x16x128xf32> to vector<16x128xf32>
    %94 = vector.shape_cast %91 : vector<16x128xf32> to vector<1x16x128xf32>
    tpu.vector_store %arg7[%c3_122, %c0_123, %c0_124], %94 {strides = array<i32>} : memref<6x16x128xf32, #tpu.memory_space<vmem>>, vector<1x16x128xf32>,
    %c0_125 = arith.constant 0 : index
    %c0_126 = arith.constant 0 : index
    %c0_127 = arith.constant 0 : index
    %c0_128 = arith.constant 0 : index
    %95 = vector.load %arg4[%c0_125, %c0_126, %c0_127, %c0_128] : memref<1x3x4x128xbf16, #tpu.memory_space<vmem>>, vector<1x1x4x128xbf16>
    %96 = vector.shape_cast %95 : vector<1x1x4x128xbf16> to vector<4x128xbf16>
    %c0_129 = arith.constant 0 : index
    %c4 = arith.constant 4 : index
    %c12_130 = arith.constant 12 : index
    %c0_131 = arith.constant 0 : index
    %97 = vector.load %arg3[%c0_129, %c4, %c12_130, %c0_131] : memref<1x6x52x4xbf16, #tpu.memory_space<vmem>>, vector<1x1x16x4xbf16>
    %98 = vector.shape_cast %97 : vector<1x1x16x4xbf16> to vector<16x4xbf16>
    %cst_132 = arith.constant dense<0.000000e+00> : vector<16x128xf32>
    %99 = tpu.matmul %98, %96, %cst_132 {dimension_numbers = #tpu.dot_dimension_numbers<[1], [0], [0], [1], [0, 0, 1, 1], [], []>} : vector<16x4xbf16>, vector<4x128xbf16>, vector<16x128xf32> -> vector<16x128xf32>
    %c0_133 = arith.constant 0 : index
    %c1_134 = arith.constant 1 : index
    %c0_135 = arith.constant 0 : index
    %c0_136 = arith.constant 0 : index
    %100 = vector.load %arg4[%c0_133, %c1_134, %c0_135, %c0_136] : memref<1x3x4x128xbf16, #tpu.memory_space<vmem>>, vector<1x1x4x128xbf16>
    %101 = vector.shape_cast %100 : vector<1x1x4x128xbf16> to vector<4x128xbf16>
    %c0_137 = arith.constant 0 : index
    %c4_138 = arith.constant 4 : index
    %c18_139 = arith.constant 18 : index
    %c0_140 = arith.constant 0 : index
    %102 = vector.load %arg3[%c0_137, %c4_138, %c18_139, %c0_140] : memref<1x6x52x4xbf16, #tpu.memory_space<vmem>>, vector<1x1x16x4xbf16>
    %103 = vector.shape_cast %102 : vector<1x1x16x4xbf16> to vector<16x4xbf16>
    %cst_141 = arith.constant dense<0.000000e+00> : vector<16x128xf32>
    %104 = tpu.matmul %103, %101, %cst_141 {dimension_numbers = #tpu.dot_dimension_numbers<[1], [0], [0], [1], [0, 0, 1, 1], [], []>} : vector<16x4xbf16>, vector<4x128xbf16>, vector<16x128xf32> -> vector<16x128xf32>
    %105 = arith.addf %99, %104 : vector<16x128xf32>
    %c0_142 = arith.constant 0 : index
    %c2_143 = arith.constant 2 : index
    %c0_144 = arith.constant 0 : index
    %c0_145 = arith.constant 0 : index
    %106 = vector.load %arg4[%c0_142, %c2_143, %c0_144, %c0_145] : memref<1x3x4x128xbf16, #tpu.memory_space<vmem>>, vector<1x1x4x128xbf16>
    %107 = vector.shape_cast %106 : vector<1x1x4x128xbf16> to vector<4x128xbf16>
    %c0_146 = arith.constant 0 : index
    %c4_147 = arith.constant 4 : index
    %c24_148 = arith.constant 24 : index
    %c0_149 = arith.constant 0 : index
    %108 = vector.load %arg3[%c0_146, %c4_147, %c24_148, %c0_149] : memref<1x6x52x4xbf16, #tpu.memory_space<vmem>>, vector<1x1x16x4xbf16>
    %109 = vector.shape_cast %108 : vector<1x1x16x4xbf16> to vector<16x4xbf16>
    %cst_150 = arith.constant dense<0.000000e+00> : vector<16x128xf32>
    %110 = tpu.matmul %109, %107, %cst_150 {dimension_numbers = #tpu.dot_dimension_numbers<[1], [0], [0], [1], [0, 0, 1, 1], [], []>} : vector<16x4xbf16>, vector<4x128xbf16>, vector<16x128xf32> -> vector<16x128xf32>
    %111 = arith.addf %105, %110 : vector<16x128xf32>
    %c4_151 = arith.constant 4 : index
    %c0_152 = arith.constant 0 : index
    %c0_153 = arith.constant 0 : index
    %112 = vector.load %arg7[%c4_151, %c0_152, %c0_153] : memref<6x16x128xf32, #tpu.memory_space<vmem>>, vector<1x16x128xf32>
    %113 = vector.shape_cast %112 : vector<1x16x128xf32> to vector<16x128xf32>
    %114 = arith.addf %113, %111 : vector<16x128xf32>
    %c4_154 = arith.constant 4 : index
    %c0_155 = arith.constant 0 : index
    %c0_156 = arith.constant 0 : index
    %115 = vector.load %arg7[%c4_154, %c0_155, %c0_156] : memref<6x16x128xf32, #tpu.memory_space<vmem>>, vector<1x16x128xf32>
    %116 = vector.shape_cast %115 : vector<1x16x128xf32> to vector<16x128xf32>
    %117 = vector.shape_cast %114 : vector<16x128xf32> to vector<1x16x128xf32>
    tpu.vector_store %arg7[%c4_154, %c0_155, %c0_156], %117 {strides = array<i32>} : memref<6x16x128xf32, #tpu.memory_space<vmem>>, vector<1x16x128xf32>,
    %c0_157 = arith.constant 0 : index
    %c0_158 = arith.constant 0 : index
    %c0_159 = arith.constant 0 : index
    %c0_160 = arith.constant 0 : index
    %118 = vector.load %arg4[%c0_157, %c0_158, %c0_159, %c0_160] : memref<1x3x4x128xbf16, #tpu.memory_space<vmem>>, vector<1x1x4x128xbf16>
    %119 = vector.shape_cast %118 : vector<1x1x4x128xbf16> to vector<4x128xbf16>
    %c0_161 = arith.constant 0 : index
    %c5 = arith.constant 5 : index
    %c12_162 = arith.constant 12 : index
    %c0_163 = arith.constant 0 : index
    %120 = vector.load %arg3[%c0_161, %c5, %c12_162, %c0_163] : memref<1x6x52x4xbf16, #tpu.memory_space<vmem>>, vector<1x1x16x4xbf16>
    %121 = vector.shape_cast %120 : vector<1x1x16x4xbf16> to vector<16x4xbf16>
    %cst_164 = arith.constant dense<0.000000e+00> : vector<16x128xf32>
    %122 = tpu.matmul %121, %119, %cst_164 {dimension_numbers = #tpu.dot_dimension_numbers<[1], [0], [0], [1], [0, 0, 1, 1], [], []>} : vector<16x4xbf16>, vector<4x128xbf16>, vector<16x128xf32> -> vector<16x128xf32>
    %c0_165 = arith.constant 0 : index
    %c1_166 = arith.constant 1 : index
    %c0_167 = arith.constant 0 : index
    %c0_168 = arith.constant 0 : index
    %123 = vector.load %arg4[%c0_165, %c1_166, %c0_167, %c0_168] : memref<1x3x4x128xbf16, #tpu.memory_space<vmem>>, vector<1x1x4x128xbf16>
    %124 = vector.shape_cast %123 : vector<1x1x4x128xbf16> to vector<4x128xbf16>
    %c0_169 = arith.constant 0 : index
    %c5_170 = arith.constant 5 : index
    %c18_171 = arith.constant 18 : index
    %c0_172 = arith.constant 0 : index
    %125 = vector.load %arg3[%c0_169, %c5_170, %c18_171, %c0_172] : memref<1x6x52x4xbf16, #tpu.memory_space<vmem>>, vector<1x1x16x4xbf16>
    %126 = vector.shape_cast %125 : vector<1x1x16x4xbf16> to vector<16x4xbf16>
    %cst_173 = arith.constant dense<0.000000e+00> : vector<16x128xf32>
    %127 = tpu.matmul %126, %124, %cst_173 {dimension_numbers = #tpu.dot_dimension_numbers<[1], [0], [0], [1], [0, 0, 1, 1], [], []>} : vector<16x4xbf16>, vector<4x128xbf16>, vector<16x128xf32> -> vector<16x128xf32>
    %128 = arith.addf %122, %127 : vector<16x128xf32>
    %c0_174 = arith.constant 0 : index
    %c2_175 = arith.constant 2 : index
    %c0_176 = arith.constant 0 : index
    %c0_177 = arith.constant 0 : index
    %129 = vector.load %arg4[%c0_174, %c2_175, %c0_176, %c0_177] : memref<1x3x4x128xbf16, #tpu.memory_space<vmem>>, vector<1x1x4x128xbf16>
    %130 = vector.shape_cast %129 : vector<1x1x4x128xbf16> to vector<4x128xbf16>
    %c0_178 = arith.constant 0 : index
    %c5_179 = arith.constant 5 : index
    %c24_180 = arith.constant 24 : index
    %c0_181 = arith.constant 0 : index
    %131 = vector.load %arg3[%c0_178, %c5_179, %c24_180, %c0_181] : memref<1x6x52x4xbf16, #tpu.memory_space<vmem>>, vector<1x1x16x4xbf16>
    %132 = vector.shape_cast %131 : vector<1x1x16x4xbf16> to vector<16x4xbf16>
    %cst_182 = arith.constant dense<0.000000e+00> : vector<16x128xf32>
    %133 = tpu.matmul %132, %130, %cst_182 {dimension_numbers = #tpu.dot_dimension_numbers<[1], [0], [0], [1], [0, 0, 1, 1], [], []>} : vector<16x4xbf16>, vector<4x128xbf16>, vector<16x128xf32> -> vector<16x128xf32>
    %134 = arith.addf %128, %133 : vector<16x128xf32>
    %c5_183 = arith.constant 5 : index
    %c0_184 = arith.constant 0 : index
    %c0_185 = arith.constant 0 : index
    %135 = vector.load %arg7[%c5_183, %c0_184, %c0_185] : memref<6x16x128xf32, #tpu.memory_space<vmem>>, vector<1x16x128xf32>
    %136 = vector.shape_cast %135 : vector<1x16x128xf32> to vector<16x128xf32>
    %137 = arith.addf %136, %134 : vector<16x128xf32>
    %c5_186 = arith.constant 5 : index
    %c0_187 = arith.constant 0 : index
    %c0_188 = arith.constant 0 : index
    %138 = vector.load %arg7[%c5_186, %c0_187, %c0_188] : memref<6x16x128xf32, #tpu.memory_space<vmem>>, vector<1x16x128xf32>
    %139 = vector.shape_cast %138 : vector<1x16x128xf32> to vector<16x128xf32>
    %140 = vector.shape_cast %137 : vector<16x128xf32> to vector<1x16x128xf32>
    tpu.vector_store %arg7[%c5_186, %c0_187, %c0_188], %140 {strides = array<i32>} : memref<6x16x128xf32, #tpu.memory_space<vmem>>, vector<1x16x128xf32>,
    %c2_i32 = arith.constant 2 : i32
    %141 = arith.cmpi eq, %arg2, %c2_i32 : i32
    %142 = arith.extui %141 : i1 to i32
    %c0_i32_189 = arith.constant 0 : i32
    %143 = arith.cmpi ne, %142, %c0_i32_189 : i32
    scf.if %143 {
      %c0_190 = arith.constant 0 : index
      %c0_191 = arith.constant 0 : index
      %c0_192 = arith.constant 0 : index
      %144 = vector.load %arg7[%c0_190, %c0_191, %c0_192] : memref<6x16x128xf32, #tpu.memory_space<vmem>>, vector<6x16x128xf32>
      %c0_193 = arith.constant 0 : index
      %c0_194 = arith.constant 0 : index
      %c0_195 = arith.constant 0 : index
      %145 = vector.load %arg5[%c0_193, %c0_194, %c0_195] : memref<1x1x128xf32, #tpu.memory_space<vmem>>, vector<1x1x128xf32>
      %146 = vector.broadcast %145 : vector<1x1x128xf32> to vector<6x16x128xf32>
      %147 = arith.addf %144, %146 : vector<6x16x128xf32>
      %cst_196 = arith.constant 0.000000e+00 : f32
      %148 = vector.broadcast %cst_196 : f32 to vector<6x16x128xf32>
      %149 = arith.maximumf %147, %148 : vector<6x16x128xf32>
      %150 = arith.truncf %149 : vector<6x16x128xf32> to vector<6x16x128xbf16>
      %c0_197 = arith.constant 0 : index
      %c0_198 = arith.constant 0 : index
      %c0_199 = arith.constant 0 : index
      %c0_200 = arith.constant 0 : index
      %151 = vector.load %arg6[%c0_197, %c0_198, %c0_199, %c0_200] : memref<1x6x16x128xbf16, #tpu.memory_space<vmem>>, vector<1x6x16x128xbf16>
      %152 = vector.shape_cast %151 : vector<1x6x16x128xbf16> to vector<6x16x128xbf16>
      %153 = vector.shape_cast %150 : vector<6x16x128xbf16> to vector<1x6x16x128xbf16>
      tpu.vector_store %arg6[%c0_197, %c0_198, %c0_199, %c0_200], %153 {strides = array<i32>} : memref<1x6x16x128xbf16, #tpu.memory_space<vmem>>, vector<1x6x16x128xbf16>,
    } else {
    }
    return
  }
  func.func @transform_0(%arg0: i32, %arg1: i32, %arg2: i32) -> (i32, i32, i32, i32) {
    %c1_i32 = arith.constant 1 : i32
    %0 = arith.muli %arg2, %c1_i32 : i32
    %1 = arith.addi %arg1, %0 : i32
    %c2_i32 = arith.constant 2 : i32
    %2 = arith.addi %1, %c2_i32 : i32
    %c0_i32 = arith.constant 0 : i32
    %c0_i32_0 = arith.constant 0 : i32
    %c0_i32_1 = arith.constant 0 : i32
    return %arg0, %2, %c0_i32, %c0_i32_0 : i32, i32, i32, i32
  }
  func.func @transform_1(%arg0: i32, %arg1: i32, %arg2: i32) -> (i32, i32, i32, i32) {
    %c0_i32 = arith.constant 0 : i32
    %c0_i32_0 = arith.constant 0 : i32
    %c0_i32_1 = arith.constant 0 : i32
    %c0_i32_2 = arith.constant 0 : i32
    return %arg2, %c0_i32, %c0_i32_0, %c0_i32_1 : i32, i32, i32, i32
  }
  func.func @transform_2(%arg0: i32, %arg1: i32, %arg2: i32) -> (i32, i32, i32) {
    %c0_i32 = arith.constant 0 : i32
    %c0_i32_0 = arith.constant 0 : i32
    %c0_i32_1 = arith.constant 0 : i32
    %c0_i32_2 = arith.constant 0 : i32
    return %c0_i32, %c0_i32_0, %c0_i32_1 : i32, i32, i32
  }
  func.func @transform_3(%arg0: i32, %arg1: i32, %arg2: i32) -> (i32, i32, i32, i32) {
    %c0_i32 = arith.constant 0 : i32
    %c0_i32_0 = arith.constant 0 : i32
    %c0_i32_1 = arith.constant 0 : i32
    return %arg0, %arg1, %c0_i32, %c0_i32_0 : i32, i32, i32, i32
  }
}

module attributes {stable_mosaic.version = 11 : i64} {
  func.func @_dconv3x3_kernel(%arg0: i32, %arg1: i32, %arg2: i32, %arg3: memref<1x6x52x4xbf16, #tpu.memory_space<vmem>>, %arg4: memref<1x3x4x128xbf16, #tpu.memory_space<vmem>>, %arg5: memref<1x1x128xf32, #tpu.memory_space<vmem>>, %arg6: memref<1x6x16x128xbf16, #tpu.memory_space<vmem>>, %arg7: memref<6x16x128xf32, #tpu.memory_space<vmem>>) attributes {dimension_semantics = [#tpu.dimension_semantics<parallel>, #tpu.dimension_semantics<parallel>, #tpu.dimension_semantics<arbitrary>], iteration_bounds = array<i64: 2, 3, 3>, scalar_prefetch = 0 : i64, scratch_operands = 1 : i64, tpu.core_type = #tpu.core_type<tc>, window_params = [{transform_indices = @transform_0, window_bounds = array<i64: 1, 6, 52, 4>}, {transform_indices = @transform_1, window_bounds = array<i64: 1, 3, 4, 128>}, {pipeline_mode = #tpu.pipeline_mode<synchronous>, transform_indices = @transform_2, window_bounds = array<i64: 1, 1, 128>}, {transform_indices = @transform_3, window_bounds = array<i64: 1, 6, 16, 128>}]} {
    %c0_i32 = arith.constant 0 : i32
    %0 = arith.cmpi eq, %arg2, %c0_i32 : i32
    %1 = arith.extui %0 : i1 to i32
    %c0_i32_0 = arith.constant 0 : i32
    %2 = arith.cmpi ne, %1, %c0_i32_0 : i32
    scf.if %2 {
      %cst_190 = arith.constant 0.000000e+00 : f32
      %144 = vector.broadcast %cst_190 : f32 to vector<6x16x128xf32>
      %c0_191 = arith.constant 0 : index
      %c0_192 = arith.constant 0 : index
      %c0_193 = arith.constant 0 : index
      %145 = vector.load %arg7[%c0_191, %c0_192, %c0_193] : memref<6x16x128xf32, #tpu.memory_space<vmem>>, vector<6x16x128xf32>
      tpu.vector_store %arg7[%c0_191, %c0_192, %c0_193], %144 {strides = array<i32>} : memref<6x16x128xf32, #tpu.memory_space<vmem>>, vector<6x16x128xf32>,
    } else {
    }
    %c0 = arith.constant 0 : index
    %c0_1 = arith.constant 0 : index
    %c0_2 = arith.constant 0 : index
    %c0_3 = arith.constant 0 : index
    %3 = vector.load %arg4[%c0, %c0_1, %c0_2, %c0_3] : memref<1x3x4x128xbf16, #tpu.memory_space<vmem>>, vector<1x1x4x128xbf16>
    %4 = vector.shape_cast %3 : vector<1x1x4x128xbf16> to vector<4x128xbf16>
    %c0_4 = arith.constant 0 : index
    %c0_5 = arith.constant 0 : index
    %c6 = arith.constant 6 : index
    %c0_6 = arith.constant 0 : index
    %5 = vector.load %arg3[%c0_4, %c0_5, %c6, %c0_6] : memref<1x6x52x4xbf16, #tpu.memory_space<vmem>>, vector<1x1x16x4xbf16>
    %6 = vector.shape_cast %5 : vector<1x1x16x4xbf16> to vector<16x4xbf16>
    %cst = arith.constant dense<0.000000e+00> : vector<16x128xf32>
    %7 = tpu.matmul %6, %4, %cst {dimension_numbers = #tpu.dot_dimension_numbers<[1], [0], [0], [1], [0, 0, 1, 1], [], []>} : vector<16x4xbf16>, vector<4x128xbf16>, vector<16x128xf32> -> vector<16x128xf32>
    %c0_7 = arith.constant 0 : index
    %c1 = arith.constant 1 : index
    %c0_8 = arith.constant 0 : index
    %c0_9 = arith.constant 0 : index
    %8 = vector.load %arg4[%c0_7, %c1, %c0_8, %c0_9] : memref<1x3x4x128xbf16, #tpu.memory_space<vmem>>, vector<1x1x4x128xbf16>
    %9 = vector.shape_cast %8 : vector<1x1x4x128xbf16> to vector<4x128xbf16>
    %c0_10 = arith.constant 0 : index
    %c0_11 = arith.constant 0 : index
    %c18 = arith.constant 18 : index
    %c0_12 = arith.constant 0 : index
    %10 = vector.load %arg3[%c0_10, %c0_11, %c18, %c0_12] : memref<1x6x52x4xbf16, #tpu.memory_space<vmem>>, vector<1x1x16x4xbf16>
    %11 = vector.shape_cast %10 : vector<1x1x16x4xbf16> to vector<16x4xbf16>
    %cst_13 = arith.constant dense<0.000000e+00> : vector<16x128xf32>
    %12 = tpu.matmul %11, %9, %cst_13 {dimension_numbers = #tpu.dot_dimension_numbers<[1], [0], [0], [1], [0, 0, 1, 1], [], []>} : vector<16x4xbf16>, vector<4x128xbf16>, vector<16x128xf32> -> vector<16x128xf32>
    %13 = arith.addf %7, %12 : vector<16x128xf32>
    %c0_14 = arith.constant 0 : index
    %c2 = arith.constant 2 : index
    %c0_15 = arith.constant 0 : index
    %c0_16 = arith.constant 0 : index
    %14 = vector.load %arg4[%c0_14, %c2, %c0_15, %c0_16] : memref<1x3x4x128xbf16, #tpu.memory_space<vmem>>, vector<1x1x4x128xbf16>
    %15 = vector.shape_cast %14 : vector<1x1x4x128xbf16> to vector<4x128xbf16>
    %c0_17 = arith.constant 0 : index
    %c0_18 = arith.constant 0 : index
    %c30 = arith.constant 30 : index
    %c0_19 = arith.constant 0 : index
    %16 = vector.load %arg3[%c0_17, %c0_18, %c30, %c0_19] : memref<1x6x52x4xbf16, #tpu.memory_space<vmem>>, vector<1x1x16x4xbf16>
    %17 = vector.shape_cast %16 : vector<1x1x16x4xbf16> to vector<16x4xbf16>
    %cst_20 = arith.constant dense<0.000000e+00> : vector<16x128xf32>
    %18 = tpu.matmul %17, %15, %cst_20 {dimension_numbers = #tpu.dot_dimension_numbers<[1], [0], [0], [1], [0, 0, 1, 1], [], []>} : vector<16x4xbf16>, vector<4x128xbf16>, vector<16x128xf32> -> vector<16x128xf32>
    %19 = arith.addf %13, %18 : vector<16x128xf32>
    %c0_21 = arith.constant 0 : index
    %c0_22 = arith.constant 0 : index
    %c0_23 = arith.constant 0 : index
    %20 = vector.load %arg7[%c0_21, %c0_22, %c0_23] : memref<6x16x128xf32, #tpu.memory_space<vmem>>, vector<1x16x128xf32>
    %21 = vector.shape_cast %20 : vector<1x16x128xf32> to vector<16x128xf32>
    %22 = arith.addf %21, %19 : vector<16x128xf32>
    %c0_24 = arith.constant 0 : index
    %c0_25 = arith.constant 0 : index
    %c0_26 = arith.constant 0 : index
    %23 = vector.load %arg7[%c0_24, %c0_25, %c0_26] : memref<6x16x128xf32, #tpu.memory_space<vmem>>, vector<1x16x128xf32>
    %24 = vector.shape_cast %23 : vector<1x16x128xf32> to vector<16x128xf32>
    %25 = vector.shape_cast %22 : vector<16x128xf32> to vector<1x16x128xf32>
    tpu.vector_store %arg7[%c0_24, %c0_25, %c0_26], %25 {strides = array<i32>} : memref<6x16x128xf32, #tpu.memory_space<vmem>>, vector<1x16x128xf32>,
    %c0_27 = arith.constant 0 : index
    %c0_28 = arith.constant 0 : index
    %c0_29 = arith.constant 0 : index
    %c0_30 = arith.constant 0 : index
    %26 = vector.load %arg4[%c0_27, %c0_28, %c0_29, %c0_30] : memref<1x3x4x128xbf16, #tpu.memory_space<vmem>>, vector<1x1x4x128xbf16>
    %27 = vector.shape_cast %26 : vector<1x1x4x128xbf16> to vector<4x128xbf16>
    %c0_31 = arith.constant 0 : index
    %c1_32 = arith.constant 1 : index
    %c6_33 = arith.constant 6 : index
    %c0_34 = arith.constant 0 : index
    %28 = vector.load %arg3[%c0_31, %c1_32, %c6_33, %c0_34] : memref<1x6x52x4xbf16, #tpu.memory_space<vmem>>, vector<1x1x16x4xbf16>
    %29 = vector.shape_cast %28 : vector<1x1x16x4xbf16> to vector<16x4xbf16>
    %cst_35 = arith.constant dense<0.000000e+00> : vector<16x128xf32>
    %30 = tpu.matmul %29, %27, %cst_35 {dimension_numbers = #tpu.dot_dimension_numbers<[1], [0], [0], [1], [0, 0, 1, 1], [], []>} : vector<16x4xbf16>, vector<4x128xbf16>, vector<16x128xf32> -> vector<16x128xf32>
    %c0_36 = arith.constant 0 : index
    %c1_37 = arith.constant 1 : index
    %c0_38 = arith.constant 0 : index
    %c0_39 = arith.constant 0 : index
    %31 = vector.load %arg4[%c0_36, %c1_37, %c0_38, %c0_39] : memref<1x3x4x128xbf16, #tpu.memory_space<vmem>>, vector<1x1x4x128xbf16>
    %32 = vector.shape_cast %31 : vector<1x1x4x128xbf16> to vector<4x128xbf16>
    %c0_40 = arith.constant 0 : index
    %c1_41 = arith.constant 1 : index
    %c18_42 = arith.constant 18 : index
    %c0_43 = arith.constant 0 : index
    %33 = vector.load %arg3[%c0_40, %c1_41, %c18_42, %c0_43] : memref<1x6x52x4xbf16, #tpu.memory_space<vmem>>, vector<1x1x16x4xbf16>
    %34 = vector.shape_cast %33 : vector<1x1x16x4xbf16> to vector<16x4xbf16>
    %cst_44 = arith.constant dense<0.000000e+00> : vector<16x128xf32>
    %35 = tpu.matmul %34, %32, %cst_44 {dimension_numbers = #tpu.dot_dimension_numbers<[1], [0], [0], [1], [0, 0, 1, 1], [], []>} : vector<16x4xbf16>, vector<4x128xbf16>, vector<16x128xf32> -> vector<16x128xf32>
    %36 = arith.addf %30, %35 : vector<16x128xf32>
    %c0_45 = arith.constant 0 : index
    %c2_46 = arith.constant 2 : index
    %c0_47 = arith.constant 0 : index
    %c0_48 = arith.constant 0 : index
    %37 = vector.load %arg4[%c0_45, %c2_46, %c0_47, %c0_48] : memref<1x3x4x128xbf16, #tpu.memory_space<vmem>>, vector<1x1x4x128xbf16>
    %38 = vector.shape_cast %37 : vector<1x1x4x128xbf16> to vector<4x128xbf16>
    %c0_49 = arith.constant 0 : index
    %c1_50 = arith.constant 1 : index
    %c30_51 = arith.constant 30 : index
    %c0_52 = arith.constant 0 : index
    %39 = vector.load %arg3[%c0_49, %c1_50, %c30_51, %c0_52] : memref<1x6x52x4xbf16, #tpu.memory_space<vmem>>, vector<1x1x16x4xbf16>
    %40 = vector.shape_cast %39 : vector<1x1x16x4xbf16> to vector<16x4xbf16>
    %cst_53 = arith.constant dense<0.000000e+00> : vector<16x128xf32>
    %41 = tpu.matmul %40, %38, %cst_53 {dimension_numbers = #tpu.dot_dimension_numbers<[1], [0], [0], [1], [0, 0, 1, 1], [], []>} : vector<16x4xbf16>, vector<4x128xbf16>, vector<16x128xf32> -> vector<16x128xf32>
    %42 = arith.addf %36, %41 : vector<16x128xf32>
    %c1_54 = arith.constant 1 : index
    %c0_55 = arith.constant 0 : index
    %c0_56 = arith.constant 0 : index
    %43 = vector.load %arg7[%c1_54, %c0_55, %c0_56] : memref<6x16x128xf32, #tpu.memory_space<vmem>>, vector<1x16x128xf32>
    %44 = vector.shape_cast %43 : vector<1x16x128xf32> to vector<16x128xf32>
    %45 = arith.addf %44, %42 : vector<16x128xf32>
    %c1_57 = arith.constant 1 : index
    %c0_58 = arith.constant 0 : index
    %c0_59 = arith.constant 0 : index
    %46 = vector.load %arg7[%c1_57, %c0_58, %c0_59] : memref<6x16x128xf32, #tpu.memory_space<vmem>>, vector<1x16x128xf32>
    %47 = vector.shape_cast %46 : vector<1x16x128xf32> to vector<16x128xf32>
    %48 = vector.shape_cast %45 : vector<16x128xf32> to vector<1x16x128xf32>
    tpu.vector_store %arg7[%c1_57, %c0_58, %c0_59], %48 {strides = array<i32>} : memref<6x16x128xf32, #tpu.memory_space<vmem>>, vector<1x16x128xf32>,
    %c0_60 = arith.constant 0 : index
    %c0_61 = arith.constant 0 : index
    %c0_62 = arith.constant 0 : index
    %c0_63 = arith.constant 0 : index
    %49 = vector.load %arg4[%c0_60, %c0_61, %c0_62, %c0_63] : memref<1x3x4x128xbf16, #tpu.memory_space<vmem>>, vector<1x1x4x128xbf16>
    %50 = vector.shape_cast %49 : vector<1x1x4x128xbf16> to vector<4x128xbf16>
    %c0_64 = arith.constant 0 : index
    %c2_65 = arith.constant 2 : index
    %c6_66 = arith.constant 6 : index
    %c0_67 = arith.constant 0 : index
    %51 = vector.load %arg3[%c0_64, %c2_65, %c6_66, %c0_67] : memref<1x6x52x4xbf16, #tpu.memory_space<vmem>>, vector<1x1x16x4xbf16>
    %52 = vector.shape_cast %51 : vector<1x1x16x4xbf16> to vector<16x4xbf16>
    %cst_68 = arith.constant dense<0.000000e+00> : vector<16x128xf32>
    %53 = tpu.matmul %52, %50, %cst_68 {dimension_numbers = #tpu.dot_dimension_numbers<[1], [0], [0], [1], [0, 0, 1, 1], [], []>} : vector<16x4xbf16>, vector<4x128xbf16>, vector<16x128xf32> -> vector<16x128xf32>
    %c0_69 = arith.constant 0 : index
    %c1_70 = arith.constant 1 : index
    %c0_71 = arith.constant 0 : index
    %c0_72 = arith.constant 0 : index
    %54 = vector.load %arg4[%c0_69, %c1_70, %c0_71, %c0_72] : memref<1x3x4x128xbf16, #tpu.memory_space<vmem>>, vector<1x1x4x128xbf16>
    %55 = vector.shape_cast %54 : vector<1x1x4x128xbf16> to vector<4x128xbf16>
    %c0_73 = arith.constant 0 : index
    %c2_74 = arith.constant 2 : index
    %c18_75 = arith.constant 18 : index
    %c0_76 = arith.constant 0 : index
    %56 = vector.load %arg3[%c0_73, %c2_74, %c18_75, %c0_76] : memref<1x6x52x4xbf16, #tpu.memory_space<vmem>>, vector<1x1x16x4xbf16>
    %57 = vector.shape_cast %56 : vector<1x1x16x4xbf16> to vector<16x4xbf16>
    %cst_77 = arith.constant dense<0.000000e+00> : vector<16x128xf32>
    %58 = tpu.matmul %57, %55, %cst_77 {dimension_numbers = #tpu.dot_dimension_numbers<[1], [0], [0], [1], [0, 0, 1, 1], [], []>} : vector<16x4xbf16>, vector<4x128xbf16>, vector<16x128xf32> -> vector<16x128xf32>
    %59 = arith.addf %53, %58 : vector<16x128xf32>
    %c0_78 = arith.constant 0 : index
    %c2_79 = arith.constant 2 : index
    %c0_80 = arith.constant 0 : index
    %c0_81 = arith.constant 0 : index
    %60 = vector.load %arg4[%c0_78, %c2_79, %c0_80, %c0_81] : memref<1x3x4x128xbf16, #tpu.memory_space<vmem>>, vector<1x1x4x128xbf16>
    %61 = vector.shape_cast %60 : vector<1x1x4x128xbf16> to vector<4x128xbf16>
    %c0_82 = arith.constant 0 : index
    %c2_83 = arith.constant 2 : index
    %c30_84 = arith.constant 30 : index
    %c0_85 = arith.constant 0 : index
    %62 = vector.load %arg3[%c0_82, %c2_83, %c30_84, %c0_85] : memref<1x6x52x4xbf16, #tpu.memory_space<vmem>>, vector<1x1x16x4xbf16>
    %63 = vector.shape_cast %62 : vector<1x1x16x4xbf16> to vector<16x4xbf16>
    %cst_86 = arith.constant dense<0.000000e+00> : vector<16x128xf32>
    %64 = tpu.matmul %63, %61, %cst_86 {dimension_numbers = #tpu.dot_dimension_numbers<[1], [0], [0], [1], [0, 0, 1, 1], [], []>} : vector<16x4xbf16>, vector<4x128xbf16>, vector<16x128xf32> -> vector<16x128xf32>
    %65 = arith.addf %59, %64 : vector<16x128xf32>
    %c2_87 = arith.constant 2 : index
    %c0_88 = arith.constant 0 : index
    %c0_89 = arith.constant 0 : index
    %66 = vector.load %arg7[%c2_87, %c0_88, %c0_89] : memref<6x16x128xf32, #tpu.memory_space<vmem>>, vector<1x16x128xf32>
    %67 = vector.shape_cast %66 : vector<1x16x128xf32> to vector<16x128xf32>
    %68 = arith.addf %67, %65 : vector<16x128xf32>
    %c2_90 = arith.constant 2 : index
    %c0_91 = arith.constant 0 : index
    %c0_92 = arith.constant 0 : index
    %69 = vector.load %arg7[%c2_90, %c0_91, %c0_92] : memref<6x16x128xf32, #tpu.memory_space<vmem>>, vector<1x16x128xf32>
    %70 = vector.shape_cast %69 : vector<1x16x128xf32> to vector<16x128xf32>
    %71 = vector.shape_cast %68 : vector<16x128xf32> to vector<1x16x128xf32>
    tpu.vector_store %arg7[%c2_90, %c0_91, %c0_92], %71 {strides = array<i32>} : memref<6x16x128xf32, #tpu.memory_space<vmem>>, vector<1x16x128xf32>,
    %c0_93 = arith.constant 0 : index
    %c0_94 = arith.constant 0 : index
    %c0_95 = arith.constant 0 : index
    %c0_96 = arith.constant 0 : index
    %72 = vector.load %arg4[%c0_93, %c0_94, %c0_95, %c0_96] : memref<1x3x4x128xbf16, #tpu.memory_space<vmem>>, vector<1x1x4x128xbf16>
    %73 = vector.shape_cast %72 : vector<1x1x4x128xbf16> to vector<4x128xbf16>
    %c0_97 = arith.constant 0 : index
    %c3 = arith.constant 3 : index
    %c6_98 = arith.constant 6 : index
    %c0_99 = arith.constant 0 : index
    %74 = vector.load %arg3[%c0_97, %c3, %c6_98, %c0_99] : memref<1x6x52x4xbf16, #tpu.memory_space<vmem>>, vector<1x1x16x4xbf16>
    %75 = vector.shape_cast %74 : vector<1x1x16x4xbf16> to vector<16x4xbf16>
    %cst_100 = arith.constant dense<0.000000e+00> : vector<16x128xf32>
    %76 = tpu.matmul %75, %73, %cst_100 {dimension_numbers = #tpu.dot_dimension_numbers<[1], [0], [0], [1], [0, 0, 1, 1], [], []>} : vector<16x4xbf16>, vector<4x128xbf16>, vector<16x128xf32> -> vector<16x128xf32>
    %c0_101 = arith.constant 0 : index
    %c1_102 = arith.constant 1 : index
    %c0_103 = arith.constant 0 : index
    %c0_104 = arith.constant 0 : index
    %77 = vector.load %arg4[%c0_101, %c1_102, %c0_103, %c0_104] : memref<1x3x4x128xbf16, #tpu.memory_space<vmem>>, vector<1x1x4x128xbf16>
    %78 = vector.shape_cast %77 : vector<1x1x4x128xbf16> to vector<4x128xbf16>
    %c0_105 = arith.constant 0 : index
    %c3_106 = arith.constant 3 : index
    %c18_107 = arith.constant 18 : index
    %c0_108 = arith.constant 0 : index
    %79 = vector.load %arg3[%c0_105, %c3_106, %c18_107, %c0_108] : memref<1x6x52x4xbf16, #tpu.memory_space<vmem>>, vector<1x1x16x4xbf16>
    %80 = vector.shape_cast %79 : vector<1x1x16x4xbf16> to vector<16x4xbf16>
    %cst_109 = arith.constant dense<0.000000e+00> : vector<16x128xf32>
    %81 = tpu.matmul %80, %78, %cst_109 {dimension_numbers = #tpu.dot_dimension_numbers<[1], [0], [0], [1], [0, 0, 1, 1], [], []>} : vector<16x4xbf16>, vector<4x128xbf16>, vector<16x128xf32> -> vector<16x128xf32>
    %82 = arith.addf %76, %81 : vector<16x128xf32>
    %c0_110 = arith.constant 0 : index
    %c2_111 = arith.constant 2 : index
    %c0_112 = arith.constant 0 : index
    %c0_113 = arith.constant 0 : index
    %83 = vector.load %arg4[%c0_110, %c2_111, %c0_112, %c0_113] : memref<1x3x4x128xbf16, #tpu.memory_space<vmem>>, vector<1x1x4x128xbf16>
    %84 = vector.shape_cast %83 : vector<1x1x4x128xbf16> to vector<4x128xbf16>
    %c0_114 = arith.constant 0 : index
    %c3_115 = arith.constant 3 : index
    %c30_116 = arith.constant 30 : index
    %c0_117 = arith.constant 0 : index
    %85 = vector.load %arg3[%c0_114, %c3_115, %c30_116, %c0_117] : memref<1x6x52x4xbf16, #tpu.memory_space<vmem>>, vector<1x1x16x4xbf16>
    %86 = vector.shape_cast %85 : vector<1x1x16x4xbf16> to vector<16x4xbf16>
    %cst_118 = arith.constant dense<0.000000e+00> : vector<16x128xf32>
    %87 = tpu.matmul %86, %84, %cst_118 {dimension_numbers = #tpu.dot_dimension_numbers<[1], [0], [0], [1], [0, 0, 1, 1], [], []>} : vector<16x4xbf16>, vector<4x128xbf16>, vector<16x128xf32> -> vector<16x128xf32>
    %88 = arith.addf %82, %87 : vector<16x128xf32>
    %c3_119 = arith.constant 3 : index
    %c0_120 = arith.constant 0 : index
    %c0_121 = arith.constant 0 : index
    %89 = vector.load %arg7[%c3_119, %c0_120, %c0_121] : memref<6x16x128xf32, #tpu.memory_space<vmem>>, vector<1x16x128xf32>
    %90 = vector.shape_cast %89 : vector<1x16x128xf32> to vector<16x128xf32>
    %91 = arith.addf %90, %88 : vector<16x128xf32>
    %c3_122 = arith.constant 3 : index
    %c0_123 = arith.constant 0 : index
    %c0_124 = arith.constant 0 : index
    %92 = vector.load %arg7[%c3_122, %c0_123, %c0_124] : memref<6x16x128xf32, #tpu.memory_space<vmem>>, vector<1x16x128xf32>
    %93 = vector.shape_cast %92 : vector<1x16x128xf32> to vector<16x128xf32>
    %94 = vector.shape_cast %91 : vector<16x128xf32> to vector<1x16x128xf32>
    tpu.vector_store %arg7[%c3_122, %c0_123, %c0_124], %94 {strides = array<i32>} : memref<6x16x128xf32, #tpu.memory_space<vmem>>, vector<1x16x128xf32>,
    %c0_125 = arith.constant 0 : index
    %c0_126 = arith.constant 0 : index
    %c0_127 = arith.constant 0 : index
    %c0_128 = arith.constant 0 : index
    %95 = vector.load %arg4[%c0_125, %c0_126, %c0_127, %c0_128] : memref<1x3x4x128xbf16, #tpu.memory_space<vmem>>, vector<1x1x4x128xbf16>
    %96 = vector.shape_cast %95 : vector<1x1x4x128xbf16> to vector<4x128xbf16>
    %c0_129 = arith.constant 0 : index
    %c4 = arith.constant 4 : index
    %c6_130 = arith.constant 6 : index
    %c0_131 = arith.constant 0 : index
    %97 = vector.load %arg3[%c0_129, %c4, %c6_130, %c0_131] : memref<1x6x52x4xbf16, #tpu.memory_space<vmem>>, vector<1x1x16x4xbf16>
    %98 = vector.shape_cast %97 : vector<1x1x16x4xbf16> to vector<16x4xbf16>
    %cst_132 = arith.constant dense<0.000000e+00> : vector<16x128xf32>
    %99 = tpu.matmul %98, %96, %cst_132 {dimension_numbers = #tpu.dot_dimension_numbers<[1], [0], [0], [1], [0, 0, 1, 1], [], []>} : vector<16x4xbf16>, vector<4x128xbf16>, vector<16x128xf32> -> vector<16x128xf32>
    %c0_133 = arith.constant 0 : index
    %c1_134 = arith.constant 1 : index
    %c0_135 = arith.constant 0 : index
    %c0_136 = arith.constant 0 : index
    %100 = vector.load %arg4[%c0_133, %c1_134, %c0_135, %c0_136] : memref<1x3x4x128xbf16, #tpu.memory_space<vmem>>, vector<1x1x4x128xbf16>
    %101 = vector.shape_cast %100 : vector<1x1x4x128xbf16> to vector<4x128xbf16>
    %c0_137 = arith.constant 0 : index
    %c4_138 = arith.constant 4 : index
    %c18_139 = arith.constant 18 : index
    %c0_140 = arith.constant 0 : index
    %102 = vector.load %arg3[%c0_137, %c4_138, %c18_139, %c0_140] : memref<1x6x52x4xbf16, #tpu.memory_space<vmem>>, vector<1x1x16x4xbf16>
    %103 = vector.shape_cast %102 : vector<1x1x16x4xbf16> to vector<16x4xbf16>
    %cst_141 = arith.constant dense<0.000000e+00> : vector<16x128xf32>
    %104 = tpu.matmul %103, %101, %cst_141 {dimension_numbers = #tpu.dot_dimension_numbers<[1], [0], [0], [1], [0, 0, 1, 1], [], []>} : vector<16x4xbf16>, vector<4x128xbf16>, vector<16x128xf32> -> vector<16x128xf32>
    %105 = arith.addf %99, %104 : vector<16x128xf32>
    %c0_142 = arith.constant 0 : index
    %c2_143 = arith.constant 2 : index
    %c0_144 = arith.constant 0 : index
    %c0_145 = arith.constant 0 : index
    %106 = vector.load %arg4[%c0_142, %c2_143, %c0_144, %c0_145] : memref<1x3x4x128xbf16, #tpu.memory_space<vmem>>, vector<1x1x4x128xbf16>
    %107 = vector.shape_cast %106 : vector<1x1x4x128xbf16> to vector<4x128xbf16>
    %c0_146 = arith.constant 0 : index
    %c4_147 = arith.constant 4 : index
    %c30_148 = arith.constant 30 : index
    %c0_149 = arith.constant 0 : index
    %108 = vector.load %arg3[%c0_146, %c4_147, %c30_148, %c0_149] : memref<1x6x52x4xbf16, #tpu.memory_space<vmem>>, vector<1x1x16x4xbf16>
    %109 = vector.shape_cast %108 : vector<1x1x16x4xbf16> to vector<16x4xbf16>
    %cst_150 = arith.constant dense<0.000000e+00> : vector<16x128xf32>
    %110 = tpu.matmul %109, %107, %cst_150 {dimension_numbers = #tpu.dot_dimension_numbers<[1], [0], [0], [1], [0, 0, 1, 1], [], []>} : vector<16x4xbf16>, vector<4x128xbf16>, vector<16x128xf32> -> vector<16x128xf32>
    %111 = arith.addf %105, %110 : vector<16x128xf32>
    %c4_151 = arith.constant 4 : index
    %c0_152 = arith.constant 0 : index
    %c0_153 = arith.constant 0 : index
    %112 = vector.load %arg7[%c4_151, %c0_152, %c0_153] : memref<6x16x128xf32, #tpu.memory_space<vmem>>, vector<1x16x128xf32>
    %113 = vector.shape_cast %112 : vector<1x16x128xf32> to vector<16x128xf32>
    %114 = arith.addf %113, %111 : vector<16x128xf32>
    %c4_154 = arith.constant 4 : index
    %c0_155 = arith.constant 0 : index
    %c0_156 = arith.constant 0 : index
    %115 = vector.load %arg7[%c4_154, %c0_155, %c0_156] : memref<6x16x128xf32, #tpu.memory_space<vmem>>, vector<1x16x128xf32>
    %116 = vector.shape_cast %115 : vector<1x16x128xf32> to vector<16x128xf32>
    %117 = vector.shape_cast %114 : vector<16x128xf32> to vector<1x16x128xf32>
    tpu.vector_store %arg7[%c4_154, %c0_155, %c0_156], %117 {strides = array<i32>} : memref<6x16x128xf32, #tpu.memory_space<vmem>>, vector<1x16x128xf32>,
    %c0_157 = arith.constant 0 : index
    %c0_158 = arith.constant 0 : index
    %c0_159 = arith.constant 0 : index
    %c0_160 = arith.constant 0 : index
    %118 = vector.load %arg4[%c0_157, %c0_158, %c0_159, %c0_160] : memref<1x3x4x128xbf16, #tpu.memory_space<vmem>>, vector<1x1x4x128xbf16>
    %119 = vector.shape_cast %118 : vector<1x1x4x128xbf16> to vector<4x128xbf16>
    %c0_161 = arith.constant 0 : index
    %c5 = arith.constant 5 : index
    %c6_162 = arith.constant 6 : index
    %c0_163 = arith.constant 0 : index
    %120 = vector.load %arg3[%c0_161, %c5, %c6_162, %c0_163] : memref<1x6x52x4xbf16, #tpu.memory_space<vmem>>, vector<1x1x16x4xbf16>
    %121 = vector.shape_cast %120 : vector<1x1x16x4xbf16> to vector<16x4xbf16>
    %cst_164 = arith.constant dense<0.000000e+00> : vector<16x128xf32>
    %122 = tpu.matmul %121, %119, %cst_164 {dimension_numbers = #tpu.dot_dimension_numbers<[1], [0], [0], [1], [0, 0, 1, 1], [], []>} : vector<16x4xbf16>, vector<4x128xbf16>, vector<16x128xf32> -> vector<16x128xf32>
    %c0_165 = arith.constant 0 : index
    %c1_166 = arith.constant 1 : index
    %c0_167 = arith.constant 0 : index
    %c0_168 = arith.constant 0 : index
    %123 = vector.load %arg4[%c0_165, %c1_166, %c0_167, %c0_168] : memref<1x3x4x128xbf16, #tpu.memory_space<vmem>>, vector<1x1x4x128xbf16>
    %124 = vector.shape_cast %123 : vector<1x1x4x128xbf16> to vector<4x128xbf16>
    %c0_169 = arith.constant 0 : index
    %c5_170 = arith.constant 5 : index
    %c18_171 = arith.constant 18 : index
    %c0_172 = arith.constant 0 : index
    %125 = vector.load %arg3[%c0_169, %c5_170, %c18_171, %c0_172] : memref<1x6x52x4xbf16, #tpu.memory_space<vmem>>, vector<1x1x16x4xbf16>
    %126 = vector.shape_cast %125 : vector<1x1x16x4xbf16> to vector<16x4xbf16>
    %cst_173 = arith.constant dense<0.000000e+00> : vector<16x128xf32>
    %127 = tpu.matmul %126, %124, %cst_173 {dimension_numbers = #tpu.dot_dimension_numbers<[1], [0], [0], [1], [0, 0, 1, 1], [], []>} : vector<16x4xbf16>, vector<4x128xbf16>, vector<16x128xf32> -> vector<16x128xf32>
    %128 = arith.addf %122, %127 : vector<16x128xf32>
    %c0_174 = arith.constant 0 : index
    %c2_175 = arith.constant 2 : index
    %c0_176 = arith.constant 0 : index
    %c0_177 = arith.constant 0 : index
    %129 = vector.load %arg4[%c0_174, %c2_175, %c0_176, %c0_177] : memref<1x3x4x128xbf16, #tpu.memory_space<vmem>>, vector<1x1x4x128xbf16>
    %130 = vector.shape_cast %129 : vector<1x1x4x128xbf16> to vector<4x128xbf16>
    %c0_178 = arith.constant 0 : index
    %c5_179 = arith.constant 5 : index
    %c30_180 = arith.constant 30 : index
    %c0_181 = arith.constant 0 : index
    %131 = vector.load %arg3[%c0_178, %c5_179, %c30_180, %c0_181] : memref<1x6x52x4xbf16, #tpu.memory_space<vmem>>, vector<1x1x16x4xbf16>
    %132 = vector.shape_cast %131 : vector<1x1x16x4xbf16> to vector<16x4xbf16>
    %cst_182 = arith.constant dense<0.000000e+00> : vector<16x128xf32>
    %133 = tpu.matmul %132, %130, %cst_182 {dimension_numbers = #tpu.dot_dimension_numbers<[1], [0], [0], [1], [0, 0, 1, 1], [], []>} : vector<16x4xbf16>, vector<4x128xbf16>, vector<16x128xf32> -> vector<16x128xf32>
    %134 = arith.addf %128, %133 : vector<16x128xf32>
    %c5_183 = arith.constant 5 : index
    %c0_184 = arith.constant 0 : index
    %c0_185 = arith.constant 0 : index
    %135 = vector.load %arg7[%c5_183, %c0_184, %c0_185] : memref<6x16x128xf32, #tpu.memory_space<vmem>>, vector<1x16x128xf32>
    %136 = vector.shape_cast %135 : vector<1x16x128xf32> to vector<16x128xf32>
    %137 = arith.addf %136, %134 : vector<16x128xf32>
    %c5_186 = arith.constant 5 : index
    %c0_187 = arith.constant 0 : index
    %c0_188 = arith.constant 0 : index
    %138 = vector.load %arg7[%c5_186, %c0_187, %c0_188] : memref<6x16x128xf32, #tpu.memory_space<vmem>>, vector<1x16x128xf32>
    %139 = vector.shape_cast %138 : vector<1x16x128xf32> to vector<16x128xf32>
    %140 = vector.shape_cast %137 : vector<16x128xf32> to vector<1x16x128xf32>
    tpu.vector_store %arg7[%c5_186, %c0_187, %c0_188], %140 {strides = array<i32>} : memref<6x16x128xf32, #tpu.memory_space<vmem>>, vector<1x16x128xf32>,
    %c2_i32 = arith.constant 2 : i32
    %141 = arith.cmpi eq, %arg2, %c2_i32 : i32
    %142 = arith.extui %141 : i1 to i32
    %c0_i32_189 = arith.constant 0 : i32
    %143 = arith.cmpi ne, %142, %c0_i32_189 : i32
    scf.if %143 {
      %c0_190 = arith.constant 0 : index
      %c0_191 = arith.constant 0 : index
      %c0_192 = arith.constant 0 : index
      %144 = vector.load %arg7[%c0_190, %c0_191, %c0_192] : memref<6x16x128xf32, #tpu.memory_space<vmem>>, vector<6x16x128xf32>
      %c0_193 = arith.constant 0 : index
      %c0_194 = arith.constant 0 : index
      %c0_195 = arith.constant 0 : index
      %145 = vector.load %arg5[%c0_193, %c0_194, %c0_195] : memref<1x1x128xf32, #tpu.memory_space<vmem>>, vector<1x1x128xf32>
      %146 = vector.broadcast %145 : vector<1x1x128xf32> to vector<6x16x128xf32>
      %147 = arith.addf %144, %146 : vector<6x16x128xf32>
      %cst_196 = arith.constant 0.000000e+00 : f32
      %148 = vector.broadcast %cst_196 : f32 to vector<6x16x128xf32>
      %149 = arith.maximumf %147, %148 : vector<6x16x128xf32>
      %150 = arith.truncf %149 : vector<6x16x128xf32> to vector<6x16x128xbf16>
      %c0_197 = arith.constant 0 : index
      %c0_198 = arith.constant 0 : index
      %c0_199 = arith.constant 0 : index
      %c0_200 = arith.constant 0 : index
      %151 = vector.load %arg6[%c0_197, %c0_198, %c0_199, %c0_200] : memref<1x6x16x128xbf16, #tpu.memory_space<vmem>>, vector<1x6x16x128xbf16>
      %152 = vector.shape_cast %151 : vector<1x6x16x128xbf16> to vector<6x16x128xbf16>
      %153 = vector.shape_cast %150 : vector<6x16x128xbf16> to vector<1x6x16x128xbf16>
      tpu.vector_store %arg6[%c0_197, %c0_198, %c0_199, %c0_200], %153 {strides = array<i32>} : memref<1x6x16x128xbf16, #tpu.memory_space<vmem>>, vector<1x6x16x128xbf16>,
    } else {
    }
    return
  }
  func.func @transform_0(%arg0: i32, %arg1: i32, %arg2: i32) -> (i32, i32, i32, i32) {
    %c2_i32 = arith.constant 2 : i32
    %0 = arith.muli %arg2, %c2_i32 : i32
    %1 = arith.addi %arg1, %0 : i32
    %c1_i32 = arith.constant 1 : i32
    %2 = arith.addi %1, %c1_i32 : i32
    %c0_i32 = arith.constant 0 : i32
    %c0_i32_0 = arith.constant 0 : i32
    %c0_i32_1 = arith.constant 0 : i32
    return %arg0, %2, %c0_i32, %c0_i32_0 : i32, i32, i32, i32
  }
  func.func @transform_1(%arg0: i32, %arg1: i32, %arg2: i32) -> (i32, i32, i32, i32) {
    %c0_i32 = arith.constant 0 : i32
    %c0_i32_0 = arith.constant 0 : i32
    %c0_i32_1 = arith.constant 0 : i32
    %c0_i32_2 = arith.constant 0 : i32
    return %arg2, %c0_i32, %c0_i32_0, %c0_i32_1 : i32, i32, i32, i32
  }
  func.func @transform_2(%arg0: i32, %arg1: i32, %arg2: i32) -> (i32, i32, i32) {
    %c0_i32 = arith.constant 0 : i32
    %c0_i32_0 = arith.constant 0 : i32
    %c0_i32_1 = arith.constant 0 : i32
    %c0_i32_2 = arith.constant 0 : i32
    return %c0_i32, %c0_i32_0, %c0_i32_1 : i32, i32, i32
  }
  func.func @transform_3(%arg0: i32, %arg1: i32, %arg2: i32) -> (i32, i32, i32, i32) {
    %c0_i32 = arith.constant 0 : i32
    %c0_i32_0 = arith.constant 0 : i32
    %c0_i32_1 = arith.constant 0 : i32
    return %arg0, %arg1, %c0_i32, %c0_i32_0 : i32, i32, i32, i32
  }
}

module attributes {stable_mosaic.version = 11 : i64} {
  func.func @_dconv3x3_kernel(%arg0: i32, %arg1: i32, %arg2: i32, %arg3: memref<1x6x52x4xbf16, #tpu.memory_space<vmem>>, %arg4: memref<1x3x4x128xbf16, #tpu.memory_space<vmem>>, %arg5: memref<1x1x128xf32, #tpu.memory_space<vmem>>, %arg6: memref<1x6x16x128xbf16, #tpu.memory_space<vmem>>, %arg7: memref<6x16x128xf32, #tpu.memory_space<vmem>>) attributes {dimension_semantics = [#tpu.dimension_semantics<parallel>, #tpu.dimension_semantics<parallel>, #tpu.dimension_semantics<arbitrary>], iteration_bounds = array<i64: 2, 3, 3>, scalar_prefetch = 0 : i64, scratch_operands = 1 : i64, tpu.core_type = #tpu.core_type<tc>, window_params = [{transform_indices = @transform_0, window_bounds = array<i64: 1, 6, 52, 4>}, {transform_indices = @transform_1, window_bounds = array<i64: 1, 3, 4, 128>}, {pipeline_mode = #tpu.pipeline_mode<synchronous>, transform_indices = @transform_2, window_bounds = array<i64: 1, 1, 128>}, {transform_indices = @transform_3, window_bounds = array<i64: 1, 6, 16, 128>}]} {
    %c0_i32 = arith.constant 0 : i32
    %0 = arith.cmpi eq, %arg2, %c0_i32 : i32
    %1 = arith.extui %0 : i1 to i32
    %c0_i32_0 = arith.constant 0 : i32
    %2 = arith.cmpi ne, %1, %c0_i32_0 : i32
    scf.if %2 {
      %cst_191 = arith.constant 0.000000e+00 : f32
      %144 = vector.broadcast %cst_191 : f32 to vector<6x16x128xf32>
      %c0_192 = arith.constant 0 : index
      %c0_193 = arith.constant 0 : index
      %c0_194 = arith.constant 0 : index
      %145 = vector.load %arg7[%c0_192, %c0_193, %c0_194] : memref<6x16x128xf32, #tpu.memory_space<vmem>>, vector<6x16x128xf32>
      tpu.vector_store %arg7[%c0_192, %c0_193, %c0_194], %144 {strides = array<i32>} : memref<6x16x128xf32, #tpu.memory_space<vmem>>, vector<6x16x128xf32>,
    } else {
    }
    %c0 = arith.constant 0 : index
    %c0_1 = arith.constant 0 : index
    %c0_2 = arith.constant 0 : index
    %c0_3 = arith.constant 0 : index
    %3 = vector.load %arg4[%c0, %c0_1, %c0_2, %c0_3] : memref<1x3x4x128xbf16, #tpu.memory_space<vmem>>, vector<1x1x4x128xbf16>
    %4 = vector.shape_cast %3 : vector<1x1x4x128xbf16> to vector<4x128xbf16>
    %c0_4 = arith.constant 0 : index
    %c0_5 = arith.constant 0 : index
    %c0_6 = arith.constant 0 : index
    %c0_7 = arith.constant 0 : index
    %5 = vector.load %arg3[%c0_4, %c0_5, %c0_6, %c0_7] : memref<1x6x52x4xbf16, #tpu.memory_space<vmem>>, vector<1x1x16x4xbf16>
    %6 = vector.shape_cast %5 : vector<1x1x16x4xbf16> to vector<16x4xbf16>
    %cst = arith.constant dense<0.000000e+00> : vector<16x128xf32>
    %7 = tpu.matmul %6, %4, %cst {dimension_numbers = #tpu.dot_dimension_numbers<[1], [0], [0], [1], [0, 0, 1, 1], [], []>} : vector<16x4xbf16>, vector<4x128xbf16>, vector<16x128xf32> -> vector<16x128xf32>
    %c0_8 = arith.constant 0 : index
    %c1 = arith.constant 1 : index
    %c0_9 = arith.constant 0 : index
    %c0_10 = arith.constant 0 : index
    %8 = vector.load %arg4[%c0_8, %c1, %c0_9, %c0_10] : memref<1x3x4x128xbf16, #tpu.memory_space<vmem>>, vector<1x1x4x128xbf16>
    %9 = vector.shape_cast %8 : vector<1x1x4x128xbf16> to vector<4x128xbf16>
    %c0_11 = arith.constant 0 : index
    %c0_12 = arith.constant 0 : index
    %c18 = arith.constant 18 : index
    %c0_13 = arith.constant 0 : index
    %10 = vector.load %arg3[%c0_11, %c0_12, %c18, %c0_13] : memref<1x6x52x4xbf16, #tpu.memory_space<vmem>>, vector<1x1x16x4xbf16>
    %11 = vector.shape_cast %10 : vector<1x1x16x4xbf16> to vector<16x4xbf16>
    %cst_14 = arith.constant dense<0.000000e+00> : vector<16x128xf32>
    %12 = tpu.matmul %11, %9, %cst_14 {dimension_numbers = #tpu.dot_dimension_numbers<[1], [0], [0], [1], [0, 0, 1, 1], [], []>} : vector<16x4xbf16>, vector<4x128xbf16>, vector<16x128xf32> -> vector<16x128xf32>
    %13 = arith.addf %7, %12 : vector<16x128xf32>
    %c0_15 = arith.constant 0 : index
    %c2 = arith.constant 2 : index
    %c0_16 = arith.constant 0 : index
    %c0_17 = arith.constant 0 : index
    %14 = vector.load %arg4[%c0_15, %c2, %c0_16, %c0_17] : memref<1x3x4x128xbf16, #tpu.memory_space<vmem>>, vector<1x1x4x128xbf16>
    %15 = vector.shape_cast %14 : vector<1x1x4x128xbf16> to vector<4x128xbf16>
    %c0_18 = arith.constant 0 : index
    %c0_19 = arith.constant 0 : index
    %c36 = arith.constant 36 : index
    %c0_20 = arith.constant 0 : index
    %16 = vector.load %arg3[%c0_18, %c0_19, %c36, %c0_20] : memref<1x6x52x4xbf16, #tpu.memory_space<vmem>>, vector<1x1x16x4xbf16>
    %17 = vector.shape_cast %16 : vector<1x1x16x4xbf16> to vector<16x4xbf16>
    %cst_21 = arith.constant dense<0.000000e+00> : vector<16x128xf32>
    %18 = tpu.matmul %17, %15, %cst_21 {dimension_numbers = #tpu.dot_dimension_numbers<[1], [0], [0], [1], [0, 0, 1, 1], [], []>} : vector<16x4xbf16>, vector<4x128xbf16>, vector<16x128xf32> -> vector<16x128xf32>
    %19 = arith.addf %13, %18 : vector<16x128xf32>
    %c0_22 = arith.constant 0 : index
    %c0_23 = arith.constant 0 : index
    %c0_24 = arith.constant 0 : index
    %20 = vector.load %arg7[%c0_22, %c0_23, %c0_24] : memref<6x16x128xf32, #tpu.memory_space<vmem>>, vector<1x16x128xf32>
    %21 = vector.shape_cast %20 : vector<1x16x128xf32> to vector<16x128xf32>
    %22 = arith.addf %21, %19 : vector<16x128xf32>
    %c0_25 = arith.constant 0 : index
    %c0_26 = arith.constant 0 : index
    %c0_27 = arith.constant 0 : index
    %23 = vector.load %arg7[%c0_25, %c0_26, %c0_27] : memref<6x16x128xf32, #tpu.memory_space<vmem>>, vector<1x16x128xf32>
    %24 = vector.shape_cast %23 : vector<1x16x128xf32> to vector<16x128xf32>
    %25 = vector.shape_cast %22 : vector<16x128xf32> to vector<1x16x128xf32>
    tpu.vector_store %arg7[%c0_25, %c0_26, %c0_27], %25 {strides = array<i32>} : memref<6x16x128xf32, #tpu.memory_space<vmem>>, vector<1x16x128xf32>,
    %c0_28 = arith.constant 0 : index
    %c0_29 = arith.constant 0 : index
    %c0_30 = arith.constant 0 : index
    %c0_31 = arith.constant 0 : index
    %26 = vector.load %arg4[%c0_28, %c0_29, %c0_30, %c0_31] : memref<1x3x4x128xbf16, #tpu.memory_space<vmem>>, vector<1x1x4x128xbf16>
    %27 = vector.shape_cast %26 : vector<1x1x4x128xbf16> to vector<4x128xbf16>
    %c0_32 = arith.constant 0 : index
    %c1_33 = arith.constant 1 : index
    %c0_34 = arith.constant 0 : index
    %c0_35 = arith.constant 0 : index
    %28 = vector.load %arg3[%c0_32, %c1_33, %c0_34, %c0_35] : memref<1x6x52x4xbf16, #tpu.memory_space<vmem>>, vector<1x1x16x4xbf16>
    %29 = vector.shape_cast %28 : vector<1x1x16x4xbf16> to vector<16x4xbf16>
    %cst_36 = arith.constant dense<0.000000e+00> : vector<16x128xf32>
    %30 = tpu.matmul %29, %27, %cst_36 {dimension_numbers = #tpu.dot_dimension_numbers<[1], [0], [0], [1], [0, 0, 1, 1], [], []>} : vector<16x4xbf16>, vector<4x128xbf16>, vector<16x128xf32> -> vector<16x128xf32>
    %c0_37 = arith.constant 0 : index
    %c1_38 = arith.constant 1 : index
    %c0_39 = arith.constant 0 : index
    %c0_40 = arith.constant 0 : index
    %31 = vector.load %arg4[%c0_37, %c1_38, %c0_39, %c0_40] : memref<1x3x4x128xbf16, #tpu.memory_space<vmem>>, vector<1x1x4x128xbf16>
    %32 = vector.shape_cast %31 : vector<1x1x4x128xbf16> to vector<4x128xbf16>
    %c0_41 = arith.constant 0 : index
    %c1_42 = arith.constant 1 : index
    %c18_43 = arith.constant 18 : index
    %c0_44 = arith.constant 0 : index
    %33 = vector.load %arg3[%c0_41, %c1_42, %c18_43, %c0_44] : memref<1x6x52x4xbf16, #tpu.memory_space<vmem>>, vector<1x1x16x4xbf16>
    %34 = vector.shape_cast %33 : vector<1x1x16x4xbf16> to vector<16x4xbf16>
    %cst_45 = arith.constant dense<0.000000e+00> : vector<16x128xf32>
    %35 = tpu.matmul %34, %32, %cst_45 {dimension_numbers = #tpu.dot_dimension_numbers<[1], [0], [0], [1], [0, 0, 1, 1], [], []>} : vector<16x4xbf16>, vector<4x128xbf16>, vector<16x128xf32> -> vector<16x128xf32>
    %36 = arith.addf %30, %35 : vector<16x128xf32>
    %c0_46 = arith.constant 0 : index
    %c2_47 = arith.constant 2 : index
    %c0_48 = arith.constant 0 : index
    %c0_49 = arith.constant 0 : index
    %37 = vector.load %arg4[%c0_46, %c2_47, %c0_48, %c0_49] : memref<1x3x4x128xbf16, #tpu.memory_space<vmem>>, vector<1x1x4x128xbf16>
    %38 = vector.shape_cast %37 : vector<1x1x4x128xbf16> to vector<4x128xbf16>
    %c0_50 = arith.constant 0 : index
    %c1_51 = arith.constant 1 : index
    %c36_52 = arith.constant 36 : index
    %c0_53 = arith.constant 0 : index
    %39 = vector.load %arg3[%c0_50, %c1_51, %c36_52, %c0_53] : memref<1x6x52x4xbf16, #tpu.memory_space<vmem>>, vector<1x1x16x4xbf16>
    %40 = vector.shape_cast %39 : vector<1x1x16x4xbf16> to vector<16x4xbf16>
    %cst_54 = arith.constant dense<0.000000e+00> : vector<16x128xf32>
    %41 = tpu.matmul %40, %38, %cst_54 {dimension_numbers = #tpu.dot_dimension_numbers<[1], [0], [0], [1], [0, 0, 1, 1], [], []>} : vector<16x4xbf16>, vector<4x128xbf16>, vector<16x128xf32> -> vector<16x128xf32>
    %42 = arith.addf %36, %41 : vector<16x128xf32>
    %c1_55 = arith.constant 1 : index
    %c0_56 = arith.constant 0 : index
    %c0_57 = arith.constant 0 : index
    %43 = vector.load %arg7[%c1_55, %c0_56, %c0_57] : memref<6x16x128xf32, #tpu.memory_space<vmem>>, vector<1x16x128xf32>
    %44 = vector.shape_cast %43 : vector<1x16x128xf32> to vector<16x128xf32>
    %45 = arith.addf %44, %42 : vector<16x128xf32>
    %c1_58 = arith.constant 1 : index
    %c0_59 = arith.constant 0 : index
    %c0_60 = arith.constant 0 : index
    %46 = vector.load %arg7[%c1_58, %c0_59, %c0_60] : memref<6x16x128xf32, #tpu.memory_space<vmem>>, vector<1x16x128xf32>
    %47 = vector.shape_cast %46 : vector<1x16x128xf32> to vector<16x128xf32>
    %48 = vector.shape_cast %45 : vector<16x128xf32> to vector<1x16x128xf32>
    tpu.vector_store %arg7[%c1_58, %c0_59, %c0_60], %48 {strides = array<i32>} : memref<6x16x128xf32, #tpu.memory_space<vmem>>, vector<1x16x128xf32>,
    %c0_61 = arith.constant 0 : index
    %c0_62 = arith.constant 0 : index
    %c0_63 = arith.constant 0 : index
    %c0_64 = arith.constant 0 : index
    %49 = vector.load %arg4[%c0_61, %c0_62, %c0_63, %c0_64] : memref<1x3x4x128xbf16, #tpu.memory_space<vmem>>, vector<1x1x4x128xbf16>
    %50 = vector.shape_cast %49 : vector<1x1x4x128xbf16> to vector<4x128xbf16>
    %c0_65 = arith.constant 0 : index
    %c2_66 = arith.constant 2 : index
    %c0_67 = arith.constant 0 : index
    %c0_68 = arith.constant 0 : index
    %51 = vector.load %arg3[%c0_65, %c2_66, %c0_67, %c0_68] : memref<1x6x52x4xbf16, #tpu.memory_space<vmem>>, vector<1x1x16x4xbf16>
    %52 = vector.shape_cast %51 : vector<1x1x16x4xbf16> to vector<16x4xbf16>
    %cst_69 = arith.constant dense<0.000000e+00> : vector<16x128xf32>
    %53 = tpu.matmul %52, %50, %cst_69 {dimension_numbers = #tpu.dot_dimension_numbers<[1], [0], [0], [1], [0, 0, 1, 1], [], []>} : vector<16x4xbf16>, vector<4x128xbf16>, vector<16x128xf32> -> vector<16x128xf32>
    %c0_70 = arith.constant 0 : index
    %c1_71 = arith.constant 1 : index
    %c0_72 = arith.constant 0 : index
    %c0_73 = arith.constant 0 : index
    %54 = vector.load %arg4[%c0_70, %c1_71, %c0_72, %c0_73] : memref<1x3x4x128xbf16, #tpu.memory_space<vmem>>, vector<1x1x4x128xbf16>
    %55 = vector.shape_cast %54 : vector<1x1x4x128xbf16> to vector<4x128xbf16>
    %c0_74 = arith.constant 0 : index
    %c2_75 = arith.constant 2 : index
    %c18_76 = arith.constant 18 : index
    %c0_77 = arith.constant 0 : index
    %56 = vector.load %arg3[%c0_74, %c2_75, %c18_76, %c0_77] : memref<1x6x52x4xbf16, #tpu.memory_space<vmem>>, vector<1x1x16x4xbf16>
    %57 = vector.shape_cast %56 : vector<1x1x16x4xbf16> to vector<16x4xbf16>
    %cst_78 = arith.constant dense<0.000000e+00> : vector<16x128xf32>
    %58 = tpu.matmul %57, %55, %cst_78 {dimension_numbers = #tpu.dot_dimension_numbers<[1], [0], [0], [1], [0, 0, 1, 1], [], []>} : vector<16x4xbf16>, vector<4x128xbf16>, vector<16x128xf32> -> vector<16x128xf32>
    %59 = arith.addf %53, %58 : vector<16x128xf32>
    %c0_79 = arith.constant 0 : index
    %c2_80 = arith.constant 2 : index
    %c0_81 = arith.constant 0 : index
    %c0_82 = arith.constant 0 : index
    %60 = vector.load %arg4[%c0_79, %c2_80, %c0_81, %c0_82] : memref<1x3x4x128xbf16, #tpu.memory_space<vmem>>, vector<1x1x4x128xbf16>
    %61 = vector.shape_cast %60 : vector<1x1x4x128xbf16> to vector<4x128xbf16>
    %c0_83 = arith.constant 0 : index
    %c2_84 = arith.constant 2 : index
    %c36_85 = arith.constant 36 : index
    %c0_86 = arith.constant 0 : index
    %62 = vector.load %arg3[%c0_83, %c2_84, %c36_85, %c0_86] : memref<1x6x52x4xbf16, #tpu.memory_space<vmem>>, vector<1x1x16x4xbf16>
    %63 = vector.shape_cast %62 : vector<1x1x16x4xbf16> to vector<16x4xbf16>
    %cst_87 = arith.constant dense<0.000000e+00> : vector<16x128xf32>
    %64 = tpu.matmul %63, %61, %cst_87 {dimension_numbers = #tpu.dot_dimension_numbers<[1], [0], [0], [1], [0, 0, 1, 1], [], []>} : vector<16x4xbf16>, vector<4x128xbf16>, vector<16x128xf32> -> vector<16x128xf32>
    %65 = arith.addf %59, %64 : vector<16x128xf32>
    %c2_88 = arith.constant 2 : index
    %c0_89 = arith.constant 0 : index
    %c0_90 = arith.constant 0 : index
    %66 = vector.load %arg7[%c2_88, %c0_89, %c0_90] : memref<6x16x128xf32, #tpu.memory_space<vmem>>, vector<1x16x128xf32>
    %67 = vector.shape_cast %66 : vector<1x16x128xf32> to vector<16x128xf32>
    %68 = arith.addf %67, %65 : vector<16x128xf32>
    %c2_91 = arith.constant 2 : index
    %c0_92 = arith.constant 0 : index
    %c0_93 = arith.constant 0 : index
    %69 = vector.load %arg7[%c2_91, %c0_92, %c0_93] : memref<6x16x128xf32, #tpu.memory_space<vmem>>, vector<1x16x128xf32>
    %70 = vector.shape_cast %69 : vector<1x16x128xf32> to vector<16x128xf32>
    %71 = vector.shape_cast %68 : vector<16x128xf32> to vector<1x16x128xf32>
    tpu.vector_store %arg7[%c2_91, %c0_92, %c0_93], %71 {strides = array<i32>} : memref<6x16x128xf32, #tpu.memory_space<vmem>>, vector<1x16x128xf32>,
    %c0_94 = arith.constant 0 : index
    %c0_95 = arith.constant 0 : index
    %c0_96 = arith.constant 0 : index
    %c0_97 = arith.constant 0 : index
    %72 = vector.load %arg4[%c0_94, %c0_95, %c0_96, %c0_97] : memref<1x3x4x128xbf16, #tpu.memory_space<vmem>>, vector<1x1x4x128xbf16>
    %73 = vector.shape_cast %72 : vector<1x1x4x128xbf16> to vector<4x128xbf16>
    %c0_98 = arith.constant 0 : index
    %c3 = arith.constant 3 : index
    %c0_99 = arith.constant 0 : index
    %c0_100 = arith.constant 0 : index
    %74 = vector.load %arg3[%c0_98, %c3, %c0_99, %c0_100] : memref<1x6x52x4xbf16, #tpu.memory_space<vmem>>, vector<1x1x16x4xbf16>
    %75 = vector.shape_cast %74 : vector<1x1x16x4xbf16> to vector<16x4xbf16>
    %cst_101 = arith.constant dense<0.000000e+00> : vector<16x128xf32>
    %76 = tpu.matmul %75, %73, %cst_101 {dimension_numbers = #tpu.dot_dimension_numbers<[1], [0], [0], [1], [0, 0, 1, 1], [], []>} : vector<16x4xbf16>, vector<4x128xbf16>, vector<16x128xf32> -> vector<16x128xf32>
    %c0_102 = arith.constant 0 : index
    %c1_103 = arith.constant 1 : index
    %c0_104 = arith.constant 0 : index
    %c0_105 = arith.constant 0 : index
    %77 = vector.load %arg4[%c0_102, %c1_103, %c0_104, %c0_105] : memref<1x3x4x128xbf16, #tpu.memory_space<vmem>>, vector<1x1x4x128xbf16>
    %78 = vector.shape_cast %77 : vector<1x1x4x128xbf16> to vector<4x128xbf16>
    %c0_106 = arith.constant 0 : index
    %c3_107 = arith.constant 3 : index
    %c18_108 = arith.constant 18 : index
    %c0_109 = arith.constant 0 : index
    %79 = vector.load %arg3[%c0_106, %c3_107, %c18_108, %c0_109] : memref<1x6x52x4xbf16, #tpu.memory_space<vmem>>, vector<1x1x16x4xbf16>
    %80 = vector.shape_cast %79 : vector<1x1x16x4xbf16> to vector<16x4xbf16>
    %cst_110 = arith.constant dense<0.000000e+00> : vector<16x128xf32>
    %81 = tpu.matmul %80, %78, %cst_110 {dimension_numbers = #tpu.dot_dimension_numbers<[1], [0], [0], [1], [0, 0, 1, 1], [], []>} : vector<16x4xbf16>, vector<4x128xbf16>, vector<16x128xf32> -> vector<16x128xf32>
    %82 = arith.addf %76, %81 : vector<16x128xf32>
    %c0_111 = arith.constant 0 : index
    %c2_112 = arith.constant 2 : index
    %c0_113 = arith.constant 0 : index
    %c0_114 = arith.constant 0 : index
    %83 = vector.load %arg4[%c0_111, %c2_112, %c0_113, %c0_114] : memref<1x3x4x128xbf16, #tpu.memory_space<vmem>>, vector<1x1x4x128xbf16>
    %84 = vector.shape_cast %83 : vector<1x1x4x128xbf16> to vector<4x128xbf16>
    %c0_115 = arith.constant 0 : index
    %c3_116 = arith.constant 3 : index
    %c36_117 = arith.constant 36 : index
    %c0_118 = arith.constant 0 : index
    %85 = vector.load %arg3[%c0_115, %c3_116, %c36_117, %c0_118] : memref<1x6x52x4xbf16, #tpu.memory_space<vmem>>, vector<1x1x16x4xbf16>
    %86 = vector.shape_cast %85 : vector<1x1x16x4xbf16> to vector<16x4xbf16>
    %cst_119 = arith.constant dense<0.000000e+00> : vector<16x128xf32>
    %87 = tpu.matmul %86, %84, %cst_119 {dimension_numbers = #tpu.dot_dimension_numbers<[1], [0], [0], [1], [0, 0, 1, 1], [], []>} : vector<16x4xbf16>, vector<4x128xbf16>, vector<16x128xf32> -> vector<16x128xf32>
    %88 = arith.addf %82, %87 : vector<16x128xf32>
    %c3_120 = arith.constant 3 : index
    %c0_121 = arith.constant 0 : index
    %c0_122 = arith.constant 0 : index
    %89 = vector.load %arg7[%c3_120, %c0_121, %c0_122] : memref<6x16x128xf32, #tpu.memory_space<vmem>>, vector<1x16x128xf32>
    %90 = vector.shape_cast %89 : vector<1x16x128xf32> to vector<16x128xf32>
    %91 = arith.addf %90, %88 : vector<16x128xf32>
    %c3_123 = arith.constant 3 : index
    %c0_124 = arith.constant 0 : index
    %c0_125 = arith.constant 0 : index
    %92 = vector.load %arg7[%c3_123, %c0_124, %c0_125] : memref<6x16x128xf32, #tpu.memory_space<vmem>>, vector<1x16x128xf32>
    %93 = vector.shape_cast %92 : vector<1x16x128xf32> to vector<16x128xf32>
    %94 = vector.shape_cast %91 : vector<16x128xf32> to vector<1x16x128xf32>
    tpu.vector_store %arg7[%c3_123, %c0_124, %c0_125], %94 {strides = array<i32>} : memref<6x16x128xf32, #tpu.memory_space<vmem>>, vector<1x16x128xf32>,
    %c0_126 = arith.constant 0 : index
    %c0_127 = arith.constant 0 : index
    %c0_128 = arith.constant 0 : index
    %c0_129 = arith.constant 0 : index
    %95 = vector.load %arg4[%c0_126, %c0_127, %c0_128, %c0_129] : memref<1x3x4x128xbf16, #tpu.memory_space<vmem>>, vector<1x1x4x128xbf16>
    %96 = vector.shape_cast %95 : vector<1x1x4x128xbf16> to vector<4x128xbf16>
    %c0_130 = arith.constant 0 : index
    %c4 = arith.constant 4 : index
    %c0_131 = arith.constant 0 : index
    %c0_132 = arith.constant 0 : index
    %97 = vector.load %arg3[%c0_130, %c4, %c0_131, %c0_132] : memref<1x6x52x4xbf16, #tpu.memory_space<vmem>>, vector<1x1x16x4xbf16>
    %98 = vector.shape_cast %97 : vector<1x1x16x4xbf16> to vector<16x4xbf16>
    %cst_133 = arith.constant dense<0.000000e+00> : vector<16x128xf32>
    %99 = tpu.matmul %98, %96, %cst_133 {dimension_numbers = #tpu.dot_dimension_numbers<[1], [0], [0], [1], [0, 0, 1, 1], [], []>} : vector<16x4xbf16>, vector<4x128xbf16>, vector<16x128xf32> -> vector<16x128xf32>
    %c0_134 = arith.constant 0 : index
    %c1_135 = arith.constant 1 : index
    %c0_136 = arith.constant 0 : index
    %c0_137 = arith.constant 0 : index
    %100 = vector.load %arg4[%c0_134, %c1_135, %c0_136, %c0_137] : memref<1x3x4x128xbf16, #tpu.memory_space<vmem>>, vector<1x1x4x128xbf16>
    %101 = vector.shape_cast %100 : vector<1x1x4x128xbf16> to vector<4x128xbf16>
    %c0_138 = arith.constant 0 : index
    %c4_139 = arith.constant 4 : index
    %c18_140 = arith.constant 18 : index
    %c0_141 = arith.constant 0 : index
    %102 = vector.load %arg3[%c0_138, %c4_139, %c18_140, %c0_141] : memref<1x6x52x4xbf16, #tpu.memory_space<vmem>>, vector<1x1x16x4xbf16>
    %103 = vector.shape_cast %102 : vector<1x1x16x4xbf16> to vector<16x4xbf16>
    %cst_142 = arith.constant dense<0.000000e+00> : vector<16x128xf32>
    %104 = tpu.matmul %103, %101, %cst_142 {dimension_numbers = #tpu.dot_dimension_numbers<[1], [0], [0], [1], [0, 0, 1, 1], [], []>} : vector<16x4xbf16>, vector<4x128xbf16>, vector<16x128xf32> -> vector<16x128xf32>
    %105 = arith.addf %99, %104 : vector<16x128xf32>
    %c0_143 = arith.constant 0 : index
    %c2_144 = arith.constant 2 : index
    %c0_145 = arith.constant 0 : index
    %c0_146 = arith.constant 0 : index
    %106 = vector.load %arg4[%c0_143, %c2_144, %c0_145, %c0_146] : memref<1x3x4x128xbf16, #tpu.memory_space<vmem>>, vector<1x1x4x128xbf16>
    %107 = vector.shape_cast %106 : vector<1x1x4x128xbf16> to vector<4x128xbf16>
    %c0_147 = arith.constant 0 : index
    %c4_148 = arith.constant 4 : index
    %c36_149 = arith.constant 36 : index
    %c0_150 = arith.constant 0 : index
    %108 = vector.load %arg3[%c0_147, %c4_148, %c36_149, %c0_150] : memref<1x6x52x4xbf16, #tpu.memory_space<vmem>>, vector<1x1x16x4xbf16>
    %109 = vector.shape_cast %108 : vector<1x1x16x4xbf16> to vector<16x4xbf16>
    %cst_151 = arith.constant dense<0.000000e+00> : vector<16x128xf32>
    %110 = tpu.matmul %109, %107, %cst_151 {dimension_numbers = #tpu.dot_dimension_numbers<[1], [0], [0], [1], [0, 0, 1, 1], [], []>} : vector<16x4xbf16>, vector<4x128xbf16>, vector<16x128xf32> -> vector<16x128xf32>
    %111 = arith.addf %105, %110 : vector<16x128xf32>
    %c4_152 = arith.constant 4 : index
    %c0_153 = arith.constant 0 : index
    %c0_154 = arith.constant 0 : index
    %112 = vector.load %arg7[%c4_152, %c0_153, %c0_154] : memref<6x16x128xf32, #tpu.memory_space<vmem>>, vector<1x16x128xf32>
    %113 = vector.shape_cast %112 : vector<1x16x128xf32> to vector<16x128xf32>
    %114 = arith.addf %113, %111 : vector<16x128xf32>
    %c4_155 = arith.constant 4 : index
    %c0_156 = arith.constant 0 : index
    %c0_157 = arith.constant 0 : index
    %115 = vector.load %arg7[%c4_155, %c0_156, %c0_157] : memref<6x16x128xf32, #tpu.memory_space<vmem>>, vector<1x16x128xf32>
    %116 = vector.shape_cast %115 : vector<1x16x128xf32> to vector<16x128xf32>
    %117 = vector.shape_cast %114 : vector<16x128xf32> to vector<1x16x128xf32>
    tpu.vector_store %arg7[%c4_155, %c0_156, %c0_157], %117 {strides = array<i32>} : memref<6x16x128xf32, #tpu.memory_space<vmem>>, vector<1x16x128xf32>,
    %c0_158 = arith.constant 0 : index
    %c0_159 = arith.constant 0 : index
    %c0_160 = arith.constant 0 : index
    %c0_161 = arith.constant 0 : index
    %118 = vector.load %arg4[%c0_158, %c0_159, %c0_160, %c0_161] : memref<1x3x4x128xbf16, #tpu.memory_space<vmem>>, vector<1x1x4x128xbf16>
    %119 = vector.shape_cast %118 : vector<1x1x4x128xbf16> to vector<4x128xbf16>
    %c0_162 = arith.constant 0 : index
    %c5 = arith.constant 5 : index
    %c0_163 = arith.constant 0 : index
    %c0_164 = arith.constant 0 : index
    %120 = vector.load %arg3[%c0_162, %c5, %c0_163, %c0_164] : memref<1x6x52x4xbf16, #tpu.memory_space<vmem>>, vector<1x1x16x4xbf16>
    %121 = vector.shape_cast %120 : vector<1x1x16x4xbf16> to vector<16x4xbf16>
    %cst_165 = arith.constant dense<0.000000e+00> : vector<16x128xf32>
    %122 = tpu.matmul %121, %119, %cst_165 {dimension_numbers = #tpu.dot_dimension_numbers<[1], [0], [0], [1], [0, 0, 1, 1], [], []>} : vector<16x4xbf16>, vector<4x128xbf16>, vector<16x128xf32> -> vector<16x128xf32>
    %c0_166 = arith.constant 0 : index
    %c1_167 = arith.constant 1 : index
    %c0_168 = arith.constant 0 : index
    %c0_169 = arith.constant 0 : index
    %123 = vector.load %arg4[%c0_166, %c1_167, %c0_168, %c0_169] : memref<1x3x4x128xbf16, #tpu.memory_space<vmem>>, vector<1x1x4x128xbf16>
    %124 = vector.shape_cast %123 : vector<1x1x4x128xbf16> to vector<4x128xbf16>
    %c0_170 = arith.constant 0 : index
    %c5_171 = arith.constant 5 : index
    %c18_172 = arith.constant 18 : index
    %c0_173 = arith.constant 0 : index
    %125 = vector.load %arg3[%c0_170, %c5_171, %c18_172, %c0_173] : memref<1x6x52x4xbf16, #tpu.memory_space<vmem>>, vector<1x1x16x4xbf16>
    %126 = vector.shape_cast %125 : vector<1x1x16x4xbf16> to vector<16x4xbf16>
    %cst_174 = arith.constant dense<0.000000e+00> : vector<16x128xf32>
    %127 = tpu.matmul %126, %124, %cst_174 {dimension_numbers = #tpu.dot_dimension_numbers<[1], [0], [0], [1], [0, 0, 1, 1], [], []>} : vector<16x4xbf16>, vector<4x128xbf16>, vector<16x128xf32> -> vector<16x128xf32>
    %128 = arith.addf %122, %127 : vector<16x128xf32>
    %c0_175 = arith.constant 0 : index
    %c2_176 = arith.constant 2 : index
    %c0_177 = arith.constant 0 : index
    %c0_178 = arith.constant 0 : index
    %129 = vector.load %arg4[%c0_175, %c2_176, %c0_177, %c0_178] : memref<1x3x4x128xbf16, #tpu.memory_space<vmem>>, vector<1x1x4x128xbf16>
    %130 = vector.shape_cast %129 : vector<1x1x4x128xbf16> to vector<4x128xbf16>
    %c0_179 = arith.constant 0 : index
    %c5_180 = arith.constant 5 : index
    %c36_181 = arith.constant 36 : index
    %c0_182 = arith.constant 0 : index
    %131 = vector.load %arg3[%c0_179, %c5_180, %c36_181, %c0_182] : memref<1x6x52x4xbf16, #tpu.memory_space<vmem>>, vector<1x1x16x4xbf16>
    %132 = vector.shape_cast %131 : vector<1x1x16x4xbf16> to vector<16x4xbf16>
    %cst_183 = arith.constant dense<0.000000e+00> : vector<16x128xf32>
    %133 = tpu.matmul %132, %130, %cst_183 {dimension_numbers = #tpu.dot_dimension_numbers<[1], [0], [0], [1], [0, 0, 1, 1], [], []>} : vector<16x4xbf16>, vector<4x128xbf16>, vector<16x128xf32> -> vector<16x128xf32>
    %134 = arith.addf %128, %133 : vector<16x128xf32>
    %c5_184 = arith.constant 5 : index
    %c0_185 = arith.constant 0 : index
    %c0_186 = arith.constant 0 : index
    %135 = vector.load %arg7[%c5_184, %c0_185, %c0_186] : memref<6x16x128xf32, #tpu.memory_space<vmem>>, vector<1x16x128xf32>
    %136 = vector.shape_cast %135 : vector<1x16x128xf32> to vector<16x128xf32>
    %137 = arith.addf %136, %134 : vector<16x128xf32>
    %c5_187 = arith.constant 5 : index
    %c0_188 = arith.constant 0 : index
    %c0_189 = arith.constant 0 : index
    %138 = vector.load %arg7[%c5_187, %c0_188, %c0_189] : memref<6x16x128xf32, #tpu.memory_space<vmem>>, vector<1x16x128xf32>
    %139 = vector.shape_cast %138 : vector<1x16x128xf32> to vector<16x128xf32>
    %140 = vector.shape_cast %137 : vector<16x128xf32> to vector<1x16x128xf32>
    tpu.vector_store %arg7[%c5_187, %c0_188, %c0_189], %140 {strides = array<i32>} : memref<6x16x128xf32, #tpu.memory_space<vmem>>, vector<1x16x128xf32>,
    %c2_i32 = arith.constant 2 : i32
    %141 = arith.cmpi eq, %arg2, %c2_i32 : i32
    %142 = arith.extui %141 : i1 to i32
    %c0_i32_190 = arith.constant 0 : i32
    %143 = arith.cmpi ne, %142, %c0_i32_190 : i32
    scf.if %143 {
      %c0_191 = arith.constant 0 : index
      %c0_192 = arith.constant 0 : index
      %c0_193 = arith.constant 0 : index
      %144 = vector.load %arg7[%c0_191, %c0_192, %c0_193] : memref<6x16x128xf32, #tpu.memory_space<vmem>>, vector<6x16x128xf32>
      %c0_194 = arith.constant 0 : index
      %c0_195 = arith.constant 0 : index
      %c0_196 = arith.constant 0 : index
      %145 = vector.load %arg5[%c0_194, %c0_195, %c0_196] : memref<1x1x128xf32, #tpu.memory_space<vmem>>, vector<1x1x128xf32>
      %146 = vector.broadcast %145 : vector<1x1x128xf32> to vector<6x16x128xf32>
      %147 = arith.addf %144, %146 : vector<6x16x128xf32>
      %cst_197 = arith.constant 0.000000e+00 : f32
      %148 = vector.broadcast %cst_197 : f32 to vector<6x16x128xf32>
      %149 = arith.maximumf %147, %148 : vector<6x16x128xf32>
      %150 = arith.truncf %149 : vector<6x16x128xf32> to vector<6x16x128xbf16>
      %c0_198 = arith.constant 0 : index
      %c0_199 = arith.constant 0 : index
      %c0_200 = arith.constant 0 : index
      %c0_201 = arith.constant 0 : index
      %151 = vector.load %arg6[%c0_198, %c0_199, %c0_200, %c0_201] : memref<1x6x16x128xbf16, #tpu.memory_space<vmem>>, vector<1x6x16x128xbf16>
      %152 = vector.shape_cast %151 : vector<1x6x16x128xbf16> to vector<6x16x128xbf16>
      %153 = vector.shape_cast %150 : vector<6x16x128xbf16> to vector<1x6x16x128xbf16>
      tpu.vector_store %arg6[%c0_198, %c0_199, %c0_200, %c0_201], %153 {strides = array<i32>} : memref<1x6x16x128xbf16, #tpu.memory_space<vmem>>, vector<1x6x16x128xbf16>,
    } else {
    }
    return
  }
  func.func @transform_0(%arg0: i32, %arg1: i32, %arg2: i32) -> (i32, i32, i32, i32) {
    %c3_i32 = arith.constant 3 : i32
    %0 = arith.muli %arg2, %c3_i32 : i32
    %1 = arith.addi %arg1, %0 : i32
    %c0_i32 = arith.constant 0 : i32
    %2 = arith.addi %1, %c0_i32 : i32
    %c0_i32_0 = arith.constant 0 : i32
    %c0_i32_1 = arith.constant 0 : i32
    %c0_i32_2 = arith.constant 0 : i32
    return %arg0, %2, %c0_i32_0, %c0_i32_1 : i32, i32, i32, i32
  }
  func.func @transform_1(%arg0: i32, %arg1: i32, %arg2: i32) -> (i32, i32, i32, i32) {
    %c0_i32 = arith.constant 0 : i32
    %c0_i32_0 = arith.constant 0 : i32
    %c0_i32_1 = arith.constant 0 : i32
    %c0_i32_2 = arith.constant 0 : i32
    return %arg2, %c0_i32, %c0_i32_0, %c0_i32_1 : i32, i32, i32, i32
  }
  func.func @transform_2(%arg0: i32, %arg1: i32, %arg2: i32) -> (i32, i32, i32) {
    %c0_i32 = arith.constant 0 : i32
    %c0_i32_0 = arith.constant 0 : i32
    %c0_i32_1 = arith.constant 0 : i32
    %c0_i32_2 = arith.constant 0 : i32
    return %c0_i32, %c0_i32_0, %c0_i32_1 : i32, i32, i32
  }
  func.func @transform_3(%arg0: i32, %arg1: i32, %arg2: i32) -> (i32, i32, i32, i32) {
    %c0_i32 = arith.constant 0 : i32
    %c0_i32_0 = arith.constant 0 : i32
    %c0_i32_1 = arith.constant 0 : i32
    return %arg0, %arg1, %c0_i32, %c0_i32_0 : i32, i32, i32, i32
  }
}

module attributes {stable_mosaic.version = 11 : i64} {
  func.func @_mm_bias_act_kernel(%arg0: i32, %arg1: i32, %arg2: i32, %arg3: memref<256x4xbf16, #tpu.memory_space<vmem>>, %arg4: memref<4x128xbf16, #tpu.memory_space<vmem>>, %arg5: memref<1x128xf32, #tpu.memory_space<vmem>>, %arg6: memref<256x128xbf16, #tpu.memory_space<vmem>>, %arg7: memref<256x128xf32, #tpu.memory_space<vmem>>) attributes {dimension_semantics = [#tpu.dimension_semantics<parallel>, #tpu.dimension_semantics<parallel>, #tpu.dimension_semantics<arbitrary>], iteration_bounds = array<i64: 2, 1, 1>, scalar_prefetch = 0 : i64, scratch_operands = 1 : i64, tpu.core_type = #tpu.core_type<tc>, window_params = [{transform_indices = @transform_0, window_bounds = array<i64: 256, 4>}, {transform_indices = @transform_1, window_bounds = array<i64: 4, 128>}, {transform_indices = @transform_2, window_bounds = array<i64: 1, 128>}, {transform_indices = @transform_3, window_bounds = array<i64: 256, 128>}]} {
    %c0_i32 = arith.constant 0 : i32
    %0 = arith.cmpi eq, %arg2, %c0_i32 : i32
    %1 = arith.extui %0 : i1 to i32
    %c0_i32_0 = arith.constant 0 : i32
    %2 = arith.cmpi ne, %1, %c0_i32_0 : i32
    scf.if %2 {
      %cst_10 = arith.constant 0.000000e+00 : f32
      %12 = vector.broadcast %cst_10 : f32 to vector<256x128xf32>
      %c0_11 = arith.constant 0 : index
      %c0_12 = arith.constant 0 : index
      %13 = vector.load %arg7[%c0_11, %c0_12] : memref<256x128xf32, #tpu.memory_space<vmem>>, vector<256x128xf32>
      tpu.vector_store %arg7[%c0_11, %c0_12], %12 {strides = array<i32>} : memref<256x128xf32, #tpu.memory_space<vmem>>, vector<256x128xf32>,
    } else {
    }
    %c0 = arith.constant 0 : index
    %c0_1 = arith.constant 0 : index
    %3 = vector.load %arg7[%c0, %c0_1] : memref<256x128xf32, #tpu.memory_space<vmem>>, vector<256x128xf32>
    %c0_2 = arith.constant 0 : index
    %c0_3 = arith.constant 0 : index
    %4 = vector.load %arg3[%c0_2, %c0_3] : memref<256x4xbf16, #tpu.memory_space<vmem>>, vector<256x4xbf16>
    %c0_4 = arith.constant 0 : index
    %c0_5 = arith.constant 0 : index
    %5 = vector.load %arg4[%c0_4, %c0_5] : memref<4x128xbf16, #tpu.memory_space<vmem>>, vector<4x128xbf16>
    %cst = arith.constant dense<0.000000e+00> : vector<256x128xf32>
    %6 = tpu.matmul %4, %5, %cst {dimension_numbers = #tpu.dot_dimension_numbers<[1], [0], [0], [1], [0, 0, 1, 1], [], []>} : vector<256x4xbf16>, vector<4x128xbf16>, vector<256x128xf32> -> vector<256x128xf32>
    %7 = arith.addf %3, %6 : vector<256x128xf32>
    %c0_6 = arith.constant 0 : index
    %c0_7 = arith.constant 0 : index
    %8 = vector.load %arg7[%c0_6, %c0_7] : memref<256x128xf32, #tpu.memory_space<vmem>>, vector<256x128xf32>
    tpu.vector_store %arg7[%c0_6, %c0_7], %7 {strides = array<i32>} : memref<256x128xf32, #tpu.memory_space<vmem>>, vector<256x128xf32>,
    %c0_i32_8 = arith.constant 0 : i32
    %9 = arith.cmpi eq, %arg2, %c0_i32_8 : i32
    %10 = arith.extui %9 : i1 to i32
    %c0_i32_9 = arith.constant 0 : i32
    %11 = arith.cmpi ne, %10, %c0_i32_9 : i32
    scf.if %11 {
      %c0_10 = arith.constant 0 : index
      %c0_11 = arith.constant 0 : index
      %12 = vector.load %arg7[%c0_10, %c0_11] : memref<256x128xf32, #tpu.memory_space<vmem>>, vector<256x128xf32>
      %c0_12 = arith.constant 0 : index
      %c0_13 = arith.constant 0 : index
      %13 = vector.load %arg5[%c0_12, %c0_13] : memref<1x128xf32, #tpu.memory_space<vmem>>, vector<1x128xf32>
      %14 = vector.broadcast %13 : vector<1x128xf32> to vector<256x128xf32>
      %15 = arith.addf %12, %14 : vector<256x128xf32>
      %cst_14 = arith.constant 0.000000e+00 : f32
      %16 = vector.broadcast %cst_14 : f32 to vector<256x128xf32>
      %17 = arith.maximumf %15, %16 : vector<256x128xf32>
      %18 = arith.truncf %17 : vector<256x128xf32> to vector<256x128xbf16>
      %c0_15 = arith.constant 0 : index
      %c0_16 = arith.constant 0 : index
      %19 = vector.load %arg6[%c0_15, %c0_16] : memref<256x128xbf16, #tpu.memory_space<vmem>>, vector<256x128xbf16>
      tpu.vector_store %arg6[%c0_15, %c0_16], %18 {strides = array<i32>} : memref<256x128xbf16, #tpu.memory_space<vmem>>, vector<256x128xbf16>,
    } else {
    }
    return
  }
  func.func @transform_0(%arg0: i32, %arg1: i32, %arg2: i32) -> (i32, i32) {
    %c0_i32 = arith.constant 0 : i32
    return %arg0, %arg2 : i32, i32
  }
  func.func @transform_1(%arg0: i32, %arg1: i32, %arg2: i32) -> (i32, i32) {
    %c0_i32 = arith.constant 0 : i32
    return %arg2, %arg1 : i32, i32
  }
  func.func @transform_2(%arg0: i32, %arg1: i32, %arg2: i32) -> (i32, i32) {
    %c0_i32 = arith.constant 0 : i32
    %c0_i32_0 = arith.constant 0 : i32
    return %c0_i32, %arg1 : i32, i32
  }
  func.func @transform_3(%arg0: i32, %arg1: i32, %arg2: i32) -> (i32, i32) {
    %c0_i32 = arith.constant 0 : i32
    return %arg0, %arg1 : i32, i32
  }
}

module attributes {stable_mosaic.version = 11 : i64} {
  func.func @_c5_fused_kernel(%arg0: i32, %arg1: i32, %arg2: memref<256x4xf32, #tpu.memory_space<vmem>>, %arg3: memref<1x4x128xf32, #tpu.memory_space<vmem>>, %arg4: memref<1x256x128xbf16, #tpu.memory_space<vmem>>, %arg5: memref<1x256x128xbf16, #tpu.memory_space<vmem>>, %arg6: memref<1x256x128xbf16, #tpu.memory_space<vmem>>, %arg7: memref<1x256x128xbf16, #tpu.memory_space<vmem>>, %arg8: memref<128x128xbf16, #tpu.memory_space<vmem>>, %arg9: memref<128x128xbf16, #tpu.memory_space<vmem>>, %arg10: memref<128x128xbf16, #tpu.memory_space<vmem>>, %arg11: memref<128x128xbf16, #tpu.memory_space<vmem>>, %arg12: memref<1x128xf32, #tpu.memory_space<vmem>>, %arg13: memref<1x256x128xf32, #tpu.memory_space<vmem>>) attributes {dimension_semantics = [#tpu.dimension_semantics<parallel>, #tpu.dimension_semantics<parallel>], iteration_bounds = array<i64: 2, 1>, scalar_prefetch = 0 : i64, scratch_operands = 0 : i64, tpu.core_type = #tpu.core_type<tc>, window_params = [{transform_indices = @transform_0, window_bounds = array<i64: 256, 4>}, {transform_indices = @transform_1, window_bounds = array<i64: 1, 4, 128>}, {transform_indices = @transform_2, window_bounds = array<i64: 1, 256, 128>}, {transform_indices = @transform_3, window_bounds = array<i64: 1, 256, 128>}, {transform_indices = @transform_4, window_bounds = array<i64: 1, 256, 128>}, {transform_indices = @transform_5, window_bounds = array<i64: 1, 256, 128>}, {pipeline_mode = #tpu.pipeline_mode<synchronous>, transform_indices = @transform_6, window_bounds = array<i64: 128, 128>}, {pipeline_mode = #tpu.pipeline_mode<synchronous>, transform_indices = @transform_7, window_bounds = array<i64: 128, 128>}, {pipeline_mode = #tpu.pipeline_mode<synchronous>, transform_indices = @transform_8, window_bounds = array<i64: 128, 128>}, {pipeline_mode = #tpu.pipeline_mode<synchronous>, transform_indices = @transform_9, window_bounds = array<i64: 128, 128>}, {pipeline_mode = #tpu.pipeline_mode<synchronous>, transform_indices = @transform_10, window_bounds = array<i64: 1, 128>}, {transform_indices = @transform_11, window_bounds = array<i64: 1, 256, 128>}]} {
    %c0 = arith.constant 0 : index
    %c0_0 = arith.constant 0 : index
    %0 = vector.load %arg2[%c0, %c0_0] : memref<256x4xf32, #tpu.memory_space<vmem>>, vector<256x4xf32>
    %c0_1 = arith.constant 0 : index
    %c0_2 = arith.constant 0 : index
    %c0_3 = arith.constant 0 : index
    %1 = vector.load %arg3[%c0_1, %c0_2, %c0_3] : memref<1x4x128xf32, #tpu.memory_space<vmem>>, vector<1x4x128xf32>
    %2 = vector.shape_cast %1 : vector<1x4x128xf32> to vector<4x128xf32>
    %cst = arith.constant dense<0.000000e+00> : vector<256x128xf32>
    %3 = tpu.matmul %0, %2, %cst {dimension_numbers = #tpu.dot_dimension_numbers<[1], [0], [0], [1], [0, 0, 1, 1], [], []>} : vector<256x4xf32>, vector<4x128xf32>, vector<256x128xf32> -> vector<256x128xf32>
    %c0_4 = arith.constant 0 : index
    %c0_5 = arith.constant 0 : index
    %c0_6 = arith.constant 0 : index
    %4 = vector.load %arg4[%c0_4, %c0_5, %c0_6] : memref<1x256x128xbf16, #tpu.memory_space<vmem>>, vector<1x256x128xbf16>
    %5 = vector.shape_cast %4 : vector<1x256x128xbf16> to vector<256x128xbf16>
    %c0_7 = arith.constant 0 : index
    %c0_8 = arith.constant 0 : index
    %6 = vector.load %arg8[%c0_7, %c0_8] : memref<128x128xbf16, #tpu.memory_space<vmem>>, vector<128x128xbf16>
    %cst_9 = arith.constant dense<0.000000e+00> : vector<256x128xf32>
    %7 = tpu.matmul %5, %6, %cst_9 {dimension_numbers = #tpu.dot_dimension_numbers<[1], [0], [0], [1], [0, 0, 1, 1], [], []>} : vector<256x128xbf16>, vector<128x128xbf16>, vector<256x128xf32> -> vector<256x128xf32>
    %8 = arith.addf %3, %7 : vector<256x128xf32>
    %c0_10 = arith.constant 0 : index
    %c0_11 = arith.constant 0 : index
    %c0_12 = arith.constant 0 : index
    %9 = vector.load %arg5[%c0_10, %c0_11, %c0_12] : memref<1x256x128xbf16, #tpu.memory_space<vmem>>, vector<1x256x128xbf16>
    %10 = vector.shape_cast %9 : vector<1x256x128xbf16> to vector<256x128xbf16>
    %c0_13 = arith.constant 0 : index
    %c0_14 = arith.constant 0 : index
    %11 = vector.load %arg9[%c0_13, %c0_14] : memref<128x128xbf16, #tpu.memory_space<vmem>>, vector<128x128xbf16>
    %cst_15 = arith.constant dense<0.000000e+00> : vector<256x128xf32>
    %12 = tpu.matmul %10, %11, %cst_15 {dimension_numbers = #tpu.dot_dimension_numbers<[1], [0], [0], [1], [0, 0, 1, 1], [], []>} : vector<256x128xbf16>, vector<128x128xbf16>, vector<256x128xf32> -> vector<256x128xf32>
    %13 = arith.addf %8, %12 : vector<256x128xf32>
    %c0_16 = arith.constant 0 : index
    %c0_17 = arith.constant 0 : index
    %c0_18 = arith.constant 0 : index
    %14 = vector.load %arg6[%c0_16, %c0_17, %c0_18] : memref<1x256x128xbf16, #tpu.memory_space<vmem>>, vector<1x256x128xbf16>
    %15 = vector.shape_cast %14 : vector<1x256x128xbf16> to vector<256x128xbf16>
    %c0_19 = arith.constant 0 : index
    %c0_20 = arith.constant 0 : index
    %16 = vector.load %arg10[%c0_19, %c0_20] : memref<128x128xbf16, #tpu.memory_space<vmem>>, vector<128x128xbf16>
    %cst_21 = arith.constant dense<0.000000e+00> : vector<256x128xf32>
    %17 = tpu.matmul %15, %16, %cst_21 {dimension_numbers = #tpu.dot_dimension_numbers<[1], [0], [0], [1], [0, 0, 1, 1], [], []>} : vector<256x128xbf16>, vector<128x128xbf16>, vector<256x128xf32> -> vector<256x128xf32>
    %18 = arith.addf %13, %17 : vector<256x128xf32>
    %c0_22 = arith.constant 0 : index
    %c0_23 = arith.constant 0 : index
    %c0_24 = arith.constant 0 : index
    %19 = vector.load %arg7[%c0_22, %c0_23, %c0_24] : memref<1x256x128xbf16, #tpu.memory_space<vmem>>, vector<1x256x128xbf16>
    %20 = vector.shape_cast %19 : vector<1x256x128xbf16> to vector<256x128xbf16>
    %c0_25 = arith.constant 0 : index
    %c0_26 = arith.constant 0 : index
    %21 = vector.load %arg11[%c0_25, %c0_26] : memref<128x128xbf16, #tpu.memory_space<vmem>>, vector<128x128xbf16>
    %cst_27 = arith.constant dense<0.000000e+00> : vector<256x128xf32>
    %22 = tpu.matmul %20, %21, %cst_27 {dimension_numbers = #tpu.dot_dimension_numbers<[1], [0], [0], [1], [0, 0, 1, 1], [], []>} : vector<256x128xbf16>, vector<128x128xbf16>, vector<256x128xf32> -> vector<256x128xf32>
    %23 = arith.addf %18, %22 : vector<256x128xf32>
    %c0_28 = arith.constant 0 : index
    %c0_29 = arith.constant 0 : index
    %24 = vector.load %arg12[%c0_28, %c0_29] : memref<1x128xf32, #tpu.memory_space<vmem>>, vector<1x128xf32>
    %25 = vector.broadcast %24 : vector<1x128xf32> to vector<256x128xf32>
    %26 = arith.addf %23, %25 : vector<256x128xf32>
    %cst_30 = arith.constant 0.000000e+00 : f32
    %27 = vector.broadcast %cst_30 : f32 to vector<256x128xf32>
    %28 = arith.maximumf %26, %27 : vector<256x128xf32>
    %c0_31 = arith.constant 0 : index
    %c0_32 = arith.constant 0 : index
    %c0_33 = arith.constant 0 : index
    %29 = vector.load %arg13[%c0_31, %c0_32, %c0_33] : memref<1x256x128xf32, #tpu.memory_space<vmem>>, vector<1x256x128xf32>
    %30 = vector.shape_cast %29 : vector<1x256x128xf32> to vector<256x128xf32>
    %31 = vector.shape_cast %28 : vector<256x128xf32> to vector<1x256x128xf32>
    tpu.vector_store %arg13[%c0_31, %c0_32, %c0_33], %31 {strides = array<i32>} : memref<1x256x128xf32, #tpu.memory_space<vmem>>, vector<1x256x128xf32>,
    return
  }
  func.func @transform_0(%arg0: i32, %arg1: i32) -> (i32, i32) {
    %c0_i32 = arith.constant 0 : i32
    %c0_i32_0 = arith.constant 0 : i32
    return %arg1, %c0_i32 : i32, i32
  }
  func.func @transform_1(%arg0: i32, %arg1: i32) -> (i32, i32, i32) {
    %c0_i32 = arith.constant 0 : i32
    %c0_i32_0 = arith.constant 0 : i32
    %c0_i32_1 = arith.constant 0 : i32
    return %arg0, %c0_i32, %c0_i32_0 : i32, i32, i32
  }
  func.func @transform_2(%arg0: i32, %arg1: i32) -> (i32, i32, i32) {
    %c0_i32 = arith.constant 0 : i32
    %c0_i32_0 = arith.constant 0 : i32
    return %arg0, %arg1, %c0_i32 : i32, i32, i32
  }
  func.func @transform_3(%arg0: i32, %arg1: i32) -> (i32, i32, i32) {
    %c0_i32 = arith.constant 0 : i32
    %c0_i32_0 = arith.constant 0 : i32
    return %arg0, %arg1, %c0_i32 : i32, i32, i32
  }
  func.func @transform_4(%arg0: i32, %arg1: i32) -> (i32, i32, i32) {
    %c0_i32 = arith.constant 0 : i32
    %c0_i32_0 = arith.constant 0 : i32
    return %arg0, %arg1, %c0_i32 : i32, i32, i32
  }
  func.func @transform_5(%arg0: i32, %arg1: i32) -> (i32, i32, i32) {
    %c0_i32 = arith.constant 0 : i32
    %c0_i32_0 = arith.constant 0 : i32
    return %arg0, %arg1, %c0_i32 : i32, i32, i32
  }
  func.func @transform_6(%arg0: i32, %arg1: i32) -> (i32, i32) {
    %c0_i32 = arith.constant 0 : i32
    %c0_i32_0 = arith.constant 0 : i32
    %c0_i32_1 = arith.constant 0 : i32
    return %c0_i32, %c0_i32_0 : i32, i32
  }
  func.func @transform_7(%arg0: i32, %arg1: i32) -> (i32, i32) {
    %c0_i32 = arith.constant 0 : i32
    %c0_i32_0 = arith.constant 0 : i32
    %c0_i32_1 = arith.constant 0 : i32
    return %c0_i32, %c0_i32_0 : i32, i32
  }
  func.func @transform_8(%arg0: i32, %arg1: i32) -> (i32, i32) {
    %c0_i32 = arith.constant 0 : i32
    %c0_i32_0 = arith.constant 0 : i32
    %c0_i32_1 = arith.constant 0 : i32
    return %c0_i32, %c0_i32_0 : i32, i32
  }
  func.func @transform_9(%arg0: i32, %arg1: i32) -> (i32, i32) {
    %c0_i32 = arith.constant 0 : i32
    %c0_i32_0 = arith.constant 0 : i32
    %c0_i32_1 = arith.constant 0 : i32
    return %c0_i32, %c0_i32_0 : i32, i32
  }
  func.func @transform_10(%arg0: i32, %arg1: i32) -> (i32, i32) {
    %c0_i32 = arith.constant 0 : i32
    %c0_i32_0 = arith.constant 0 : i32
    %c0_i32_1 = arith.constant 0 : i32
    return %c0_i32, %c0_i32_0 : i32, i32
  }
  func.func @transform_11(%arg0: i32, %arg1: i32) -> (i32, i32, i32) {
    %c0_i32 = arith.constant 0 : i32
    %c0_i32_0 = arith.constant 0 : i32
    return %arg0, %arg1, %c0_i32 : i32, i32, i32
  }
}

</mosaic_0001>

<bundles_post_ra>
// kernel: aspp_forward.8
= control target key start
LH: loop header
LB: loop body
LE: loop exit
PB: predicated region body
PF: predicated region fallthrough
CT: control target
= control target key end

     0   :  { %8 = vsyncpa [#allocation4], 0  ;;  %s419_s0 = inlined_call_operand.hbm [shape: bf16[8,128], index: 0, kind: input, shape index: {}]   ;;  %s420_s1 = inlined_call_operand.hbm [shape: bf16[128,128], index: 1, kind: input, shape index: {}]   ;;  %s421_s2 = inlined_call_operand.hbm [shape: f32[1,128], index: 2, kind: input, shape index: {}]   ;;  %s422_s3 = inlined_call_operand.hbm [shape: f32[8,128], index: 3, kind: output, shape index: {}]  }
   0x1   :  { %9 = vsyncpa [#allocation7], 0 }
   0x2   :  { %10 = vsyncpa [#allocation5], 0  ;;  %s343_s12 = smov [#allocation6]   ;;  %s249_s16 = scalar_lea.hbm %s420_s1, 1024 }
   0x3   :  { %s26_s13 = sshll.u32 %s343_s12, 4  ;;  %p250_p0 = scmp.ne.s32.totalorder %s420_s1, %s249_s16  ;;  %s27_s13 = int_to_ptr.vmem [resolvable:$true] %s26_s13 }
   0x4   :  { %p253_p1 = scmp.lt.u32.totalorder %s249_s16, %s420_s1 }
   0x6   :  { %p255_p2 = pnand %p253_p1, %p250_p0 }
   0x8   :  { %258 = shalt.err (!%p255_p2)
}
   0x9   :  { %s259_s21 = scalar_lea.vmem %s27_s13, 1024  ;;  %p264_p4 = scmp.lt.s32.totalorder %s27_s13, %s27_s13 }
   0xa   :  { %p260_p3 = scmp.ne.s32.totalorder %s27_s13, %s259_s21  ;;  %p265_p5 = scmp.lt.s32.totalorder %s259_s21, %s259_s21 }
   0xc   :  { %p266_p6 = por %p265_p5, %p264_p4 }
   0xe   :  { %p267_p7 = pnand %p266_p6, %p260_p3 }
  0x10   :  { %270 = shalt.err (!%p267_p7)
}
  0x11   :  { %s344_s22 = smov 64   ;;  %s345_s23 = smov 4  }
  0x12   :  { %32 = dma.hbm_to_vmem [thread:$0]  %s420_s1, 1024, %s27_s13, [#allocation7], %s344_s22, %s344_s22, %s345_s23  }
  0x13   :  { %s346_s26 = smov [#allocation3]   ;;  %s347_s28 = smov [#allocation8]  }
  0x14   :  { %s17_s27 = sshll.u32 %s346_s26, 4  ;;  %s39_s29 = sshll.u32 %s347_s28, 4  ;;  %s18_s27 = int_to_ptr.vmem [resolvable:$true] %s17_s27  ;;  %s40_s29 = int_to_ptr.vmem [resolvable:$true] %s39_s29 }
  0x15   :  { %s271_s5 = scalar_lea.hbm %s419_s0, 64 }
  0x16   :  { %p272_p8 = scmp.ne.s32.totalorder %s419_s0, %s271_s5  ;;  %p275_p9 = scmp.lt.u32.totalorder %s271_s5, %s419_s0 }
  0x18   :  { %p277_p10 = pnand %p275_p9, %p272_p8 }
  0x1a   :  { %280 = shalt.err (!%p277_p10)
}
  0x1b   :  { %s281_s1 = scalar_lea.vmem %s18_s27, 64  ;;  %p286_p12 = scmp.lt.s32.totalorder %s18_s27, %s18_s27 }
  0x1c   :  { %p282_p11 = scmp.ne.s32.totalorder %s18_s27, %s281_s1  ;;  %p287_p13 = scmp.lt.s32.totalorder %s281_s1, %s281_s1 }
  0x1e   :  { %p288_p0 = por %p287_p13, %p286_p12 }
  0x20   :  { %p289_p1 = pnand %p288_p0, %p282_p11 }
  0x22   :  { %292 = shalt.err (!%p289_p1)
}
  0x23   :  { %20 = dma.hbm_to_vmem [thread:$0]  %s419_s0, 64, %s18_s27, [#allocation4]  }
  0x24   :  { %s293_s14 = scalar_lea.hbm %s421_s2, 16 }
  0x25   :  { %p294_p2 = scmp.ne.s32.totalorder %s421_s2, %s293_s14  ;;  %p297_p3 = scmp.lt.u32.totalorder %s293_s14, %s421_s2 }
  0x27   :  { %p299_p4 = pnand %p297_p3, %p294_p2 }
  0x29   :  { %302 = shalt.err (!%p299_p4)
}
  0x2a   :  { %s303_s19 = scalar_lea.vmem %s40_s29, 16  ;;  %s307_s20 = scalar_lea.vmem %s40_s29, 32 }
  0x2b   :  { %p304_p5 = scmp.ne.s32.totalorder %s40_s29, %s303_s19  ;;  %p308_p6 = scmp.lt.s32.totalorder %s40_s29, %s40_s29 }
  0x2c   :  { %p309_p7 = scmp.lt.s32.totalorder %s307_s20, %s303_s19 }
  0x2e   :  { %p310_p8 = por %p309_p7, %p308_p6 }
  0x30   :  { %p311_p9 = pnand %p310_p8, %p304_p5 }
  0x32   :  { %314 = shalt.err (!%p311_p9)
}
  0x33   :  { %42 = dma.hbm_to_vmem [thread:$0]  %s421_s2, 16, %s40_s29, [#allocation7]  }
  0x34   :  { %337 = dma.done.wait [#allocation4], 64  }
  0x35   :  { %338 = vsyncadd [#allocation4], 4294967232 }
  0x36   :  { %339 = dma.done.wait [#allocation7], 1040  }
  0x37   :  { %340 = vsyncadd [#allocation7], 4294966256  ;;  %v348_v0 = vmov 0.0   ;;  %vm349_vm0 = vmmov 0   ;;  %v241_v1 = vld [vmem:[#allocation6] sm:$0xff]   ;;  %v242_v2 = vld [vmem:[#allocation6 + $0x8] sm:$0xff]  }
  0x38   :  { %213 = vmatprep.subr.bf16.mxu0 %v348_v0  ;;  %229 = vmatprep.mubr.msk.bf16.mxu0 %vm349_vm0, %v348_v0  ;;  %v243_v3 = vld [vmem:[#allocation6 + $0x10] sm:$0xff]   ;;  %v244_v4 = vld [vmem:[#allocation6 + $0x18] sm:$0xff]   ;;  %v245_v5 = vld [vmem:[#allocation6 + $0x20] sm:$0xff]   ;;  %s350_s2 = smov [#allocation9]  }
  0x39   :  { %214 = vmatpush3.bf16.msra.mxu0 %v241_v1  ;;  %v246_v6 = vld [vmem:[#allocation6 + $0x28] sm:$0xff]   ;;  %v247_v7 = vld [vmem:[#allocation6 + $0x30] sm:$0xff]   ;;  %v248_v8 = vld [vmem:[#allocation6 + $0x38] sm:$0xff]   ;;  %s185_s22 = sshll.u32 %s350_s2, 4  ;;  %s186_s22 = int_to_ptr.vmem [resolvable:$true] %s185_s22 }
  0x3a   :  { %215 = vmatprep.subr.bf16.mxu0 %v348_v0  ;;  %v59_v9 = vld [vmem:[#allocation3] sm:$0xf]  ;;  %v203_v10 = vld [vmem:[#allocation8] ss:$0 sm:$0xff]  ;;  %s315_s23 = scalar_lea.vmem %s186_s22, 128  ;;  %p320_p11 = scmp.lt.s32.totalorder %s186_s22, %s186_s22 }
  0x3b   :  { %p316_p10 = scmp.ne.s32.totalorder %s186_s22, %s315_s23  ;;  %p321_p12 = scmp.lt.s32.totalorder %s315_s23, %s315_s23 }
  0x3d   :  { %216 = vmatpush3.bf16.msra.mxu0 %v242_v2  ;;  %p322_p13 = por %p321_p12, %p320_p11 }
  0x3e   :  { %217 = vmatprep.subr.bf16.mxu0 %v348_v0 }
  0x3f   :  { %p323_p0 = pnand %p322_p13, %p316_p10 }
  0x41   :  { %218 = vmatpush3.bf16.msra.mxu0 %v243_v3 }
  0x42   :  { %219 = vmatprep.subr.bf16.mxu0 %v348_v0 }
  0x45   :  { %220 = vmatpush3.bf16.msra.mxu0 %v244_v4 }
  0x46   :  { %221 = vmatprep.subr.bf16.mxu0 %v348_v0 }
  0x49   :  { %222 = vmatpush3.bf16.msra.mxu0 %v245_v5 }
  0x4a   :  { %223 = vmatprep.subr.bf16.mxu0 %v348_v0 }
  0x4d   :  { %224 = vmatpush3.bf16.msra.mxu0 %v246_v6 }
  0x4e   :  { %225 = vmatprep.subr.bf16.mxu0 %v348_v0 }
  0x51   :  { %226 = vmatpush3.bf16.msra.mxu0 %v247_v7 }
  0x52   :  { %227 = vmatprep.subr.bf16.mxu0 %v348_v0 }
  0x55   :  { %228 = vmatpush3.bf16.msra.mxu0 %v248_v8 }
  0x58   :  { %230 = vmatmul.mubr.bf16.vlgmr.msra.gmra.mrb[0].mxu0 %v59_v9 }
 0x12b   :  { %v158_v11 = vpop.f32.mrb[0].mxu0 }
 0x12c   :  { %v177_v12 = vadd.f32 %v203_v10, %v158_v11  ;;  %v231_v13 = vpop.f32.mrb[1].mxu0 }
 0x12d   :  { %v161_v14 = vpop.f32.mrb[2].mxu0 }
 0x12e   :  { %178 = vst [vmem:[#allocation9] sm:$0xff] %v177_v12  ;;  %v232_v15 = vpop.f32.mrb[3].mxu0 }
 0x12f   :  { %326 = shalt.err (!%p323_p0)
}
 0x130   :  { %s327_s26 = scalar_lea.hbm %s422_s3, 128 }
 0x131   :  { %p328_p1 = scmp.ne.s32.totalorder %s422_s3, %s327_s26  ;;  %p331_p2 = scmp.lt.u32.totalorder %s327_s26, %s422_s3 }
 0x133   :  { %p333_p3 = pnand %p331_p2, %p328_p1 }
 0x135   :  { %336 = shalt.err (!%p333_p3)
}
 0x136   :  { %188 = dma.vmem_to_hbm [thread:$0]  %s186_s22, 128, %s422_s3, [#allocation5]  }
 0x137   :  { %341 = dma.done.wait [#allocation5], 128  }
 0x138   :  { %342 = vsyncadd [#allocation5], 4294967168 }
 0x139   :  { %192 = vsyncpa [#allocation4], 1 }
 0x13a   :  { %193 = vsyncpa [#allocation7], 1 }
 0x13b   :  { %194 = vsyncpa [#allocation5], 1 }

// kernel: aspp_forward.7
= control target key start
LH: loop header
LB: loop body
LE: loop exit
PB: predicated region body
PF: predicated region fallthrough
CT: control target
= control target key end

     0   :  { %8 = vsyncpa [#allocation4], 0  ;;  %s324_s0 = inlined_call_operand.hbm [shape: bf16[8,4], index: 0, kind: input, shape index: {}]   ;;  %s325_s1 = inlined_call_operand.hbm [shape: bf16[4,128], index: 1, kind: input, shape index: {}]   ;;  %s326_s2 = inlined_call_operand.hbm [shape: f32[1,128], index: 2, kind: input, shape index: {}]   ;;  %s327_s3 = inlined_call_operand.hbm [shape: bf16[8,128], index: 3, kind: output, shape index: {}]  }
   0x1   :  { %9 = vsyncpa [#allocation7], 0 }
   0x2   :  { %10 = vsyncpa [#allocation5], 0  ;;  %s250_s12 = smov [#allocation6]   ;;  %s251_s14 = smov [#allocation3]  }
   0x3   :  { %s27_s13 = sshll.u32 %s250_s12, 4  ;;  %s17_s15 = sshll.u32 %s251_s14, 4  ;;  %s28_s13 = int_to_ptr.vmem [resolvable:$true] %s27_s13  ;;  %s18_s15 = int_to_ptr.vmem [resolvable:$true] %s17_s15 }
   0x4   :  { %s156_s18 = scalar_lea.hbm %s325_s1, 32 }
   0x5   :  { %p157_p0 = scmp.ne.s32.totalorder %s325_s1, %s156_s18  ;;  %p160_p1 = scmp.lt.u32.totalorder %s156_s18, %s325_s1 }
   0x7   :  { %p162_p2 = pnand %p160_p1, %p157_p0 }
   0x9   :  { %165 = shalt.err (!%p162_p2)
}
   0xa   :  { %s166_s23 = scalar_lea.vmem %s28_s13, 32  ;;  %p171_p4 = scmp.lt.s32.totalorder %s28_s13, %s28_s13 }
   0xb   :  { %p167_p3 = scmp.ne.s32.totalorder %s28_s13, %s166_s23  ;;  %p172_p5 = scmp.lt.s32.totalorder %s166_s23, %s166_s23 }
   0xd   :  { %p173_p6 = por %p172_p5, %p171_p4 }
   0xf   :  { %p174_p7 = pnand %p173_p6, %p167_p3 }
  0x11   :  { %177 = shalt.err (!%p174_p7)
}
  0x12   :  { %30 = dma.hbm_to_vmem [thread:$0]  %s325_s1, 32, %s28_s13, [#allocation7]  }
  0x13   :  { %s178_s28 = scalar_lea.hbm %s324_s0, 64 }
  0x14   :  { %p179_p8 = scmp.ne.s32.totalorder %s324_s0, %s178_s28  ;;  %p182_p9 = scmp.lt.u32.totalorder %s178_s28, %s324_s0 }
  0x16   :  { %p184_p10 = pnand %p182_p9, %p179_p8 }
  0x18   :  { %187 = shalt.err (!%p184_p10)
}
  0x19   :  { %s188_s6 = scalar_lea.vmem %s18_s15, 64  ;;  %p193_p12 = scmp.lt.s32.totalorder %s18_s15, %s18_s15 }
  0x1a   :  { %p189_p11 = scmp.ne.s32.totalorder %s18_s15, %s188_s6  ;;  %p194_p13 = scmp.lt.s32.totalorder %s188_s6, %s188_s6 }
  0x1c   :  { %p195_p0 = por %p194_p13, %p193_p12 }
  0x1e   :  { %p196_p1 = pnand %p195_p0, %p189_p11 }
  0x20   :  { %199 = shalt.err (!%p196_p1)
}
  0x21   :  { %20 = dma.hbm_to_vmem [thread:$0]  %s324_s0, 64, %s18_s15, [#allocation4]  }
  0x22   :  { %s252_s8 = smov [#allocation8]   ;;  %s200_s12 = scalar_lea.hbm %s326_s2, 16 }
  0x23   :  { %s37_s9 = sshll.u32 %s252_s8, 4  ;;  %p201_p2 = scmp.ne.s32.totalorder %s326_s2, %s200_s12  ;;  %s38_s9 = int_to_ptr.vmem [resolvable:$true] %s37_s9 }
  0x24   :  { %p204_p3 = scmp.lt.u32.totalorder %s200_s12, %s326_s2 }
  0x26   :  { %p206_p4 = pnand %p204_p3, %p201_p2 }
  0x28   :  { %209 = shalt.err (!%p206_p4)
}
  0x29   :  { %s210_s18 = scalar_lea.vmem %s38_s9, 16  ;;  %s214_s0 = scalar_lea.vmem %s38_s9, 32 }
  0x2a   :  { %p211_p5 = scmp.ne.s32.totalorder %s38_s9, %s210_s18  ;;  %p215_p6 = scmp.lt.s32.totalorder %s38_s9, %s38_s9 }
  0x2b   :  { %p216_p7 = scmp.lt.s32.totalorder %s214_s0, %s210_s18 }
  0x2d   :  { %p217_p8 = por %p216_p7, %p215_p6 }
  0x2f   :  { %p218_p9 = pnand %p217_p8, %p211_p5 }
  0x31   :  { %221 = shalt.err (!%p218_p9)
}
  0x32   :  { %40 = dma.hbm_to_vmem [thread:$0]  %s326_s2, 16, %s38_s9, [#allocation7]  }
  0x33   :  { %244 = dma.done.wait [#allocation4], 64  }
  0x34   :  { %245 = vsyncadd [#allocation4], 4294967232 }
  0x35   :  { %246 = dma.done.wait [#allocation7], 48  }
  0x36   :  { %247 = vsyncadd [#allocation7], 4294967248  ;;  %v253_v0 = vmov 0.0   ;;  %vm254_vm0 = vmmov 0   ;;  %vm63_vm1 = vcmask 1041408   ;;  %vm59_vm2 = vcmask 31744  }
  0x37   :  { %144 = vmatprep.subr.bf16.mxu0 %v253_v0  ;;  %146 = vmatprep.mubr.msk.bf16.mxu0 %vm254_vm0, %v253_v0  ;;  %v58_v1 = vld [vmem:[#allocation6] sm:$0x3]  ;;  %v57_v3 = vld [vmem:[#allocation3] sm:$0xf]  ;;  %v141_v4 = vld [vmem:[#allocation8] ss:$0 sm:$0xff] }
  0x38   :  { %v65_v2 = vsel %vm63_vm1, %v58_v1, 0  ;;  %s255_s2 = smov [#allocation9]  }
  0x39   :  { %145 = vmatpush3.bf16.msra.mxu0 %v65_v2  ;;  %s130_s20 = sshll.u32 %s255_s2, 4  ;;  %s131_s20 = int_to_ptr.vmem [resolvable:$true] %s130_s20 }
  0x3a   :  { %s222_s21 = scalar_lea.vmem %s131_s20, 64  ;;  %p227_p11 = scmp.lt.s32.totalorder %s131_s20, %s131_s20 }
  0x3b   :  { %p223_p10 = scmp.ne.s32.totalorder %s131_s20, %s222_s21  ;;  %p228_p12 = scmp.lt.s32.totalorder %s222_s21, %s222_s21 }
  0x3c   :  { %147 = vmatmul.mubr.msk.bf16.vlgmr.msra.gmra.mrb[0].mxu0 %vm59_vm2, %v57_v3 }
  0x3d   :  { %p229_p13 = por %p228_p12, %p227_p11 }
  0x3f   :  { %p230_p0 = pnand %p229_p13, %p223_p10 }
 0x10f   :  { %v101_v5 = vpop.f32.mrb[0].mxu0 }
 0x110   :  { %v120_v6 = vadd.f32 %v141_v4, %v101_v5  ;;  %v148_v7 = vpop.f32.mrb[1].mxu0 }
 0x111   :  { %v104_v8 = vpop.f32.mrb[2].mxu0 }
 0x112   :  { %v121_v9 = vmax.f32 %v120_v6, 0.0  ;;  %v149_v10 = vpop.f32.mrb[3].mxu0 }
 0x114   :  { %v122_v11 = vpack.c.bf16 %v121_v9, %v121_v9 }
 0x116   :  { %123 = vst [vmem:[#allocation9] sm:$0xf] %v122_v11 }
 0x117   :  { %233 = shalt.err (!%p230_p0)
}
 0x118   :  { %s234_s24 = scalar_lea.hbm %s327_s3, 64 }
 0x119   :  { %p235_p1 = scmp.ne.s32.totalorder %s327_s3, %s234_s24  ;;  %p238_p2 = scmp.lt.u32.totalorder %s234_s24, %s327_s3 }
 0x11b   :  { %p240_p3 = pnand %p238_p2, %p235_p1 }
 0x11d   :  { %243 = shalt.err (!%p240_p3)
}
 0x11e   :  { %133 = dma.vmem_to_hbm [thread:$0]  %s131_s20, 64, %s327_s3, [#allocation5]  }
 0x11f   :  { %248 = dma.done.wait [#allocation5], 64  }
 0x120   :  { %249 = vsyncadd [#allocation5], 4294967232 }
 0x121   :  { %137 = vsyncpa [#allocation4], 1 }
 0x122   :  { %138 = vsyncpa [#allocation7], 1 }
 0x123   :  { %139 = vsyncpa [#allocation5], 1 }

// kernel: aspp_forward.10
= control target key start
LH: loop header
LB: loop body
LE: loop exit
PB: predicated region body
PF: predicated region fallthrough
CT: control target
= control target key end

     0   :  { %s3054_s0 = inlined_call_operand.hbm [shape: bf16[2,54,52,4], index: 0, kind: input, shape index: {}]   ;;  %s3055_s1 = inlined_call_operand.hbm [shape: bf16[3,3,4,128], index: 1, kind: input, shape index: {}]   ;;  %s3056_s2 = inlined_call_operand.hbm [shape: f32[1,1,128], index: 2, kind: input, shape index: {}]   ;;  %s3057_s3 = inlined_call_operand.hbm [shape: bf16[2,18,16,128], index: 3, kind: output, shape index: {}]  }
   0x1   :  { %3080 = sst [smem:[#allocation28_spill]] %s3056_s2 }
   0x2   :  { %3081 = sst [smem:[#allocation29_spill]] %s3057_s3 }
   0x3   :  { %8 = vsyncpa [#allocation4], 0 }
   0x4   :  { %10 = vsyncpa [#allocation4 + $0x1], 0 }
   0x5   :  { %11 = vsyncpa [#allocation7], 0 }
   0x6   :  { %13 = vsyncpa [#allocation7 + $0x1], 0 }
   0x7   :  { %14 = vsyncpa [#allocation5], 0 }
   0x8   :  { %16 = vsyncpa [#allocation5 + $0x1], 0  ;;  %s2481_s12 = smov 0   ;;  %s2483_s13 = smov 0  }
   0x9   :  { %s2485_s14 = smov 0   ;;  %s2487_s15 = smov 0  }
   0xa   :  { %s2489_s16 = smov 0   ;;  %s2491_s17 = smov 0  }
   0xb   :  { %s2493_s18 = smov 0   ;;  %s2495_s19 = smov 0  }
   0xc   :  { %s2497_s20 = smov 0   ;;  %s2499_s21 = smov 0  }
   0xd   :  { %s2501_s22 = smov 0   ;;  %s2503_s23 = smov 0  }
   0xe   :  { %s2505_s24 = smov 0   ;;  %s2507_s25 = smov 0  }
   0xf   :  { %s2509_s26 = smov 0   ;;  %s2511_s27 = smov 0  }
  0x10 LB: > { %3082 = sst [smem:[#allocation14_spill]] %s2386_s12  ;;  %s2558_s28 = sadd.s32 4294967295, %s2446_s27   ;;  %s2446_s27 = sphi %s2511_s27, %s22_s27   ;;  %s2442_s26 = sphi %s2509_s26, %s3154_s26   ;;  %s2438_s25 = sphi %s2507_s25, %s3153_s25   ;;  %s2434_s24 = sphi %s2505_s24, %s3152_s24   ;;  %s2430_s23 = sphi %s2503_s23, %s3151_s23   ;;  %s2426_s22 = sphi %s2501_s22, %s3137_s22   ;;  %s2422_s21 = sphi %s2499_s21, %s3150_s21   ;;  %s2418_s20 = sphi %s2497_s20, %s3149_s20   ;;  %s2414_s19 = sphi %s2495_s19, %s3148_s19   ;;  %s2410_s18 = sphi %s2493_s18, %s3147_s18   ;;  %s2406_s17 = sphi %s2491_s17, %s3146_s17   ;;  %s2402_s16 = sphi %s2489_s16, %s3145_s16   ;;  %s2398_s15 = sphi %s2487_s15, %s3144_s15   ;;  %s2394_s14 = sphi %s2485_s14, %s3143_s14   ;;  %s2390_s13 = sphi %s2483_s13, %s3142_s13   ;;  %s2386_s12 = sphi %s2481_s12, %s3141_s12  }
  0x11   : > { %3083 = sst [smem:[#allocation15_spill]] %s2390_s13  ;;  %s1669_s29 = sadd.s32 4294967294, %s2446_s27  }
  0x12   : > { %3084 = sst [smem:[#allocation16_spill]] %s2402_s16  ;;  %p3058_p0 = scmp.eq.s32.totalorder %s2446_s27, 0 }
  0x13   : > { %3085 = sst [smem:[#allocation17_spill]] %s2422_s21  ;;  %p67_p1 = scmp.ne.s32.totalorder %s2414_s19, %s2410_s18 }
  0x14   : > { %3086 = sst [smem:[#allocation18_spill]] %s2426_s22  ;;  %p3062_p2 = scmp.eq.s32.totalorder %s2558_s28, 0 }
  0x15   : > { %3087 = sst [smem:[#allocation19_spill]] %s2430_s23  ;;  %p87_p3 = scmp.ne.s32.totalorder %s2406_s17, %s2402_s16 }
  0x16   : > { %3088 = sst [smem:[#allocation20_spill]] %s2438_s25  ;;  %p93_p4 = scmp.ne.s32.totalorder %s2402_s16, %s2398_s15 }
  0x17   : > { %p2570_p5 = por %p3062_p2, %p67_p1  ;;  %p2577_p6 = por %p87_p3, %p3058_p0 }
  0x18   : > { %p2583_p7 = por %p93_p4, %p3062_p2  ;;  %p139_p8 = scmp.ne.s32.totalorder %s2394_s14, %s2390_s13 }
  0x19   : > { %s3089_s4 = scalar_select %p2570_p5, 1, 0 }
  0x1a   : > { %s3091_s7 = scalar_select %p2583_p7, 1, 0 }
  0x1b   : > { %p140_p9 = scmp.eq.s32.totalorder %s2558_s28, 17  ;;  %p145_p10 = scmp.ne.s32.totalorder %s2390_s13, %s2386_s12 }
  0x1c   : > { %3092 = sst [smem:[#allocation21_spill]] %s3091_s7  ;;  %p146_p11 = scmp.eq.s32.totalorder %s1669_s29, 17 }
  0x1d   : > { %p2592_p12 = por %p140_p9, %p139_p8  ;;  %p1670_p13 = scmp.ge.s32.totalorder %s2446_s27, 1 }
  0x1e   : > { %p2597_p1 = por %p146_p11, %p145_p10  ;;  %p153_p3 = scmp.lt.s32.totalorder %s2446_s27, 19 }
  0x1f   : > { %s3093_s8 = scalar_select %p2592_p12, 1, 0 }
  0x20   : > { %s3095_s9 = scalar_select %p2597_p1, 1, 0 }
  0x21   : > { %3094 = sst [smem:[#allocation22_spill]] %s3093_s8  ;;  %p2602_p4 = pnand %p1670_p13, %p153_p3 }
  0x22   : > { %3096 = sst [smem:[#allocation23_spill]] %s3095_s9  ;;  %s2448_s11 = smov [#allocation8]  }
  0x23   : > { %s3097_s10 = scalar_select %p2602_p4, 1, 0 }
  0x24   : > { %s166_s15 = sshll.u32 %s2448_s11, 4  ;;  %p2000_p0 = pneg %p2602_p4  ;;  %s167_s15 = int_to_ptr.vmem [resolvable:$true] %s166_s15 }
  0x25   : > { %p3065_p8 = scmp.lt.s32.totalorder %s2446_s27, 18  ;;  %s3100_s2 = sld [smem:[#allocation28_spill]] }
  0x26   : > { %p2611_p9 = pnand %p2000_p0, %p3062_p2 }
  0x27   : > { %p2619_p10 = pnand %p3065_p8, %p2577_p6 }
  0x28   : > { %p2189_p0 = pneg %p2611_p9 }
  0x29   : > { %s3099_s29 = scalar_select %p2619_p10, 1, 0 }
  0x2b   : > { %s2187_s11 = scalar_lea.hbm %s3100_s2, 16 }
  0x2c   : > { %p2188_p11 = scmp.ne.s32.totalorder %s3100_s2, %s2187_s11  ;;  %p2194_p2 = scmp.lt.u32.totalorder %s2187_s11, %s3100_s2 }
  0x2e   : > { %p2190_p13 = pnand %p2189_p0, %p2188_p11 }
  0x30   : > { %p2191_p3 = pneg %p2190_p13 }
  0x32   : > { %p2196_p6 = pnand %p2194_p2, %p2191_p3 }
  0x34   : > { %2199 = shalt.err (!%p2196_p6)
}
  0x35   : > { %s2200_s8 = scalar_lea.vmem %s167_s15, 16  ;;  %s2207_s30 = scalar_lea.vmem %s167_s15, 32 }
  0x36   : > { %p2201_p8 = scmp.ne.s32.totalorder %s167_s15, %s2200_s8  ;;  %p2208_p7 = scmp.lt.s32.totalorder %s167_s15, %s167_s15 }
  0x37   : > { %p2209_p5 = scmp.lt.s32.totalorder %s2207_s30, %s2200_s8 }
  0x38   : > { %p2203_p1 = pnand %p2201_p8, %p2189_p0 }
  0x39   : > { %p2210_p4 = por %p2209_p5, %p2208_p7 }
  0x3a   : > { %p2204_p12 = pneg %p2203_p1 }
  0x3c   : > { %p2211_p10 = pnand %p2210_p4, %p2204_p12 }
  0x3e   : > { %2214 = shalt.err (!%p2211_p10)
}
  0x3f   : > { %2003 = dma.hbm_to_vmem [thread:$0]  (!%p2611_p9), %s3100_s2, 16, %s167_s15, [#allocation7]  }
  0x40   : > { %s34_s3 = sadd.s32 1, %s2434_s24  ;;  %s37_s8 = sadd.s32 1, %s2438_s25 }
  0x41   : > { %p35_p2 = scmp.ge.s32.totalorder %s34_s3, 3  ;;  %s41_s9 = sadd.s32 1, %s2442_s26 }
  0x42   : > { %s2644_s18 = sadd.s32 %s2434_s24, %s2438_s25  ;;  %s54_s11 = sadd.s32 1, %s2418_s20 }
  0x43   : > { %s3156_s3 = smov (%p35_p2, %s34_s3), 0  ;;  %s3158_s8 = smov (!%p35_p2, %s37_s8), %s2438_s25 }
  0x44   : > { %3101 = sst [smem:[#allocation24_spill]] %s3156_s3  ;;  %s46_s6 = sadd.s32 2, %s2644_s18 }
  0x45   : > { %p61_p5 = scmp.ne.s32.totalorder %s2418_s20, %s2414_s19  ;;  %p39_p7 = scmp.ge.s32.totalorder %s3158_s8, 3 }
  0x46   : > { %s77_s15 = ssub.s32 %s2434_s24, %s3156_s3  ;;  %p3102_p12 = scmp.eq.s32.totalorder %s2446_s27, 0 }
  0x47   : > { %p78_p4 = scmp.eq.s32.totalorder %s77_s15, 0  ;;  %s3160_s8 = smov (%p39_p7, %s3158_s8), 0 }
  0x48   : > { %p2657_p1 = por %p3102_p12, %p61_p5  ;;  %3104 = sst [smem:[#allocation25_spill]] %s3160_s8 }
  0x49   : > { %s3162_s9 = smov (!%p39_p7, %s41_s9), %s2442_s26  ;;  %s47_s12 = sadd.s32 %s3160_s8, %s3156_s3 }
  0x4a   : > { %s125_s5 = ssub.s32 %s2438_s25, %s3160_s8  ;;  %p43_p8 = scmp.ge.s32.totalorder %s3162_s9, 2 }
  0x4b   : > { %s48_s2 = sadd.s32 2, %s47_s12  ;;  %s177_s22 = sand.u32 1, %s2418_s20  }
  0x4c   : > { %s50_s23 = ssub.s32 %s46_s6, %s48_s2  ;;  %s3164_s9 = smov (%p43_p8, %s3162_s9), 0 }
  0x4d   : > { %3105 = sst [smem:[#allocation26_spill]] %s3164_s9  ;;  %s3106_s15 = sadd.s32 1, %s2406_s17 }
  0x4e   : > { %s2674_s21 = scalar_select %p78_p4, %s2406_s17, %s3106_s15  }
  0x4f   : > { %s49_s13 = ssub.s32 %s2442_s26, %s3164_s9  ;;  %s1983_s3 = smul.u32 168, %s177_s22 }
  0x50   : > { %3107 = sst [smem:[#allocation27_spill]] %s2674_s21  ;;  %s51_s7 = sor.u32 %s50_s23, %s49_s13 }
  0x51   : > { %s126_s16 = sor.u32 %s125_s5, %s49_s13  ;;  %p52_p9 = scmp.eq.s32.totalorder %s51_s7, 0 }
  0x52   : > { %p127_p10 = scmp.eq.s32.totalorder %s126_s16, 0  ;;  %p3108_p11 = scmp.lt.s32.totalorder %s2446_s27, 18 }
  0x53   : > { %s2687_s2 = scalar_select %p52_p9, %s2418_s20, %s54_s11  }
  0x54   : > { %p2682_p0 = pnand %p3108_p11, %p2657_p1  ;;  %s3110_s6 = sadd.s32 1, %s2394_s14 }
  0x55   : > { %s2692_s12 = scalar_select %p127_p10, %s2394_s14, %s3110_s6  }
  0x56   : > { %s1572_s15 = smul.u32 42, %s2644_s18  ;;  %s181_s13 = scalar_lea.vmem [#allocation3], %s1983_s3 }
  0x57   : > { %s1573_s23 = smul.u32 378, %s2442_s26  ;;  %s193_s5 = sshll.u32 %s181_s13, 4  ;;  %s2696_s5 = int_to_ptr.vmem [resolvable:$true] %s193_s5 }
  0x58   : > { %s203_s11 = sand.u32 1, %s2446_s27   ;;  %s2704_s6 = scalar_lea.sflag [#allocation4], %s177_s22 }
  0x59   : > { %s1574_s16 = sadd.s32 %s1573_s23, %s1572_s15  ;;  %p2217_p3 = pneg %p2682_p0 }
  0x5a   : > { %s1673_s7 = sshll.u32 %s1574_s16, 6  ;;  %s2220_s9 = scalar_lea.hbm %s3054_s0, 48384 }
  0x5b   : > { %s1576_s25 = scalar_lea.hbm %s3054_s0, %s1673_s7 }
  0x5c   : > { %s2701_s21 = scalar_lea.hbm %s1576_s25, 5376  ;;  %s2245_s18 = scalar_lea.hbm %s1576_s25, 8064 }
  0x5d   : > { %p2216_p13 = scmp.ne.s32.totalorder %s2701_s21, %s2245_s18  ;;  %p2221_p5 = scmp.lt.u32.totalorder %s2701_s21, %s3054_s0 }
  0x5e   : > { %p2222_p7 = scmp.lt.u32.totalorder %s2220_s9, %s2245_s18  ;;  %p2224_p1 = scmp.lt.u32.totalorder %s2245_s18, %s2701_s21 }
  0x5f   : > { %p2218_p6 = pnand %p2217_p3, %p2216_p13 }
  0x60   : > { %p2223_p12 = por %p2222_p7, %p2221_p5 }
  0x61   : > { %p2219_p2 = pneg %p2218_p6 }
  0x62   : > { %p2225_p4 = por %p2224_p1, %p2223_p12 }
  0x64   : > { %p2226_p8 = pnand %p2225_p4, %p2219_p2 }
  0x66   : > { %2229 = shalt.err (!%p2226_p8)
}
  0x67   : > { %s2230_s22 = scalar_lea.vmem %s2696_s5, 2688  ;;  %s2449_s25 = smov [#allocation3]  }
  0x68   : > { %p2231_p9 = scmp.ne.s32.totalorder %s2696_s5, %s2230_s22  ;;  %s2235_s16 = sshll.u32 %s2449_s25, 4  ;;  %s2236_s16 = int_to_ptr.vmem [resolvable:$false] %s2235_s16 }
  0x69   : > { %s2237_s7 = scalar_lea.vmem %s2236_s16, 5376  ;;  %p2238_p13 = scmp.lt.s32.totalorder %s2696_s5, %s2236_s16 }
  0x6a   : > { %p2233_p10 = pnand %p2231_p9, %p2217_p3  ;;  %p2239_p6 = scmp.lt.s32.totalorder %s2237_s7, %s2230_s22 }
  0x6c   : > { %p2234_p11 = pneg %p2233_p10  ;;  %p2240_p5 = por %p2239_p6, %p2238_p13 }
  0x6e   : > { %p2241_p7 = pnand %p2240_p5, %p2234_p11 }
  0x70   : > { %2244 = shalt.err (!%p2241_p7)
}
  0x71   : > { %s2450_s30 = smov 64   ;;  %s2451_s18 = smov 4  }
  0x72   : > { %2007 = dma.hbm_to_vmem [thread:$0]  (!%p2682_p0), %s2701_s21, 2688, %s2696_s5, %s2704_s6, %s2450_s30, %s2450_s30, %s2451_s18  }
  0x73   : > { %s205_s3 = sand.u32 1, %s2406_s17   ;;  %s1985_s15 = smul.u32 96, %s2434_s24 }
  0x74   : > { %s1984_s9 = smul.u32 6, %s205_s3  ;;  %s2742_s7 = scalar_lea.sflag [#allocation7], %s203_s11 }
  0x75   : > { %s2736_s22 = scalar_lea.hbm %s3055_s1, %s1985_s15  ;;  %p3111_p3 = scmp.ne.s32.totalorder %s3099_s29, 0 }
  0x76   : > { %s207_s25 = scalar_lea.vmem [#allocation6], %s1984_s9  ;;  %s2246_s21 = scalar_lea.hbm %s2736_s22, 96 }
  0x77   : > { %s214_s16 = sshll.u32 %s207_s25, 4  ;;  %p2247_p0 = scmp.ne.s32.totalorder %s2736_s22, %s2246_s21  ;;  %s2738_s16 = int_to_ptr.vmem [resolvable:$true] %s214_s16 }
  0x78   : > { %p2248_p2 = pneg %p3111_p3  ;;  %s2251_s6 = scalar_lea.hbm %s3055_s1, 288 }
  0x79   : > { %p2252_p4 = scmp.lt.u32.totalorder %s2736_s22, %s3055_s1  ;;  %p2253_p8 = scmp.lt.u32.totalorder %s2251_s6, %s2246_s21 }
  0x7a   : > { %p2249_p12 = pnand %p2248_p2, %p2247_p0  ;;  %p2255_p10 = scmp.lt.u32.totalorder %s2246_s21, %s2736_s22 }
  0x7b   : > { %p2254_p9 = por %p2253_p8, %p2252_p4 }
  0x7c   : > { %p2250_p1 = pneg %p2249_p12 }
  0x7d   : > { %p2256_p11 = por %p2255_p10, %p2254_p9 }
  0x7f   : > { %p2257_p13 = pnand %p2256_p11, %p2250_p1 }
  0x81   : > { %2260 = shalt.err (!%p2257_p13)
}
  0x82   : > { %s2261_s11 = scalar_lea.vmem %s2738_s16, 96  ;;  %s2452_s3 = smov [#allocation6]  }
  0x83   : > { %p2262_p6 = scmp.ne.s32.totalorder %s2738_s16, %s2261_s11  ;;  %s2266_s15 = sshll.u32 %s2452_s3, 4  ;;  %s2267_s15 = int_to_ptr.vmem [resolvable:$false] %s2266_s15 }
  0x84   : > { %s2268_s9 = scalar_lea.vmem %s2267_s15, 192  ;;  %p2269_p0 = scmp.lt.s32.totalorder %s2738_s16, %s2267_s15 }
  0x85   : > { %p2264_p5 = pnand %p2262_p6, %p2248_p2  ;;  %p2270_p12 = scmp.lt.s32.totalorder %s2268_s9, %s2261_s11 }
  0x87   : > { %p2265_p7 = pneg %p2264_p5  ;;  %p2271_p4 = por %p2270_p12, %p2269_p0 }
  0x89   : > { %p2272_p8 = pnand %p2271_p4, %p2265_p7 }
  0x8b   : > { %2275 = shalt.err (!%p2272_p8)
}
  0x8c   : > { %s2453_s23 = smov 32   ;;  %s2454_s13 = smov 2  }
  0x8d   : > { %2010 = dma.hbm_to_vmem [thread:$0]  (!%p3111_p3), %s2736_s22, 96, %s2738_s16, %s2742_s7, %s2453_s23, %s2453_s23, %s2454_s13  }
  0x8e   : > { %p3112_p2 = scmp.ne.s32.totalorder %s3097_s10, 0 }
  0x8f   : > { %s228_s25 = sand.u32 (!%p3112_p2), 1, %s2414_s19   ;;  %p3113_p1 = scmp.ne.s32.totalorder (!%p3112_p2), %s3089_s4, 0 }
  0x90   : > { %226 = sbr.rel (%p3112_p2) target bundleno = 517 (0x205), region = 32  ;;  %s229_s8 = scalar_lea.sflag (!%p3112_p2), [#allocation4], %s228_s25 }
  0x91   : > { %s1986_s21 = smul.u32 (!%p3112_p2), 168, %s228_s25 }
  0x93   : > { %s2773_s5 = scalar_lea.vmem (!%p3112_p2), [#allocation3], %s1986_s21 }
  0x97   : > { %2369 = dma.done.wait (%p3113_p1), %s229_s8, 2688  }
  0x98   : > { %2371 = vsyncadd (%p3113_p1), %s229_s8, 4294964608  ;;  %s3114_s6 = sld [smem:[#allocation16_spill]]  ;;  %s3115_s30 = sld [smem:[#allocation21_spill]] }
  0x99   : > { %s237_s29 = sand.u32 1, %s2558_s28  }
  0x9a   : > { %s238_s10 = scalar_lea.sflag [#allocation7], %s237_s29 }
  0x9e   : > { %s239_s22 = sand.u32 1, %s3114_s6   ;;  %p3116_p3 = scmp.ne.s32.totalorder %s3115_s30, 0 }
  0x9f   : > { %s1987_s16 = smul.u32 6, %s239_s22 }
  0xa1   : > { %s2781_s7 = scalar_lea.vmem [#allocation6], %s1987_s16 }
  0xa2   : > { %2373 = dma.done.wait (%p3116_p3), %s238_s10, 96  }
  0xa3   : > { %2375 = vsyncadd (%p3116_p3), %s238_s10, 4294967200  ;;  %p3117_p9 = scmp.eq.s32.totalorder %s2558_s28, 0 }
  0xa5   : > { %2377 = dma.done.wait (%p3117_p9), [#allocation7], 16   ;;  %p3118_p10 = pmov %p3117_p9 }
  0xa6   : > { %s3119_s4 = sld [smem:[#allocation15_spill]] }
  0xa7   : > { %2379 = vsyncadd (%p3118_p10), [#allocation7], 4294967280  ;;  %s3120_s15 = sld [smem:[#allocation17_spill]] }
  0xac   : > { %s270_s18 = sand.u32 1, %s3119_s4  }
  0xad   : > { %s1988_s11 = smul.u32 48, %s270_s18  ;;  %p1677_p11 = scmp.ne.s32.totalorder %s3120_s15, 0 }
  0xae   : > { %v2455_v0 = vmov (!%p1677_p11), 0.0  }
  0xaf   : > { %s2794_s3 = scalar_lea.vmem [#allocation9], %s1988_s11  ;;  %281 = sbr.rel (%p1677_p11) target bundleno = 182 (0xb6), region = 48  ;;  %282 = vst [vmem:[#allocation2] sm:$0xff] (!%p1677_p11), %v2455_v0  ;;  %283 = vst [vmem:[#allocation2 + $0x8] sm:$0xff] (!%p1677_p11), %v2455_v0 }
  0xb0   : > { %284 = vst [vmem:[#allocation2 + $0x10] sm:$0xff] (!%p1677_p11), %v2455_v0  ;;  %285 = vst [vmem:[#allocation2 + $0x18] sm:$0xff] (!%p1677_p11), %v2455_v0 }
  0xb1   : > { %286 = vst [vmem:[#allocation2 + $0x20] sm:$0xff] (!%p1677_p11), %v2455_v0  ;;  %287 = vst [vmem:[#allocation2 + $0x28] sm:$0xff] (!%p1677_p11), %v2455_v0 }
  0xb2   : > { %288 = vst [vmem:[#allocation2 + $0x30] sm:$0xff] (!%p1677_p11), %v2455_v0  ;;  %289 = vst [vmem:[#allocation2 + $0x38] sm:$0xff] (!%p1677_p11), %v2455_v0 }
  0xb3   : > { %290 = vst [vmem:[#allocation2 + $0x40] sm:$0xff] (!%p1677_p11), %v2455_v0  ;;  %291 = vst [vmem:[#allocation2 + $0x48] sm:$0xff] (!%p1677_p11), %v2455_v0 }
  0xb4   : > { %292 = vst [vmem:[#allocation2 + $0x50] sm:$0xff] (!%p1677_p11), %v2455_v0  ;;  %293 = vst [vmem:[#allocation2 + $0x58] sm:$0xff] (!%p1677_p11), %v2455_v0 }
  0xb6 PF: > { %v1678_v1 = vld [vmem:[%s2781_s7 + $0x2] sm:$0x3]  ;;  %vm319_vm0 = vcmask 1041408   ;;  %v294_v2 = vld [vmem:[%s2781_s7] sm:$0x3]  ;;  %v2456_v3 = vmov 0.0  }
  0xb7   : > { %1875 = vmatprep.subr.bf16.mxu0 %v2456_v3  ;;  %v321_v4 = vsel %vm319_vm0, %v1678_v1, 0  ;;  %1881 = vmatprep.subr.bf16.mxu1 %v2456_v3  ;;  %v380_v5 = vsel %vm319_vm0, %v294_v2, 0  ;;  %v300_v6 = vld [vmem:[%s2773_s5 + $0x8] sm:$0xe]  ;;  %v301_v7 = vld [vmem:[%s2773_s5 + $0xc] sm:$0xf] }
  0xb8   : > { %1876 = vmatpush3.bf16.msra.mxu0 %v321_v4  ;;  %1882 = vmatpush3.bf16.msra.mxu1 %v380_v5  ;;  %vm2457_vm1 = vmmov 0   ;;  %v1679_v8 = vcombine.low %v300_v6, %v301_v7  ;;  %v2158_v9 = vld [vmem:[%s2773_s5 + $0x10] ss:$0 sps:$4 sm:$0x11]   ;;  %vm311_vm2 = vcmask 1046528   ;;  %vm315_vm3 = vcmask 31744  }
  0xb9   : > { %1877 = vmatprep.mubr.msk.bf16.mxu0 %vm2457_vm1, %v2456_v3  ;;  %1883 = vmatprep.mubr.msk.bf16.mxu1 %vm2457_vm1, %v2456_v3  ;;  %v313_v11 = vrot.slane %v2158_v9, 1  ;;  %v2160_v12 = vld [vmem:[%s2773_s5 + $0x4] sm:$0xfc]   ;;  %v1685_v13 = vld [vmem:[%s2781_s7 + $0x4] sm:$0x3]  ;;  %vm372_vm4 = vcmask 1045504  }
  0xba   : > { %1887 = vmatprep.subr.bf16.mxu0 %v2456_v3  ;;  %1893 = vmatprep.subr.bf16.mxu1 %v2456_v3  ;;  %v312_v10 = vrot.slane %v1679_v8, 1  ;;  %v2161_v14 = vld [vmem:[%s2773_s5 + $0xc] ss:$0 sps:$4 sm:$0x33]   ;;  %v433_v15 = vsel %vm319_vm0, %v1685_v13, 0  ;;  %v373_v18 = vrot.slane %v2160_v12, 2 }
  0xbb   : > { %v1691_v16 = vld [vmem:[%s2781_s7 + $0x2] sm:$0x3]  ;;  %v1692_v19 = vld [vmem:[%s2773_s5 + $0x24] sm:$0xe]  ;;  %v1693_v20 = vld [vmem:[%s2773_s5 + $0x28] sm:$0xf] }
  0xbc   : > { %v314_v17 = vsel %vm311_vm2, %v312_v10, %v313_v11  ;;  %v374_v21 = vrot.slane %v2161_v14, 2  ;;  %v1695_v22 = vcombine.low %v1692_v19, %v1693_v20  ;;  %v2163_v23 = vld [vmem:[%s2773_s5 + $0x2c] ss:$0 sps:$4 sm:$0x11]   ;;  %v425_v24 = vld [vmem:[%s2773_s5 + $0x10] sm:$0xf] }
  0xbd   : > { %1878 = vmatmul.mubr.msk.bf16.vlgmr.msra.gmra.mrb[0].mxu0 %vm315_vm3, %v314_v17  ;;  %v508_v25 = vsel %vm319_vm0, %v1691_v16, 0  ;;  %v484_v27 = vld [vmem:[%s2781_s7] sm:$0x3]  ;;  %v1686_v28 = vcombine.low %v301_v7, %v425_v24  ;;  %v502_v30 = vrot.slane %v2163_v23, 1  ;;  %v2164_v31 = vld [vmem:[%s2773_s5 + $0x20] sm:$0xfc]  }
  0xbe   : > { %1888 = vmatpush3.bf16.msra.mxu0 %v433_v15  ;;  %1889 = vmatprep.mubr.msk.bf16.mxu0 %vm2457_vm1, %v2456_v3  ;;  %v375_v26 = vsel %vm372_vm4, %v373_v18, %v374_v21  ;;  %v501_v29 = vrot.slane %v1695_v22, 1  ;;  %v2165_v32 = vld [vmem:[%s2773_s5 + $0x28] ss:$0 sps:$4 sm:$0x33]   ;;  %v566_v33 = vsel %vm319_vm0, %v484_v27, 0  ;;  %v559_v37 = vrot.slane %v2164_v31, 2 }
  0xbf   : > { %1899 = vmatprep.subr.bf16.mxu0 %v2456_v3  ;;  %1884 = vmatmul.mubr.msk.bf16.vlgmr.msra.gmra.mrb[0].mxu1 %vm315_vm3, %v375_v26  ;;  %v1701_v34 = vld [vmem:[%s2781_s7 + $0x4] sm:$0x3]  ;;  %v560_v38 = vrot.slane %v2165_v32, 2  ;;  %v1709_v39 = vld [vmem:[%s2773_s5 + $0x40] sm:$0xe]  ;;  %s3121_s28 = sld [smem:[#allocation17_spill]] }
  0xc0   : > { %1894 = vmatpush3.bf16.msra.mxu1 %v508_v25  ;;  %1895 = vmatprep.mubr.msk.bf16.mxu1 %vm2457_vm1, %v2456_v3  ;;  %v503_v35 = vsel %vm311_vm2, %v501_v29, %v502_v30  ;;  %v618_v36 = vsel %vm319_vm0, %v1701_v34, 0  ;;  %v1710_v40 = vld [vmem:[%s2773_s5 + $0x44] sm:$0xf]  ;;  %v1708_v41 = vld [vmem:[%s2781_s7 + $0x2] sm:$0x3] }
  0xc1   : > { %1905 = vmatprep.subr.bf16.mxu1 %v2456_v3  ;;  %v1702_v42 = vld [vmem:[%s2773_s5 + $0x2c] sm:$0xf]  ;;  %v561_v43 = vsel %vm372_vm4, %v559_v37, %v560_v38  ;;  %v1712_v44 = vcombine.low %v1709_v39, %v1710_v40  ;;  %v2168_v45 = vld [vmem:[%s2773_s5 + $0x48] ss:$0 sps:$4 sm:$0x11]   ;;  %v694_v46 = vsel %vm319_vm0, %v1708_v41, 0 }
  0xc2   : > { %v670_v47 = vld [vmem:[%s2781_s7] sm:$0x3]  ;;  %v1703_v48 = vcombine.low %v1693_v20, %v1702_v42  ;;  %v2169_v49 = vld [vmem:[%s2773_s5 + $0x3c] sm:$0xfc]   ;;  %v688_v53 = vrot.slane %v2168_v45, 1 }
  0xc3   : > { %v2170_v50 = vld [vmem:[%s2773_s5 + $0x44] ss:$0 sps:$4 sm:$0x33]   ;;  %v752_v51 = vsel %vm319_vm0, %v670_v47, 0  ;;  %v687_v52 = vrot.slane %v1712_v44, 1  ;;  %v745_v55 = vrot.slane %v2169_v49, 2 }
  0xc4   : > { %v1718_v54 = vld [vmem:[%s2781_s7 + $0x4] sm:$0x3]  ;;  %v746_v56 = vrot.slane %v2170_v50, 2  ;;  %v1726_v57 = vld [vmem:[%s2773_s5 + $0x5c] sm:$0xe] }
  0xc5   : > { %1890 = vmatmul.mubr.msk.bf16.vlgmr.msra.gmra.mrb[4].mxu0 %vm315_vm3, %v1686_v28  ;;  %v689_v58 = vsel %vm311_vm2, %v687_v52, %v688_v53  ;;  %v1727_v59 = vld [vmem:[%s2773_s5 + $0x60] sm:$0xf]  ;;  %v804_v60 = vsel %vm319_vm0, %v1718_v54, 0  ;;  %v1725_v61 = vld [vmem:[%s2781_s7 + $0x2] sm:$0x3]  ;;  %p1773_p13 = scmp.ne.s32.totalorder %s3121_s28, 2 }
  0xc6   : > { %1900 = vmatpush3.bf16.msra.mxu0 %v566_v33  ;;  %1901 = vmatprep.mubr.msk.bf16.mxu0 %vm2457_vm1, %v2456_v3  ;;  %v747_v62 = vsel %vm372_vm4, %v745_v55, %v746_v56  ;;  %v1729_v63 = vcombine.low %v1726_v57, %v1727_v59  ;;  %v2173_v0 = vld [vmem:[%s2773_s5 + $0x64] ss:$0 sps:$4 sm:$0x11]   ;;  %v880_v1 = vsel %vm319_vm0, %v1725_v61, 0  ;;  %v1719_v2 = vld [vmem:[%s2773_s5 + $0x48] sm:$0xf] }
  0xc7   : > { %1911 = vmatprep.subr.bf16.mxu0 %v2456_v3  ;;  %1896 = vmatmul.mubr.msk.bf16.vlgmr.msra.gmra.mrb[4].mxu1 %vm315_vm3, %v503_v35  ;;  %v856_v4 = vld [vmem:[%s2781_s7] sm:$0x3]  ;;  %v1720_v5 = vcombine.low %v1710_v40, %v1719_v2  ;;  %v874_v7 = vrot.slane %v2173_v0, 1  ;;  %v2174_v8 = vld [vmem:[%s2773_s5 + $0x58] sm:$0xfc]  }
  0xc8   : > { %1906 = vmatpush3.bf16.msra.mxu1 %v618_v36  ;;  %1907 = vmatprep.mubr.msk.bf16.mxu1 %vm2457_vm1, %v2456_v3  ;;  %v873_v6 = vrot.slane %v1729_v63, 1  ;;  %v2175_v9 = vld [vmem:[%s2773_s5 + $0x60] ss:$0 sps:$4 sm:$0x33]   ;;  %v938_v10 = vsel %vm319_vm0, %v856_v4, 0  ;;  %v931_v14 = vrot.slane %v2174_v8, 2 }
  0xc9   : > { %1917 = vmatprep.subr.bf16.mxu1 %v2456_v3  ;;  %v1735_v11 = vld [vmem:[%s2781_s7 + $0x4] sm:$0x3]  ;;  %v932_v15 = vrot.slane %v2175_v9, 2  ;;  %v1743_v16 = vld [vmem:[%s2773_s5 + $0x78] sm:$0xe] }
  0xca   : > { %v875_v12 = vsel %vm311_vm2, %v873_v6, %v874_v7  ;;  %v990_v13 = vsel %vm319_vm0, %v1735_v11, 0  ;;  %v1744_v17 = vld [vmem:[%s2773_s5 + $0x7c] sm:$0xf]  ;;  %v1742_v18 = vld [vmem:[%s2781_s7 + $0x2] sm:$0x3] }
  0xcb   : > { %v1736_v19 = vld [vmem:[%s2773_s5 + $0x64] sm:$0xf]  ;;  %v933_v20 = vsel %vm372_vm4, %v931_v14, %v932_v15  ;;  %v1746_v21 = vcombine.low %v1743_v16, %v1744_v17  ;;  %v2178_v22 = vld [vmem:[%s2773_s5 + $0x80] ss:$0 sps:$4 sm:$0x11]   ;;  %v1066_v23 = vsel %vm319_vm0, %v1742_v18, 0 }
  0xcc   : > { %v1042_v24 = vld [vmem:[%s2781_s7] sm:$0x3]  ;;  %v1737_v25 = vcombine.low %v1727_v59, %v1736_v19  ;;  %v2179_v26 = vld [vmem:[%s2773_s5 + $0x74] sm:$0xfc]   ;;  %v1060_v30 = vrot.slane %v2178_v22, 1 }
  0xcd   : > { %1902 = vmatmul.mubr.msk.bf16.vlgmr.msra.gmra.mrb[8].mxu0 %vm315_vm3, %v561_v43  ;;  %v2180_v27 = vld [vmem:[%s2773_s5 + $0x7c] ss:$0 sps:$4 sm:$0x33]   ;;  %v1124_v28 = vsel %vm319_vm0, %v1042_v24, 0  ;;  %v1059_v29 = vrot.slane %v1746_v21, 1  ;;  %v1117_v32 = vrot.slane %v2179_v26, 2 }
  0xce   : > { %1912 = vmatpush3.bf16.msra.mxu0 %v694_v46  ;;  %1913 = vmatprep.mubr.msk.bf16.mxu0 %vm2457_vm1, %v2456_v3  ;;  %v1752_v31 = vld [vmem:[%s2781_s7 + $0x4] sm:$0x3]  ;;  %v1118_v33 = vrot.slane %v2180_v27, 2  ;;  %v1761_v36 = vld [vmem:[%s2773_s5 + $0x98] sm:$0xf] }
  0xcf   : > { %1923 = vmatprep.subr.bf16.mxu0 %v2456_v3  ;;  %1908 = vmatmul.mubr.msk.bf16.vlgmr.msra.gmra.mrb[8].mxu1 %vm315_vm3, %v1703_v48  ;;  %v1061_v34 = vsel %vm311_vm2, %v1059_v29, %v1060_v30  ;;  %v1760_v35 = vld [vmem:[%s2773_s5 + $0x94] sm:$0xe]  ;;  %v1176_v37 = vsel %vm319_vm0, %v1752_v31, 0  ;;  %v1759_v38 = vld [vmem:[%s2781_s7 + $0x2] sm:$0x3] }
  0xd0   : > { %1918 = vmatpush3.bf16.msra.mxu1 %v752_v51  ;;  %1919 = vmatprep.mubr.msk.bf16.mxu1 %vm2457_vm1, %v2456_v3  ;;  %v1119_v39 = vsel %vm372_vm4, %v1117_v32, %v1118_v33  ;;  %v1763_v40 = vcombine.low %v1760_v35, %v1761_v36  ;;  %v2183_v41 = vld [vmem:[%s2773_s5 + $0x9c] ss:$0 sps:$4 sm:$0x11]   ;;  %v1252_v42 = vsel %vm319_vm0, %v1759_v38, 0  ;;  %v1753_v43 = vld [vmem:[%s2773_s5 + $0x80] sm:$0xf] }
  0xd1   : > { %1929 = vmatprep.subr.bf16.mxu1 %v2456_v3  ;;  %v1228_v44 = vld [vmem:[%s2781_s7] sm:$0x3]  ;;  %v1754_v45 = vcombine.low %v1744_v17, %v1753_v43  ;;  %v1246_v47 = vrot.slane %v2183_v41, 1  ;;  %v2184_v48 = vld [vmem:[%s2773_s5 + $0x90] sm:$0xfc]  }
  0xd2   : > { %v1245_v46 = vrot.slane %v1763_v40, 1  ;;  %v2185_v49 = vld [vmem:[%s2773_s5 + $0x98] ss:$0 sps:$4 sm:$0x33]   ;;  %v1310_v50 = vsel %vm319_vm0, %v1228_v44, 0  ;;  %v1303_v54 = vrot.slane %v2184_v48, 2 }
  0xd3   : > { %v1769_v51 = vld [vmem:[%s2781_s7 + $0x4] sm:$0x3]  ;;  %v1304_v55 = vrot.slane %v2185_v49, 2  ;;  %v1770_v56 = vld [vmem:[%s2773_s5 + $0x9c] sm:$0xf] }
  0xd4   : > { %v1247_v52 = vsel %vm311_vm2, %v1245_v46, %v1246_v47  ;;  %v1362_v53 = vsel %vm319_vm0, %v1769_v51, 0  ;;  %v664_v24 = vld [vmem:[#allocation2 + $0x10] sm:$0xff]  ;;  %v665_v30 = vld [vmem:[#allocation2 + $0x18] sm:$0xff]  ;;  %v850_v46 = vld [vmem:[#allocation2 + $0x20] sm:$0xff] }
  0xd5   : > { %1914 = vmatmul.mubr.msk.bf16.vlgmr.msra.gmra.mrb[12].mxu0 %vm315_vm3, %v689_v58  ;;  %v1305_v57 = vsel %vm372_vm4, %v1303_v54, %v1304_v55  ;;  %v1771_v58 = vcombine.low %v1761_v36, %v1770_v56 }
  0xd6   : > { %1924 = vmatpush3.bf16.msra.mxu0 %v804_v60  ;;  %1925 = vmatprep.mubr.msk.bf16.mxu0 %vm2457_vm1, %v2456_v3 }
  0xd7   : > { %1935 = vmatprep.subr.bf16.mxu0 %v2456_v3  ;;  %1920 = vmatmul.mubr.msk.bf16.vlgmr.msra.gmra.mrb[12].mxu1 %vm315_vm3, %v747_v62 }
  0xd8   : > { %1930 = vmatpush3.bf16.msra.mxu1 %v880_v1  ;;  %1931 = vmatprep.mubr.msk.bf16.mxu1 %vm2457_vm1, %v2456_v3 }
  0xd9   : > { %1941 = vmatprep.subr.bf16.mxu1 %v2456_v3 }
  0xdd   : > { %1926 = vmatmul.mubr.msk.bf16.vlgmr.msra.gmra.mrb[16].mxu0 %vm315_vm3, %v1720_v5 }
  0xde   : > { %1936 = vmatpush3.bf16.msra.mxu0 %v938_v10  ;;  %1937 = vmatprep.mubr.msk.bf16.mxu0 %vm2457_vm1, %v2456_v3  ;;  %v479_v10 = vld [vmem:[#allocation2 + $0x8] sm:$0xff] }
  0xdf   : > { %1947 = vmatprep.subr.bf16.mxu0 %v2456_v3  ;;  %1932 = vmatmul.mubr.msk.bf16.vlgmr.msra.gmra.mrb[16].mxu1 %vm315_vm3, %v875_v12 }
  0xe0   : > { %1942 = vmatpush3.bf16.msra.mxu1 %v990_v13  ;;  %1943 = vmatprep.mubr.msk.bf16.mxu1 %vm2457_vm1, %v2456_v3 }
  0xe1   : > { %1953 = vmatprep.subr.bf16.mxu1 %v2456_v3 }
  0xe5   : > { %1938 = vmatmul.mubr.msk.bf16.vlgmr.msra.gmra.mrb[20].mxu0 %vm315_vm3, %v933_v20 }
  0xe6   : > { %1948 = vmatpush3.bf16.msra.mxu0 %v1066_v23  ;;  %1949 = vmatprep.mubr.msk.bf16.mxu0 %vm2457_vm1, %v2456_v3 }
  0xe7   : > { %1959 = vmatprep.subr.bf16.mxu0 %v2456_v3  ;;  %1944 = vmatmul.mubr.msk.bf16.vlgmr.msra.gmra.mrb[20].mxu1 %vm315_vm3, %v1737_v25 }
  0xe8   : > { %1954 = vmatpush3.bf16.msra.mxu1 %v1124_v28  ;;  %1955 = vmatprep.mubr.msk.bf16.mxu1 %vm2457_vm1, %v2456_v3 }
  0xe9   : > { %1965 = vmatprep.subr.bf16.mxu1 %v2456_v3 }
  0xed   : > { %1950 = vmatmul.mubr.msk.bf16.vlgmr.msra.gmra.mrb[24].mxu0 %vm315_vm3, %v1061_v34 }
  0xee   : > { %1960 = vmatpush3.bf16.msra.mxu0 %v1176_v37  ;;  %1961 = vmatprep.mubr.msk.bf16.mxu0 %vm2457_vm1, %v2456_v3 }
  0xef   : > { %1971 = vmatprep.subr.bf16.mxu0 %v2456_v3  ;;  %1956 = vmatmul.mubr.msk.bf16.vlgmr.msra.gmra.mrb[24].mxu1 %vm315_vm3, %v1119_v39 }
  0xf0   : > { %1966 = vmatpush3.bf16.msra.mxu1 %v1252_v42  ;;  %1967 = vmatprep.mubr.msk.bf16.mxu1 %vm2457_vm1, %v2456_v3 }
  0xf1   : > { %1977 = vmatprep.subr.bf16.mxu1 %v2456_v3 }
  0xf5   : > { %1962 = vmatmul.mubr.msk.bf16.vlgmr.msra.gmra.mrb[28].mxu0 %vm315_vm3, %v1754_v45 }
  0xf6   : > { %1972 = vmatpush3.bf16.msra.mxu0 %v1310_v50  ;;  %1973 = vmatprep.mubr.msk.bf16.mxu0 %vm2457_vm1, %v2456_v3  ;;  %v851_v50 = vld [vmem:[#allocation2 + $0x28] sm:$0xff] }
  0xf7   : > { %1968 = vmatmul.mubr.msk.bf16.vlgmr.msra.gmra.mrb[28].mxu1 %vm315_vm3, %v1247_v52 }
  0xf8   : > { %1978 = vmatpush3.bf16.msra.mxu1 %v1362_v53  ;;  %1979 = vmatprep.mubr.msk.bf16.mxu1 %vm2457_vm1, %v2456_v3  ;;  %v478_v3 = vld [vmem:[#allocation2] sm:$0xff] }
  0xfd   : > { %1974 = vmatmul.mubr.msk.bf16.vlgmr.msra.gmra.mrb[32].mxu0 %vm315_vm3, %v1305_v57 }
  0xff   : > { %1980 = vmatmul.mubr.msk.bf16.vlgmr.msra.gmra.mrb[32].mxu1 %vm315_vm3, %v1771_v58 }
 0x190   : > { %v357_v59 = vpop.f32.mrb[0].mxu0 }
 0x191   : > { %v1879_v60 = vpop.f32.mrb[1].mxu0 }
 0x192   : > { %v360_v61 = vpop.f32.mrb[2].mxu0  ;;  %v416_v62 = vpop.f32.mrb[0].mxu1 }
 0x193   : > { %v1880_v63 = vpop.f32.mrb[3].mxu0  ;;  %v417_v0 = vadd.f32 %v416_v62, %v357_v59  ;;  %v1885_v1 = vpop.f32.mrb[1].mxu1 }
 0x194   : > { %v419_v2 = vpop.f32.mrb[2].mxu1 }
 0x195   : > { %v420_v4 = vadd.f32 %v419_v2, %v360_v61  ;;  %v1886_v5 = vpop.f32.mrb[3].mxu1 }
 0x198   : > { %v469_v6 = vpop.f32.mrb[4].mxu0 }
 0x199   : > { %v476_v7 = vadd.f32 %v469_v6, %v417_v0  ;;  %v1891_v8 = vpop.f32.mrb[5].mxu0  ;;  %v1036_v0 = vld [vmem:[#allocation2 + $0x30] sm:$0xff] }
 0x19a   : > { %v472_v9 = vpop.f32.mrb[6].mxu0  ;;  %v544_v12 = vpop.f32.mrb[4].mxu1 }
 0x19b   : > { %v480_v11 = vadd.f32 %v478_v3, %v476_v7  ;;  %v477_v13 = vadd.f32 %v472_v9, %v420_v4  ;;  %v1892_v14 = vpop.f32.mrb[7].mxu0  ;;  %v1897_v15 = vpop.f32.mrb[5].mxu1  ;;  %v1037_v3 = vld [vmem:[#allocation2 + $0x38] sm:$0xff] }
 0x19c   : > { %v547_v17 = vpop.f32.mrb[6].mxu1 }
 0x19d   : > { %482 = vst [vmem:[#allocation2] sm:$0xff] %v480_v11  ;;  %v481_v16 = vadd.f32 %v479_v10, %v477_v13  ;;  %v1898_v18 = vpop.f32.mrb[7].mxu1 }
 0x19f   : > { %483 = vst [vmem:[#allocation2 + $0x8] sm:$0xff] %v481_v16 }
 0x1a0   : > { %v602_v19 = vpop.f32.mrb[8].mxu0 }
 0x1a1   : > { %v603_v20 = vadd.f32 %v602_v19, %v544_v12  ;;  %v1903_v21 = vpop.f32.mrb[9].mxu0 }
 0x1a2   : > { %v605_v22 = vpop.f32.mrb[10].mxu0  ;;  %v654_v23 = vpop.f32.mrb[8].mxu1 }
 0x1a3   : > { %v606_v25 = vadd.f32 %v605_v22, %v547_v17  ;;  %v1904_v26 = vpop.f32.mrb[11].mxu0  ;;  %v661_v27 = vadd.f32 %v654_v23, %v603_v20  ;;  %v1909_v28 = vpop.f32.mrb[9].mxu1  ;;  %v1222_v22 = vld [vmem:[#allocation2 + $0x40] sm:$0xff] }
 0x1a4   : > { %v657_v29 = vpop.f32.mrb[10].mxu1  ;;  %v1223_v26 = vld [vmem:[#allocation2 + $0x48] sm:$0xff] }
 0x1a5   : > { %v666_v31 = vadd.f32 %v664_v24, %v661_v27  ;;  %v662_v32 = vadd.f32 %v657_v29, %v606_v25  ;;  %v1910_v33 = vpop.f32.mrb[11].mxu1 }
 0x1a7   : > { %668 = vst [vmem:[#allocation2 + $0x10] sm:$0xff] %v666_v31  ;;  %v667_v34 = vadd.f32 %v665_v30, %v662_v32 }
 0x1a8   : > { %v730_v35 = vpop.f32.mrb[12].mxu0 }
 0x1a9   : > { %v1915_v36 = vpop.f32.mrb[13].mxu0  ;;  %669 = vst [vmem:[#allocation2 + $0x18] sm:$0xff] %v667_v34 }
 0x1aa   : > { %v733_v37 = vpop.f32.mrb[14].mxu0  ;;  %v788_v38 = vpop.f32.mrb[12].mxu1 }
 0x1ab   : > { %v1916_v39 = vpop.f32.mrb[15].mxu0  ;;  %v789_v40 = vadd.f32 %v788_v38, %v730_v35  ;;  %v1921_v41 = vpop.f32.mrb[13].mxu1 }
 0x1ac   : > { %v791_v42 = vpop.f32.mrb[14].mxu1 }
 0x1ad   : > { %v792_v43 = vadd.f32 %v791_v42, %v733_v37  ;;  %v1922_v44 = vpop.f32.mrb[15].mxu1 }
 0x1b0   : > { %v840_v45 = vpop.f32.mrb[16].mxu0 }
 0x1b1   : > { %v847_v47 = vadd.f32 %v840_v45, %v789_v40  ;;  %v1927_v48 = vpop.f32.mrb[17].mxu0  ;;  %v1408_v40 = vld [vmem:[#allocation2 + $0x50] sm:$0xff] }
 0x1b2   : > { %v843_v49 = vpop.f32.mrb[18].mxu0  ;;  %v916_v52 = vpop.f32.mrb[16].mxu1 }
 0x1b3   : > { %v852_v51 = vadd.f32 %v850_v46, %v847_v47  ;;  %v848_v53 = vadd.f32 %v843_v49, %v792_v43  ;;  %v1928_v54 = vpop.f32.mrb[19].mxu0  ;;  %v1933_v55 = vpop.f32.mrb[17].mxu1  ;;  %v1409_v46 = vld [vmem:[#allocation2 + $0x58] sm:$0xff] }
 0x1b4   : > { %v919_v57 = vpop.f32.mrb[18].mxu1 }
 0x1b5   : > { %854 = vst [vmem:[#allocation2 + $0x20] sm:$0xff] %v852_v51  ;;  %v853_v56 = vadd.f32 %v851_v50, %v848_v53  ;;  %v1934_v58 = vpop.f32.mrb[19].mxu1  ;;  %v1418_v51 = vld [vmem:[#allocation2] sm:$0xff] (!%p1773_p13)  ;;  %v1774_v53 = vld [vmem:[#allocation8] ss:$0 sm:$0xff] (!%p1773_p13) }
 0x1b6   : > { %v1437_v54 = vadd.f32 (!%p1773_p13), %v1774_v53, %v1418_v51 }
 0x1b7   : > { %855 = vst [vmem:[#allocation2 + $0x28] sm:$0xff] %v853_v56  ;;  %v1420_v56 = vld [vmem:[#allocation2 + $0x10] sm:$0xff] (!%p1773_p13) }
 0x1b8   : > { %v974_v59 = vpop.f32.mrb[20].mxu0 }
 0x1b9   : > { %v975_v60 = vadd.f32 %v974_v59, %v916_v52  ;;  %v1939_v61 = vpop.f32.mrb[21].mxu0  ;;  %v1419_v52 = vld [vmem:[#allocation2 + $0x8] sm:$0xff] (!%p1773_p13)  ;;  %v1439_v59 = vadd.f32 (!%p1773_p13), %v1774_v53, %v1420_v56 }
 0x1ba   : > { %v977_v62 = vpop.f32.mrb[22].mxu0  ;;  %v1026_v63 = vpop.f32.mrb[20].mxu1  ;;  %v1438_v55 = vadd.f32 (!%p1773_p13), %v1774_v53, %v1419_v52 }
 0x1bb   : > { %v978_v1 = vadd.f32 %v977_v62, %v919_v57  ;;  %v1940_v2 = vpop.f32.mrb[23].mxu0  ;;  %v1033_v4 = vadd.f32 %v1026_v63, %v975_v60  ;;  %v1945_v5 = vpop.f32.mrb[21].mxu1  ;;  %v1421_v57 = vld [vmem:[#allocation2 + $0x18] sm:$0xff] (!%p1773_p13) }
 0x1bc   : > { %v1029_v6 = vpop.f32.mrb[22].mxu1  ;;  %v1422_v58 = vld [vmem:[#allocation2 + $0x20] sm:$0xff] (!%p1773_p13)  ;;  %v1440_v60 = vadd.f32 (!%p1773_p13), %v1774_v53, %v1421_v57  ;;  %v1450_v2 = vmax.f32 (!%p1773_p13), %v1438_v55, 0.0 }
 0x1bd   : > { %v1038_v7 = vadd.f32 %v1036_v0, %v1033_v4  ;;  %v1034_v8 = vadd.f32 %v1029_v6, %v978_v1  ;;  %v1946_v9 = vpop.f32.mrb[23].mxu1  ;;  %v1441_v62 = vadd.f32 (!%p1773_p13), %v1774_v53, %v1422_v58  ;;  %v1449_v1 = vmax.f32 (!%p1773_p13), %v1437_v54, 0.0 }
 0x1be   : > { %v1423_v61 = vld [vmem:[#allocation2 + $0x28] sm:$0xff] (!%p1773_p13)  ;;  %v1452_v9 = vmax.f32 (!%p1773_p13), %v1440_v60, 0.0 }
 0x1bf   : > { %1040 = vst [vmem:[#allocation2 + $0x30] sm:$0xff] %v1038_v7  ;;  %v1039_v10 = vadd.f32 %v1037_v3, %v1034_v8  ;;  %v1442_v4 = vadd.f32 (!%p1773_p13), %v1774_v53, %v1423_v61  ;;  %v1451_v8 = vmax.f32 (!%p1773_p13), %v1439_v59, 0.0 }
 0x1c0   : > { %v1102_v11 = vpop.f32.mrb[24].mxu0 }
 0x1c1   : > { %v1951_v12 = vpop.f32.mrb[25].mxu0  ;;  %1041 = vst [vmem:[#allocation2 + $0x38] sm:$0xff] %v1039_v10  ;;  %v1453_v10 = vmax.f32 (!%p1773_p13), %v1441_v62, 0.0 }
 0x1c2   : > { %v1105_v13 = vpop.f32.mrb[26].mxu0  ;;  %v1160_v14 = vpop.f32.mrb[24].mxu1 }
 0x1c3   : > { %v1952_v15 = vpop.f32.mrb[27].mxu0  ;;  %v1161_v16 = vadd.f32 %v1160_v14, %v1102_v11  ;;  %v1957_v17 = vpop.f32.mrb[25].mxu1  ;;  %v1454_v14 = vmax.f32 (!%p1773_p13), %v1442_v4, 0.0 }
 0x1c4   : > { %v1163_v18 = vpop.f32.mrb[26].mxu1  ;;  %v1812_v17 = vpack.c.bf16 (!%p1773_p13), %v1452_v9, %v1451_v8 }
 0x1c5   : > { %v1164_v19 = vadd.f32 %v1163_v18, %v1105_v13  ;;  %v1958_v20 = vpop.f32.mrb[27].mxu1  ;;  %v1807_v13 = vpack.c.bf16 (!%p1773_p13), %v1450_v2, %v1449_v1 }
 0x1c6   : > { %v1424_v63 = vld [vmem:[#allocation2 + $0x30] sm:$0xff] (!%p1773_p13)  ;;  %1834 = vst [vmem:[%s2794_s3 + $0x8] sm:$0xff] (!%p1773_p13), %v1812_v17  }
 0x1c7   : > { %v1443_v5 = vadd.f32 (!%p1773_p13), %v1774_v53, %v1424_v63  ;;  %1808 = vst [vmem:[%s2794_s3] sm:$0xff] (!%p1773_p13), %v1807_v13  }
 0x1c8   : > { %v1212_v21 = vpop.f32.mrb[28].mxu0  ;;  %v1425_v0 = vld [vmem:[#allocation2 + $0x38] sm:$0xff] (!%p1773_p13) }
 0x1c9   : > { %v1219_v23 = vadd.f32 %v1212_v21, %v1161_v16  ;;  %v1963_v24 = vpop.f32.mrb[29].mxu0  ;;  %v1444_v11 = vadd.f32 (!%p1773_p13), %v1774_v53, %v1425_v0  ;;  %v1455_v15 = vmax.f32 (!%p1773_p13), %v1443_v5, 0.0  ;;  %v1817_v21 = vpack.c.bf16 (!%p1773_p13), %v1454_v14, %v1453_v10 }
 0x1ca   : > { %v1215_v25 = vpop.f32.mrb[30].mxu0  ;;  %v1288_v28 = vpop.f32.mrb[28].mxu1 }
 0x1cb   : > { %v1224_v27 = vadd.f32 %v1222_v22, %v1219_v23  ;;  %v1220_v29 = vadd.f32 %v1215_v25, %v1164_v19  ;;  %v1964_v30 = vpop.f32.mrb[31].mxu0  ;;  %v1969_v31 = vpop.f32.mrb[29].mxu1  ;;  %v1456_v18 = vmax.f32 (!%p1773_p13), %v1444_v11, 0.0  ;;  %1835 = vst [vmem:[%s2794_s3 + $0x10] sm:$0xff] (!%p1773_p13), %v1817_v21  }
 0x1cc   : > { %v1291_v33 = vpop.f32.mrb[30].mxu1 }
 0x1cd   : > { %1226 = vst [vmem:[#allocation2 + $0x40] sm:$0xff] %v1224_v27  ;;  %v1225_v32 = vadd.f32 %v1223_v26, %v1220_v29  ;;  %v1970_v34 = vpop.f32.mrb[31].mxu1  ;;  %v1822_v24 = vpack.c.bf16 (!%p1773_p13), %v1456_v18, %v1455_v15 }
 0x1cf   : > { %1227 = vst [vmem:[#allocation2 + $0x48] sm:$0xff] %v1225_v32  ;;  %1836 = vst [vmem:[%s2794_s3 + $0x18] sm:$0xff] (!%p1773_p13), %v1822_v24  }
 0x1d0   : > { %v1346_v35 = vpop.f32.mrb[32].mxu0 }
 0x1d1   : > { %v1347_v36 = vadd.f32 %v1346_v35, %v1288_v28  ;;  %v1975_v37 = vpop.f32.mrb[33].mxu0 }
 0x1d2   : > { %v1349_v38 = vpop.f32.mrb[34].mxu0  ;;  %v1398_v39 = vpop.f32.mrb[32].mxu1 }
 0x1d3   : > { %v1350_v41 = vadd.f32 %v1349_v38, %v1291_v33  ;;  %v1976_v42 = vpop.f32.mrb[35].mxu0  ;;  %v1405_v43 = vadd.f32 %v1398_v39, %v1347_v36  ;;  %v1981_v44 = vpop.f32.mrb[33].mxu1  ;;  %1417 = sbr.rel (%p1773_p13) target bundleno = 488 (0x1e8), region = 52 }
 0x1d4   : > { %v1401_v45 = vpop.f32.mrb[34].mxu1  ;;  %v1426_v6 = vld [vmem:[#allocation2 + $0x40] sm:$0xff] (!%p1773_p13) }
 0x1d5   : > { %v1410_v47 = vadd.f32 %v1408_v40, %v1405_v43  ;;  %v1406_v48 = vadd.f32 %v1401_v45, %v1350_v41  ;;  %v1982_v49 = vpop.f32.mrb[35].mxu1  ;;  %v1445_v16 = vadd.f32 (!%p1773_p13), %v1774_v53, %v1426_v6 }
 0x1d6   : > { %v1427_v3 = vld [vmem:[#allocation2 + $0x48] sm:$0xff] (!%p1773_p13) }
 0x1d7   : > { %1412 = vst [vmem:[#allocation2 + $0x50] sm:$0xff] %v1410_v47  ;;  %v1411_v50 = vadd.f32 %v1409_v46, %v1406_v48  ;;  %v1446_v19 = vadd.f32 (!%p1773_p13), %v1774_v53, %v1427_v3  ;;  %v1457_v22 = vmax.f32 (!%p1773_p13), %v1445_v16, 0.0 }
 0x1d9   : > { %1413 = vst [vmem:[#allocation2 + $0x58] sm:$0xff] %v1411_v50  ;;  %v1458_v25 = vmax.f32 (!%p1773_p13), %v1446_v19, 0.0 }
 0x1db   : > { %v1827_v28 = vpack.c.bf16 %v1458_v25, %v1457_v22 }
 0x1dd   : > { %1837 = vst [vmem:[%s2794_s3 + $0x20] sm:$0xff] %v1827_v28  }
 0x1de   : > { %v1428_v7 = vld [vmem:[#allocation2 + $0x50] sm:$0xff] }
 0x1df   : > { %v1447_v20 = vadd.f32 %v1774_v53, %v1428_v7 }
 0x1e0   : > { %v1429_v12 = vld [vmem:[#allocation2 + $0x58] sm:$0xff] }
 0x1e1   : > { %v1448_v23 = vadd.f32 %v1774_v53, %v1429_v12  ;;  %v1459_v26 = vmax.f32 %v1447_v20, 0.0 }
 0x1e3   : > { %v1460_v27 = vmax.f32 %v1448_v23, 0.0 }
 0x1e5   : > { %v1832_v29 = vpack.c.bf16 %v1460_v27, %v1459_v26 }
 0x1e7   : > { %1838 = vst [vmem:[%s2794_s3 + $0x28] sm:$0xff] %v1832_v29  }
 0x1e8 PF: > { %s3122_s9 = sld [smem:[#allocation18_spill]]  ;;  %s3123_s23 = sld [smem:[#allocation19_spill]] }
 0x1e9   : > { %s3125_s25 = sld [smem:[#allocation22_spill]]  ;;  %s1538_s5 = sshll.u32 %s2794_s3, 4  ;;  %s2963_s5 = int_to_ptr.vmem [resolvable:$true] %s1538_s5 }
 0x1ea   : > { %s3126_s16 = sld [smem:[#allocation29_spill]]  ;;  %s2972_s4 = scalar_lea.sflag [#allocation5], %s270_s18 }
 0x1eb   : > { %s2276_s11 = scalar_lea.vmem %s2963_s5, 768  ;;  %s2458_s3 = smov [#allocation9]  }
 0x1ec   : > { %p2277_p6 = scmp.ne.s32.totalorder %s2963_s5, %s2276_s11  ;;  %s2280_s15 = sshll.u32 %s2458_s3, 4  ;;  %s2281_s15 = int_to_ptr.vmem [resolvable:$false] %s2280_s15 }
 0x1ed   : > { %s2282_s28 = scalar_lea.vmem %s2281_s15, 1536  ;;  %p2283_p12 = scmp.lt.s32.totalorder %s2963_s5, %s2281_s15 }
 0x1ee   : > { %s1803_s21 = smul.u32 12, %s3122_s9  ;;  %p2284_p4 = scmp.lt.s32.totalorder %s2282_s28, %s2276_s11 }
 0x1ef   : > { %s1989_s8 = smul.u32 36, %s3123_s23  ;;  %p3128_p5 = scmp.ne.s32.totalorder %s3125_s25, 0 }
 0x1f0   : > { %s3127_s10 = smov %s3126_s16  ;;  %p2285_p8 = por %p2284_p4, %p2283_p12 }
 0x1f1   : > { %s1535_s6 = sadd.s32 %s1989_s8, %s1803_s21  ;;  %p2278_p7 = pnand %p2277_p6, %p3128_p5 }
 0x1f2   : > { %s1788_s30 = sshll.u32 %s1535_s6, 6 }
 0x1f3   : > { %s2968_s7 = scalar_lea.hbm %s3126_s16, %s1788_s30  ;;  %p2279_p0 = pneg %p2278_p7 }
 0x1f5   : > { %p2286_p2 = pnand %p2285_p8, %p2279_p0 }
 0x1f7   : > { %2289 = shalt.err (!%p2286_p2)
}
 0x1f8   : > { %s2290_s18 = scalar_lea.hbm %s2968_s7, 768  ;;  %s2294_s13 = scalar_lea.hbm %s3127_s10, 4608 }
 0x1f9   : > { %p2291_p1 = scmp.ne.s32.totalorder %s2968_s7, %s2290_s18  ;;  %p2295_p10 = scmp.lt.u32.totalorder %s2968_s7, %s3127_s10 }
 0x1fa   : > { %p2296_p11 = scmp.lt.u32.totalorder %s2294_s13, %s2290_s18  ;;  %p2298_p6 = scmp.lt.u32.totalorder %s2290_s18, %s2968_s7 }
 0x1fb   : > { %p2292_p3 = pnand %p2291_p1, %p3128_p5 }
 0x1fc   : > { %p2297_p13 = por %p2296_p11, %p2295_p10 }
 0x1fd   : > { %p2293_p9 = pneg %p2292_p3 }
 0x1fe   : > { %p2299_p7 = por %p2298_p6, %p2297_p13 }
 0x200   : > { %p2300_p0 = pnand %p2299_p7, %p2293_p9 }
 0x202   : > { %2303 = shalt.err (!%p2300_p0)
}
 0x203   : > { %s2459_s6 = smov 64   ;;  %s2460_s30 = smov 4  }
 0x204   : > { %1998 = dma.vmem_to_hbm [thread:$0]  (%p3128_p5), %s2963_s5, 768, %s2968_s7, %s2972_s4, %s2459_s6, %s2459_s6, %s2460_s30  }
 0x205 PF: > { %s3129_s29 = sld [smem:[#allocation14_spill]]  ;;  %s3130_s22 = sld [smem:[#allocation23_spill]] }
 0x206   : > { %p2018_p12 = scmp.ge.s32.totalorder %s2446_s27, 2 }
 0x20b   : > { %s1553_s16 = sand.u32 1, %s3129_s29   ;;  %p3131_p4 = scmp.ne.s32.totalorder %s3130_s22, 0 }
 0x20c   : > { %s1554_s11 = scalar_lea.sflag [#allocation5], %s1553_s16 }
 0x20d   : > { %p2012_p8 = pnand %p2018_p12, %p3131_p4 }
 0x20f   : > { %2381 = dma.done.wait (!%p2012_p8), %s1554_s11, 768  }
 0x210   : > { %2383 = vsyncadd (!%p2012_p8), %s1554_s11, 4294966528  ;;  %s22_s27 = sadd.s32 1, %s2446_s27   ;;  %s3133_s15 = sld [smem:[#allocation15_spill]] }
 0x211   : > { %p3001_p2 = scmp.ge.s32.totalorder %s22_s27, 20   ;;  %s3134_s25 = smov %s2692_s12 }
 0x212   : > { %s3135_s5 = sld [smem:[#allocation16_spill]]  ;;  %s3136_s7 = sld [smem:[#allocation27_spill]] }
 0x213   : > { %s3137_s22 = sld [smem:[#allocation20_spill]]  ;;  %s3138_s4 = sld [smem:[#allocation24_spill]] }
 0x214   : > { %s3139_s28 = sld [smem:[#allocation25_spill]]  ;;  %s3140_s9 = sld [smem:[#allocation26_spill]] }
 0x215   : > { %s3142_s13 = smov %s2394_s14  ;;  %s3143_s14 = smov %s3134_s25 }
 0x216   : > { %s3141_s12 = smov %s3133_s15  ;;  %s3145_s16 = smov %s2406_s17 }
 0x217   : > { %s3147_s18 = smov %s2414_s19  ;;  %s3148_s19 = smov %s2418_s20 }
 0x218   : > { %s3144_s15 = smov %s3135_s5  ;;  %s3146_s17 = smov %s3136_s7 }
 0x219   : > { %s3149_s20 = smov %s2687_s2  ;;  %s3150_s21 = smov %s2434_s24 }
 0x21a   : > { %s3151_s23 = smov %s2442_s26  ;;  %s3152_s24 = smov %s3138_s4 }
 0x21b   : > { %s3153_s25 = smov %s3139_s28  ;;  %s3154_s26 = smov %s3140_s9 }
 0x21c   :  { %21 = sbr.rel (!%p3001_p2) target bundleno = 16 (0x10), region = 114 }
 0x223   :  { %1559 = vsyncpa [#allocation4], 1 }
 0x224   :  { %1561 = vsyncpa [#allocation4 + $0x1], 1 }
 0x225   :  { %1562 = vsyncpa [#allocation7], 1 }
 0x226   :  { %1564 = vsyncpa [#allocation7 + $0x1], 1 }
 0x227   :  { %1565 = vsyncpa [#allocation5], 1 }
 0x228   :  { %1567 = vsyncpa [#allocation5 + $0x1], 1 }

// kernel: aspp_forward.9
= control target key start
LH: loop header
LB: loop body
LE: loop exit
PB: predicated region body
PF: predicated region fallthrough
CT: control target
= control target key end

     0   :  { %8 = vsyncpa [#allocation4], 0  ;;  %s2023_s0 = inlined_call_operand.hbm [shape: bf16[512,4], index: 0, kind: input, shape index: {}]   ;;  %s2024_s1 = inlined_call_operand.hbm [shape: bf16[4,128], index: 1, kind: input, shape index: {}]   ;;  %s2025_s2 = inlined_call_operand.hbm [shape: f32[1,128], index: 2, kind: input, shape index: {}]   ;;  %s2026_s3 = inlined_call_operand.hbm [shape: bf16[512,128], index: 3, kind: output, shape index: {}]  }
   0x1   :  { %10 = vsyncpa [#allocation4 + $0x1], 0 }
   0x2   :  { %11 = vsyncpa [#allocation7], 0 }
   0x3   :  { %12 = vsyncpa [#allocation5], 0 }
   0x4   :  { %14 = vsyncpa [#allocation5 + $0x1], 0  ;;  %s1683_s12 = smov 0   ;;  %s1685_s13 = smov 0  }
   0x5   :  { %s1687_s14 = smov 0   ;;  %s1689_s15 = smov 0  }
   0x6   :  { %s1691_s16 = smov 0   ;;  %s1693_s17 = smov 0  }
   0x7 LB: > { %s1110_s18 = sadd.s32 4294967295, %s1653_s17   ;;  %s1111_s19 = sadd.s32 4294967294, %s1653_s17   ;;  %s1653_s17 = sphi %s1693_s17, %s20_s17   ;;  %s1649_s16 = sphi %s1691_s16, %s2052_s16   ;;  %s1645_s15 = sphi %s1689_s15, %s2051_s15   ;;  %s1641_s14 = sphi %s1687_s14, %s2050_s14   ;;  %s1637_s13 = sphi %s1685_s13, %s2049_s13   ;;  %s1633_s12 = sphi %s1683_s12, %s2048_s12  }
   0x8   : > { %s48_s20 = sadd.s32 1, %s1641_s14  ;;  %p55_p0 = scmp.ne.s32.totalorder %s1641_s14, %s1637_s13 }
   0x9   : > { %p56_p1 = scmp.eq.s32.totalorder %s1653_s17, 0  ;;  %p61_p2 = scmp.ne.s32.totalorder %s1637_s13, %s1633_s12 }
   0xa   : > { %p1721_p3 = scmp.eq.s32.totalorder %s1110_s18, 0  ;;  %p141_p4 = scmp.eq.s32.totalorder %s1110_s18, 1 }
   0xb   : > { %p1725_p5 = por %p56_p1, %p55_p0  ;;  %p147_p6 = scmp.eq.s32.totalorder %s1111_s19, 1 }
   0xc   : > { %s2033_s21 = scalar_select %p1721_p3, 1, 0 }
   0xd   : > { %p1731_p7 = por %p1721_p3, %p61_p2  ;;  %p1735_p8 = por %p141_p4, %p55_p0 }
   0xe   : > { %p1739_p9 = por %p147_p6, %p61_p2  ;;  %p1112_p10 = scmp.ge.s32.totalorder %s1653_s17, 1 }
   0xf   : > { %s2035_s23 = scalar_select %p1731_p7, 1, 0 }
  0x10   : > { %s2036_s24 = scalar_select %p1735_p8, 1, 0 }
  0x11   : > { %s2037_s25 = scalar_select %p1739_p9, 1, 0 }
  0x12   : > { %p154_p11 = scmp.lt.s32.totalorder %s1653_s17, 3  ;;  %s1655_s27 = smov [#allocation6]  }
  0x13   : > { %s170_s28 = sshll.u32 %s1655_s27, 4  ;;  %p1407_p1 = scmp.lt.s32.totalorder %s1653_s17, 2  ;;  %s171_s28 = int_to_ptr.vmem [resolvable:$true] %s170_s28 }
  0x14   : > { %p1746_p13 = pnand %p1112_p10, %p154_p11  ;;  %s1656_s30 = smov [#allocation8]  }
  0x15   : > { %p1755_p4 = pnand %p1407_p1, %p1725_p5  ;;  %s183_s4 = sshll.u32 %s1656_s30, 4  ;;  %s1765_s4 = int_to_ptr.vmem [resolvable:$true] %s183_s4 }
  0x16   : > { %s2038_s26 = scalar_select %p1746_p13, 1, 0 }
  0x17   : > { %p1390_p0 = pneg %p1746_p13  ;;  %s1481_s8 = scalar_lea.hbm %s2024_s1, 32 }
  0x18   : > { %s2039_s29 = scalar_select %p1755_p4, 1, 0 }
  0x19   : > { %p1761_p2 = pnand %p1390_p0, %p1721_p3  ;;  %p1482_p5 = scmp.ne.s32.totalorder %s2024_s1, %s1481_s8 }
  0x1a   : > { %p1488_p1 = scmp.lt.u32.totalorder %s1481_s8, %s2024_s1 }
  0x1b   : > { %p1483_p6 = pneg %p1761_p2 }
  0x1d   : > { %p1484_p10 = pnand %p1483_p6, %p1482_p5 }
  0x1f   : > { %p1485_p11 = pneg %p1484_p10 }
  0x21   : > { %p1490_p0 = pnand %p1488_p1, %p1485_p11 }
  0x23   : > { %1493 = shalt.err (!%p1490_p0)
}
  0x24   : > { %s1494_s19 = scalar_lea.vmem %s171_s28, 32  ;;  %p1502_p3 = scmp.lt.s32.totalorder %s171_s28, %s171_s28 }
  0x25   : > { %p1495_p12 = scmp.ne.s32.totalorder %s171_s28, %s1494_s19  ;;  %p1503_p7 = scmp.lt.s32.totalorder %s1494_s19, %s1494_s19 }
  0x27   : > { %p1497_p9 = pnand %p1495_p12, %p1483_p6  ;;  %p1504_p13 = por %p1503_p7, %p1502_p3 }
  0x29   : > { %p1498_p8 = pneg %p1497_p9 }
  0x2b   : > { %p1505_p4 = pnand %p1504_p13, %p1498_p8 }
  0x2d   : > { %1508 = shalt.err (!%p1505_p4)
}
  0x2e   : > { %1393 = dma.hbm_to_vmem [thread:$0]  (!%p1761_p2), %s2024_s1, 32, %s171_s28, [#allocation7]  }
  0x2f   : > { %s1509_s7 = scalar_lea.hbm %s2025_s2, 16 }
  0x30   : > { %p1510_p9 = scmp.ne.s32.totalorder %s2025_s2, %s1509_s7  ;;  %p1516_p8 = scmp.lt.u32.totalorder %s1509_s7, %s2025_s2 }
  0x32   : > { %p1512_p3 = pnand %p1510_p9, %p1483_p6 }
  0x34   : > { %p1513_p7 = pneg %p1512_p3 }
  0x36   : > { %p1518_p12 = pnand %p1516_p8, %p1513_p7 }
  0x38   : > { %1521 = shalt.err (!%p1518_p12)
}
  0x39   : > { %s1522_s28 = scalar_lea.vmem %s1765_s4, 16  ;;  %s1529_s18 = scalar_lea.vmem %s1765_s4, 32 }
  0x3a   : > { %p1523_p13 = scmp.ne.s32.totalorder %s1765_s4, %s1522_s28  ;;  %p1530_p10 = scmp.lt.s32.totalorder %s1765_s4, %s1765_s4 }
  0x3b   : > { %p1531_p11 = scmp.lt.s32.totalorder %s1529_s18, %s1522_s28 }
  0x3c   : > { %p1525_p4 = pnand %p1523_p13, %p1483_p6 }
  0x3d   : > { %p1532_p1 = por %p1531_p11, %p1530_p10 }
  0x3e   : > { %p1526_p5 = pneg %p1525_p4 }
  0x40   : > { %p1533_p0 = pnand %p1532_p1, %p1526_p5 }
  0x42   : > { %1536 = shalt.err (!%p1533_p0)
}
  0x43   : > { %1396 = dma.hbm_to_vmem [thread:$0]  (!%p1761_p2), %s2025_s2, 16, %s1765_s4, [#allocation7]  }
  0x44   : > { %s39_s27 = sadd.s32 1, %s1649_s16  ;;  %s194_s30 = sand.u32 1, %s1641_s14  }
  0x45   : > { %p41_p6 = scmp.ge.s32.totalorder %s39_s27, 2  ;;  %s1116_s6 = sshll.u32 %s194_s30, 7 }
  0x46   : > { %s1194_s7 = sshll.u32 %s1649_s16, 11  ;;  %s198_s4 = scalar_lea.vmem [#allocation3], %s1116_s6 }
  0x47   : > { %s2054_s27 = smov (%p41_p6, %s39_s27), 0  ;;  %s1823_s9 = scalar_lea.hbm %s2023_s0, %s1194_s7 }
  0x48   : > { %s43_s10 = ssub.s32 %s1649_s16, %s2054_s27  ;;  %s206_s11 = sshll.u32 %s198_s4, 4  ;;  %s1827_s11 = int_to_ptr.vmem [resolvable:$true] %s206_s11 }
  0x49   : > { %p46_p2 = scmp.eq.s32.totalorder %s43_s10, 0  ;;  %s1834_s18 = scalar_lea.sflag [#allocation4], %s194_s30 }
  0x4a   : > { %s1537_s19 = scalar_lea.hbm %s1823_s9, 2048  ;;  %p2041_p3 = scmp.ne.s32.totalorder %s2039_s29, 0 }
  0x4b   : > { %s1832_s28 = scalar_select %p46_p2, %s1641_s14, %s48_s20  }
  0x4c   : > { %p1538_p9 = scmp.ne.s32.totalorder %s1823_s9, %s1537_s19  ;;  %p1539_p7 = pneg %p2041_p3 }
  0x4d   : > { %s1542_s6 = scalar_lea.hbm %s2023_s0, 4096  ;;  %p1543_p13 = scmp.lt.u32.totalorder %s1823_s9, %s2023_s0 }
  0x4e   : > { %p1540_p8 = pnand %p1539_p7, %p1538_p9  ;;  %p1544_p4 = scmp.lt.u32.totalorder %s1542_s6, %s1537_s19 }
  0x4f   : > { %p1546_p10 = scmp.lt.u32.totalorder %s1537_s19, %s1823_s9 }
  0x50   : > { %p1541_p12 = pneg %p1540_p8  ;;  %p1545_p5 = por %p1544_p4, %p1543_p13 }
  0x52   : > { %p1547_p11 = por %p1546_p10, %p1545_p5 }
  0x54   : > { %p1548_p1 = pnand %p1547_p11, %p1541_p12 }
  0x56   : > { %1551 = shalt.err (!%p1548_p1)
}
  0x57   : > { %s1552_s20 = scalar_lea.vmem %s1827_s11, 2048  ;;  %s1657_s30 = smov [#allocation3]  }
  0x58   : > { %p1553_p0 = scmp.ne.s32.totalorder %s1827_s11, %s1552_s20  ;;  %s1557_s10 = sshll.u32 %s1657_s30, 4  ;;  %s1558_s10 = int_to_ptr.vmem [resolvable:$false] %s1557_s10 }
  0x59   : > { %s1559_s4 = scalar_lea.vmem %s1558_s10, 4096  ;;  %p1560_p9 = scmp.lt.s32.totalorder %s1827_s11, %s1558_s10 }
  0x5a   : > { %p1555_p6 = pnand %p1553_p0, %p1539_p7  ;;  %p1561_p8 = scmp.lt.s32.totalorder %s1559_s4, %s1552_s20 }
  0x5c   : > { %p1556_p2 = pneg %p1555_p6  ;;  %p1562_p13 = por %p1561_p8, %p1560_p9 }
  0x5e   : > { %p1563_p4 = pnand %p1562_p13, %p1556_p2 }
  0x60   : > { %1566 = shalt.err (!%p1563_p4)
}
  0x61   : > { %s1658_s19 = smov 64   ;;  %s1659_s22 = smov 4  }
  0x62   : > { %1400 = dma.hbm_to_vmem [thread:$0]  (!%p2041_p3), %s1823_s9, 2048, %s1827_s11, %s1834_s18, %s1658_s19, %s1658_s19, %s1659_s22  }
  0x63   : > { %p2042_p7 = scmp.ne.s32.totalorder %s2038_s26, 0 }
  0x64   : > { %s1865_s7 = sand.u32 (!%p2042_p7), 1, %s1637_s13   ;;  %p2043_p12 = scmp.ne.s32.totalorder (!%p2042_p7), %s2035_s23, 0 }
  0x65   : > { %218 = sbr.rel (%p2042_p7) target bundleno = 377 (0x179), region = 32  ;;  %s1120_s6 = sshll.u32 (!%p2042_p7), %s1865_s7, 7 }
  0x66   : > { %s221_s5 = scalar_lea.sflag (!%p2042_p7), [#allocation4], %s1865_s7  ;;  %s1871_s8 = scalar_lea.vmem (!%p2042_p7), [#allocation3], %s1120_s6 }
  0x6c   : > { %1620 = dma.done.wait (%p2043_p12), %s221_s5, 2048  }
  0x6d   : > { %1622 = vsyncadd (%p2043_p12), %s221_s5, 4294965248  ;;  %p2044_p3 = scmp.ne.s32.totalorder %s2033_s21, 0 }
  0x6f   : > { %1624 = dma.done.wait (%p2044_p3), [#allocation7], 48  }
  0x70   : > { %1626 = vsyncadd (%p2044_p3), [#allocation7], 4294967248  ;;  %vm488_vm0 = vcmask 1041408   ;;  %vm439_vm1 = vcmask 31744   ;;  %v358_v0 = vld [vmem:[#allocation6] sm:$0x3] }
  0x71   : > { %1376 = vmatprep.subr.msk.bf16.mxu0 %vm488_vm0, %v358_v0  ;;  %1377 = vmatprep.subr.msk.bf16.mxu1 %vm488_vm0, %v358_v0  ;;  %v490_v1 = vsel %vm488_vm0, %v358_v0, 0  ;;  %v1465_v2 = vld [vmem:[%s1871_s8] sm:$0xff]   ;;  %v1467_v4 = vld [vmem:[%s1871_s8 + $0x8] sm:$0xff]   ;;  %v1469_v6 = vld [vmem:[%s1871_s8 + $0x10] sm:$0xff]   ;;  %s1925_s21 = scalar_lea.vmem [#allocation9], %s1120_s6  ;;  %s1227_s23 = sshll.u32 %s1645_s15, 11 }
  0x72   : > { %1341 = vmatpush3.bf16.msra.mxu0 %v490_v1  ;;  %1375 = vmatpush3.bf16.msra.mxu1 %v490_v1  ;;  %v1466_v3 = vld [vmem:[%s1871_s8 + $0x40] sm:$0xff]   ;;  %v1468_v5 = vld [vmem:[%s1871_s8 + $0x48] sm:$0xff]   ;;  %v1470_v7 = vld [vmem:[%s1871_s8 + $0x50] sm:$0xff]   ;;  %s998_s26 = sshll.u32 %s1925_s21, 4  ;;  %s1968_s11 = scalar_lea.hbm %s2026_s3, %s1227_s23  ;;  %s1970_s26 = int_to_ptr.vmem [resolvable:$true] %s998_s26 }
  0x73   : > { %1342 = vmatprep.mubr.msk.bf16.mxu0 %vm439_vm1, %v1465_v2  ;;  %1358 = vmatprep.mubr.msk.bf16.mxu1 %vm439_vm1, %v1466_v3  ;;  %v1471_v8 = vld [vmem:[%s1871_s8 + $0x18] sm:$0xff]   ;;  %v1473_v10 = vld [vmem:[%s1871_s8 + $0x20] sm:$0xff]   ;;  %v1475_v12 = vld [vmem:[%s1871_s8 + $0x28] sm:$0xff]   ;;  %s984_s15 = scalar_lea.sflag [#allocation5], %s1865_s7  ;;  %s1567_s18 = scalar_lea.vmem %s1970_s26, 2048 }
  0x74   : > { %v1472_v9 = vld [vmem:[%s1871_s8 + $0x58] sm:$0xff]   ;;  %v1474_v11 = vld [vmem:[%s1871_s8 + $0x60] sm:$0xff]   ;;  %v1476_v13 = vld [vmem:[%s1871_s8 + $0x68] sm:$0xff]   ;;  %p1568_p5 = scmp.ne.s32.totalorder %s1970_s26, %s1567_s18  ;;  %p2045_p10 = scmp.ne.s32.totalorder %s2036_s24, 0 }
  0x75   : > { %1343 = vmatmul.mubr.msk.bf16.vlgmr.msra.gmra.mrb[0].mxu0 %vm439_vm1, %v1467_v4  ;;  %1359 = vmatmul.mubr.msk.bf16.vlgmr.msra.gmra.mrb[0].mxu1 %vm439_vm1, %v1468_v5  ;;  %v1477_v14 = vld [vmem:[%s1871_s8 + $0x30] sm:$0xff]   ;;  %v1479_v16 = vld [vmem:[%s1871_s8 + $0x38] sm:$0xff]   ;;  %v1913_v18 = vld [vmem:[#allocation8] ss:$0 sm:$0xff]  ;;  %s1660_s20 = smov [#allocation9]  }
  0x76   : > { %1346 = vmatprep.mubr.msk.bf16.mxu0 %vm439_vm1, %v1469_v6  ;;  %1362 = vmatprep.mubr.msk.bf16.mxu1 %vm439_vm1, %v1470_v7  ;;  %v1478_v15 = vld [vmem:[%s1871_s8 + $0x70] sm:$0xff]   ;;  %v1480_v17 = vld [vmem:[%s1871_s8 + $0x78] sm:$0xff]   ;;  %p1569_p11 = pnand %p1568_p5, %p2045_p10  ;;  %s1571_s30 = sshll.u32 %s1660_s20, 4  ;;  %s1572_s30 = int_to_ptr.vmem [resolvable:$false] %s1571_s30 }
  0x77   : > { %s1573_s10 = scalar_lea.vmem %s1572_s30, 4096  ;;  %p1574_p0 = scmp.lt.s32.totalorder %s1970_s26, %s1572_s30 }
  0x78   : > { %p1570_p1 = pneg %p1569_p11  ;;  %p1575_p6 = scmp.lt.s32.totalorder %s1573_s10, %s1567_s18 }
  0x7a   : > { %p1576_p2 = por %p1575_p6, %p1574_p0 }
  0x7c   : > { %p1577_p9 = pnand %p1576_p2, %p1570_p1 }
  0x7d   : > { %1347 = vmatmul.mubr.msk.bf16.gmra.mrb[4].mxu0 %vm439_vm1, %v1471_v8  ;;  %1363 = vmatmul.mubr.msk.bf16.gmra.mrb[4].mxu1 %vm439_vm1, %v1472_v9 }
  0x7e   : > { %1350 = vmatprep.mubr.msk.bf16.mxu0 %vm439_vm1, %v1473_v10  ;;  %1366 = vmatprep.mubr.msk.bf16.mxu1 %vm439_vm1, %v1474_v11 }
  0x85   : > { %1351 = vmatmul.mubr.msk.bf16.gmra.mrb[8].mxu0 %vm439_vm1, %v1475_v12  ;;  %1367 = vmatmul.mubr.msk.bf16.gmra.mrb[8].mxu1 %vm439_vm1, %v1476_v13 }
  0x86   : > { %1354 = vmatprep.mubr.msk.bf16.mxu0 %vm439_vm1, %v1477_v14  ;;  %1370 = vmatprep.mubr.msk.bf16.mxu1 %vm439_vm1, %v1478_v15 }
  0x8d   : > { %1355 = vmatmul.mubr.msk.bf16.gmra.mrb[12].mxu0 %vm439_vm1, %v1479_v16  ;;  %1371 = vmatmul.mubr.msk.bf16.gmra.mrb[12].mxu1 %vm439_vm1, %v1480_v17 }
 0x148   : > { %v1344_v19 = vpop.f32.mrb[0].mxu0  ;;  %v1360_v21 = vpop.f32.mrb[0].mxu1 }
 0x149   : > { %v761_v20 = vadd.f32 %v1344_v19, %v1913_v18  ;;  %v526_v22 = vpop.f32.mrb[1].mxu0  ;;  %v777_v23 = vadd.f32 %v1360_v21, %v1913_v18  ;;  %v590_v25 = vpop.f32.mrb[1].mxu1 }
 0x14a   : > { %v759_v24 = vadd.f32 %v1913_v18, %v526_v22  ;;  %v1345_v26 = vpop.f32.mrb[2].mxu0  ;;  %v775_v27 = vadd.f32 %v1913_v18, %v590_v25  ;;  %v1361_v29 = vpop.f32.mrb[2].mxu1 }
 0x14b   : > { %v762_v28 = vadd.f32 %v1345_v26, %v1913_v18  ;;  %v529_v30 = vpop.f32.mrb[3].mxu0  ;;  %v778_v31 = vadd.f32 %v1361_v29, %v1913_v18  ;;  %v593_v33 = vpop.f32.mrb[3].mxu1  ;;  %v793_v34 = vmax.f32 %v761_v20, 0.0  ;;  %v809_v37 = vmax.f32 %v777_v23, 0.0 }
 0x14c   : > { %v760_v32 = vadd.f32 %v1913_v18, %v529_v30  ;;  %v776_v36 = vadd.f32 %v1913_v18, %v593_v33  ;;  %v791_v38 = vmax.f32 %v759_v24, 0.0  ;;  %v807_v41 = vmax.f32 %v775_v27, 0.0 }
 0x14d   : > { %v794_v35 = vmax.f32 %v762_v28, 0.0  ;;  %v810_v39 = vmax.f32 %v778_v31, 0.0 }
 0x14e   : > { %v792_v40 = vmax.f32 %v760_v32, 0.0  ;;  %v808_v43 = vmax.f32 %v776_v36, 0.0 }
 0x14f   : > { %v1236_v42 = vpack.c.bf16 %v794_v35, %v793_v34  ;;  %v1276_v44 = vpack.c.bf16 %v810_v39, %v809_v37 }
 0x150   : > { %v1231_v45 = vpack.c.bf16 %v792_v40, %v791_v38  ;;  %v1348_v46 = vpop.f32.mrb[4].mxu0  ;;  %v1271_v47 = vpack.c.bf16 %v808_v43, %v807_v41  ;;  %v1364_v49 = vpop.f32.mrb[4].mxu1 }
 0x151   : > { %1308 = vst [vmem:[%s1925_s21 + $0x8] sm:$0xff] %v1236_v42   ;;  %v765_v48 = vadd.f32 %v1348_v46, %v1913_v18  ;;  %v542_v50 = vpop.f32.mrb[5].mxu0  ;;  %1316 = vst [vmem:[%s1925_s21 + $0x48] sm:$0xff] %v1276_v44   ;;  %v781_v51 = vadd.f32 %v1364_v49, %v1913_v18  ;;  %v606_v53 = vpop.f32.mrb[5].mxu1 }
 0x152   : > { %1232 = vst [vmem:[%s1925_s21] sm:$0xff] %v1231_v45   ;;  %v763_v52 = vadd.f32 %v1913_v18, %v542_v50  ;;  %v1349_v54 = vpop.f32.mrb[6].mxu0  ;;  %1315 = vst [vmem:[%s1925_s21 + $0x40] sm:$0xff] %v1271_v47   ;;  %v779_v55 = vadd.f32 %v1913_v18, %v606_v53  ;;  %v1365_v57 = vpop.f32.mrb[6].mxu1 }
 0x153   : > { %v766_v56 = vadd.f32 %v1349_v54, %v1913_v18  ;;  %v545_v58 = vpop.f32.mrb[7].mxu0  ;;  %v782_v59 = vadd.f32 %v1365_v57, %v1913_v18  ;;  %v609_v61 = vpop.f32.mrb[7].mxu1  ;;  %v797_v62 = vmax.f32 %v765_v48, 0.0  ;;  %v813_v1 = vmax.f32 %v781_v51, 0.0 }
 0x154   : > { %v764_v60 = vadd.f32 %v1913_v18, %v545_v58  ;;  %v780_v0 = vadd.f32 %v1913_v18, %v609_v61  ;;  %v795_v2 = vmax.f32 %v763_v52, 0.0  ;;  %v811_v5 = vmax.f32 %v779_v55, 0.0 }
 0x155   : > { %v798_v63 = vmax.f32 %v766_v56, 0.0  ;;  %v814_v3 = vmax.f32 %v782_v59, 0.0 }
 0x156   : > { %v796_v4 = vmax.f32 %v764_v60, 0.0  ;;  %v812_v7 = vmax.f32 %v780_v0, 0.0 }
 0x157   : > { %v1246_v6 = vpack.c.bf16 %v798_v63, %v797_v62  ;;  %v1286_v8 = vpack.c.bf16 %v814_v3, %v813_v1 }
 0x158   : > { %v1241_v9 = vpack.c.bf16 %v796_v4, %v795_v2  ;;  %v1352_v10 = vpop.f32.mrb[8].mxu0  ;;  %v1281_v11 = vpack.c.bf16 %v812_v7, %v811_v5  ;;  %v1368_v13 = vpop.f32.mrb[8].mxu1 }
 0x159   : > { %1310 = vst [vmem:[%s1925_s21 + $0x18] sm:$0xff] %v1246_v6   ;;  %v769_v12 = vadd.f32 %v1352_v10, %v1913_v18  ;;  %v558_v14 = vpop.f32.mrb[9].mxu0  ;;  %1318 = vst [vmem:[%s1925_s21 + $0x58] sm:$0xff] %v1286_v8   ;;  %v785_v15 = vadd.f32 %v1368_v13, %v1913_v18  ;;  %v622_v17 = vpop.f32.mrb[9].mxu1 }
 0x15a   : > { %1309 = vst [vmem:[%s1925_s21 + $0x10] sm:$0xff] %v1241_v9   ;;  %v767_v16 = vadd.f32 %v1913_v18, %v558_v14  ;;  %v1353_v19 = vpop.f32.mrb[10].mxu0  ;;  %1317 = vst [vmem:[%s1925_s21 + $0x50] sm:$0xff] %v1281_v11   ;;  %v783_v20 = vadd.f32 %v1913_v18, %v622_v17  ;;  %v1369_v22 = vpop.f32.mrb[10].mxu1 }
 0x15b   : > { %v770_v21 = vadd.f32 %v1353_v19, %v1913_v18  ;;  %v561_v23 = vpop.f32.mrb[11].mxu0  ;;  %v786_v24 = vadd.f32 %v1369_v22, %v1913_v18  ;;  %v625_v26 = vpop.f32.mrb[11].mxu1  ;;  %v801_v27 = vmax.f32 %v769_v12, 0.0  ;;  %v817_v30 = vmax.f32 %v785_v15, 0.0 }
 0x15c   : > { %v768_v25 = vadd.f32 %v1913_v18, %v561_v23  ;;  %v784_v29 = vadd.f32 %v1913_v18, %v625_v26  ;;  %v799_v31 = vmax.f32 %v767_v16, 0.0  ;;  %v815_v34 = vmax.f32 %v783_v20, 0.0 }
 0x15d   : > { %v802_v28 = vmax.f32 %v770_v21, 0.0  ;;  %v818_v32 = vmax.f32 %v786_v24, 0.0 }
 0x15e   : > { %v800_v33 = vmax.f32 %v768_v25, 0.0  ;;  %v816_v36 = vmax.f32 %v784_v29, 0.0 }
 0x15f   : > { %v1256_v35 = vpack.c.bf16 %v802_v28, %v801_v27  ;;  %v1296_v37 = vpack.c.bf16 %v818_v32, %v817_v30 }
 0x160   : > { %v1251_v38 = vpack.c.bf16 %v800_v33, %v799_v31  ;;  %v1356_v39 = vpop.f32.mrb[12].mxu0  ;;  %v1291_v40 = vpack.c.bf16 %v816_v36, %v815_v34  ;;  %v1372_v42 = vpop.f32.mrb[12].mxu1 }
 0x161   : > { %1312 = vst [vmem:[%s1925_s21 + $0x28] sm:$0xff] %v1256_v35   ;;  %v773_v41 = vadd.f32 %v1356_v39, %v1913_v18  ;;  %v574_v43 = vpop.f32.mrb[13].mxu0  ;;  %1320 = vst [vmem:[%s1925_s21 + $0x68] sm:$0xff] %v1296_v37   ;;  %v789_v44 = vadd.f32 %v1372_v42, %v1913_v18  ;;  %v638_v46 = vpop.f32.mrb[13].mxu1 }
 0x162   : > { %1311 = vst [vmem:[%s1925_s21 + $0x20] sm:$0xff] %v1251_v38   ;;  %v771_v45 = vadd.f32 %v1913_v18, %v574_v43  ;;  %v1357_v47 = vpop.f32.mrb[14].mxu0  ;;  %1319 = vst [vmem:[%s1925_s21 + $0x60] sm:$0xff] %v1291_v40   ;;  %v787_v48 = vadd.f32 %v1913_v18, %v638_v46  ;;  %v1373_v50 = vpop.f32.mrb[14].mxu1 }
 0x163   : > { %v774_v49 = vadd.f32 %v1357_v47, %v1913_v18  ;;  %v577_v51 = vpop.f32.mrb[15].mxu0  ;;  %v790_v52 = vadd.f32 %v1373_v50, %v1913_v18  ;;  %v641_v54 = vpop.f32.mrb[15].mxu1  ;;  %v805_v55 = vmax.f32 %v773_v41, 0.0  ;;  %v821_v58 = vmax.f32 %v789_v44, 0.0 }
 0x164   : > { %v772_v53 = vadd.f32 %v1913_v18, %v577_v51  ;;  %v788_v57 = vadd.f32 %v1913_v18, %v641_v54  ;;  %v803_v59 = vmax.f32 %v771_v45, 0.0  ;;  %v819_v62 = vmax.f32 %v787_v48, 0.0 }
 0x165   : > { %v806_v56 = vmax.f32 %v774_v49, 0.0  ;;  %v822_v60 = vmax.f32 %v790_v52, 0.0 }
 0x166   : > { %v804_v61 = vmax.f32 %v772_v53, 0.0  ;;  %v820_v0 = vmax.f32 %v788_v57, 0.0 }
 0x167   : > { %v1266_v63 = vpack.c.bf16 %v806_v56, %v805_v55  ;;  %v1306_v1 = vpack.c.bf16 %v822_v60, %v821_v58 }
 0x168   : > { %v1261_v2 = vpack.c.bf16 %v804_v61, %v803_v59  ;;  %v1301_v18 = vpack.c.bf16 %v820_v0, %v819_v62 }
 0x169   : > { %1314 = vst [vmem:[%s1925_s21 + $0x38] sm:$0xff] %v1266_v63   ;;  %1322 = vst [vmem:[%s1925_s21 + $0x78] sm:$0xff] %v1306_v1  }
 0x16a   : > { %1313 = vst [vmem:[%s1925_s21 + $0x30] sm:$0xff] %v1261_v2   ;;  %1321 = vst [vmem:[%s1925_s21 + $0x70] sm:$0xff] %v1301_v18  }
 0x16b   : > { %1580 = shalt.err (!%p1577_p9)
}
 0x16c   : > { %s1581_s4 = scalar_lea.hbm %s1968_s11, 2048  ;;  %s1585_s6 = scalar_lea.hbm %s2026_s3, 4096 }
 0x16d   : > { %p1582_p8 = scmp.ne.s32.totalorder %s1968_s11, %s1581_s4  ;;  %p1586_p7 = scmp.lt.u32.totalorder %s1968_s11, %s2026_s3 }
 0x16e   : > { %p1587_p12 = scmp.lt.u32.totalorder %s1585_s6, %s1581_s4  ;;  %p1589_p5 = scmp.lt.u32.totalorder %s1581_s4, %s1968_s11 }
 0x16f   : > { %p1583_p13 = pnand %p1582_p8, %p2045_p10 }
 0x170   : > { %p1588_p3 = por %p1587_p12, %p1586_p7 }
 0x171   : > { %p1584_p4 = pneg %p1583_p13 }
 0x172   : > { %p1590_p11 = por %p1589_p5, %p1588_p3 }
 0x174   : > { %p1591_p1 = pnand %p1590_p11, %p1584_p4 }
 0x176   : > { %1594 = shalt.err (!%p1591_p1)
}
 0x177   : > { %s1661_s21 = smov 64   ;;  %s1662_s23 = smov 4  }
 0x178   : > { %1388 = dma.vmem_to_hbm [thread:$0]  (%p2045_p10), %s1970_s26, 2048, %s1968_s11, %s984_s15, %s1661_s21, %s1661_s21, %s1662_s23  }
 0x179 PF: > { %s1013_s29 = sand.u32 1, %s1633_s12   ;;  %p2046_p0 = scmp.ne.s32.totalorder %s2037_s25, 0 }
 0x17a   : > { %p2047_p6 = scmp.ge.s32.totalorder %s1653_s17, 2  ;;  %s1014_s9 = scalar_lea.sflag [#allocation5], %s1013_s29 }
 0x17c   : > { %p1402_p2 = pnand %p2047_p6, %p2046_p0 }
 0x17e   : > { %1628 = dma.done.wait (!%p1402_p2), %s1014_s9, 2048  }
 0x17f   : > { %1630 = vsyncadd (!%p1402_p2), %s1014_s9, 4294965248  ;;  %s20_s17 = sadd.s32 1, %s1653_s17   ;;  %s2048_s12 = smov %s1637_s13 }
 0x180   : > { %p17_p9 = scmp.ge.s32.totalorder %s20_s17, 4   ;;  %s2049_s13 = smov %s1641_s14 }
 0x181   : > { %s2050_s14 = smov %s1832_s28  ;;  %s2051_s15 = smov %s1649_s16 }
 0x182   : > { %s2052_s16 = smov %s2054_s27  ;;  %19 = sbr.rel (!%p17_p9) target bundleno = 7 (0x7), region = 95 }
 0x189   :  { %1019 = vsyncpa [#allocation4], 1 }
 0x18a   :  { %1021 = vsyncpa [#allocation4 + $0x1], 1 }
 0x18b   :  { %1022 = vsyncpa [#allocation7], 1 }
 0x18c   :  { %1023 = vsyncpa [#allocation5], 1 }
 0x18d   :  { %1025 = vsyncpa [#allocation5 + $0x1], 1 }

// kernel: aspp_forward.11
= control target key start
LH: loop header
LB: loop body
LE: loop exit
PB: predicated region body
PF: predicated region fallthrough
CT: control target
= control target key end

     0   :  { %s3148_s0 = inlined_call_operand.hbm [shape: bf16[2,54,52,4], index: 0, kind: input, shape index: {}]   ;;  %s3149_s1 = inlined_call_operand.hbm [shape: bf16[3,3,4,128], index: 1, kind: input, shape index: {}]   ;;  %s3150_s2 = inlined_call_operand.hbm [shape: f32[1,1,128], index: 2, kind: input, shape index: {}]   ;;  %s3151_s3 = inlined_call_operand.hbm [shape: bf16[2,18,16,128], index: 3, kind: output, shape index: {}]  }
   0x1   :  { %3176 = sst [smem:[#allocation27_spill]] %s3148_s0 }
   0x2   :  { %3177 = sst [smem:[#allocation28_spill]] %s3150_s2 }
   0x3   :  { %3178 = sst [smem:[#allocation29_spill]] %s3151_s3 }
   0x4   :  { %8 = vsyncpa [#allocation4], 0 }
   0x5   :  { %10 = vsyncpa [#allocation4 + $0x1], 0 }
   0x6   :  { %11 = vsyncpa [#allocation7], 0 }
   0x7   :  { %13 = vsyncpa [#allocation7 + $0x1], 0 }
   0x8   :  { %14 = vsyncpa [#allocation5], 0 }
   0x9   :  { %16 = vsyncpa [#allocation5 + $0x1], 0  ;;  %s2571_s12 = smov 0   ;;  %s2573_s13 = smov 0  }
   0xa   :  { %s2575_s14 = smov 0   ;;  %s2577_s15 = smov 0  }
   0xb   :  { %s2579_s16 = smov 0   ;;  %s2581_s17 = smov 0  }
   0xc   :  { %s2583_s18 = smov 0   ;;  %s2585_s19 = smov 0  }
   0xd   :  { %s2587_s20 = smov 0   ;;  %s2589_s21 = smov 0  }
   0xe   :  { %s2591_s22 = smov 0   ;;  %s2593_s23 = smov 0  }
   0xf   :  { %s2595_s24 = smov 0   ;;  %s2597_s25 = smov 0  }
  0x10   :  { %s2599_s26 = smov 0   ;;  %s2601_s27 = smov 0  }
  0x11 LB: > { %3179 = sst [smem:[#allocation14_spill]] %s2476_s12  ;;  %s2648_s28 = sadd.s32 4294967295, %s2536_s27   ;;  %s2536_s27 = sphi %s2601_s27, %s22_s27   ;;  %s2532_s26 = sphi %s2599_s26, %s3250_s26   ;;  %s2528_s25 = sphi %s2597_s25, %s3249_s25   ;;  %s2524_s24 = sphi %s2595_s24, %s3248_s24   ;;  %s2520_s23 = sphi %s2593_s23, %s3247_s23   ;;  %s2516_s22 = sphi %s2591_s22, %s3246_s22   ;;  %s2512_s21 = sphi %s2589_s21, %s3245_s21   ;;  %s2508_s20 = sphi %s2587_s20, %s3244_s20   ;;  %s2504_s19 = sphi %s2585_s19, %s3243_s19   ;;  %s2500_s18 = sphi %s2583_s18, %s3242_s18   ;;  %s2496_s17 = sphi %s2581_s17, %s3241_s17   ;;  %s2492_s16 = sphi %s2579_s16, %s3240_s16   ;;  %s2488_s15 = sphi %s2577_s15, %s3239_s15   ;;  %s2484_s14 = sphi %s2575_s14, %s3238_s14   ;;  %s2480_s13 = sphi %s2573_s13, %s3237_s13   ;;  %s2476_s12 = sphi %s2571_s12, %s3231_s12  }
  0x12   : > { %3180 = sst [smem:[#allocation15_spill]] %s2480_s13  ;;  %s1734_s29 = sadd.s32 4294967294, %s2536_s27  }
  0x13   : > { %3181 = sst [smem:[#allocation16_spill]] %s2492_s16  ;;  %p3152_p0 = scmp.eq.s32.totalorder %s2536_s27, 0 }
  0x14   : > { %3182 = sst [smem:[#allocation17_spill]] %s2512_s21  ;;  %p69_p1 = scmp.ne.s32.totalorder %s2504_s19, %s2500_s18 }
  0x15   : > { %3183 = sst [smem:[#allocation18_spill]] %s2516_s22  ;;  %p3156_p2 = scmp.eq.s32.totalorder %s2648_s28, 0 }
  0x16   : > { %3184 = sst [smem:[#allocation19_spill]] %s2520_s23  ;;  %p89_p3 = scmp.ne.s32.totalorder %s2496_s17, %s2492_s16 }
  0x17   : > { %3185 = sst [smem:[#allocation20_spill]] %s2648_s28  ;;  %p95_p4 = scmp.ne.s32.totalorder %s2492_s16, %s2488_s15 }
  0x18   : > { %p2660_p5 = por %p3156_p2, %p69_p1  ;;  %p2667_p6 = por %p89_p3, %p3152_p0 }
  0x19   : > { %p2673_p7 = por %p95_p4, %p3156_p2  ;;  %p141_p8 = scmp.ne.s32.totalorder %s2484_s14, %s2480_s13 }
  0x1a   : > { %s3186_s4 = scalar_select %p2660_p5, 1, 0 }
  0x1b   : > { %s3189_s7 = scalar_select %p2673_p7, 1, 0 }
  0x1c   : > { %3187 = sst [smem:[#allocation21_spill]] %s3186_s4  ;;  %p142_p9 = scmp.eq.s32.totalorder %s2648_s28, 17 }
  0x1d   : > { %3190 = sst [smem:[#allocation22_spill]] %s3189_s7  ;;  %p147_p10 = scmp.ne.s32.totalorder %s2480_s13, %s2476_s12 }
  0x1e   : > { %p148_p11 = scmp.eq.s32.totalorder %s1734_s29, 17  ;;  %p2682_p12 = por %p142_p9, %p141_p8 }
  0x1f   : > { %p1737_p13 = scmp.ge.s32.totalorder %s2536_s27, 1  ;;  %p155_p3 = scmp.lt.s32.totalorder %s2536_s27, 19 }
  0x20   : > { %s3191_s8 = scalar_select %p2682_p12, 1, 0 }
  0x21   : > { %p2687_p1 = por %p148_p11, %p147_p10  ;;  %p2692_p4 = pnand %p1737_p13, %p155_p3 }
  0x22   : > { %3192 = sst [smem:[#allocation23_spill]] %s3191_s8  ;;  %s2538_s11 = smov [#allocation8]  }
  0x23   : > { %s3193_s9 = scalar_select %p2687_p1, 1, 0 }
  0x24   : > { %s3195_s10 = scalar_select %p2692_p4, 1, 0 }
  0x25   : > { %3194 = sst [smem:[#allocation24_spill]] %s3193_s9  ;;  %s168_s15 = sshll.u32 %s2538_s11, 4  ;;  %s169_s15 = int_to_ptr.vmem [resolvable:$true] %s168_s15 }
  0x26   : > { %p2084_p0 = pneg %p2692_p4  ;;  %p3159_p8 = scmp.lt.s32.totalorder %s2536_s27, 18 }
  0x27   : > { %s3198_s2 = sld [smem:[#allocation28_spill]] }
  0x28   : > { %p2701_p9 = pnand %p2084_p0, %p3156_p2  ;;  %p2709_p10 = pnand %p3159_p8, %p2667_p6 }
  0x2a   : > { %s3197_s29 = scalar_select %p2709_p10, 1, 0 }
  0x2b   : > { %p2279_p0 = pneg %p2701_p9 }
  0x2d   : > { %s2277_s11 = scalar_lea.hbm %s3198_s2, 16 }
  0x2e   : > { %p2278_p11 = scmp.ne.s32.totalorder %s3198_s2, %s2277_s11  ;;  %p2284_p2 = scmp.lt.u32.totalorder %s2277_s11, %s3198_s2 }
  0x30   : > { %p2280_p13 = pnand %p2279_p0, %p2278_p11 }
  0x32   : > { %p2281_p3 = pneg %p2280_p13 }
  0x34   : > { %p2286_p6 = pnand %p2284_p2, %p2281_p3 }
  0x36   : > { %2289 = shalt.err (!%p2286_p6)
}
  0x37   : > { %s2290_s8 = scalar_lea.vmem %s169_s15, 16  ;;  %s2297_s30 = scalar_lea.vmem %s169_s15, 32 }
  0x38   : > { %p2291_p8 = scmp.ne.s32.totalorder %s169_s15, %s2290_s8  ;;  %p2298_p7 = scmp.lt.s32.totalorder %s169_s15, %s169_s15 }
  0x39   : > { %p2299_p5 = scmp.lt.s32.totalorder %s2297_s30, %s2290_s8 }
  0x3a   : > { %p2293_p1 = pnand %p2291_p8, %p2279_p0 }
  0x3b   : > { %p2300_p4 = por %p2299_p5, %p2298_p7 }
  0x3c   : > { %p2294_p12 = pneg %p2293_p1 }
  0x3e   : > { %p2301_p10 = pnand %p2300_p4, %p2294_p12 }
  0x40   : > { %2304 = shalt.err (!%p2301_p10)
}
  0x41   : > { %2087 = dma.hbm_to_vmem [thread:$0]  (!%p2701_p9), %s3198_s2, 16, %s169_s15, [#allocation7]  }
  0x42   : > { %s34_s3 = sadd.s32 1, %s2524_s24  ;;  %s37_s8 = sadd.s32 1, %s2528_s25 }
  0x43   : > { %p35_p2 = scmp.ge.s32.totalorder %s34_s3, 3  ;;  %s41_s9 = sadd.s32 1, %s2532_s26 }
  0x44   : > { %s1735_s18 = sshll.u32 %s2524_s24, 1  ;;  %s56_s11 = sadd.s32 1, %s2508_s20 }
  0x45   : > { %s3252_s3 = smov (%p35_p2, %s34_s3), 0  ;;  %s3254_s8 = smov (!%p35_p2, %s37_s8), %s2528_s25 }
  0x46   : > { %3199 = sst [smem:[#allocation25_spill]] %s3252_s3  ;;  %s2738_s6 = sadd.s32 %s2528_s25, %s1735_s18 }
  0x47   : > { %s1736_s15 = sshll.u32 %s3252_s3, 1  ;;  %p39_p5 = scmp.ge.s32.totalorder %s3254_s8, 3 }
  0x48   : > { %s47_s30 = sadd.s32 1, %s2738_s6  ;;  %p63_p7 = scmp.ne.s32.totalorder %s2508_s20, %s2504_s19 }
  0x49   : > { %s79_s12 = ssub.s32 %s2524_s24, %s3252_s3  ;;  %s3256_s8 = smov (%p39_p5, %s3254_s8), 0 }
  0x4a   : > { %s3258_s9 = smov (!%p39_p5, %s41_s9), %s2532_s26  ;;  %s49_s5 = sadd.s32 %s1736_s15, %s3256_s8 }
  0x4b   : > { %p3200_p12 = scmp.eq.s32.totalorder %s2536_s27, 0  ;;  %p43_p4 = scmp.ge.s32.totalorder %s3258_s9, 2 }
  0x4c   : > { %s50_s2 = sadd.s32 1, %s49_s5  ;;  %p80_p8 = scmp.eq.s32.totalorder %s79_s12, 0 }
  0x4d   : > { %p2752_p1 = por %p3200_p12, %p63_p7  ;;  %s52_s3 = ssub.s32 %s47_s30, %s50_s2 }
  0x4e   : > { %s3260_s9 = smov (%p43_p4, %s3258_s9), 0  ;;  %s3203_s23 = sadd.s32 1, %s2496_s17 }
  0x4f   : > { %3202 = sst [smem:[#allocation26_spill]] %s3260_s9  ;;  %s51_s22 = ssub.s32 %s2532_s26, %s3260_s9 }
  0x50   : > { %s2761_s15 = scalar_select %p80_p8, %s2496_s17, %s3203_s23  }
  0x51   : > { %s127_s21 = ssub.s32 %s2528_s25, %s3256_s8  ;;  %s53_s13 = sor.u32 %s52_s3, %s51_s22 }
  0x52   : > { %s128_s7 = sor.u32 %s127_s21, %s51_s22  ;;  %p54_p9 = scmp.eq.s32.totalorder %s53_s13, 0 }
  0x53   : > { %p129_p10 = scmp.eq.s32.totalorder %s128_s7, 0  ;;  %s179_s16 = sand.u32 1, %s2508_s20  }
  0x54   : > { %s1637_s28 = smul.u32 42, %s2738_s6  ;;  %s3204_s2 = sadd.s32 1, %s2484_s14 }
  0x55   : > { %s2770_s5 = scalar_select %p54_p9, %s2508_s20, %s56_s11  }
  0x56   : > { %s2775_s30 = scalar_select %p129_p10, %s2484_s14, %s3204_s2  }
  0x57   : > { %s2067_s12 = smul.u32 168, %s179_s16  ;;  %p3205_p11 = scmp.lt.s32.totalorder %s2536_s27, 18 }
  0x58   : > { %s1638_s4 = smul.u32 378, %s2532_s26  ;;  %s3207_s0 = sld [smem:[#allocation27_spill]] }
  0x59   : > { %p2782_p0 = pnand %p3205_p11, %p2752_p1  ;;  %s183_s13 = scalar_lea.vmem [#allocation3], %s2067_s12 }
  0x5a   : > { %s1639_s21 = sadd.s32 %s1638_s4, %s1637_s28  ;;  %s196_s22 = sshll.u32 %s183_s13, 4  ;;  %s2786_s22 = int_to_ptr.vmem [resolvable:$true] %s196_s22 }
  0x5b   : > { %s1741_s7 = sshll.u32 %s1639_s21, 6  ;;  %s2793_s18 = scalar_lea.sflag [#allocation4], %s179_s16 }
  0x5c   : > { %p2307_p3 = pneg %p2782_p0 }
  0x5e   : > { %s1641_s6 = scalar_lea.hbm %s3207_s0, %s1741_s7  ;;  %s2310_s12 = scalar_lea.hbm %s3207_s0, 48384 }
  0x5f   : > { %s2791_s2 = scalar_lea.hbm %s1641_s6, 2688  ;;  %s2335_s9 = scalar_lea.hbm %s1641_s6, 5376 }
  0x60   : > { %p2306_p13 = scmp.ne.s32.totalorder %s2791_s2, %s2335_s9  ;;  %p2311_p5 = scmp.lt.u32.totalorder %s2791_s2, %s3207_s0 }
  0x61   : > { %p2312_p7 = scmp.lt.u32.totalorder %s2310_s12, %s2335_s9  ;;  %p2314_p1 = scmp.lt.u32.totalorder %s2335_s9, %s2791_s2 }
  0x62   : > { %p2308_p6 = pnand %p2307_p3, %p2306_p13 }
  0x63   : > { %p2313_p12 = por %p2312_p7, %p2311_p5 }
  0x64   : > { %p2309_p2 = pneg %p2308_p6 }
  0x65   : > { %p2315_p4 = por %p2314_p1, %p2313_p12 }
  0x67   : > { %p2316_p8 = pnand %p2315_p4, %p2309_p2 }
  0x69   : > { %2319 = shalt.err (!%p2316_p8)
}
  0x6a   : > { %s2320_s16 = scalar_lea.vmem %s2786_s22, 2688  ;;  %s2539_s7 = smov [#allocation3]  }
  0x6b   : > { %p2321_p9 = scmp.ne.s32.totalorder %s2786_s22, %s2320_s16  ;;  %s2325_s3 = sshll.u32 %s2539_s7, 4  ;;  %s2326_s3 = int_to_ptr.vmem [resolvable:$false] %s2325_s3 }
  0x6c   : > { %s2327_s11 = scalar_lea.vmem %s2326_s3, 5376  ;;  %p2328_p13 = scmp.lt.s32.totalorder %s2786_s22, %s2326_s3 }
  0x6d   : > { %p2323_p10 = pnand %p2321_p9, %p2307_p3  ;;  %p2329_p6 = scmp.lt.s32.totalorder %s2327_s11, %s2320_s16 }
  0x6f   : > { %p2324_p11 = pneg %p2323_p10  ;;  %p2330_p5 = por %p2329_p6, %p2328_p13 }
  0x71   : > { %p2331_p7 = pnand %p2330_p5, %p2324_p11 }
  0x73   : > { %2334 = shalt.err (!%p2331_p7)
}
  0x74   : > { %s2540_s9 = smov 64   ;;  %s2541_s6 = smov 4  }
  0x75   : > { %2091 = dma.hbm_to_vmem [thread:$0]  (!%p2782_p0), %s2791_s2, 2688, %s2786_s22, %s2793_s18, %s2540_s9, %s2540_s9, %s2541_s6  }
  0x76   : > { %s206_s28 = sand.u32 1, %s2536_s27   ;;  %s208_s4 = sand.u32 1, %s2496_s17  }
  0x77   : > { %s2068_s12 = smul.u32 6, %s208_s4  ;;  %s2830_s0 = scalar_lea.sflag [#allocation7], %s206_s28 }
  0x78   : > { %s2069_s21 = smul.u32 96, %s2524_s24  ;;  %p3208_p3 = scmp.ne.s32.totalorder %s3197_s29, 0 }
  0x79   : > { %s210_s3 = scalar_lea.vmem [#allocation6], %s2068_s12  ;;  %s2341_s18 = scalar_lea.hbm %s3149_s1, 288 }
  0x7a   : > { %s2826_s7 = scalar_lea.hbm %s3149_s1, %s2069_s21  ;;  %s217_s11 = sshll.u32 %s210_s3, 4  ;;  %s2828_s11 = int_to_ptr.vmem [resolvable:$true] %s217_s11 }
  0x7b   : > { %s2336_s23 = scalar_lea.hbm %s2826_s7, 96  ;;  %p2338_p2 = pneg %p3208_p3 }
  0x7c   : > { %p2337_p0 = scmp.ne.s32.totalorder %s2826_s7, %s2336_s23  ;;  %p2342_p4 = scmp.lt.u32.totalorder %s2826_s7, %s3149_s1 }
  0x7d   : > { %p2343_p8 = scmp.lt.u32.totalorder %s2341_s18, %s2336_s23  ;;  %p2345_p10 = scmp.lt.u32.totalorder %s2336_s23, %s2826_s7 }
  0x7e   : > { %p2339_p12 = pnand %p2338_p2, %p2337_p0 }
  0x7f   : > { %p2344_p9 = por %p2343_p8, %p2342_p4 }
  0x80   : > { %p2340_p1 = pneg %p2339_p12 }
  0x81   : > { %p2346_p11 = por %p2345_p10, %p2344_p9 }
  0x83   : > { %p2347_p13 = pnand %p2346_p11, %p2340_p1 }
  0x85   : > { %2350 = shalt.err (!%p2347_p13)
}
  0x86   : > { %s2351_s28 = scalar_lea.vmem %s2828_s11, 96  ;;  %s2542_s4 = smov [#allocation6]  }
  0x87   : > { %p2352_p6 = scmp.ne.s32.totalorder %s2828_s11, %s2351_s28  ;;  %s2356_s12 = sshll.u32 %s2542_s4, 4  ;;  %s2357_s12 = int_to_ptr.vmem [resolvable:$false] %s2356_s12 }
  0x88   : > { %s2358_s21 = scalar_lea.vmem %s2357_s12, 192  ;;  %p2359_p0 = scmp.lt.s32.totalorder %s2828_s11, %s2357_s12 }
  0x89   : > { %p2354_p5 = pnand %p2352_p6, %p2338_p2  ;;  %p2360_p12 = scmp.lt.s32.totalorder %s2358_s21, %s2351_s28 }
  0x8b   : > { %p2355_p7 = pneg %p2354_p5  ;;  %p2361_p4 = por %p2360_p12, %p2359_p0 }
  0x8d   : > { %p2362_p8 = pnand %p2361_p4, %p2355_p7 }
  0x8f   : > { %2365 = shalt.err (!%p2362_p8)
}
  0x90   : > { %s2543_s13 = smov 32   ;;  %s2544_s16 = smov 2  }
  0x91   : > { %2094 = dma.hbm_to_vmem [thread:$0]  (!%p3208_p3), %s2826_s7, 96, %s2828_s11, %s2830_s0, %s2543_s13, %s2543_s13, %s2544_s16  }
  0x92   : > { %p3209_p2 = scmp.ne.s32.totalorder %s3195_s10, 0 }
  0x93   : > { %s3210_s3 = sld [smem:[#allocation21_spill]] (!%p3209_p2)  ;;  %s231_s23 = sand.u32 (!%p3209_p2), 1, %s2504_s19  }
  0x94   : > { %229 = sbr.rel (%p3209_p2) target bundleno = 519 (0x207), region = 32  ;;  %s232_s2 = scalar_lea.sflag (!%p3209_p2), [#allocation4], %s231_s23 }
  0x95   : > { %s2070_s22 = smul.u32 (!%p3209_p2), 168, %s231_s23 }
  0x97   : > { %s2861_s18 = scalar_lea.vmem (!%p3209_p2), [#allocation3], %s2070_s22 }
  0x99   : > { %p3211_p1 = scmp.ne.s32.totalorder (!%p3209_p2), %s3210_s3, 0 }
  0x9b   : > { %2459 = dma.done.wait (%p3211_p1), %s232_s2, 2688  }
  0x9c   : > { %2461 = vsyncadd (%p3211_p1), %s232_s2, 4294964608  ;;  %s3212_s9 = sld [smem:[#allocation20_spill]]  ;;  %s3213_s6 = sld [smem:[#allocation16_spill]] }
  0x9d   : > { %s3214_s28 = sld [smem:[#allocation22_spill]] }
  0xa2   : > { %s240_s29 = sand.u32 1, %s3212_s9   ;;  %s242_s0 = sand.u32 1, %s3213_s6  }
  0xa3   : > { %s2071_s7 = smul.u32 6, %s242_s0  ;;  %s241_s10 = scalar_lea.sflag [#allocation7], %s240_s29 }
  0xa4   : > { %p3215_p3 = scmp.ne.s32.totalorder %s3214_s28, 0 }
  0xa5   : > { %s2869_s11 = scalar_lea.vmem [#allocation6], %s2071_s7 }
  0xa6   : > { %2463 = dma.done.wait (%p3215_p3), %s241_s10, 96  }
  0xa7   : > { %2465 = vsyncadd (%p3215_p3), %s241_s10, 4294967200  ;;  %p3216_p9 = scmp.eq.s32.totalorder %s3212_s9, 0 }
  0xa9   : > { %2467 = dma.done.wait (%p3216_p9), [#allocation7], 16   ;;  %p3217_p10 = pmov %p3216_p9 }
  0xaa   : > { %s3218_s4 = sld [smem:[#allocation15_spill]]  ;;  %s3219_s16 = sld [smem:[#allocation17_spill]] }
  0xab   : > { %2469 = vsyncadd (%p3217_p10), [#allocation7], 4294967280 }
  0xb0   : > { %s273_s12 = sand.u32 1, %s3218_s4   ;;  %p1745_p11 = scmp.ne.s32.totalorder %s3219_s16, 0 }
  0xb1   : > { %s2072_s21 = smul.u32 48, %s273_s12  ;;  %v2545_v0 = vmov (!%p1745_p11), 0.0  }
  0xb2   : > { %285 = sbr.rel (%p1745_p11) target bundleno = 185 (0xb9), region = 48  ;;  %286 = vst [vmem:[#allocation2] sm:$0xff] (!%p1745_p11), %v2545_v0  ;;  %287 = vst [vmem:[#allocation2 + $0x8] sm:$0xff] (!%p1745_p11), %v2545_v0 }
  0xb3   : > { %s2882_s13 = scalar_lea.vmem [#allocation9], %s2072_s21  ;;  %288 = vst [vmem:[#allocation2 + $0x10] sm:$0xff] (!%p1745_p11), %v2545_v0  ;;  %289 = vst [vmem:[#allocation2 + $0x18] sm:$0xff] (!%p1745_p11), %v2545_v0 }
  0xb4   : > { %290 = vst [vmem:[#allocation2 + $0x20] sm:$0xff] (!%p1745_p11), %v2545_v0  ;;  %291 = vst [vmem:[#allocation2 + $0x28] sm:$0xff] (!%p1745_p11), %v2545_v0 }
  0xb5   : > { %292 = vst [vmem:[#allocation2 + $0x30] sm:$0xff] (!%p1745_p11), %v2545_v0  ;;  %293 = vst [vmem:[#allocation2 + $0x38] sm:$0xff] (!%p1745_p11), %v2545_v0 }
  0xb6   : > { %294 = vst [vmem:[#allocation2 + $0x40] sm:$0xff] (!%p1745_p11), %v2545_v0  ;;  %295 = vst [vmem:[#allocation2 + $0x48] sm:$0xff] (!%p1745_p11), %v2545_v0 }
  0xb7   : > { %296 = vst [vmem:[#allocation2 + $0x50] sm:$0xff] (!%p1745_p11), %v2545_v0  ;;  %297 = vst [vmem:[#allocation2 + $0x58] sm:$0xff] (!%p1745_p11), %v2545_v0 }
  0xb9 PF: > { %v1746_v1 = vld [vmem:[%s2869_s11 + $0x2] sm:$0x3]  ;;  %vm323_vm0 = vcmask 1041408   ;;  %v298_v2 = vld [vmem:[%s2869_s11] sm:$0x3]  ;;  %v2546_v3 = vmov 0.0  }
  0xba   : > { %1959 = vmatprep.subr.bf16.mxu0 %v2546_v3  ;;  %v325_v4 = vsel %vm323_vm0, %v1746_v1, 0  ;;  %1965 = vmatprep.subr.bf16.mxu1 %v2546_v3  ;;  %v384_v5 = vsel %vm323_vm0, %v298_v2, 0  ;;  %vm315_vm1 = vcmask 1046528   ;;  %v2241_v6 = vld [vmem:[%s2861_s18 + $0x8] sm:$0xfe]   ;;  %vm2547_vm2 = vmmov 0  }
  0xbb   : > { %1960 = vmatpush3.bf16.msra.mxu0 %v325_v4  ;;  %1966 = vmatpush3.bf16.msra.mxu1 %v384_v5  ;;  %v2242_v7 = vld [vmem:[%s2861_s18 + $0x10] ss:$0 sps:$4 sm:$0x11]   ;;  %vm319_vm3 = vcmask 31744   ;;  %v316_v8 = vrot.slane %v2241_v6, 1  ;;  %vm376_vm4 = vcmask 1044480  }
  0xbc   : > { %1961 = vmatprep.mubr.msk.bf16.mxu0 %vm2547_vm2, %v2546_v3  ;;  %1967 = vmatprep.mubr.msk.bf16.mxu1 %vm2547_vm2, %v2546_v3  ;;  %v317_v9 = vrot.slane %v2242_v7, 1  ;;  %v2243_v10 = vld [vmem:[%s2861_s18] sm:$0xf8]   ;;  %v2244_v11 = vld [vmem:[%s2861_s18 + $0x8] ss:$0 sps:$4 sm:$0x77]  }
  0xbd   : > { %1971 = vmatprep.subr.bf16.mxu0 %v2546_v3  ;;  %1977 = vmatprep.subr.bf16.mxu1 %v2546_v3  ;;  %v1753_v12 = vld [vmem:[%s2869_s11 + $0x4] sm:$0x3]  ;;  %v1760_v13 = vld [vmem:[%s2869_s11 + $0x2] sm:$0x3]  ;;  %v377_v15 = vrot.slane %v2243_v10, 3  ;;  %v378_v16 = vrot.slane %v2244_v11, 3 }
  0xbe   : > { %v318_v14 = vsel %vm315_vm1, %v316_v8, %v317_v9  ;;  %v447_v17 = vsel %vm323_vm0, %v1753_v12, 0  ;;  %v522_v18 = vsel %vm323_vm0, %v1760_v13, 0  ;;  %v2245_v19 = vld [vmem:[%s2861_s18 + $0xc] sm:$0xf8]   ;;  %v2247_v24 = vld [vmem:[%s2861_s18 + $0x24] sm:$0xfe]  }
  0xbf   : > { %1962 = vmatmul.mubr.msk.bf16.vlgmr.msra.gmra.mrb[0].mxu0 %vm319_vm3, %v318_v14  ;;  %v379_v20 = vsel %vm376_vm4, %v377_v15, %v378_v16  ;;  %v2246_v21 = vld [vmem:[%s2861_s18 + $0x14] ss:$0 sps:$4 sm:$0x77]   ;;  %v440_v22 = vrot.slane %v2245_v19, 3  ;;  %v498_v26 = vld [vmem:[%s2869_s11] sm:$0x3] }
  0xc0   : > { %1972 = vmatpush3.bf16.msra.mxu0 %v447_v17  ;;  %1973 = vmatprep.mubr.msk.bf16.mxu0 %vm2547_vm2, %v2546_v3  ;;  %v441_v23 = vrot.slane %v2246_v21, 3  ;;  %v2248_v25 = vld [vmem:[%s2861_s18 + $0x2c] ss:$0 sps:$4 sm:$0x11]   ;;  %v515_v28 = vrot.slane %v2247_v24, 1  ;;  %v580_v31 = vsel %vm323_vm0, %v498_v26, 0 }
  0xc1   : > { %1968 = vmatmul.mubr.msk.bf16.vlgmr.msra.gmra.mrb[0].mxu1 %vm319_vm3, %v379_v20  ;;  %1983 = vmatprep.subr.bf16.mxu0 %v2546_v3  ;;  %v516_v29 = vrot.slane %v2248_v25, 1  ;;  %v1770_v30 = vld [vmem:[%s2869_s11 + $0x4] sm:$0x3]  ;;  %v2249_v32 = vld [vmem:[%s2861_s18 + $0x1c] sm:$0xf8]   ;;  %s3220_s3 = sld [smem:[#allocation17_spill]] }
  0xc2   : > { %1978 = vmatpush3.bf16.msra.mxu1 %v522_v18  ;;  %1979 = vmatprep.mubr.msk.bf16.mxu1 %vm2547_vm2, %v2546_v3  ;;  %v442_v27 = vsel %vm376_vm4, %v440_v22, %v441_v23  ;;  %v2250_v34 = vld [vmem:[%s2861_s18 + $0x24] ss:$0 sps:$4 sm:$0x77]   ;;  %v642_v35 = vsel %vm323_vm0, %v1770_v30, 0  ;;  %v573_v36 = vrot.slane %v2249_v32, 3 }
  0xc3   : > { %1989 = vmatprep.subr.bf16.mxu1 %v2546_v3  ;;  %v517_v33 = vsel %vm315_vm1, %v515_v28, %v516_v29  ;;  %v574_v37 = vrot.slane %v2250_v34, 3  ;;  %v2251_v38 = vld [vmem:[%s2861_s18 + $0x28] sm:$0xf8]   ;;  %v2252_v39 = vld [vmem:[%s2861_s18 + $0x30] ss:$0 sps:$4 sm:$0x77]  }
  0xc4   : > { %v635_v40 = vrot.slane %v2251_v38, 3  ;;  %v636_v41 = vrot.slane %v2252_v39, 3  ;;  %v1780_v42 = vld [vmem:[%s2869_s11 + $0x2] sm:$0x3]  ;;  %v694_v43 = vld [vmem:[%s2869_s11] sm:$0x3] }
  0xc5   : > { %v2253_v44 = vld [vmem:[%s2861_s18 + $0x40] sm:$0xfe]   ;;  %v575_v45 = vsel %vm376_vm4, %v573_v36, %v574_v37  ;;  %v2254_v46 = vld [vmem:[%s2861_s18 + $0x48] ss:$0 sps:$4 sm:$0x11]   ;;  %v718_v47 = vsel %vm323_vm0, %v1780_v42, 0 }
  0xc6   : > { %v637_v48 = vsel %vm376_vm4, %v635_v40, %v636_v41  ;;  %v2255_v49 = vld [vmem:[%s2861_s18 + $0x38] sm:$0xf8]   ;;  %v2256_v50 = vld [vmem:[%s2861_s18 + $0x40] ss:$0 sps:$4 sm:$0x77]   ;;  %v776_v51 = vsel %vm323_vm0, %v694_v43, 0 }
  0xc7   : > { %1974 = vmatmul.mubr.msk.bf16.vlgmr.msra.gmra.mrb[4].mxu0 %vm319_vm3, %v442_v27  ;;  %v711_v52 = vrot.slane %v2253_v44, 1  ;;  %v712_v53 = vrot.slane %v2254_v46, 1  ;;  %v769_v54 = vrot.slane %v2255_v49, 3  ;;  %v770_v55 = vrot.slane %v2256_v50, 3  ;;  %v1790_v56 = vld [vmem:[%s2869_s11 + $0x4] sm:$0x3] }
  0xc8   : > { %1984 = vmatpush3.bf16.msra.mxu0 %v580_v31  ;;  %1985 = vmatprep.mubr.msk.bf16.mxu0 %vm2547_vm2, %v2546_v3  ;;  %v1800_v57 = vld [vmem:[%s2869_s11 + $0x2] sm:$0x3]  ;;  %v2257_v59 = vld [vmem:[%s2861_s18 + $0x44] sm:$0xf8]   ;;  %v838_v61 = vsel %vm323_vm0, %v1790_v56, 0  ;;  %p1857_p13 = scmp.ne.s32.totalorder %s3220_s3, 2 }
  0xc9   : > { %1980 = vmatmul.mubr.msk.bf16.vlgmr.msra.gmra.mrb[4].mxu1 %vm319_vm3, %v517_v33  ;;  %1995 = vmatprep.subr.bf16.mxu0 %v2546_v3  ;;  %v713_v58 = vsel %vm315_vm1, %v711_v52, %v712_v53  ;;  %v2258_v60 = vld [vmem:[%s2861_s18 + $0x4c] ss:$0 sps:$4 sm:$0x77]   ;;  %v2259_v62 = vld [vmem:[%s2861_s18 + $0x5c] sm:$0xfe]   ;;  %v771_v63 = vsel %vm376_vm4, %v769_v54, %v770_v55  ;;  %v914_v1 = vsel %vm323_vm0, %v1800_v57, 0 }
  0xca   : > { %1990 = vmatpush3.bf16.msra.mxu1 %v642_v35  ;;  %1991 = vmatprep.mubr.msk.bf16.mxu1 %vm2547_vm2, %v2546_v3  ;;  %v2260_v0 = vld [vmem:[%s2861_s18 + $0x64] ss:$0 sps:$4 sm:$0x11]   ;;  %v831_v2 = vrot.slane %v2257_v59, 3  ;;  %v832_v4 = vrot.slane %v2258_v60, 3  ;;  %v907_v5 = vrot.slane %v2259_v62, 1 }
  0xcb   : > { %2001 = vmatprep.subr.bf16.mxu1 %v2546_v3  ;;  %v908_v6 = vrot.slane %v2260_v0, 1  ;;  %v890_v7 = vld [vmem:[%s2869_s11] sm:$0x3]  ;;  %v1810_v8 = vld [vmem:[%s2869_s11 + $0x4] sm:$0x3] }
  0xcc   : > { %v2261_v9 = vld [vmem:[%s2861_s18 + $0x54] sm:$0xf8]   ;;  %v833_v10 = vsel %vm376_vm4, %v831_v2, %v832_v4  ;;  %v2262_v11 = vld [vmem:[%s2861_s18 + $0x5c] ss:$0 sps:$4 sm:$0x77]   ;;  %v972_v12 = vsel %vm323_vm0, %v890_v7, 0 }
  0xcd   : > { %v2263_v13 = vld [vmem:[%s2861_s18 + $0x60] sm:$0xf8]   ;;  %v909_v14 = vsel %vm315_vm1, %v907_v5, %v908_v6  ;;  %v2264_v15 = vld [vmem:[%s2861_s18 + $0x68] ss:$0 sps:$4 sm:$0x77]   ;;  %v1034_v16 = vsel %vm323_vm0, %v1810_v8, 0 }
  0xce   : > { %v965_v17 = vrot.slane %v2261_v9, 3  ;;  %v966_v18 = vrot.slane %v2262_v11, 3  ;;  %v1027_v19 = vrot.slane %v2263_v13, 3  ;;  %v1028_v20 = vrot.slane %v2264_v15, 3  ;;  %v1820_v21 = vld [vmem:[%s2869_s11 + $0x2] sm:$0x3] }
  0xcf   : > { %1986 = vmatmul.mubr.msk.bf16.vlgmr.msra.gmra.mrb[8].mxu0 %vm319_vm3, %v575_v45  ;;  %v1086_v22 = vld [vmem:[%s2869_s11] sm:$0x3]  ;;  %v2265_v23 = vld [vmem:[%s2861_s18 + $0x78] sm:$0xfe]   ;;  %v1110_v26 = vsel %vm323_vm0, %v1820_v21, 0 }
  0xd0   : > { %1996 = vmatpush3.bf16.msra.mxu0 %v718_v47  ;;  %1997 = vmatprep.mubr.msk.bf16.mxu0 %vm2547_vm2, %v2546_v3  ;;  %v967_v24 = vsel %vm376_vm4, %v965_v17, %v966_v18  ;;  %v2266_v25 = vld [vmem:[%s2861_s18 + $0x80] ss:$0 sps:$4 sm:$0x11]   ;;  %v1029_v27 = vsel %vm376_vm4, %v1027_v19, %v1028_v20  ;;  %v2267_v28 = vld [vmem:[%s2861_s18 + $0x70] sm:$0xf8]   ;;  %v1168_v30 = vsel %vm323_vm0, %v1086_v22, 0 }
  0xd1   : > { %1992 = vmatmul.mubr.msk.bf16.vlgmr.msra.gmra.mrb[8].mxu1 %vm319_vm3, %v637_v48  ;;  %2007 = vmatprep.subr.bf16.mxu0 %v2546_v3  ;;  %v2268_v29 = vld [vmem:[%s2861_s18 + $0x78] ss:$0 sps:$4 sm:$0x77]   ;;  %v1103_v31 = vrot.slane %v2265_v23, 1  ;;  %v1104_v32 = vrot.slane %v2266_v25, 1  ;;  %v1161_v33 = vrot.slane %v2267_v28, 3 }
  0xd2   : > { %2002 = vmatpush3.bf16.msra.mxu1 %v776_v51  ;;  %2003 = vmatprep.mubr.msk.bf16.mxu1 %vm2547_vm2, %v2546_v3  ;;  %v1162_v34 = vrot.slane %v2268_v29, 3  ;;  %v1830_v35 = vld [vmem:[%s2869_s11 + $0x4] sm:$0x3]  ;;  %v1840_v36 = vld [vmem:[%s2869_s11 + $0x2] sm:$0x3]  ;;  %v493_v17 = vld [vmem:[#allocation2 + $0x8] sm:$0xff] }
  0xd3   : > { %2013 = vmatprep.subr.bf16.mxu1 %v2546_v3  ;;  %v1105_v37 = vsel %vm315_vm1, %v1103_v31, %v1104_v32  ;;  %v2269_v38 = vld [vmem:[%s2861_s18 + $0x7c] sm:$0xf8]   ;;  %v2270_v39 = vld [vmem:[%s2861_s18 + $0x84] ss:$0 sps:$4 sm:$0x77]   ;;  %v1230_v40 = vsel %vm323_vm0, %v1830_v35, 0 }
  0xd4   : > { %v1163_v41 = vsel %vm376_vm4, %v1161_v33, %v1162_v34  ;;  %v2271_v42 = vld [vmem:[%s2861_s18 + $0x94] sm:$0xfe]   ;;  %v2272_v43 = vld [vmem:[%s2861_s18 + $0x9c] ss:$0 sps:$4 sm:$0x11]   ;;  %v1306_v44 = vsel %vm323_vm0, %v1840_v36, 0 }
  0xd5   : > { %v1223_v45 = vrot.slane %v2269_v38, 3  ;;  %v1224_v46 = vrot.slane %v2270_v39, 3  ;;  %v1299_v47 = vrot.slane %v2271_v42, 1  ;;  %v1300_v48 = vrot.slane %v2272_v43, 1  ;;  %v1282_v49 = vld [vmem:[%s2869_s11] sm:$0x3] }
  0xd6   : > { %v1850_v50 = vld [vmem:[%s2869_s11 + $0x4] sm:$0x3]  ;;  %v1364_v54 = vsel %vm323_vm0, %v1282_v49, 0  ;;  %v2275_v56 = vld [vmem:[%s2861_s18 + $0x98] sm:$0xf8]  }
  0xd7   : > { %1998 = vmatmul.mubr.msk.bf16.vlgmr.msra.gmra.mrb[12].mxu0 %vm319_vm3, %v713_v58  ;;  %v1225_v51 = vsel %vm376_vm4, %v1223_v45, %v1224_v46  ;;  %v2273_v52 = vld [vmem:[%s2861_s18 + $0x8c] sm:$0xf8]   ;;  %v2274_v53 = vld [vmem:[%s2861_s18 + $0x94] ss:$0 sps:$4 sm:$0x77]   ;;  %v1301_v55 = vsel %vm315_vm1, %v1299_v47, %v1300_v48  ;;  %v1426_v58 = vsel %vm323_vm0, %v1850_v50, 0 }
  0xd8   : > { %2008 = vmatpush3.bf16.msra.mxu0 %v838_v61  ;;  %2009 = vmatprep.mubr.msk.bf16.mxu0 %vm2547_vm2, %v2546_v3  ;;  %v2276_v57 = vld [vmem:[%s2861_s18 + $0xa0] ss:$0 sps:$4 sm:$0x77]   ;;  %v1357_v59 = vrot.slane %v2273_v52, 3  ;;  %v1358_v60 = vrot.slane %v2274_v53, 3  ;;  %v1419_v61 = vrot.slane %v2275_v56, 3 }
  0xd9   : > { %2004 = vmatmul.mubr.msk.bf16.vlgmr.msra.gmra.mrb[12].mxu1 %vm319_vm3, %v771_v63  ;;  %2019 = vmatprep.subr.bf16.mxu0 %v2546_v3  ;;  %v1420_v62 = vrot.slane %v2276_v57, 3  ;;  %v688_v29 = vld [vmem:[#allocation2 + $0x10] sm:$0xff]  ;;  %v689_v36 = vld [vmem:[#allocation2 + $0x18] sm:$0xff]  ;;  %v884_v52 = vld [vmem:[#allocation2 + $0x20] sm:$0xff] }
  0xda   : > { %2014 = vmatpush3.bf16.msra.mxu1 %v914_v1  ;;  %2015 = vmatprep.mubr.msk.bf16.mxu1 %vm2547_vm2, %v2546_v3  ;;  %v1359_v63 = vsel %vm376_vm4, %v1357_v59, %v1358_v60  ;;  %v885_v57 = vld [vmem:[#allocation2 + $0x28] sm:$0xff] }
  0xdb   : > { %2025 = vmatprep.subr.bf16.mxu1 %v2546_v3  ;;  %v1421_v0 = vsel %vm376_vm4, %v1419_v61, %v1420_v62 }
  0xdf   : > { %2010 = vmatmul.mubr.msk.bf16.vlgmr.msra.gmra.mrb[16].mxu0 %vm319_vm3, %v833_v10 }
  0xe0   : > { %2020 = vmatpush3.bf16.msra.mxu0 %v972_v12  ;;  %2021 = vmatprep.mubr.msk.bf16.mxu0 %vm2547_vm2, %v2546_v3  ;;  %v492_v12 = vld [vmem:[#allocation2] sm:$0xff] }
  0xe1   : > { %2016 = vmatmul.mubr.msk.bf16.vlgmr.msra.gmra.mrb[16].mxu1 %vm319_vm3, %v909_v14  ;;  %2031 = vmatprep.subr.bf16.mxu0 %v2546_v3 }
  0xe2   : > { %2026 = vmatpush3.bf16.msra.mxu1 %v1034_v16  ;;  %2027 = vmatprep.mubr.msk.bf16.mxu1 %vm2547_vm2, %v2546_v3 }
  0xe3   : > { %2037 = vmatprep.subr.bf16.mxu1 %v2546_v3 }
  0xe7   : > { %2022 = vmatmul.mubr.msk.bf16.vlgmr.msra.gmra.mrb[20].mxu0 %vm319_vm3, %v967_v24 }
  0xe8   : > { %2032 = vmatpush3.bf16.msra.mxu0 %v1110_v26  ;;  %2033 = vmatprep.mubr.msk.bf16.mxu0 %vm2547_vm2, %v2546_v3 }
  0xe9   : > { %2028 = vmatmul.mubr.msk.bf16.vlgmr.msra.gmra.mrb[20].mxu1 %vm319_vm3, %v1029_v27  ;;  %2043 = vmatprep.subr.bf16.mxu0 %v2546_v3 }
  0xea   : > { %2038 = vmatpush3.bf16.msra.mxu1 %v1168_v30  ;;  %2039 = vmatprep.mubr.msk.bf16.mxu1 %vm2547_vm2, %v2546_v3 }
  0xeb   : > { %2049 = vmatprep.subr.bf16.mxu1 %v2546_v3 }
  0xef   : > { %2034 = vmatmul.mubr.msk.bf16.vlgmr.msra.gmra.mrb[24].mxu0 %vm319_vm3, %v1105_v37 }
  0xf0   : > { %2044 = vmatpush3.bf16.msra.mxu0 %v1230_v40  ;;  %2045 = vmatprep.mubr.msk.bf16.mxu0 %vm2547_vm2, %v2546_v3 }
  0xf1   : > { %2040 = vmatmul.mubr.msk.bf16.vlgmr.msra.gmra.mrb[24].mxu1 %vm319_vm3, %v1163_v41  ;;  %2055 = vmatprep.subr.bf16.mxu0 %v2546_v3 }
  0xf2   : > { %2050 = vmatpush3.bf16.msra.mxu1 %v1306_v44  ;;  %2051 = vmatprep.mubr.msk.bf16.mxu1 %vm2547_vm2, %v2546_v3 }
  0xf3   : > { %2061 = vmatprep.subr.bf16.mxu1 %v2546_v3 }
  0xf7   : > { %2046 = vmatmul.mubr.msk.bf16.vlgmr.msra.gmra.mrb[28].mxu0 %vm319_vm3, %v1225_v51 }
  0xf8   : > { %2056 = vmatpush3.bf16.msra.mxu0 %v1364_v54  ;;  %2057 = vmatprep.mubr.msk.bf16.mxu0 %vm2547_vm2, %v2546_v3 }
  0xf9   : > { %2052 = vmatmul.mubr.msk.bf16.vlgmr.msra.gmra.mrb[28].mxu1 %vm319_vm3, %v1301_v55 }
  0xfa   : > { %2062 = vmatpush3.bf16.msra.mxu1 %v1426_v58  ;;  %2063 = vmatprep.mubr.msk.bf16.mxu1 %vm2547_vm2, %v2546_v3 }
  0xff   : > { %2058 = vmatmul.mubr.msk.bf16.vlgmr.msra.gmra.mrb[32].mxu0 %vm319_vm3, %v1359_v63 }
 0x101   : > { %2064 = vmatmul.mubr.msk.bf16.vlgmr.msra.gmra.mrb[32].mxu1 %vm319_vm3, %v1421_v0 }
 0x192   : > { %v361_v1 = vpop.f32.mrb[0].mxu0 }
 0x193   : > { %v1963_v2 = vpop.f32.mrb[1].mxu0 }
 0x194   : > { %v420_v4 = vpop.f32.mrb[0].mxu1  ;;  %v364_v5 = vpop.f32.mrb[2].mxu0 }
 0x195   : > { %v421_v6 = vadd.f32 %v420_v4, %v361_v1  ;;  %v1969_v7 = vpop.f32.mrb[1].mxu1  ;;  %v1964_v8 = vpop.f32.mrb[3].mxu0 }
 0x196   : > { %v423_v9 = vpop.f32.mrb[2].mxu1 }
 0x197   : > { %v424_v10 = vadd.f32 %v423_v9, %v364_v5  ;;  %v1970_v3 = vpop.f32.mrb[3].mxu1 }
 0x19a   : > { %v483_v11 = vpop.f32.mrb[4].mxu0 }
 0x19b   : > { %v490_v13 = vadd.f32 %v483_v11, %v421_v6  ;;  %v1975_v14 = vpop.f32.mrb[5].mxu0  ;;  %v1080_v6 = vld [vmem:[#allocation2 + $0x30] sm:$0xff] }
 0x19c   : > { %v558_v15 = vpop.f32.mrb[4].mxu1  ;;  %v486_v16 = vpop.f32.mrb[6].mxu0 }
 0x19d   : > { %v494_v18 = vadd.f32 %v492_v12, %v490_v13  ;;  %v1981_v19 = vpop.f32.mrb[5].mxu1  ;;  %v491_v20 = vadd.f32 %v486_v16, %v424_v10  ;;  %v1976_v21 = vpop.f32.mrb[7].mxu0  ;;  %v1081_v12 = vld [vmem:[#allocation2 + $0x38] sm:$0xff] }
 0x19e   : > { %v561_v22 = vpop.f32.mrb[6].mxu1 }
 0x19f   : > { %496 = vst [vmem:[#allocation2] sm:$0xff] %v494_v18  ;;  %v495_v23 = vadd.f32 %v493_v17, %v491_v20  ;;  %v1982_v24 = vpop.f32.mrb[7].mxu1 }
 0x1a1   : > { %497 = vst [vmem:[#allocation2 + $0x8] sm:$0xff] %v495_v23 }
 0x1a2   : > { %v616_v25 = vpop.f32.mrb[8].mxu0 }
 0x1a3   : > { %v617_v26 = vadd.f32 %v616_v25, %v558_v15  ;;  %v1987_v27 = vpop.f32.mrb[9].mxu0 }
 0x1a4   : > { %v678_v28 = vpop.f32.mrb[8].mxu1  ;;  %v619_v30 = vpop.f32.mrb[10].mxu0 }
 0x1a5   : > { %v685_v31 = vadd.f32 %v678_v28, %v617_v26  ;;  %v1993_v32 = vpop.f32.mrb[9].mxu1  ;;  %v620_v33 = vadd.f32 %v619_v30, %v561_v22  ;;  %v1988_v34 = vpop.f32.mrb[11].mxu0  ;;  %v1276_v28 = vld [vmem:[#allocation2 + $0x40] sm:$0xff] }
 0x1a6   : > { %v681_v35 = vpop.f32.mrb[10].mxu1 }
 0x1a7   : > { %v690_v37 = vadd.f32 %v688_v29, %v685_v31  ;;  %v686_v38 = vadd.f32 %v681_v35, %v620_v33  ;;  %v1994_v39 = vpop.f32.mrb[11].mxu1  ;;  %v1277_v33 = vld [vmem:[#allocation2 + $0x48] sm:$0xff] }
 0x1a9   : > { %692 = vst [vmem:[#allocation2 + $0x10] sm:$0xff] %v690_v37  ;;  %v691_v40 = vadd.f32 %v689_v36, %v686_v38 }
 0x1aa   : > { %v754_v41 = vpop.f32.mrb[12].mxu0 }
 0x1ab   : > { %693 = vst [vmem:[#allocation2 + $0x18] sm:$0xff] %v691_v40  ;;  %v1999_v42 = vpop.f32.mrb[13].mxu0 }
 0x1ac   : > { %v812_v43 = vpop.f32.mrb[12].mxu1  ;;  %v757_v44 = vpop.f32.mrb[14].mxu0 }
 0x1ad   : > { %v813_v45 = vadd.f32 %v812_v43, %v754_v41  ;;  %v2005_v46 = vpop.f32.mrb[13].mxu1  ;;  %v2000_v47 = vpop.f32.mrb[15].mxu0 }
 0x1ae   : > { %v815_v48 = vpop.f32.mrb[14].mxu1 }
 0x1af   : > { %v816_v49 = vadd.f32 %v815_v48, %v757_v44  ;;  %v2006_v50 = vpop.f32.mrb[15].mxu1 }
 0x1b2   : > { %v874_v51 = vpop.f32.mrb[16].mxu0 }
 0x1b3   : > { %v881_v53 = vadd.f32 %v874_v51, %v813_v45  ;;  %v2011_v54 = vpop.f32.mrb[17].mxu0  ;;  %v1472_v45 = vld [vmem:[#allocation2 + $0x50] sm:$0xff] }
 0x1b4   : > { %v950_v55 = vpop.f32.mrb[16].mxu1  ;;  %v877_v56 = vpop.f32.mrb[18].mxu0 }
 0x1b5   : > { %v886_v58 = vadd.f32 %v884_v52, %v881_v53  ;;  %v2017_v59 = vpop.f32.mrb[17].mxu1  ;;  %v882_v60 = vadd.f32 %v877_v56, %v816_v49  ;;  %v2012_v61 = vpop.f32.mrb[19].mxu0  ;;  %v1473_v52 = vld [vmem:[#allocation2 + $0x58] sm:$0xff] }
 0x1b6   : > { %v953_v62 = vpop.f32.mrb[18].mxu1  ;;  %v1858_v59 = vld [vmem:[#allocation8] ss:$0 sm:$0xff] (!%p1857_p13) }
 0x1b7   : > { %888 = vst [vmem:[#allocation2 + $0x20] sm:$0xff] %v886_v58  ;;  %v887_v63 = vadd.f32 %v885_v57, %v882_v60  ;;  %v2018_v0 = vpop.f32.mrb[19].mxu1  ;;  %v1482_v57 = vld [vmem:[#allocation2] sm:$0xff] (!%p1857_p13)  ;;  %v1483_v58 = vld [vmem:[#allocation2 + $0x8] sm:$0xff] (!%p1857_p13) }
 0x1b8   : > { %v1501_v60 = vadd.f32 (!%p1857_p13), %v1858_v59, %v1482_v57  ;;  %v1502_v61 = vadd.f32 (!%p1857_p13), %v1858_v59, %v1483_v58 }
 0x1b9   : > { %889 = vst [vmem:[#allocation2 + $0x28] sm:$0xff] %v887_v63  ;;  %v1485_v63 = vld [vmem:[#allocation2 + $0x18] sm:$0xff] (!%p1857_p13) }
 0x1ba   : > { %v1008_v1 = vpop.f32.mrb[20].mxu0 }
 0x1bb   : > { %v1009_v2 = vadd.f32 %v1008_v1, %v950_v55  ;;  %v2023_v4 = vpop.f32.mrb[21].mxu0 }
 0x1bc   : > { %v1070_v5 = vpop.f32.mrb[20].mxu1  ;;  %v1011_v7 = vpop.f32.mrb[22].mxu0 }
 0x1bd   : > { %v1077_v8 = vadd.f32 %v1070_v5, %v1009_v2  ;;  %v2029_v9 = vpop.f32.mrb[21].mxu1  ;;  %v1012_v10 = vadd.f32 %v1011_v7, %v953_v62  ;;  %v2024_v3 = vpop.f32.mrb[23].mxu0  ;;  %v1484_v62 = vld [vmem:[#allocation2 + $0x10] sm:$0xff] (!%p1857_p13)  ;;  %v1504_v2 = vadd.f32 (!%p1857_p13), %v1858_v59, %v1485_v63 }
 0x1be   : > { %v1073_v11 = vpop.f32.mrb[22].mxu1  ;;  %v1486_v0 = vld [vmem:[#allocation2 + $0x20] sm:$0xff] (!%p1857_p13)  ;;  %v1503_v1 = vadd.f32 (!%p1857_p13), %v1858_v59, %v1484_v62  ;;  %v1514_v9 = vmax.f32 (!%p1857_p13), %v1502_v61, 0.0 }
 0x1bf   : > { %v1082_v13 = vadd.f32 %v1080_v6, %v1077_v8  ;;  %v1078_v14 = vadd.f32 %v1073_v11, %v1012_v10  ;;  %v2030_v15 = vpop.f32.mrb[23].mxu1  ;;  %v1505_v5 = vadd.f32 (!%p1857_p13), %v1858_v59, %v1486_v0  ;;  %v1513_v8 = vmax.f32 (!%p1857_p13), %v1501_v60, 0.0 }
 0x1c0   : > { %v1487_v4 = vld [vmem:[#allocation2 + $0x28] sm:$0xff] (!%p1857_p13)  ;;  %v1516_v15 = vmax.f32 (!%p1857_p13), %v1504_v2, 0.0 }
 0x1c1   : > { %1084 = vst [vmem:[#allocation2 + $0x30] sm:$0xff] %v1082_v13  ;;  %v1083_v16 = vadd.f32 %v1081_v12, %v1078_v14  ;;  %v1506_v10 = vadd.f32 (!%p1857_p13), %v1858_v59, %v1487_v4  ;;  %v1515_v14 = vmax.f32 (!%p1857_p13), %v1503_v1, 0.0 }
 0x1c2   : > { %v1146_v17 = vpop.f32.mrb[24].mxu0 }
 0x1c3   : > { %1085 = vst [vmem:[#allocation2 + $0x38] sm:$0xff] %v1083_v16  ;;  %v2035_v18 = vpop.f32.mrb[25].mxu0  ;;  %v1517_v16 = vmax.f32 (!%p1857_p13), %v1505_v5, 0.0 }
 0x1c4   : > { %v1204_v19 = vpop.f32.mrb[24].mxu1  ;;  %v1149_v20 = vpop.f32.mrb[26].mxu0 }
 0x1c5   : > { %v1205_v21 = vadd.f32 %v1204_v19, %v1146_v17  ;;  %v2041_v22 = vpop.f32.mrb[25].mxu1  ;;  %v2036_v23 = vpop.f32.mrb[27].mxu0  ;;  %v1891_v19 = vpack.c.bf16 (!%p1857_p13), %v1514_v9, %v1513_v8 }
 0x1c6   : > { %v1207_v24 = vpop.f32.mrb[26].mxu1  ;;  %v1896_v23 = vpack.c.bf16 (!%p1857_p13), %v1516_v15, %v1515_v14 }
 0x1c7   : > { %v1208_v25 = vadd.f32 %v1207_v24, %v1149_v20  ;;  %v2042_v26 = vpop.f32.mrb[27].mxu1  ;;  %v1518_v20 = vmax.f32 (!%p1857_p13), %v1506_v10, 0.0  ;;  %1892 = vst [vmem:[%s2882_s13] sm:$0xff] (!%p1857_p13), %v1891_v19  }
 0x1c8   : > { %v1488_v6 = vld [vmem:[#allocation2 + $0x30] sm:$0xff] (!%p1857_p13)  ;;  %1918 = vst [vmem:[%s2882_s13 + $0x8] sm:$0xff] (!%p1857_p13), %v1896_v23  }
 0x1c9   : > { %v1507_v3 = vadd.f32 (!%p1857_p13), %v1858_v59, %v1488_v6 }
 0x1ca   : > { %v1266_v27 = vpop.f32.mrb[28].mxu0  ;;  %v1489_v7 = vld [vmem:[#allocation2 + $0x38] sm:$0xff] (!%p1857_p13) }
 0x1cb   : > { %v1273_v29 = vadd.f32 %v1266_v27, %v1205_v21  ;;  %v2047_v30 = vpop.f32.mrb[29].mxu0  ;;  %v1508_v17 = vadd.f32 (!%p1857_p13), %v1858_v59, %v1489_v7  ;;  %v1519_v21 = vmax.f32 (!%p1857_p13), %v1507_v3, 0.0  ;;  %v1901_v27 = vpack.c.bf16 (!%p1857_p13), %v1518_v20, %v1517_v16 }
 0x1cc   : > { %v1342_v31 = vpop.f32.mrb[28].mxu1  ;;  %v1269_v32 = vpop.f32.mrb[30].mxu0 }
 0x1cd   : > { %v1278_v34 = vadd.f32 %v1276_v28, %v1273_v29  ;;  %v2053_v35 = vpop.f32.mrb[29].mxu1  ;;  %v1274_v36 = vadd.f32 %v1269_v32, %v1208_v25  ;;  %v2048_v37 = vpop.f32.mrb[31].mxu0  ;;  %v1520_v24 = vmax.f32 (!%p1857_p13), %v1508_v17, 0.0  ;;  %1919 = vst [vmem:[%s2882_s13 + $0x10] sm:$0xff] (!%p1857_p13), %v1901_v27  }
 0x1ce   : > { %v1345_v38 = vpop.f32.mrb[30].mxu1 }
 0x1cf   : > { %1280 = vst [vmem:[#allocation2 + $0x40] sm:$0xff] %v1278_v34  ;;  %v1279_v39 = vadd.f32 %v1277_v33, %v1274_v36  ;;  %v2054_v40 = vpop.f32.mrb[31].mxu1  ;;  %v1906_v30 = vpack.c.bf16 (!%p1857_p13), %v1520_v24, %v1519_v21 }
 0x1d1   : > { %1281 = vst [vmem:[#allocation2 + $0x48] sm:$0xff] %v1279_v39  ;;  %1920 = vst [vmem:[%s2882_s13 + $0x18] sm:$0xff] (!%p1857_p13), %v1906_v30  }
 0x1d2   : > { %v1400_v41 = vpop.f32.mrb[32].mxu0 }
 0x1d3   : > { %v1401_v42 = vadd.f32 %v1400_v41, %v1342_v31  ;;  %v2059_v43 = vpop.f32.mrb[33].mxu0 }
 0x1d4   : > { %v1462_v44 = vpop.f32.mrb[32].mxu1  ;;  %v1403_v46 = vpop.f32.mrb[34].mxu0 }
 0x1d5   : > { %v1469_v47 = vadd.f32 %v1462_v44, %v1401_v42  ;;  %v2065_v48 = vpop.f32.mrb[33].mxu1  ;;  %v1404_v49 = vadd.f32 %v1403_v46, %v1345_v38  ;;  %v2060_v50 = vpop.f32.mrb[35].mxu0  ;;  %1481 = sbr.rel (%p1857_p13) target bundleno = 490 (0x1ea), region = 52 }
 0x1d6   : > { %v1465_v51 = vpop.f32.mrb[34].mxu1  ;;  %v1490_v11 = vld [vmem:[#allocation2 + $0x40] sm:$0xff] (!%p1857_p13) }
 0x1d7   : > { %v1474_v53 = vadd.f32 %v1472_v45, %v1469_v47  ;;  %v1470_v54 = vadd.f32 %v1465_v51, %v1404_v49  ;;  %v2066_v55 = vpop.f32.mrb[35].mxu1  ;;  %v1509_v22 = vadd.f32 (!%p1857_p13), %v1858_v59, %v1490_v11 }
 0x1d8   : > { %v1491_v12 = vld [vmem:[#allocation2 + $0x48] sm:$0xff] (!%p1857_p13) }
 0x1d9   : > { %1476 = vst [vmem:[#allocation2 + $0x50] sm:$0xff] %v1474_v53  ;;  %v1475_v56 = vadd.f32 %v1473_v52, %v1470_v54  ;;  %v1510_v25 = vadd.f32 (!%p1857_p13), %v1858_v59, %v1491_v12  ;;  %v1521_v28 = vmax.f32 (!%p1857_p13), %v1509_v22, 0.0 }
 0x1db   : > { %1477 = vst [vmem:[#allocation2 + $0x58] sm:$0xff] %v1475_v56  ;;  %v1522_v31 = vmax.f32 (!%p1857_p13), %v1510_v25, 0.0 }
 0x1dd   : > { %v1911_v34 = vpack.c.bf16 %v1522_v31, %v1521_v28 }
 0x1df   : > { %1921 = vst [vmem:[%s2882_s13 + $0x20] sm:$0xff] %v1911_v34  }
 0x1e0   : > { %v1492_v13 = vld [vmem:[#allocation2 + $0x50] sm:$0xff] }
 0x1e1   : > { %v1511_v26 = vadd.f32 %v1858_v59, %v1492_v13 }
 0x1e2   : > { %v1493_v18 = vld [vmem:[#allocation2 + $0x58] sm:$0xff] }
 0x1e3   : > { %v1512_v29 = vadd.f32 %v1858_v59, %v1493_v18  ;;  %v1523_v32 = vmax.f32 %v1511_v26, 0.0 }
 0x1e5   : > { %v1524_v33 = vmax.f32 %v1512_v29, 0.0 }
 0x1e7   : > { %v1916_v35 = vpack.c.bf16 %v1524_v33, %v1523_v32 }
 0x1e9   : > { %1922 = vst [vmem:[%s2882_s13 + $0x28] sm:$0xff] %v1916_v35  }
 0x1ea PF: > { %s3221_s23 = sld [smem:[#allocation18_spill]]  ;;  %s3222_s22 = sld [smem:[#allocation19_spill]] }
 0x1eb   : > { %s3224_s18 = sld [smem:[#allocation23_spill]]  ;;  %s1602_s28 = sshll.u32 %s2882_s13, 4  ;;  %s3057_s28 = int_to_ptr.vmem [resolvable:$true] %s1602_s28 }
 0x1ec   : > { %s3225_s11 = sld [smem:[#allocation29_spill]]  ;;  %s3066_s21 = scalar_lea.sflag [#allocation5], %s273_s12 }
 0x1ed   : > { %s2366_s16 = scalar_lea.vmem %s3057_s28, 768  ;;  %s2548_s13 = smov [#allocation9]  }
 0x1ee   : > { %p2367_p6 = scmp.ne.s32.totalorder %s3057_s28, %s2366_s16  ;;  %s2370_s3 = sshll.u32 %s2548_s13, 4  ;;  %s2371_s3 = int_to_ptr.vmem [resolvable:$false] %s2370_s3 }
 0x1ef   : > { %p2373_p12 = scmp.lt.s32.totalorder %s3057_s28, %s2371_s3 }
 0x1f0   : > { %s1887_s9 = smul.u32 12, %s3221_s23  ;;  %s2372_s23 = scalar_lea.vmem %s2371_s3, 1536 }
 0x1f1   : > { %s2073_s6 = smul.u32 36, %s3222_s22  ;;  %p3226_p5 = scmp.ne.s32.totalorder %s3224_s18, 0 }
 0x1f2   : > { %p2374_p4 = scmp.lt.s32.totalorder %s2372_s23, %s2366_s16 }
 0x1f3   : > { %s1599_s29 = sadd.s32 %s2073_s6, %s1887_s9  ;;  %p2368_p7 = pnand %p2367_p6, %p3226_p5 }
 0x1f4   : > { %s1872_s0 = sshll.u32 %s1599_s29, 6  ;;  %p2375_p8 = por %p2374_p4, %p2373_p12 }
 0x1f5   : > { %s3062_s4 = scalar_lea.hbm %s3225_s11, %s1872_s0  ;;  %p2369_p0 = pneg %p2368_p7 }
 0x1f7   : > { %p2376_p2 = pnand %p2375_p8, %p2369_p0 }
 0x1f9   : > { %2379 = shalt.err (!%p2376_p2)
}
 0x1fa   : > { %s2380_s12 = scalar_lea.hbm %s3062_s4, 768  ;;  %s2384_s9 = scalar_lea.hbm %s3225_s11, 4608 }
 0x1fb   : > { %p2381_p1 = scmp.ne.s32.totalorder %s3062_s4, %s2380_s12  ;;  %p2385_p10 = scmp.lt.u32.totalorder %s3062_s4, %s3225_s11 }
 0x1fc   : > { %p2386_p11 = scmp.lt.u32.totalorder %s2384_s9, %s2380_s12  ;;  %p2388_p6 = scmp.lt.u32.totalorder %s2380_s12, %s3062_s4 }
 0x1fd   : > { %p2382_p3 = pnand %p2381_p1, %p3226_p5 }
 0x1fe   : > { %p2387_p13 = por %p2386_p11, %p2385_p10 }
 0x1ff   : > { %p2383_p9 = pneg %p2382_p3 }
 0x200   : > { %p2389_p7 = por %p2388_p6, %p2387_p13 }
 0x202   : > { %p2390_p0 = pnand %p2389_p7, %p2383_p9 }
 0x204   : > { %2393 = shalt.err (!%p2390_p0)
}
 0x205   : > { %s2549_s0 = smov 64   ;;  %s2550_s7 = smov 4  }
 0x206   : > { %2082 = dma.vmem_to_hbm [thread:$0]  (%p3226_p5), %s3057_s28, 768, %s3062_s4, %s3066_s21, %s2549_s0, %s2549_s0, %s2550_s7  }
 0x207 PF: > { %s3227_s10 = sld [smem:[#allocation14_spill]]  ;;  %p2102_p12 = scmp.ge.s32.totalorder %s2536_s27, 2 }
 0x208   : > { %s3228_s16 = sld [smem:[#allocation24_spill]] }
 0x20d   : > { %s1617_s13 = sand.u32 1, %s3227_s10  }
 0x20e   : > { %p3229_p4 = scmp.ne.s32.totalorder %s3228_s16, 0  ;;  %s1618_s3 = scalar_lea.sflag [#allocation5], %s1617_s13 }
 0x210   : > { %p2096_p8 = pnand %p2102_p12, %p3229_p4 }
 0x212   : > { %2471 = dma.done.wait (!%p2096_p8), %s1618_s3, 768  }
 0x213   : > { %2473 = vsyncadd (!%p2096_p8), %s1618_s3, 4294966528  ;;  %s22_s27 = sadd.s32 1, %s2536_s27   ;;  %s3231_s12 = sld [smem:[#allocation15_spill]] }
 0x214   : > { %p3095_p2 = scmp.ge.s32.totalorder %s22_s27, 20   ;;  %s3232_s18 = sld [smem:[#allocation16_spill]] }
 0x215   : > { %s3233_s28 = smov %s2761_s15  ;;  %s3234_s4 = sld [smem:[#allocation25_spill]] }
 0x216   : > { %s3235_s2 = sld [smem:[#allocation26_spill]]  ;;  %s3237_s13 = smov %s2484_s14 }
 0x217   : > { %s3238_s14 = smov %s2775_s30  ;;  %s3240_s16 = smov %s2496_s17 }
 0x218   : > { %s3241_s17 = smov %s3233_s28  ;;  %s3245_s21 = smov %s2524_s24 }
 0x219   : > { %s3246_s22 = smov %s2528_s25  ;;  %s3247_s23 = smov %s2532_s26 }
 0x21a   : > { %s3239_s15 = smov %s3232_s18  ;;  %s3242_s18 = smov %s2504_s19 }
 0x21b   : > { %s3243_s19 = smov %s2508_s20  ;;  %s3244_s20 = smov %s2770_s5 }
 0x21c   : > { %s3248_s24 = smov %s3234_s4  ;;  %s3249_s25 = smov %s3256_s8 }
 0x21d   : > { %s3250_s26 = smov %s3235_s2  ;;  %21 = sbr.rel (!%p3095_p2) target bundleno = 17 (0x11), region = 114 }
 0x224   :  { %1623 = vsyncpa [#allocation4], 1 }
 0x225   :  { %1625 = vsyncpa [#allocation4 + $0x1], 1 }
 0x226   :  { %1626 = vsyncpa [#allocation7], 1 }
 0x227   :  { %1628 = vsyncpa [#allocation7 + $0x1], 1 }
 0x228   :  { %1629 = vsyncpa [#allocation5], 1 }
 0x229   :  { %1631 = vsyncpa [#allocation5 + $0x1], 1 }

// kernel: aspp_forward.12
= control target key start
LH: loop header
LB: loop body
LE: loop exit
PB: predicated region body
PF: predicated region fallthrough
CT: control target
= control target key end

     0   :  { %s3074_s0 = inlined_call_operand.hbm [shape: bf16[2,54,52,4], index: 0, kind: input, shape index: {}]   ;;  %s3075_s1 = inlined_call_operand.hbm [shape: bf16[3,3,4,128], index: 1, kind: input, shape index: {}]   ;;  %s3076_s2 = inlined_call_operand.hbm [shape: f32[1,1,128], index: 2, kind: input, shape index: {}]   ;;  %s3077_s3 = inlined_call_operand.hbm [shape: bf16[2,18,16,128], index: 3, kind: output, shape index: {}]  }
   0x1   :  { %3099 = sst [smem:[#allocation27_spill]] %s3074_s0 }
   0x2   :  { %3100 = sst [smem:[#allocation28_spill]] %s3076_s2 }
   0x3   :  { %3101 = sst [smem:[#allocation29_spill]] %s3077_s3 }
   0x4   :  { %8 = vsyncpa [#allocation4], 0 }
   0x5   :  { %10 = vsyncpa [#allocation4 + $0x1], 0 }
   0x6   :  { %11 = vsyncpa [#allocation7], 0 }
   0x7   :  { %13 = vsyncpa [#allocation7 + $0x1], 0 }
   0x8   :  { %14 = vsyncpa [#allocation5], 0 }
   0x9   :  { %16 = vsyncpa [#allocation5 + $0x1], 0  ;;  %s2506_s12 = smov 0   ;;  %s2508_s13 = smov 0  }
   0xa   :  { %s2510_s14 = smov 0   ;;  %s2512_s15 = smov 0  }
   0xb   :  { %s2514_s16 = smov 0   ;;  %s2516_s17 = smov 0  }
   0xc   :  { %s2518_s18 = smov 0   ;;  %s2520_s19 = smov 0  }
   0xd   :  { %s2522_s20 = smov 0   ;;  %s2524_s21 = smov 0  }
   0xe   :  { %s2526_s22 = smov 0   ;;  %s2528_s23 = smov 0  }
   0xf   :  { %s2530_s24 = smov 0   ;;  %s2532_s25 = smov 0  }
  0x10   :  { %s2534_s26 = smov 0   ;;  %s2536_s27 = smov 0  }
  0x11 LB: > { %3102 = sst [smem:[#allocation14_spill]] %s2411_s12  ;;  %s2583_s28 = sadd.s32 4294967295, %s2471_s27   ;;  %s2471_s27 = sphi %s2536_s27, %s22_s27   ;;  %s2467_s26 = sphi %s2534_s26, %s3170_s26   ;;  %s2463_s25 = sphi %s2532_s25, %s3169_s25   ;;  %s2459_s24 = sphi %s2530_s24, %s3168_s24   ;;  %s2455_s23 = sphi %s2528_s23, %s3167_s23   ;;  %s2451_s22 = sphi %s2526_s22, %s3154_s22   ;;  %s2447_s21 = sphi %s2524_s21, %s3166_s21   ;;  %s2443_s20 = sphi %s2522_s20, %s3165_s20   ;;  %s2439_s19 = sphi %s2520_s19, %s3164_s19   ;;  %s2435_s18 = sphi %s2518_s18, %s3163_s18   ;;  %s2431_s17 = sphi %s2516_s17, %s3162_s17   ;;  %s2427_s16 = sphi %s2514_s16, %s3161_s16   ;;  %s2423_s15 = sphi %s2512_s15, %s3160_s15   ;;  %s2419_s14 = sphi %s2510_s14, %s3159_s14   ;;  %s2415_s13 = sphi %s2508_s13, %s3158_s13   ;;  %s2411_s12 = sphi %s2506_s12, %s3152_s12  }
  0x12   : > { %3103 = sst [smem:[#allocation15_spill]] %s2415_s13  ;;  %s1687_s29 = sadd.s32 4294967294, %s2471_s27  }
  0x13   : > { %3104 = sst [smem:[#allocation16_spill]] %s2447_s21  ;;  %p3078_p0 = scmp.eq.s32.totalorder %s2471_s27, 0 }
  0x14   : > { %3105 = sst [smem:[#allocation17_spill]] %s2451_s22  ;;  %p67_p1 = scmp.ne.s32.totalorder %s2439_s19, %s2435_s18 }
  0x15   : > { %3106 = sst [smem:[#allocation18_spill]] %s2455_s23  ;;  %p3082_p2 = scmp.eq.s32.totalorder %s2583_s28, 0 }
  0x16   : > { %3107 = sst [smem:[#allocation19_spill]] %s2463_s25  ;;  %p87_p3 = scmp.ne.s32.totalorder %s2431_s17, %s2427_s16 }
  0x17   : > { %p93_p4 = scmp.ne.s32.totalorder %s2427_s16, %s2423_s15  ;;  %p2595_p5 = por %p3082_p2, %p67_p1 }
  0x18   : > { %p2602_p6 = por %p87_p3, %p3078_p0  ;;  %p139_p8 = scmp.ne.s32.totalorder %s2419_s14, %s2415_s13 }
  0x19   : > { %s3108_s4 = scalar_select %p2595_p5, 1, 0 }
  0x1a   : > { %p2608_p7 = por %p93_p4, %p3082_p2  ;;  %p140_p9 = scmp.eq.s32.totalorder %s2583_s28, 17 }
  0x1b   : > { %p145_p10 = scmp.ne.s32.totalorder %s2415_s13, %s2411_s12  ;;  %p146_p11 = scmp.eq.s32.totalorder %s1687_s29, 17 }
  0x1c   : > { %s3110_s7 = scalar_select %p2608_p7, 1, 0 }
  0x1d   : > { %p2617_p12 = por %p140_p9, %p139_p8  ;;  %p1688_p13 = scmp.ge.s32.totalorder %s2471_s27, 1 }
  0x1e   : > { %3111 = sst [smem:[#allocation20_spill]] %s3110_s7  ;;  %p2622_p1 = por %p146_p11, %p145_p10 }
  0x1f   : > { %s3112_s8 = scalar_select %p2617_p12, 1, 0 }
  0x20   : > { %s3114_s9 = scalar_select %p2622_p1, 1, 0 }
  0x21   : > { %3113 = sst [smem:[#allocation21_spill]] %s3112_s8  ;;  %p153_p3 = scmp.lt.s32.totalorder %s2471_s27, 19 }
  0x22   : > { %3115 = sst [smem:[#allocation22_spill]] %s3114_s9  ;;  %s2473_s11 = smov [#allocation8]  }
  0x23   : > { %p2627_p4 = pnand %p1688_p13, %p153_p3  ;;  %s166_s15 = sshll.u32 %s2473_s11, 4  ;;  %s167_s15 = int_to_ptr.vmem [resolvable:$true] %s166_s15 }
  0x24   : > { %p3085_p8 = scmp.lt.s32.totalorder %s2471_s27, 18  ;;  %s3119_s2 = sld [smem:[#allocation28_spill]] }
  0x25   : > { %s3116_s10 = scalar_select %p2627_p4, 1, 0 }
  0x26   : > { %p2025_p0 = pneg %p2627_p4  ;;  %p2644_p10 = pnand %p3085_p8, %p2602_p6 }
  0x28   : > { %p2636_p9 = pnand %p2025_p0, %p3082_p2 }
  0x29   : > { %s3118_s29 = scalar_select %p2644_p10, 1, 0 }
  0x2a   : > { %s2213_s11 = scalar_lea.hbm %s3119_s2, 16  ;;  %p2215_p0 = pneg %p2636_p9 }
  0x2b   : > { %p2214_p11 = scmp.ne.s32.totalorder %s3119_s2, %s2213_s11  ;;  %p2220_p2 = scmp.lt.u32.totalorder %s2213_s11, %s3119_s2 }
  0x2d   : > { %p2216_p13 = pnand %p2215_p0, %p2214_p11 }
  0x2f   : > { %p2217_p3 = pneg %p2216_p13 }
  0x31   : > { %p2222_p6 = pnand %p2220_p2, %p2217_p3 }
  0x33   : > { %2225 = shalt.err (!%p2222_p6)
}
  0x34   : > { %s2226_s8 = scalar_lea.vmem %s167_s15, 16  ;;  %s2233_s30 = scalar_lea.vmem %s167_s15, 32 }
  0x35   : > { %p2227_p8 = scmp.ne.s32.totalorder %s167_s15, %s2226_s8  ;;  %p2234_p7 = scmp.lt.s32.totalorder %s167_s15, %s167_s15 }
  0x36   : > { %p2235_p5 = scmp.lt.s32.totalorder %s2233_s30, %s2226_s8 }
  0x37   : > { %p2229_p1 = pnand %p2227_p8, %p2215_p0 }
  0x38   : > { %p2236_p4 = por %p2235_p5, %p2234_p7 }
  0x39   : > { %p2230_p12 = pneg %p2229_p1 }
  0x3b   : > { %p2237_p10 = pnand %p2236_p4, %p2230_p12 }
  0x3d   : > { %2240 = shalt.err (!%p2237_p10)
}
  0x3e   : > { %2028 = dma.hbm_to_vmem [thread:$0]  (!%p2636_p9), %s3119_s2, 16, %s167_s15, [#allocation7]  }
  0x3f   : > { %s34_s3 = sadd.s32 1, %s2459_s24  ;;  %s37_s8 = sadd.s32 1, %s2463_s25 }
  0x40   : > { %p35_p2 = scmp.ge.s32.totalorder %s34_s3, 3  ;;  %s41_s9 = sadd.s32 1, %s2467_s26 }
  0x41   : > { %s45_s18 = smul.u32 3, %s2459_s24  ;;  %s54_s11 = sadd.s32 1, %s2443_s20 }
  0x42   : > { %s3172_s3 = smov (%p35_p2, %s34_s3), 0  ;;  %s3174_s8 = smov (!%p35_p2, %s37_s8), %s2463_s25 }
  0x43   : > { %3120 = sst [smem:[#allocation23_spill]] %s3172_s3  ;;  %s2673_s6 = sadd.s32 %s2463_s25, %s45_s18 }
  0x44   : > { %s47_s15 = smul.u32 3, %s3172_s3  ;;  %p39_p5 = scmp.ge.s32.totalorder %s3174_s8, 3 }
  0x45   : > { %p61_p7 = scmp.ne.s32.totalorder %s2443_s20, %s2439_s19  ;;  %s77_s30 = ssub.s32 %s2459_s24, %s3172_s3 }
  0x46   : > { %s177_s12 = sand.u32 1, %s2443_s20   ;;  %s3176_s8 = smov (%p39_p5, %s3174_s8), 0 }
  0x47   : > { %3121 = sst [smem:[#allocation24_spill]] %s3176_s8  ;;  %s3178_s9 = smov (!%p39_p5, %s41_s9), %s2467_s26 }
  0x48   : > { %s48_s5 = sadd.s32 %s47_s15, %s3176_s8  ;;  %p3122_p12 = scmp.eq.s32.totalorder %s2471_s27, 0 }
  0x49   : > { %p43_p4 = scmp.ge.s32.totalorder %s3178_s9, 2  ;;  %s50_s2 = ssub.s32 %s2673_s6, %s48_s5 }
  0x4a   : > { %p2687_p1 = por %p3122_p12, %p61_p7  ;;  %p78_p8 = scmp.eq.s32.totalorder %s77_s30, 0 }
  0x4b   : > { %s125_s3 = ssub.s32 %s2463_s25, %s3176_s8  ;;  %s3180_s9 = smov (%p43_p4, %s3178_s9), 0 }
  0x4c   : > { %3124 = sst [smem:[#allocation25_spill]] %s3180_s9  ;;  %s3125_s23 = sadd.s32 1, %s2431_s17 }
  0x4d   : > { %s2699_s22 = scalar_select %p78_p8, %s2431_s17, %s3125_s23  }
  0x4e   : > { %s49_s15 = ssub.s32 %s2467_s26, %s3180_s9  ;;  %s2006_s7 = smul.u32 168, %s177_s12 }
  0x4f   : > { %3126 = sst [smem:[#allocation26_spill]] %s2699_s22  ;;  %s51_s21 = sor.u32 %s50_s2, %s49_s15 }
  0x50   : > { %s126_s13 = sor.u32 %s125_s3, %s49_s15  ;;  %p52_p9 = scmp.eq.s32.totalorder %s51_s21, 0 }
  0x51   : > { %p127_p10 = scmp.eq.s32.totalorder %s126_s13, 0  ;;  %p3127_p11 = scmp.lt.s32.totalorder %s2471_s27, 18 }
  0x52   : > { %s2712_s30 = scalar_select %p52_p9, %s2443_s20, %s54_s11  }
  0x53   : > { %p2707_p0 = pnand %p3127_p11, %p2687_p1  ;;  %s3129_s8 = sadd.s32 1, %s2419_s14 }
  0x54   : > { %s2717_s23 = scalar_select %p127_p10, %s2419_s14, %s3129_s8  }
  0x55   : > { %s2042_s9 = smul.u32 42, %s2673_s6  ;;  %s181_s2 = scalar_lea.vmem [#allocation3], %s2006_s7 }
  0x56   : > { %s193_s25 = sshll.u32 %s181_s2, 4  ;;  %s2008_s3 = smul.u32 378, %s2467_s26  ;;  %s2721_s25 = int_to_ptr.vmem [resolvable:$true] %s193_s25 }
  0x57   : > { %s3130_s0 = sld [smem:[#allocation27_spill]]  ;;  %s203_s11 = sand.u32 1, %s2471_s27  }
  0x58   : > { %s190_s13 = sadd.s32 %s2042_s9, %s2008_s3  ;;  %s2729_s8 = scalar_lea.sflag [#allocation4], %s177_s12 }
  0x59   : > { %s1691_s21 = sshll.u32 %s190_s13, 6  ;;  %p2243_p3 = pneg %p2707_p0 }
  0x5d   : > { %s2726_s22 = scalar_lea.hbm %s3130_s0, %s1691_s21  ;;  %s2246_s2 = scalar_lea.hbm %s3130_s0, 48384 }
  0x5e   : > { %s2241_s6 = scalar_lea.hbm %s2726_s22, 2688  ;;  %p2247_p5 = scmp.lt.u32.totalorder %s2726_s22, %s3130_s0 }
  0x5f   : > { %p2242_p13 = scmp.ne.s32.totalorder %s2726_s22, %s2241_s6  ;;  %p2248_p7 = scmp.lt.u32.totalorder %s2246_s2, %s2241_s6 }
  0x60   : > { %p2250_p1 = scmp.lt.u32.totalorder %s2241_s6, %s2726_s22 }
  0x61   : > { %p2244_p6 = pnand %p2243_p3, %p2242_p13  ;;  %p2249_p12 = por %p2248_p7, %p2247_p5 }
  0x63   : > { %p2245_p2 = pneg %p2244_p6  ;;  %p2251_p4 = por %p2250_p1, %p2249_p12 }
  0x65   : > { %p2252_p8 = pnand %p2251_p4, %p2245_p2 }
  0x67   : > { %2255 = shalt.err (!%p2252_p8)
}
  0x68   : > { %s2256_s12 = scalar_lea.vmem %s2721_s25, 2688  ;;  %s2474_s21 = smov [#allocation3]  }
  0x69   : > { %p2257_p9 = scmp.ne.s32.totalorder %s2721_s25, %s2256_s12  ;;  %s2261_s18 = sshll.u32 %s2474_s21, 4  ;;  %s2262_s18 = int_to_ptr.vmem [resolvable:$false] %s2261_s18 }
  0x6a   : > { %s2263_s15 = scalar_lea.vmem %s2262_s18, 5376  ;;  %p2264_p13 = scmp.lt.s32.totalorder %s2721_s25, %s2262_s18 }
  0x6b   : > { %p2259_p10 = pnand %p2257_p9, %p2243_p3  ;;  %p2265_p6 = scmp.lt.s32.totalorder %s2263_s15, %s2256_s12 }
  0x6d   : > { %p2260_p11 = pneg %p2259_p10  ;;  %p2266_p5 = por %p2265_p6, %p2264_p13 }
  0x6f   : > { %p2267_p7 = pnand %p2266_p5, %p2260_p11 }
  0x71   : > { %2270 = shalt.err (!%p2267_p7)
}
  0x72   : > { %s2475_s6 = smov 64   ;;  %s2476_s7 = smov 4  }
  0x73   : > { %2032 = dma.hbm_to_vmem [thread:$0]  (!%p2707_p0), %s2726_s22, 2688, %s2721_s25, %s2729_s8, %s2475_s6, %s2475_s6, %s2476_s7  }
  0x74   : > { %s205_s9 = sand.u32 1, %s2431_s17   ;;  %s2010_s2 = smul.u32 96, %s2459_s24 }
  0x75   : > { %s2009_s3 = smul.u32 6, %s205_s9  ;;  %s2768_s0 = scalar_lea.sflag [#allocation7], %s203_s11 }
  0x76   : > { %s2762_s21 = scalar_lea.hbm %s3075_s1, %s2010_s2  ;;  %p3131_p3 = scmp.ne.s32.totalorder %s3118_s29, 0 }
  0x77   : > { %s207_s18 = scalar_lea.vmem [#allocation6], %s2009_s3  ;;  %s2271_s22 = scalar_lea.hbm %s2762_s21, 96 }
  0x78   : > { %s214_s15 = sshll.u32 %s207_s18, 4  ;;  %p2272_p0 = scmp.ne.s32.totalorder %s2762_s21, %s2271_s22  ;;  %s2764_s15 = int_to_ptr.vmem [resolvable:$true] %s214_s15 }
  0x79   : > { %p2273_p2 = pneg %p3131_p3  ;;  %s2276_s8 = scalar_lea.hbm %s3075_s1, 288 }
  0x7a   : > { %p2277_p4 = scmp.lt.u32.totalorder %s2762_s21, %s3075_s1  ;;  %p2278_p8 = scmp.lt.u32.totalorder %s2276_s8, %s2271_s22 }
  0x7b   : > { %p2274_p12 = pnand %p2273_p2, %p2272_p0  ;;  %p2280_p10 = scmp.lt.u32.totalorder %s2271_s22, %s2762_s21 }
  0x7c   : > { %p2279_p9 = por %p2278_p8, %p2277_p4 }
  0x7d   : > { %p2275_p1 = pneg %p2274_p12 }
  0x7e   : > { %p2281_p11 = por %p2280_p10, %p2279_p9 }
  0x80   : > { %p2282_p13 = pnand %p2281_p11, %p2275_p1 }
  0x82   : > { %2285 = shalt.err (!%p2282_p13)
}
  0x83   : > { %s2286_s11 = scalar_lea.vmem %s2764_s15, 96  ;;  %s2477_s9 = smov [#allocation6]  }
  0x84   : > { %p2287_p6 = scmp.ne.s32.totalorder %s2764_s15, %s2286_s11  ;;  %s2291_s2 = sshll.u32 %s2477_s9, 4  ;;  %s2292_s2 = int_to_ptr.vmem [resolvable:$false] %s2291_s2 }
  0x85   : > { %s2293_s3 = scalar_lea.vmem %s2292_s2, 192  ;;  %p2294_p0 = scmp.lt.s32.totalorder %s2764_s15, %s2292_s2 }
  0x86   : > { %p2289_p5 = pnand %p2287_p6, %p2273_p2  ;;  %p2295_p12 = scmp.lt.s32.totalorder %s2293_s3, %s2286_s11 }
  0x88   : > { %p2290_p7 = pneg %p2289_p5  ;;  %p2296_p4 = por %p2295_p12, %p2294_p0 }
  0x8a   : > { %p2297_p8 = pnand %p2296_p4, %p2290_p7 }
  0x8c   : > { %2300 = shalt.err (!%p2297_p8)
}
  0x8d   : > { %s2478_s13 = smov 32   ;;  %s2479_s12 = smov 2  }
  0x8e   : > { %2035 = dma.hbm_to_vmem [thread:$0]  (!%p3131_p3), %s2762_s21, 96, %s2764_s15, %s2768_s0, %s2478_s13, %s2478_s13, %s2479_s12  }
  0x8f   : > { %p3132_p2 = scmp.ne.s32.totalorder %s3116_s10, 0 }
  0x90   : > { %s228_s18 = sand.u32 (!%p3132_p2), 1, %s2439_s19   ;;  %p3133_p1 = scmp.ne.s32.totalorder (!%p3132_p2), %s3108_s4, 0 }
  0x91   : > { %226 = sbr.rel (%p3132_p2) target bundleno = 515 (0x203), region = 32  ;;  %s229_s25 = scalar_lea.sflag (!%p3132_p2), [#allocation4], %s228_s18 }
  0x92   : > { %s2011_s22 = smul.u32 (!%p3132_p2), 168, %s228_s18 }
  0x94   : > { %s2799_s5 = scalar_lea.vmem (!%p3132_p2), [#allocation3], %s2011_s22 }
  0x98   : > { %2394 = dma.done.wait (%p3133_p1), %s229_s25, 2688  }
  0x99   : > { %2396 = vsyncadd (%p3133_p1), %s229_s25, 4294964608  ;;  %s3134_s8 = sld [smem:[#allocation20_spill]]  ;;  %s237_s29 = sand.u32 1, %s2583_s28  }
  0x9a   : > { %s239_s0 = sand.u32 1, %s2427_s16   ;;  %s238_s10 = scalar_lea.sflag [#allocation7], %s237_s29 }
  0x9b   : > { %s2012_s21 = smul.u32 6, %s239_s0 }
  0x9d   : > { %s2807_s15 = scalar_lea.vmem [#allocation6], %s2012_s21 }
  0x9f   : > { %p3135_p3 = scmp.ne.s32.totalorder %s3134_s8, 0 }
  0xa1   : > { %2398 = dma.done.wait (%p3135_p3), %s238_s10, 96  }
  0xa2   : > { %2400 = vsyncadd (%p3135_p3), %s238_s10, 4294967200  ;;  %p3136_p9 = scmp.eq.s32.totalorder %s2583_s28, 0 }
  0xa4   : > { %2402 = dma.done.wait (%p3136_p9), [#allocation7], 16   ;;  %p3137_p10 = pmov %p3136_p9 }
  0xa5   : > { %s3138_s4 = sld [smem:[#allocation15_spill]]  ;;  %s3139_s9 = sld [smem:[#allocation16_spill]] }
  0xa6   : > { %2404 = vsyncadd (%p3137_p10), [#allocation7], 4294967280 }
  0xab   : > { %s270_s6 = sand.u32 1, %s3138_s4   ;;  %p1695_p11 = scmp.ne.s32.totalorder %s3139_s9, 0 }
  0xac   : > { %s2013_s7 = smul.u32 48, %s270_s6  ;;  %v2480_v0 = vmov (!%p1695_p11), 0.0  }
  0xad   : > { %281 = sbr.rel (%p1695_p11) target bundleno = 180 (0xb4), region = 48  ;;  %282 = vst [vmem:[#allocation2] sm:$0xff] (!%p1695_p11), %v2480_v0  ;;  %283 = vst [vmem:[#allocation2 + $0x8] sm:$0xff] (!%p1695_p11), %v2480_v0 }
  0xae   : > { %s2820_s11 = scalar_lea.vmem [#allocation9], %s2013_s7  ;;  %284 = vst [vmem:[#allocation2 + $0x10] sm:$0xff] (!%p1695_p11), %v2480_v0  ;;  %285 = vst [vmem:[#allocation2 + $0x18] sm:$0xff] (!%p1695_p11), %v2480_v0 }
  0xaf   : > { %286 = vst [vmem:[#allocation2 + $0x20] sm:$0xff] (!%p1695_p11), %v2480_v0  ;;  %287 = vst [vmem:[#allocation2 + $0x28] sm:$0xff] (!%p1695_p11), %v2480_v0 }
  0xb0   : > { %288 = vst [vmem:[#allocation2 + $0x30] sm:$0xff] (!%p1695_p11), %v2480_v0  ;;  %289 = vst [vmem:[#allocation2 + $0x38] sm:$0xff] (!%p1695_p11), %v2480_v0 }
  0xb1   : > { %290 = vst [vmem:[#allocation2 + $0x40] sm:$0xff] (!%p1695_p11), %v2480_v0  ;;  %291 = vst [vmem:[#allocation2 + $0x48] sm:$0xff] (!%p1695_p11), %v2480_v0 }
  0xb2   : > { %292 = vst [vmem:[#allocation2 + $0x50] sm:$0xff] (!%p1695_p11), %v2480_v0  ;;  %293 = vst [vmem:[#allocation2 + $0x58] sm:$0xff] (!%p1695_p11), %v2480_v0 }
  0xb4 PF: > { %v1696_v1 = vld [vmem:[%s2807_s15 + $0x2] sm:$0x3]  ;;  %vm318_vm0 = vcmask 1041408   ;;  %v294_v2 = vld [vmem:[%s2807_s15] sm:$0x3]  ;;  %v2481_v3 = vmov 0.0  }
  0xb5   : > { %1898 = vmatprep.subr.bf16.mxu0 %v2481_v3  ;;  %1904 = vmatprep.subr.bf16.mxu1 %v2481_v3  ;;  %v320_v4 = vsel %vm318_vm0, %v1696_v1, 0  ;;  %v372_v5 = vsel %vm318_vm0, %v294_v2, 0  ;;  %vm314_vm1 = vcmask 31744   ;;  %v2183_v6 = vld [vmem:[%s2799_s5] sm:$0xff]   ;;  %vm2482_vm2 = vmmov 0   ;;  %v2193_v42 = vld [vmem:[%s2799_s5 + $0x38] sm:$0xff]  }
  0xb6   : > { %1899 = vmatpush3.bf16.msra.mxu0 %v320_v4  ;;  %1905 = vmatpush3.bf16.msra.mxu1 %v372_v5  ;;  %v2184_v7 = vld [vmem:[%s2799_s5 + $0x8] sm:$0xfe]   ;;  %v2185_v8 = vld [vmem:[%s2799_s5 + $0x10] ss:$0 sps:$4 sm:$0x11]   ;;  %vm310_vm3 = vcmask 1046528  }
  0xb7   : > { %1906 = vmatprep.mubr.msk.bf16.mxu1 %vm2482_vm2, %v2481_v3  ;;  %1900 = vmatprep.mubr.msk.bf16.mxu0 %vm2482_vm2, %v2481_v3  ;;  %v1702_v9 = vld [vmem:[%s2807_s15 + $0x4] sm:$0x3]  ;;  %v311_v10 = vrot.slane %v2184_v7, 1  ;;  %v1708_v11 = vld [vmem:[%s2807_s15 + $0x2] sm:$0x3]  ;;  %v312_v12 = vrot.slane %v2185_v8, 1 }
  0xb8   : > { %1910 = vmatprep.subr.bf16.mxu0 %v2481_v3  ;;  %1916 = vmatprep.subr.bf16.mxu1 %v2481_v3  ;;  %v510_v13 = vsel %vm318_vm0, %v1708_v11, 0  ;;  %v436_v14 = vsel %vm318_vm0, %v1702_v9, 0  ;;  %v2186_v15 = vld [vmem:[%s2799_s5 + $0x24] sm:$0xfe]   ;;  %v2188_v20 = vld [vmem:[%s2799_s5 + $0x10] sm:$0xfc]  }
  0xb9   : > { %1907 = vmatmul.mubr.msk.bf16.vlgmr.msra.gmra.mrb[0].mxu1 %vm314_vm1, %v2183_v6  ;;  %v2187_v16 = vld [vmem:[%s2799_s5 + $0x2c] ss:$0 sps:$4 sm:$0x11]   ;;  %v313_v17 = vsel %vm310_vm3, %v311_v10, %v312_v12  ;;  %v503_v18 = vrot.slane %v2186_v15, 1  ;;  %vm428_vm4 = vcmask 1045504   ;;  %v429_v25 = vrot.slane %v2188_v20, 2 }
  0xba   : > { %1918 = vmatprep.mubr.msk.bf16.mxu1 %vm2482_vm2, %v2481_v3  ;;  %1917 = vmatpush3.bf16.msra.mxu1 %v510_v13  ;;  %v504_v19 = vrot.slane %v2187_v16, 1  ;;  %v2189_v21 = vld [vmem:[%s2799_s5 + $0x18] ss:$0 sps:$4 sm:$0x33]   ;;  %v487_v22 = vld [vmem:[%s2807_s15] sm:$0x3] }
  0xbb   : > { %1928 = vmatprep.subr.bf16.mxu1 %v2481_v3  ;;  %1901 = vmatmul.mubr.msk.bf16.vlgmr.msra.gmra.mrb[0].mxu0 %vm314_vm1, %v313_v17  ;;  %v1717_v23 = vld [vmem:[%s2807_s15 + $0x4] sm:$0x3]  ;;  %v430_v27 = vrot.slane %v2189_v21, 2  ;;  %v562_v32 = vsel %vm318_vm0, %v487_v22, 0  ;;  %v676_v34 = vld [vmem:[%s2807_s15] sm:$0x3] }
  0xbc   : > { %1911 = vmatpush3.bf16.msra.mxu0 %v436_v14  ;;  %1912 = vmatprep.mubr.msk.bf16.mxu0 %vm2482_vm2, %v2481_v3  ;;  %v505_v24 = vsel %vm310_vm3, %v503_v18, %v504_v19  ;;  %v624_v26 = vsel %vm318_vm0, %v1717_v23, 0  ;;  %v2190_v28 = vld [vmem:[%s2799_s5 + $0x2c] sm:$0xfc]   ;;  %v2191_v29 = vld [vmem:[%s2799_s5 + $0x34] ss:$0 sps:$4 sm:$0x33]  }
  0xbd   : > { %1922 = vmatprep.subr.bf16.mxu0 %v2481_v3  ;;  %v431_v30 = vsel %vm428_vm4, %v429_v25, %v430_v27  ;;  %v617_v31 = vrot.slane %v2190_v28, 2  ;;  %v618_v33 = vrot.slane %v2191_v29, 2  ;;  %v1726_v36 = vld [vmem:[%s2807_s15 + $0x2] sm:$0x3]  ;;  %v751_v37 = vsel %vm318_vm0, %v676_v34, 0  ;;  %v2192_v39 = vld [vmem:[%s2799_s5 + $0x1c] sm:$0xff]  }
  0xbe   : > { %v2194_v38 = vld [vmem:[%s2799_s5 + $0x40] sm:$0xfe]   ;;  %v2195_v40 = vld [vmem:[%s2799_s5 + $0x48] ss:$0 sps:$4 sm:$0x11]   ;;  %v699_v41 = vsel %vm318_vm0, %v1726_v36, 0 }
  0xbf   : > { %v619_v35 = vsel %vm428_vm4, %v617_v31, %v618_v33  ;;  %v692_v43 = vrot.slane %v2194_v38, 1  ;;  %v1744_v44 = vld [vmem:[%s2807_s15 + $0x2] sm:$0x3]  ;;  %v2196_v45 = vld [vmem:[%s2799_s5 + $0x5c] sm:$0xfe]   ;;  %v693_v46 = vrot.slane %v2195_v40, 1 }
  0xc0   : > { %v2197_v47 = vld [vmem:[%s2799_s5 + $0x64] ss:$0 sps:$4 sm:$0x11]   ;;  %v888_v48 = vsel %vm318_vm0, %v1744_v44, 0  ;;  %v1735_v49 = vld [vmem:[%s2807_s15 + $0x4] sm:$0x3] }
  0xc1   : > { %1919 = vmatmul.mubr.msk.bf16.vlgmr.msra.gmra.mrb[4].mxu1 %vm314_vm1, %v505_v24  ;;  %v2198_v50 = vld [vmem:[%s2799_s5 + $0x48] sm:$0xfc]   ;;  %v2199_v51 = vld [vmem:[%s2799_s5 + $0x50] ss:$0 sps:$4 sm:$0x33]   ;;  %v694_v52 = vsel %vm310_vm3, %v692_v43, %v693_v46  ;;  %v881_v53 = vrot.slane %v2196_v45, 1 }
  0xc2   : > { %1929 = vmatpush3.bf16.msra.mxu1 %v624_v26  ;;  %1930 = vmatprep.mubr.msk.bf16.mxu1 %vm2482_vm2, %v2481_v3  ;;  %v882_v54 = vrot.slane %v2197_v47, 1  ;;  %v813_v55 = vsel %vm318_vm0, %v1735_v49, 0  ;;  %v806_v56 = vrot.slane %v2198_v50, 2  ;;  %v1753_v57 = vld [vmem:[%s2807_s15 + $0x4] sm:$0x3]  ;;  %v807_v58 = vrot.slane %v2199_v51, 2 }
  0xc3   : > { %1940 = vmatprep.subr.bf16.mxu1 %v2481_v3  ;;  %1913 = vmatmul.mubr.msk.bf16.vlgmr.msra.gmra.mrb[4].mxu0 %vm314_vm1, %v431_v30  ;;  %v2201_v59 = vld [vmem:[%s2799_s5 + $0x6c] ss:$0 sps:$4 sm:$0x33]   ;;  %v2200_v61 = vld [vmem:[%s2799_s5 + $0x64] sm:$0xfc]   ;;  %v1002_v63 = vsel %vm318_vm0, %v1753_v57, 0 }
  0xc4   : > { %1923 = vmatpush3.bf16.msra.mxu0 %v562_v32  ;;  %1924 = vmatprep.mubr.msk.bf16.mxu0 %vm2482_vm2, %v2481_v3  ;;  %v883_v60 = vsel %vm310_vm3, %v881_v53, %v882_v54  ;;  %v865_v62 = vld [vmem:[%s2807_s15] sm:$0x3]  ;;  %v808_v0 = vsel %vm428_vm4, %v806_v56, %v807_v58  ;;  %v995_v1 = vrot.slane %v2200_v61, 2  ;;  %v996_v2 = vrot.slane %v2201_v59, 2  ;;  %v1762_v8 = vld [vmem:[%s2807_s15 + $0x2] sm:$0x3] }
  0xc5   : > { %1934 = vmatprep.subr.bf16.mxu0 %v2481_v3  ;;  %v940_v4 = vsel %vm318_vm0, %v865_v62, 0  ;;  %v1054_v5 = vld [vmem:[%s2807_s15] sm:$0x3]  ;;  %v2202_v9 = vld [vmem:[%s2799_s5 + $0x54] sm:$0xff]   ;;  %v1077_v12 = vsel %vm318_vm0, %v1762_v8, 0  ;;  %v482_v59 = vld [vmem:[#allocation2 + $0x8] sm:$0xff] }
  0xc6   : > { %v997_v6 = vsel %vm428_vm4, %v995_v1, %v996_v2  ;;  %v1129_v7 = vsel %vm318_vm0, %v1054_v5, 0  ;;  %v2204_v10 = vld [vmem:[%s2799_s5 + $0x78] sm:$0xfe]   ;;  %v2205_v11 = vld [vmem:[%s2799_s5 + $0x80] ss:$0 sps:$4 sm:$0x11]  }
  0xc7   : > { %v1780_v13 = vld [vmem:[%s2807_s15 + $0x2] sm:$0x3]  ;;  %v1070_v15 = vrot.slane %v2204_v10, 1  ;;  %v1071_v16 = vrot.slane %v2205_v11, 1  ;;  %v2206_v17 = vld [vmem:[%s2799_s5 + $0x94] sm:$0xfe]  }
  0xc8   : > { %v2203_v14 = vld [vmem:[%s2799_s5 + $0x70] sm:$0xff]   ;;  %v2207_v18 = vld [vmem:[%s2799_s5 + $0x9c] ss:$0 sps:$4 sm:$0x11]   ;;  %v1266_v19 = vsel %vm318_vm0, %v1780_v13, 0  ;;  %v1259_v23 = vrot.slane %v2206_v17, 1 }
  0xc9   : > { %1931 = vmatmul.mubr.msk.bf16.vlgmr.msra.gmra.mrb[8].mxu1 %vm314_vm1, %v619_v35  ;;  %v1771_v20 = vld [vmem:[%s2807_s15 + $0x4] sm:$0x3]  ;;  %v2208_v21 = vld [vmem:[%s2799_s5 + $0x80] sm:$0xfc]   ;;  %v1072_v22 = vsel %vm310_vm3, %v1070_v15, %v1071_v16  ;;  %v1260_v24 = vrot.slane %v2207_v18, 1  ;;  %s3140_s28 = sld [smem:[#allocation16_spill]] }
  0xca   : > { %1941 = vmatpush3.bf16.msra.mxu1 %v751_v37  ;;  %1942 = vmatprep.mubr.msk.bf16.mxu1 %vm2482_vm2, %v2481_v3  ;;  %v2209_v25 = vld [vmem:[%s2799_s5 + $0x88] ss:$0 sps:$4 sm:$0x33]   ;;  %v1191_v26 = vsel %vm318_vm0, %v1771_v20, 0  ;;  %v1789_v27 = vld [vmem:[%s2807_s15 + $0x4] sm:$0x3] }
  0xcb   : > { %1952 = vmatprep.subr.bf16.mxu1 %v2481_v3  ;;  %1925 = vmatmul.mubr.msk.bf16.vlgmr.msra.gmra.mrb[8].mxu0 %vm314_vm1, %v2192_v39  ;;  %v1184_v28 = vrot.slane %v2208_v21, 2  ;;  %v1261_v29 = vsel %vm310_vm3, %v1259_v23, %v1260_v24  ;;  %v1185_v30 = vrot.slane %v2209_v25, 2  ;;  %v2210_v31 = vld [vmem:[%s2799_s5 + $0x9c] sm:$0xfc]   ;;  %v1380_v33 = vsel %vm318_vm0, %v1789_v27, 0  ;;  %v2212_v40 = vld [vmem:[%s2799_s5 + $0x8c] sm:$0xff]  }
  0xcc   : > { %1935 = vmatpush3.bf16.msra.mxu0 %v699_v41  ;;  %1936 = vmatprep.mubr.msk.bf16.mxu0 %vm2482_vm2, %v2481_v3  ;;  %v2211_v32 = vld [vmem:[%s2799_s5 + $0xa4] ss:$0 sps:$4 sm:$0x33]   ;;  %v1243_v34 = vld [vmem:[%s2807_s15] sm:$0x3]  ;;  %v1373_v36 = vrot.slane %v2210_v31, 2 }
  0xcd   : > { %1946 = vmatprep.subr.bf16.mxu0 %v2481_v3  ;;  %v1186_v35 = vsel %vm428_vm4, %v1184_v28, %v1185_v30  ;;  %v1374_v37 = vrot.slane %v2211_v32, 2  ;;  %v1318_v38 = vsel %vm318_vm0, %v1243_v34, 0  ;;  %v670_v8 = vld [vmem:[#allocation2 + $0x10] sm:$0xff]  ;;  %v671_v13 = vld [vmem:[#allocation2 + $0x18] sm:$0xff]  ;;  %v859_v32 = vld [vmem:[#allocation2 + $0x20] sm:$0xff] }
  0xcf   : > { %v1375_v39 = vsel %vm428_vm4, %v1373_v36, %v1374_v37  ;;  %v860_v36 = vld [vmem:[#allocation2 + $0x28] sm:$0xff]  ;;  %p1796_p13 = scmp.ne.s32.totalorder %s3140_s28, 2 }
  0xd1   : > { %1943 = vmatmul.mubr.msk.bf16.vlgmr.msra.gmra.mrb[12].mxu1 %vm314_vm1, %v2193_v42 }
  0xd2   : > { %1953 = vmatpush3.bf16.msra.mxu1 %v888_v48  ;;  %1954 = vmatprep.mubr.msk.bf16.mxu1 %vm2482_vm2, %v2481_v3 }
  0xd3   : > { %1964 = vmatprep.subr.bf16.mxu1 %v2481_v3  ;;  %1937 = vmatmul.mubr.msk.bf16.vlgmr.msra.gmra.mrb[12].mxu0 %vm314_vm1, %v694_v52 }
  0xd4   : > { %1947 = vmatpush3.bf16.msra.mxu0 %v813_v55  ;;  %1948 = vmatprep.mubr.msk.bf16.mxu0 %vm2482_vm2, %v2481_v3  ;;  %v481_v55 = vld [vmem:[#allocation2] sm:$0xff] }
  0xd5   : > { %1958 = vmatprep.subr.bf16.mxu0 %v2481_v3 }
  0xd9   : > { %1955 = vmatmul.mubr.msk.bf16.vlgmr.msra.gmra.mrb[16].mxu1 %vm314_vm1, %v883_v60 }
  0xda   : > { %1965 = vmatpush3.bf16.msra.mxu1 %v1002_v63  ;;  %1966 = vmatprep.mubr.msk.bf16.mxu1 %vm2482_vm2, %v2481_v3 }
  0xdb   : > { %1976 = vmatprep.subr.bf16.mxu1 %v2481_v3  ;;  %1949 = vmatmul.mubr.msk.bf16.vlgmr.msra.gmra.mrb[16].mxu0 %vm314_vm1, %v808_v0 }
  0xdc   : > { %1959 = vmatpush3.bf16.msra.mxu0 %v940_v4  ;;  %1960 = vmatprep.mubr.msk.bf16.mxu0 %vm2482_vm2, %v2481_v3 }
  0xdd   : > { %1970 = vmatprep.subr.bf16.mxu0 %v2481_v3 }
  0xe1   : > { %1967 = vmatmul.mubr.msk.bf16.vlgmr.msra.gmra.mrb[20].mxu1 %vm314_vm1, %v997_v6 }
  0xe2   : > { %1977 = vmatpush3.bf16.msra.mxu1 %v1129_v7  ;;  %1978 = vmatprep.mubr.msk.bf16.mxu1 %vm2482_vm2, %v2481_v3 }
  0xe3   : > { %1988 = vmatprep.subr.bf16.mxu1 %v2481_v3  ;;  %1961 = vmatmul.mubr.msk.bf16.vlgmr.msra.gmra.mrb[20].mxu0 %vm314_vm1, %v2202_v9 }
  0xe4   : > { %1971 = vmatpush3.bf16.msra.mxu0 %v1077_v12  ;;  %1972 = vmatprep.mubr.msk.bf16.mxu0 %vm2482_vm2, %v2481_v3 }
  0xe5   : > { %1982 = vmatprep.subr.bf16.mxu0 %v2481_v3 }
  0xe9   : > { %1979 = vmatmul.mubr.msk.bf16.vlgmr.msra.gmra.mrb[24].mxu1 %vm314_vm1, %v2203_v14 }
  0xea   : > { %1989 = vmatpush3.bf16.msra.mxu1 %v1266_v19  ;;  %1990 = vmatprep.mubr.msk.bf16.mxu1 %vm2482_vm2, %v2481_v3 }
  0xeb   : > { %2000 = vmatprep.subr.bf16.mxu1 %v2481_v3  ;;  %1973 = vmatmul.mubr.msk.bf16.vlgmr.msra.gmra.mrb[24].mxu0 %vm314_vm1, %v1072_v22 }
  0xec   : > { %1983 = vmatpush3.bf16.msra.mxu0 %v1191_v26  ;;  %1984 = vmatprep.mubr.msk.bf16.mxu0 %vm2482_vm2, %v2481_v3 }
  0xed   : > { %1994 = vmatprep.subr.bf16.mxu0 %v2481_v3 }
  0xf1   : > { %1991 = vmatmul.mubr.msk.bf16.vlgmr.msra.gmra.mrb[28].mxu1 %vm314_vm1, %v1261_v29 }
  0xf2   : > { %2001 = vmatpush3.bf16.msra.mxu1 %v1380_v33  ;;  %2002 = vmatprep.mubr.msk.bf16.mxu1 %vm2482_vm2, %v2481_v3 }
  0xf3   : > { %1985 = vmatmul.mubr.msk.bf16.vlgmr.msra.gmra.mrb[28].mxu0 %vm314_vm1, %v1186_v35 }
  0xf4   : > { %1995 = vmatpush3.bf16.msra.mxu0 %v1318_v38  ;;  %1996 = vmatprep.mubr.msk.bf16.mxu0 %vm2482_vm2, %v2481_v3 }
  0xf9   : > { %2003 = vmatmul.mubr.msk.bf16.vlgmr.msra.gmra.mrb[32].mxu1 %vm314_vm1, %v1375_v39 }
  0xfb   : > { %1997 = vmatmul.mubr.msk.bf16.vlgmr.msra.gmra.mrb[32].mxu0 %vm314_vm1, %v2212_v40 }
 0x18c   : > { %v408_v41 = vpop.f32.mrb[0].mxu1 }
 0x18d   : > { %v1908_v42 = vpop.f32.mrb[1].mxu1 }
 0x18e   : > { %v411_v43 = vpop.f32.mrb[2].mxu1  ;;  %v356_v45 = vpop.f32.mrb[0].mxu0 }
 0x18f   : > { %v1909_v44 = vpop.f32.mrb[3].mxu1  ;;  %v409_v46 = vadd.f32 %v408_v41, %v356_v45  ;;  %v1902_v47 = vpop.f32.mrb[1].mxu0 }
 0x190   : > { %v359_v48 = vpop.f32.mrb[2].mxu0 }
 0x191   : > { %v412_v49 = vadd.f32 %v411_v43, %v359_v48  ;;  %v1903_v50 = vpop.f32.mrb[3].mxu0  ;;  %v1048_v48 = vld [vmem:[#allocation2 + $0x30] sm:$0xff] }
 0x194   : > { %v546_v51 = vpop.f32.mrb[4].mxu1 }
 0x195   : > { %v1920_v52 = vpop.f32.mrb[5].mxu1 }
 0x196   : > { %v549_v3 = vpop.f32.mrb[6].mxu1  ;;  %v472_v54 = vpop.f32.mrb[4].mxu0 }
 0x197   : > { %v1921_v53 = vpop.f32.mrb[7].mxu1  ;;  %v479_v56 = vadd.f32 %v472_v54, %v409_v46  ;;  %v1914_v57 = vpop.f32.mrb[5].mxu0 }
 0x198   : > { %v475_v58 = vpop.f32.mrb[6].mxu0 }
 0x199   : > { %v483_v60 = vadd.f32 %v481_v55, %v479_v56  ;;  %v480_v61 = vadd.f32 %v475_v58, %v412_v49  ;;  %v1915_v62 = vpop.f32.mrb[7].mxu0 }
 0x19b   : > { %485 = vst [vmem:[#allocation2] sm:$0xff] %v483_v60  ;;  %v484_v0 = vadd.f32 %v482_v59, %v480_v61 }
 0x19c   : > { %v660_v63 = vpop.f32.mrb[8].mxu1 }
 0x19d   : > { %v1932_v1 = vpop.f32.mrb[9].mxu1  ;;  %486 = vst [vmem:[#allocation2 + $0x8] sm:$0xff] %v484_v0 }
 0x19e   : > { %v663_v2 = vpop.f32.mrb[10].mxu1  ;;  %v598_v5 = vpop.f32.mrb[8].mxu0 }
 0x19f   : > { %v1933_v4 = vpop.f32.mrb[11].mxu1  ;;  %v599_v6 = vadd.f32 %v598_v5, %v546_v51  ;;  %v1926_v7 = vpop.f32.mrb[9].mxu0 }
 0x1a0   : > { %v601_v9 = vpop.f32.mrb[10].mxu0 }
 0x1a1   : > { %v667_v10 = vadd.f32 %v660_v63, %v599_v6  ;;  %v602_v11 = vadd.f32 %v601_v9, %v549_v3  ;;  %v1927_v12 = vpop.f32.mrb[11].mxu0  ;;  %v1049_v3 = vld [vmem:[#allocation2 + $0x38] sm:$0xff] }
 0x1a2   : > { %v1238_v12 = vld [vmem:[#allocation2 + $0x48] sm:$0xff] }
 0x1a3   : > { %v672_v15 = vadd.f32 %v670_v8, %v667_v10  ;;  %v668_v16 = vadd.f32 %v663_v2, %v602_v11  ;;  %v1237_v8 = vld [vmem:[#allocation2 + $0x40] sm:$0xff] }
 0x1a4   : > { %v787_v14 = vpop.f32.mrb[12].mxu1 }
 0x1a5   : > { %v1944_v17 = vpop.f32.mrb[13].mxu1  ;;  %674 = vst [vmem:[#allocation2 + $0x10] sm:$0xff] %v672_v15  ;;  %v673_v19 = vadd.f32 %v671_v13, %v668_v16 }
 0x1a6   : > { %v790_v18 = vpop.f32.mrb[14].mxu1  ;;  %v735_v21 = vpop.f32.mrb[12].mxu0 }
 0x1a7   : > { %v1945_v20 = vpop.f32.mrb[15].mxu1  ;;  %675 = vst [vmem:[#allocation2 + $0x18] sm:$0xff] %v673_v19  ;;  %v788_v22 = vadd.f32 %v787_v14, %v735_v21  ;;  %v1938_v23 = vpop.f32.mrb[13].mxu0 }
 0x1a8   : > { %v738_v24 = vpop.f32.mrb[14].mxu0 }
 0x1a9   : > { %v791_v25 = vadd.f32 %v790_v18, %v738_v24  ;;  %v1939_v26 = vpop.f32.mrb[15].mxu0  ;;  %v1426_v24 = vld [vmem:[#allocation2 + $0x50] sm:$0xff] }
 0x1ac   : > { %v924_v27 = vpop.f32.mrb[16].mxu1 }
 0x1ad   : > { %v1956_v28 = vpop.f32.mrb[17].mxu1 }
 0x1ae   : > { %v927_v29 = vpop.f32.mrb[18].mxu1  ;;  %v849_v31 = vpop.f32.mrb[16].mxu0 }
 0x1af   : > { %v1957_v30 = vpop.f32.mrb[19].mxu1  ;;  %v856_v33 = vadd.f32 %v849_v31, %v788_v22  ;;  %v1950_v34 = vpop.f32.mrb[17].mxu0 }
 0x1b0   : > { %v852_v35 = vpop.f32.mrb[18].mxu0  ;;  %v1437_v34 = vld [vmem:[#allocation2 + $0x8] sm:$0xff] (!%p1796_p13) }
 0x1b1   : > { %v861_v37 = vadd.f32 %v859_v32, %v856_v33  ;;  %v857_v38 = vadd.f32 %v852_v35, %v791_v25  ;;  %v1951_v39 = vpop.f32.mrb[19].mxu0  ;;  %v1436_v33 = vld [vmem:[#allocation2] sm:$0xff] (!%p1796_p13)  ;;  %v1797_v35 = vld [vmem:[#allocation8] ss:$0 sm:$0xff] (!%p1796_p13) }
 0x1b2   : > { %v1439_v39 = vld [vmem:[#allocation2 + $0x18] sm:$0xff] (!%p1796_p13) }
 0x1b3   : > { %863 = vst [vmem:[#allocation2 + $0x20] sm:$0xff] %v861_v37  ;;  %v862_v41 = vadd.f32 %v860_v36, %v857_v38  ;;  %v1455_v36 = vadd.f32 (!%p1796_p13), %v1797_v35, %v1436_v33  ;;  %v1456_v37 = vadd.f32 (!%p1796_p13), %v1797_v35, %v1437_v34  ;;  %v1438_v38 = vld [vmem:[#allocation2 + $0x10] sm:$0xff] (!%p1796_p13) }
 0x1b4   : > { %v1038_v40 = vpop.f32.mrb[20].mxu1 }
 0x1b5   : > { %v1968_v42 = vpop.f32.mrb[21].mxu1  ;;  %864 = vst [vmem:[#allocation2 + $0x28] sm:$0xff] %v862_v41  ;;  %v1457_v41 = vadd.f32 (!%p1796_p13), %v1797_v35, %v1438_v38 }
 0x1b6   : > { %v1041_v43 = vpop.f32.mrb[22].mxu1  ;;  %v976_v45 = vpop.f32.mrb[20].mxu0  ;;  %v1458_v42 = vadd.f32 (!%p1796_p13), %v1797_v35, %v1439_v39 }
 0x1b7   : > { %v1969_v44 = vpop.f32.mrb[23].mxu1  ;;  %v977_v46 = vadd.f32 %v976_v45, %v924_v27  ;;  %v1962_v47 = vpop.f32.mrb[21].mxu0 }
 0x1b8   : > { %v979_v49 = vpop.f32.mrb[22].mxu0  ;;  %v1467_v47 = vmax.f32 (!%p1796_p13), %v1455_v36, 0.0 }
 0x1b9   : > { %v1045_v50 = vadd.f32 %v1038_v40, %v977_v46  ;;  %v980_v51 = vadd.f32 %v979_v49, %v927_v29  ;;  %v1963_v52 = vpop.f32.mrb[23].mxu0  ;;  %v1427_v29 = vld [vmem:[#allocation2 + $0x58] sm:$0xff] }
 0x1ba   : > { %v1440_v40 = vld [vmem:[#allocation2 + $0x20] sm:$0xff] (!%p1796_p13) }
 0x1bb   : > { %v1050_v54 = vadd.f32 %v1048_v48, %v1045_v50  ;;  %v1046_v55 = vadd.f32 %v1041_v43, %v980_v51  ;;  %v1459_v44 = vadd.f32 (!%p1796_p13), %v1797_v35, %v1440_v40  ;;  %v1468_v48 = vmax.f32 (!%p1796_p13), %v1456_v37, 0.0 }
 0x1bc   : > { %v1165_v53 = vpop.f32.mrb[24].mxu1  ;;  %v1441_v43 = vld [vmem:[#allocation2 + $0x28] sm:$0xff] (!%p1796_p13) }
 0x1bd   : > { %v1980_v56 = vpop.f32.mrb[25].mxu1  ;;  %1052 = vst [vmem:[#allocation2 + $0x30] sm:$0xff] %v1050_v54  ;;  %v1051_v58 = vadd.f32 %v1049_v3, %v1046_v55  ;;  %v1460_v49 = vadd.f32 (!%p1796_p13), %v1797_v35, %v1441_v43  ;;  %v1470_v54 = vmax.f32 (!%p1796_p13), %v1458_v42, 0.0  ;;  %v1471_v55 = vmax.f32 (!%p1796_p13), %v1459_v44, 0.0 }
 0x1be   : > { %v1168_v57 = vpop.f32.mrb[26].mxu1  ;;  %v1113_v60 = vpop.f32.mrb[24].mxu0 }
 0x1bf   : > { %v1981_v59 = vpop.f32.mrb[27].mxu1  ;;  %1053 = vst [vmem:[#allocation2 + $0x38] sm:$0xff] %v1051_v58  ;;  %v1166_v61 = vadd.f32 %v1165_v53, %v1113_v60  ;;  %v1974_v62 = vpop.f32.mrb[25].mxu0  ;;  %v1469_v53 = vmax.f32 (!%p1796_p13), %v1457_v41, 0.0  ;;  %v1830_v58 = vpack.c.bf16 (!%p1796_p13), %v1468_v48, %v1467_v47 }
 0x1c0   : > { %v1116_v63 = vpop.f32.mrb[26].mxu0  ;;  %v1472_v59 = vmax.f32 (!%p1796_p13), %v1460_v49, 0.0 }
 0x1c1   : > { %v1169_v0 = vadd.f32 %v1168_v57, %v1116_v63  ;;  %v1975_v1 = vpop.f32.mrb[27].mxu0  ;;  %v1835_v62 = vpack.c.bf16 (!%p1796_p13), %v1470_v54, %v1469_v53  ;;  %1831 = vst [vmem:[%s2820_s11] sm:$0xff] (!%p1796_p13), %v1830_v58  }
 0x1c3   : > { %1857 = vst [vmem:[%s2820_s11 + $0x8] sm:$0xff] (!%p1796_p13), %v1835_v62  }
 0x1c4   : > { %v1302_v2 = vpop.f32.mrb[28].mxu1  ;;  %v1442_v45 = vld [vmem:[#allocation2 + $0x30] sm:$0xff] (!%p1796_p13) }
 0x1c5   : > { %v1992_v4 = vpop.f32.mrb[29].mxu1  ;;  %v1461_v50 = vadd.f32 (!%p1796_p13), %v1797_v35, %v1442_v45 }
 0x1c6   : > { %v1305_v5 = vpop.f32.mrb[30].mxu1  ;;  %v1227_v7 = vpop.f32.mrb[28].mxu0  ;;  %v1443_v46 = vld [vmem:[#allocation2 + $0x38] sm:$0xff] (!%p1796_p13) }
 0x1c7   : > { %v1993_v6 = vpop.f32.mrb[31].mxu1  ;;  %v1234_v9 = vadd.f32 %v1227_v7, %v1166_v61  ;;  %v1986_v10 = vpop.f32.mrb[29].mxu0  ;;  %v1462_v56 = vadd.f32 (!%p1796_p13), %v1797_v35, %v1443_v46  ;;  %v1473_v60 = vmax.f32 (!%p1796_p13), %v1461_v50, 0.0 }
 0x1c8   : > { %v1230_v11 = vpop.f32.mrb[30].mxu0 }
 0x1c9   : > { %v1239_v13 = vadd.f32 %v1237_v8, %v1234_v9  ;;  %v1235_v14 = vadd.f32 %v1230_v11, %v1169_v0  ;;  %v1987_v15 = vpop.f32.mrb[31].mxu0  ;;  %v1474_v63 = vmax.f32 (!%p1796_p13), %v1462_v56, 0.0 }
 0x1cb   : > { %1241 = vst [vmem:[#allocation2 + $0x40] sm:$0xff] %v1239_v13  ;;  %v1240_v17 = vadd.f32 %v1238_v12, %v1235_v14  ;;  %v1845_v6 = vpack.c.bf16 (!%p1796_p13), %v1474_v63, %v1473_v60 }
 0x1cc   : > { %v1416_v16 = vpop.f32.mrb[32].mxu1 }
 0x1cd   : > { %v2004_v18 = vpop.f32.mrb[33].mxu1  ;;  %1242 = vst [vmem:[#allocation2 + $0x48] sm:$0xff] %v1240_v17  ;;  %1859 = vst [vmem:[%s2820_s11 + $0x18] sm:$0xff] (!%p1796_p13), %v1845_v6  }
 0x1ce   : > { %v1419_v19 = vpop.f32.mrb[34].mxu1  ;;  %v1354_v21 = vpop.f32.mrb[32].mxu0 }
 0x1cf   : > { %v2005_v20 = vpop.f32.mrb[35].mxu1  ;;  %v1355_v22 = vadd.f32 %v1354_v21, %v1302_v2  ;;  %v1998_v23 = vpop.f32.mrb[33].mxu0  ;;  %v1840_v2 = vpack.c.bf16 (!%p1796_p13), %v1472_v59, %v1471_v55 }
 0x1d0   : > { %v1357_v25 = vpop.f32.mrb[34].mxu0 }
 0x1d1   : > { %v1423_v26 = vadd.f32 %v1416_v16, %v1355_v22  ;;  %v1358_v27 = vadd.f32 %v1357_v25, %v1305_v5  ;;  %v1999_v28 = vpop.f32.mrb[35].mxu0  ;;  %1435 = sbr.rel (%p1796_p13) target bundleno = 486 (0x1e6), region = 52  ;;  %1858 = vst [vmem:[%s2820_s11 + $0x10] sm:$0xff] (!%p1796_p13), %v1840_v2  }
 0x1d2   : > { %v1444_v51 = vld [vmem:[#allocation2 + $0x40] sm:$0xff] (!%p1796_p13) }
 0x1d3   : > { %v1428_v30 = vadd.f32 %v1426_v24, %v1423_v26  ;;  %v1424_v31 = vadd.f32 %v1419_v19, %v1358_v27  ;;  %v1463_v61 = vadd.f32 (!%p1796_p13), %v1797_v35, %v1444_v51 }
 0x1d4   : > { %v1445_v52 = vld [vmem:[#allocation2 + $0x48] sm:$0xff] (!%p1796_p13) }
 0x1d5   : > { %1430 = vst [vmem:[#allocation2 + $0x50] sm:$0xff] %v1428_v30  ;;  %v1429_v32 = vadd.f32 %v1427_v29, %v1424_v31  ;;  %v1464_v0 = vadd.f32 (!%p1796_p13), %v1797_v35, %v1445_v52  ;;  %v1475_v4 = vmax.f32 (!%p1796_p13), %v1463_v61, 0.0 }
 0x1d7   : > { %1431 = vst [vmem:[#allocation2 + $0x58] sm:$0xff] %v1429_v32  ;;  %v1476_v7 = vmax.f32 (!%p1796_p13), %v1464_v0, 0.0 }
 0x1d9   : > { %v1850_v10 = vpack.c.bf16 %v1476_v7, %v1475_v4 }
 0x1db   : > { %1860 = vst [vmem:[%s2820_s11 + $0x20] sm:$0xff] %v1850_v10  }
 0x1dc   : > { %v1446_v3 = vld [vmem:[#allocation2 + $0x50] sm:$0xff] }
 0x1dd   : > { %v1465_v1 = vadd.f32 %v1797_v35, %v1446_v3 }
 0x1de   : > { %v1447_v57 = vld [vmem:[#allocation2 + $0x58] sm:$0xff] }
 0x1df   : > { %v1466_v5 = vadd.f32 %v1797_v35, %v1447_v57  ;;  %v1477_v8 = vmax.f32 %v1465_v1, 0.0 }
 0x1e1   : > { %v1478_v9 = vmax.f32 %v1466_v5, 0.0 }
 0x1e3   : > { %v1855_v11 = vpack.c.bf16 %v1478_v9, %v1477_v8 }
 0x1e5   : > { %1861 = vst [vmem:[%s2820_s11 + $0x28] sm:$0xff] %v1855_v11  }
 0x1e6 PF: > { %s3141_s2 = sld [smem:[#allocation17_spill]]  ;;  %s3142_s3 = sld [smem:[#allocation18_spill]] }
 0x1e7   : > { %s3144_s12 = sld [smem:[#allocation21_spill]]  ;;  %s1556_s25 = sshll.u32 %s2820_s11, 4  ;;  %s2983_s25 = int_to_ptr.vmem [resolvable:$true] %s1556_s25 }
 0x1e8   : > { %s3145_s21 = sld [smem:[#allocation29_spill]]  ;;  %s2992_s4 = scalar_lea.sflag [#allocation5], %s270_s6 }
 0x1e9   : > { %s2301_s7 = scalar_lea.vmem %s2983_s25, 768  ;;  %s2483_s11 = smov [#allocation9]  }
 0x1ea   : > { %p2302_p6 = scmp.ne.s32.totalorder %s2983_s25, %s2301_s7  ;;  %s2305_s9 = sshll.u32 %s2483_s11, 4  ;;  %s2306_s9 = int_to_ptr.vmem [resolvable:$false] %s2305_s9 }
 0x1eb   : > { %s2307_s28 = scalar_lea.vmem %s2306_s9, 1536  ;;  %p2308_p12 = scmp.lt.s32.totalorder %s2983_s25, %s2306_s9 }
 0x1ec   : > { %s1826_s18 = smul.u32 12, %s3141_s2  ;;  %p2309_p4 = scmp.lt.s32.totalorder %s2307_s28, %s2301_s7 }
 0x1ed   : > { %s2014_s22 = smul.u32 36, %s3142_s3  ;;  %p3147_p5 = scmp.ne.s32.totalorder %s3144_s12, 0 }
 0x1ee   : > { %s3146_s10 = smov %s3145_s21  ;;  %p2310_p8 = por %p2309_p4, %p2308_p12 }
 0x1ef   : > { %s1553_s5 = sadd.s32 %s2014_s22, %s1826_s18  ;;  %p2303_p7 = pnand %p2302_p6, %p3147_p5 }
 0x1f0   : > { %s1811_s8 = sshll.u32 %s1553_s5, 6 }
 0x1f1   : > { %s2988_s15 = scalar_lea.hbm %s3145_s21, %s1811_s8  ;;  %p2304_p0 = pneg %p2303_p7 }
 0x1f3   : > { %p2311_p2 = pnand %p2310_p8, %p2304_p0 }
 0x1f5   : > { %2314 = shalt.err (!%p2311_p2)
}
 0x1f6   : > { %s2315_s6 = scalar_lea.hbm %s2988_s15, 768  ;;  %s2319_s13 = scalar_lea.hbm %s3146_s10, 4608 }
 0x1f7   : > { %p2316_p1 = scmp.ne.s32.totalorder %s2988_s15, %s2315_s6  ;;  %p2320_p10 = scmp.lt.u32.totalorder %s2988_s15, %s3146_s10 }
 0x1f8   : > { %p2321_p11 = scmp.lt.u32.totalorder %s2319_s13, %s2315_s6  ;;  %p2323_p6 = scmp.lt.u32.totalorder %s2315_s6, %s2988_s15 }
 0x1f9   : > { %p2317_p3 = pnand %p2316_p1, %p3147_p5 }
 0x1fa   : > { %p2322_p13 = por %p2321_p11, %p2320_p10 }
 0x1fb   : > { %p2318_p9 = pneg %p2317_p3 }
 0x1fc   : > { %p2324_p7 = por %p2323_p6, %p2322_p13 }
 0x1fe   : > { %p2325_p0 = pnand %p2324_p7, %p2318_p9 }
 0x200   : > { %2328 = shalt.err (!%p2325_p0)
}
 0x201   : > { %s2484_s5 = smov 64   ;;  %s2485_s8 = smov 4  }
 0x202   : > { %2023 = dma.vmem_to_hbm [thread:$0]  (%p3147_p5), %s2983_s25, 768, %s2988_s15, %s2992_s4, %s2484_s5, %s2484_s5, %s2485_s8  }
 0x203 PF: > { %s3148_s29 = sld [smem:[#allocation14_spill]]  ;;  %s3149_s0 = sld [smem:[#allocation22_spill]] }
 0x204   : > { %p2044_p12 = scmp.ge.s32.totalorder %s2471_s27, 2 }
 0x209   : > { %s1571_s21 = sand.u32 1, %s3148_s29   ;;  %p3150_p4 = scmp.ne.s32.totalorder %s3149_s0, 0 }
 0x20a   : > { %s1572_s7 = scalar_lea.sflag [#allocation5], %s1571_s21 }
 0x20b   : > { %p2037_p8 = pnand %p2044_p12, %p3150_p4 }
 0x20d   : > { %2406 = dma.done.wait (!%p2037_p8), %s1572_s7, 768  }
 0x20e   : > { %2408 = vsyncadd (!%p2037_p8), %s1572_s7, 4294966528  ;;  %s22_s27 = sadd.s32 1, %s2471_s27   ;;  %s3152_s12 = sld [smem:[#allocation15_spill]] }
 0x20f   : > { %p3021_p2 = scmp.ge.s32.totalorder %s22_s27, 20   ;;  %s3153_s25 = sld [smem:[#allocation26_spill]] }
 0x210   : > { %s3154_s22 = sld [smem:[#allocation19_spill]]  ;;  %s3155_s4 = sld [smem:[#allocation23_spill]] }
 0x211   : > { %s3156_s9 = sld [smem:[#allocation24_spill]]  ;;  %s3157_s28 = sld [smem:[#allocation25_spill]] }
 0x212   : > { %s3158_s13 = smov %s2419_s14  ;;  %s3159_s14 = smov %s2717_s23 }
 0x213   : > { %s3160_s15 = smov %s2427_s16  ;;  %s3161_s16 = smov %s2431_s17 }
 0x214   : > { %s3163_s18 = smov %s2439_s19  ;;  %s3164_s19 = smov %s2443_s20 }
 0x215   : > { %s3162_s17 = smov %s3153_s25  ;;  %s3165_s20 = smov %s2712_s30 }
 0x216   : > { %s3166_s21 = smov %s2459_s24  ;;  %s3167_s23 = smov %s2467_s26 }
 0x217   : > { %s3168_s24 = smov %s3155_s4  ;;  %s3169_s25 = smov %s3156_s9 }
 0x218   : > { %s3170_s26 = smov %s3157_s28  ;;  %21 = sbr.rel (!%p3021_p2) target bundleno = 17 (0x11), region = 114 }
 0x21f   :  { %1577 = vsyncpa [#allocation4], 1 }
 0x220   :  { %1579 = vsyncpa [#allocation4 + $0x1], 1 }
 0x221   :  { %1580 = vsyncpa [#allocation7], 1 }
 0x222   :  { %1582 = vsyncpa [#allocation7 + $0x1], 1 }
 0x223   :  { %1583 = vsyncpa [#allocation5], 1 }
 0x224   :  { %1585 = vsyncpa [#allocation5 + $0x1], 1 }

// kernel: aspp_forward.13
= control target key start
LH: loop header
LB: loop body
LE: loop exit
PB: predicated region body
PF: predicated region fallthrough
CT: control target
= control target key end

     0   :  { %s5173_s0 = inlined_call_operand.hbm [shape: f32[256,4], index: 0, kind: input, shape index: {}]   ;;  %s5174_s1 = inlined_call_operand.hbm [shape: f32[2,4,128], index: 1, kind: input, shape index: {}]   ;;  %s5175_s2 = inlined_call_operand.hbm [shape: bf16[2,256,128], index: 2, kind: input, shape index: {}]   ;;  %s5176_s3 = inlined_call_operand.hbm [shape: bf16[2,256,128], index: 3, kind: input, shape index: {}]   ;;  %s5177_s4 = inlined_call_operand.hbm [shape: bf16[2,256,128], index: 4, kind: input, shape index: {}]   ;;  %s5178_s5 = inlined_call_operand.hbm [shape: bf16[2,256,128], index: 5, kind: input, shape index: {}]   ;;  %s5179_s6 = inlined_call_operand.hbm [shape: bf16[128,128], index: 6, kind: input, shape index: {}]   ;;  %s5180_s7 = inlined_call_operand.hbm [shape: bf16[128,128], index: 7, kind: input, shape index: {}]   ;;  %s5181_s8 = inlined_call_operand.hbm [shape: bf16[128,128], index: 8, kind: input, shape index: {}]   ;;  %s5182_s9 = inlined_call_operand.hbm [shape: bf16[128,128], index: 9, kind: input, shape index: {}]   ;;  %s5183_s10 = inlined_call_operand.hbm [shape: f32[1,128], index: 10, kind: input, shape index: {}]   ;;  %s5184_s11 = inlined_call_operand.hbm [shape: f32[2,256,128], index: 11, kind: output, shape index: {}]  }
   0x1   :  { %5218 = sst [smem:[#allocation40_spill]] %s5174_s1 }
   0x2   :  { %5219 = sst [smem:[#allocation41_spill]] %s5176_s3 }
   0x3   :  { %5220 = sst [smem:[#allocation42_spill]] %s5177_s4 }
   0x4   :  { %5221 = sst [smem:[#allocation43_spill]] %s5178_s5 }
   0x5   :  { %5222 = sst [smem:[#allocation44_spill]] %s5179_s6 }
   0x6   :  { %5223 = sst [smem:[#allocation45_spill]] %s5180_s7 }
   0x7   :  { %5224 = sst [smem:[#allocation46_spill]] %s5182_s9 }
   0x8   :  { %5225 = sst [smem:[#allocation47_spill]] %s5184_s11 }
   0x9   :  { %16 = vsyncpa [#allocation3], 0 }
   0xa   :  { %17 = vsyncpa [#allocation6], 0 }
   0xb   :  { %19 = vsyncpa [#allocation6 + $0x1], 0 }
   0xc   :  { %20 = vsyncpa [#allocation9], 0 }
   0xd   :  { %22 = vsyncpa [#allocation9 + $0x1], 0 }
   0xe   :  { %23 = vsyncpa [#allocation12], 0 }
   0xf   :  { %25 = vsyncpa [#allocation12 + $0x1], 0 }
  0x10   :  { %26 = vsyncpa [#allocation15], 0 }
  0x11   :  { %27 = vsyncpa [#allocation18], 0 }
  0x12   :  { %28 = vsyncpa [#allocation4], 0 }
  0x13   :  { %30 = vsyncpa [#allocation4 + $0x1], 0  ;;  %s4324_s17 = smov 0   ;;  %s4326_s18 = smov 0  }
  0x14   :  { %s4328_s19 = smov 0   ;;  %s4330_s20 = smov 0  }
  0x15   :  { %s4332_s21 = smov 0   ;;  %s4334_s22 = smov 0  }
  0x16 LB: > { %5226 = sst [smem:[#allocation29_spill]] %s4224_s17  ;;  %s4246_s23 = smov [#allocation13]   ;;  %s4244_s22 = sphi %s4334_s22, %s36_s22   ;;  %s4240_s21 = sphi %s4332_s21, %s5285_s21   ;;  %s4236_s20 = sphi %s4330_s20, %s5284_s20   ;;  %s4232_s19 = sphi %s4328_s19, %s5283_s19   ;;  %s4228_s18 = sphi %s4326_s18, %s5287_s18   ;;  %s4224_s17 = sphi %s4324_s17, %s5286_s17  }
  0x17   : > { %5227 = sst [smem:[#allocation30_spill]] %s4232_s19  ;;  %s378_s24 = sshll.u32 %s4246_s23, 4  ;;  %s4360_s24 = int_to_ptr.vmem [resolvable:$true] %s378_s24 }
  0x18   : > { %5228 = sst [smem:[#allocation31_spill]] %s4236_s20  ;;  %s4355_s25 = sadd.s32 4294967295, %s4244_s22  }
  0x19   : > { %5229 = sst [smem:[#allocation32_spill]] %s4240_s21  ;;  %p2917_p0 = scmp.ge.s32.totalorder %s4244_s22, 1 }
  0x1a   : > { %5230 = sst [smem:[#allocation33_spill]] %s4244_s22  ;;  %p5194_p1 = scmp.eq.s32.totalorder %s4355_s25, 0 }
  0x1b   : > { %p350_p2 = scmp.lt.s32.totalorder %s4244_s22, 3  ;;  %s4247_s27 = smov [#allocation14]  }
  0x1c   : > { %s391_s28 = sshll.u32 %s4247_s27, 4  ;;  %s4248_s30 = smov [#allocation17]   ;;  %s4375_s28 = int_to_ptr.vmem [resolvable:$true] %s391_s28 }
  0x1d   : > { %p4362_p3 = pnand %p2917_p0, %p350_p2  ;;  %s417_s12 = sshll.u32 %s4248_s30, 4  ;;  %s4377_s12 = int_to_ptr.vmem [resolvable:$true] %s417_s12 }
  0x1e   : > { %s5234_s6 = sld [smem:[#allocation44_spill]] }
  0x1f   : > { %s5231_s26 = scalar_select %p4362_p3, 1, 0 }
  0x20   : > { %p3611_p5 = pneg %p4362_p3 }
  0x21   : > { %5232 = sst [smem:[#allocation34_spill]] %s5231_s26 }
  0x22   : > { %p4371_p6 = pnand %p3611_p5, %p5194_p1 }
  0x24   : > { %s5233_s29 = scalar_select %p4371_p6, 1, 0 }
  0x25   : > { %s3820_s15 = scalar_lea.hbm %s5234_s6, 1024  ;;  %p4387_p8 = pneg %p4371_p6 }
  0x26   : > { %p3821_p7 = scmp.ne.s32.totalorder %s5234_s6, %s3820_s15  ;;  %p3827_p11 = scmp.lt.u32.totalorder %s3820_s15, %s5234_s6 }
  0x27   : > { %s5235_s27 = scalar_select %p4387_p8, 1, 0 }
  0x28   : > { %p3823_p9 = pnand %p4387_p8, %p3821_p7 }
  0x2a   : > { %p3824_p10 = pneg %p3823_p9 }
  0x2c   : > { %p3829_p12 = pnand %p3827_p11, %p3824_p10 }
  0x2e   : > { %3832 = shalt.err (!%p3829_p12)
}
  0x2f   : > { %s3833_s13 = scalar_lea.vmem %s4360_s24, 1024  ;;  %p3841_p5 = scmp.lt.s32.totalorder %s4360_s24, %s4360_s24 }
  0x30   : > { %p3834_p13 = scmp.ne.s32.totalorder %s4360_s24, %s3833_s13  ;;  %p3842_p4 = scmp.lt.s32.totalorder %s3833_s13, %s3833_s13 }
  0x32   : > { %p3836_p0 = pnand %p3834_p13, %p4387_p8  ;;  %p3843_p7 = por %p3842_p4, %p3841_p5 }
  0x34   : > { %p3837_p2 = pneg %p3836_p0 }
  0x36   : > { %p3844_p9 = pnand %p3843_p7, %p3837_p2 }
  0x38   : > { %3847 = shalt.err (!%p3844_p9)
}
  0x39   : > { %s5189_s14 = smov 64   ;;  %s5191_s11 = smov 4  }
  0x3a   : > { %3617 = dma.hbm_to_vmem [thread:$0]  (!%p4371_p6), %s5234_s6, 1024, %s4360_s24, [#allocation12], %s5189_s14, %s5189_s14, %s5191_s11  }
  0x3b   : > { %s5236_s7 = sld [smem:[#allocation45_spill]] }
  0x41   : > { %s3848_s13 = scalar_lea.hbm %s5236_s7, 1024 }
  0x42   : > { %p3849_p4 = scmp.ne.s32.totalorder %s5236_s7, %s3848_s13  ;;  %p3855_p12 = scmp.lt.u32.totalorder %s3848_s13, %s5236_s7 }
  0x44   : > { %p3851_p10 = pnand %p3849_p4, %p4387_p8 }
  0x46   : > { %p3852_p11 = pneg %p3851_p10 }
  0x48   : > { %p3857_p13 = pnand %p3855_p12, %p3852_p11 }
  0x4a   : > { %3860 = shalt.err (!%p3857_p13)
}
  0x4b   : > { %s3861_s24 = scalar_lea.vmem %s4375_s28, 1024  ;;  %p3869_p7 = scmp.lt.s32.totalorder %s4375_s28, %s4375_s28 }
  0x4c   : > { %p3862_p0 = scmp.ne.s32.totalorder %s4375_s28, %s3861_s24  ;;  %p3870_p9 = scmp.lt.s32.totalorder %s3861_s24, %s3861_s24 }
  0x4e   : > { %p3864_p2 = pnand %p3862_p0, %p4387_p8  ;;  %p3871_p4 = por %p3870_p9, %p3869_p7 }
  0x50   : > { %p3865_p5 = pneg %p3864_p2 }
  0x52   : > { %p3872_p10 = pnand %p3871_p4, %p3865_p5 }
  0x54   : > { %3875 = shalt.err (!%p3872_p10)
}
  0x55   : > { %3620 = dma.hbm_to_vmem [thread:$0]  (!%p4371_p6), %s5236_s7, 1024, %s4375_s28, [#allocation15], %s5189_s14, %s5189_s14, %s5191_s11  }
  0x56   : > { %s5237_s9 = sld [smem:[#allocation46_spill]] }
  0x5c   : > { %s3876_s15 = scalar_lea.hbm %s5237_s9, 1024 }
  0x5d   : > { %p3877_p11 = scmp.ne.s32.totalorder %s5237_s9, %s3876_s15  ;;  %p3883_p0 = scmp.lt.u32.totalorder %s3876_s15, %s5237_s9 }
  0x5f   : > { %p3879_p12 = pnand %p3877_p11, %p4387_p8 }
  0x61   : > { %p3880_p13 = pneg %p3879_p12 }
  0x63   : > { %p3885_p2 = pnand %p3883_p0, %p3880_p13 }
  0x65   : > { %3888 = shalt.err (!%p3885_p2)
}
  0x66   : > { %s3889_s28 = scalar_lea.vmem %s4377_s12, 1024  ;;  %p3897_p4 = scmp.lt.s32.totalorder %s4377_s12, %s4377_s12 }
  0x67   : > { %p3890_p5 = scmp.ne.s32.totalorder %s4377_s12, %s3889_s28  ;;  %p3898_p10 = scmp.lt.s32.totalorder %s3889_s28, %s3889_s28 }
  0x69   : > { %p3892_p7 = pnand %p3890_p5, %p4387_p8  ;;  %p3899_p11 = por %p3898_p10, %p3897_p4 }
  0x6b   : > { %p3893_p9 = pneg %p3892_p7 }
  0x6d   : > { %p3900_p12 = pnand %p3899_p11, %p3893_p9 }
  0x6f   : > { %3903 = shalt.err (!%p3900_p12)
}
  0x70   : > { %3626 = dma.hbm_to_vmem [thread:$0]  (!%p4371_p6), %s5237_s9, 1024, %s4377_s12, [#allocation18], %s5189_s14, %s5189_s14, %s5191_s11  }
  0x71   : > { %s2916_s5 = sadd.s32 4294967294, %s4244_s22   ;;  %s48_s20 = sadd.s32 1, %s4240_s21 }
  0x72   : > { %s81_s26 = sadd.s32 1, %s4232_s19  ;;  %p50_p13 = scmp.ge.s32.totalorder %s48_s20, 2 }
  0x73   : > { %p88_p0 = scmp.ne.s32.totalorder %s4232_s19, %s4228_s18  ;;  %p89_p2 = scmp.eq.s32.totalorder %s4244_s22, 0 }
  0x74   : > { %p94_p5 = scmp.ne.s32.totalorder %s4228_s18, %s4224_s17  ;;  %s5289_s20 = smov (%p50_p13, %s48_s20), 0 }
  0x75   : > { %5238 = sst [smem:[#allocation35_spill]] %s5289_s20  ;;  %p4473_p7 = por %p89_p2, %p88_p0 }
  0x76   : > { %p4479_p9 = por %p5194_p1, %p94_p5  ;;  %s78_s16 = ssub.s32 %s4240_s21, %s5289_s20 }
  0x77   : > { %p337_p4 = scmp.eq.s32.totalorder %s4355_s25, 1  ;;  %p79_p10 = scmp.eq.s32.totalorder %s78_s16, 0 }
  0x78   : > { %s5240_s12 = scalar_select %p4479_p9, 1, 0 }
  0x79   : > { %p343_p11 = scmp.eq.s32.totalorder %s2916_s5, 1  ;;  %p4486_p12 = por %p337_p4, %p88_p0 }
  0x7a   : > { %5241 = sst [smem:[#allocation36_spill]] %s5240_s12  ;;  %p3656_p13 = scmp.lt.s32.totalorder %s4244_s22, 2 }
  0x7b   : > { %s5242_s23 = scalar_select %p4486_p12, 1, 0 }
  0x7c   : > { %s4492_s30 = scalar_select %p79_p10, %s4232_s19, %s81_s26  }
  0x7d   : > { %5243 = sst [smem:[#allocation37_spill]] %s5242_s23  ;;  %p4494_p2 = por %p343_p11, %p94_p5 }
  0x7e   : > { %5244 = sst [smem:[#allocation38_spill]] %s4492_s30  ;;  %s4499_s28 = sand.u32 1, %s4244_s22  }
  0x7f   : > { %s5245_s13 = scalar_select %p4494_p2, 1, 0 }
  0x80   : > { %s444_s24 = sand.u32 1, %s4232_s19   ;;  %s2926_s14 = sshll.u32 %s4240_s21, 6 }
  0x81   : > { %5246 = sst [smem:[#allocation39_spill]] %s5245_s13  ;;  %s2925_s4 = sshll.u32 %s444_s24, 2 }
  0x82   : > { %s5247_s1 = sld [smem:[#allocation40_spill]]  ;;  %s446_s26 = scalar_lea.vmem [#allocation5], %s2925_s4 }
  0x83   : > { %s453_s6 = sshll.u32 %s446_s26, 4  ;;  %p4510_p0 = pnand %p3656_p13, %p4473_p7  ;;  %s4514_s6 = int_to_ptr.vmem [resolvable:$true] %s453_s6 }
  0x84   : > { %s4516_s9 = sshll.u32 %s444_s24, 7  ;;  %s5203_s20 = scalar_lea.sflag [#allocation6], %s4499_s28 }
  0x85   : > { %s5248_s7 = scalar_select %p4510_p0, 1, 0 }
  0x86   : > { %p4523_p4 = pneg %p4510_p0 }
  0x88   : > { %s4506_s5 = scalar_lea.hbm %s5247_s1, %s2926_s14  ;;  %s3909_s16 = scalar_lea.hbm %s5247_s1, 128 }
  0x89   : > { %s3904_s11 = scalar_lea.hbm %s4506_s5, 64  ;;  %p3910_p11 = scmp.lt.u32.totalorder %s4506_s5, %s5247_s1 }
  0x8a   : > { %p3905_p5 = scmp.ne.s32.totalorder %s4506_s5, %s3904_s11  ;;  %p3911_p13 = scmp.lt.u32.totalorder %s3909_s16, %s3904_s11 }
  0x8b   : > { %s5249_s14 = scalar_select %p4523_p4, 1, 0 }
  0x8c   : > { %p3907_p10 = pnand %p4523_p4, %p3905_p5  ;;  %p3912_p1 = por %p3911_p13, %p3910_p11 }
  0x8d   : > { %p3913_p2 = scmp.lt.u32.totalorder %s3904_s11, %s4506_s5 }
  0x8e   : > { %p3908_p7 = pneg %p3907_p10 }
  0x8f   : > { %p3914_p12 = por %p3913_p2, %p3912_p1 }
  0x91   : > { %p3915_p9 = pnand %p3914_p12, %p3908_p7 }
  0x93   : > { %3918 = shalt.err (!%p3915_p9)
}
  0x94   : > { %s3919_s24 = scalar_lea.vmem %s4514_s6, 64  ;;  %s4251_s15 = smov [#allocation5]  }
  0x95   : > { %p3920_p5 = scmp.ne.s32.totalorder %s4514_s6, %s3919_s24  ;;  %s3924_s4 = sshll.u32 %s4251_s15, 4  ;;  %s3925_s4 = int_to_ptr.vmem [resolvable:$false] %s3924_s4 }
  0x96   : > { %s3926_s30 = scalar_lea.vmem %s3925_s4, 128  ;;  %p3927_p6 = scmp.lt.s32.totalorder %s4514_s6, %s3925_s4 }
  0x97   : > { %p3922_p10 = pnand %p3920_p5, %p4523_p4  ;;  %p3928_p8 = scmp.lt.s32.totalorder %s3926_s30, %s3919_s24 }
  0x99   : > { %p3923_p3 = pneg %p3922_p10  ;;  %p3929_p11 = por %p3928_p8, %p3927_p6 }
  0x9b   : > { %p3930_p13 = pnand %p3929_p11, %p3923_p3 }
  0x9d   : > { %3933 = shalt.err (!%p3930_p13)
}
  0x9e   : > { %3633 = dma.hbm_to_vmem [thread:$0]  (!%p4510_p0), %s4506_s5, 64, %s4514_s6, %s5203_s20  }
  0x9f   : > { %s4549_s11 = sshll.u32 %s4240_s21, 11  ;;  %s464_s16 = scalar_lea.vmem [#allocation7], %s4516_s9 }
  0xa0   : > { %s473_s26 = sshll.u32 %s464_s16, 4  ;;  %s510_s24 = scalar_lea.vmem [#allocation10], %s4516_s9  ;;  %s4552_s26 = int_to_ptr.vmem [resolvable:$true] %s473_s26 }
  0xa1   : > { %s519_s15 = sshll.u32 %s510_s24, 4  ;;  %s533_s4 = scalar_lea.vmem [#allocation11], %s4516_s9  ;;  %s4555_s15 = int_to_ptr.vmem [resolvable:$true] %s519_s15 }
  0xa2   : > { %s542_s30 = sshll.u32 %s533_s4, 4  ;;  %s5250_s3 = sld [smem:[#allocation41_spill]]  ;;  %s4558_s30 = int_to_ptr.vmem [resolvable:$true] %s542_s30 }
  0xa3   : > { %s487_s5 = scalar_lea.vmem [#allocation8], %s4516_s9  ;;  %s5211_s24 = scalar_lea.sflag [#allocation9], %s4499_s28 }
  0xa4   : > { %s496_s16 = sshll.u32 %s487_s5, 4  ;;  %s4567_s16 = int_to_ptr.vmem [resolvable:$true] %s496_s16 }
  0xa8   : > { %s4564_s6 = scalar_lea.hbm %s5250_s3, %s4549_s11  ;;  %s3939_s1 = scalar_lea.hbm %s5250_s3, 4096 }
  0xa9   : > { %s3934_s20 = scalar_lea.hbm %s4564_s6, 2048  ;;  %p3940_p8 = scmp.lt.u32.totalorder %s4564_s6, %s5250_s3 }
  0xaa   : > { %p3935_p1 = scmp.ne.s32.totalorder %s4564_s6, %s3934_s20  ;;  %p3941_p9 = scmp.lt.u32.totalorder %s3939_s1, %s3934_s20 }
  0xab   : > { %p3943_p2 = scmp.lt.u32.totalorder %s3934_s20, %s4564_s6 }
  0xac   : > { %p3937_p3 = pnand %p3935_p1, %p4523_p4  ;;  %p3942_p12 = por %p3941_p9, %p3940_p8 }
  0xae   : > { %p3938_p6 = pneg %p3937_p3  ;;  %p3944_p7 = por %p3943_p2, %p3942_p12 }
  0xb0   : > { %p3945_p5 = pnand %p3944_p7, %p3938_p6 }
  0xb2   : > { %3948 = shalt.err (!%p3945_p5)
}
  0xb3   : > { %s3949_s9 = scalar_lea.vmem %s4567_s16, 2048  ;;  %s4252_s21 = smov [#allocation8]  }
  0xb4   : > { %p3950_p10 = scmp.ne.s32.totalorder %s4567_s16, %s3949_s9  ;;  %s3954_s5 = sshll.u32 %s4252_s21, 4  ;;  %s3955_s5 = int_to_ptr.vmem [resolvable:$false] %s3954_s5 }
  0xb5   : > { %s3956_s22 = scalar_lea.vmem %s3955_s5, 4096  ;;  %p3957_p1 = scmp.lt.s32.totalorder %s4567_s16, %s3955_s5 }
  0xb6   : > { %p3952_p11 = pnand %p3950_p10, %p4523_p4  ;;  %p3958_p3 = scmp.lt.s32.totalorder %s3956_s22, %s3949_s9 }
  0xb8   : > { %p3953_p13 = pneg %p3952_p11  ;;  %p3959_p8 = por %p3958_p3, %p3957_p1 }
  0xba   : > { %p3960_p9 = pnand %p3959_p8, %p3953_p13 }
  0xbc   : > { %3963 = shalt.err (!%p3960_p9)
}
  0xbd   : > { %s5251_s20 = smov 4   ;;  %s5252_s4 = smov 64  }
  0xbe   : > { %3639 = dma.hbm_to_vmem [thread:$0]  (!%p4510_p0), %s4564_s6, 2048, %s4567_s16, %s5211_s24, %s5252_s4, %s5252_s4, %s5251_s20  }
  0xbf   : > { %s4253_s1 = smov [#allocation2]   ;;  %s3964_s9 = scalar_lea.hbm %s5173_s0, 4096 }
  0xc0   : > { %s365_s19 = sshll.u32 %s4253_s1, 4  ;;  %p3965_p6 = scmp.ne.s32.totalorder %s5173_s0, %s3964_s9  ;;  %s366_s19 = int_to_ptr.vmem [resolvable:$true] %s365_s19 }
  0xc1   : > { %p5253_p12 = scmp.ne.s32.totalorder %s5235_s27, 0  ;;  %p3971_p5 = scmp.lt.u32.totalorder %s3964_s9, %s5173_s0 }
  0xc3   : > { %p3967_p2 = pnand %p3965_p6, %p5253_p12 }
  0xc5   : > { %p3968_p7 = pneg %p3967_p2 }
  0xc7   : > { %p3973_p10 = pnand %p3971_p5, %p3968_p7 }
  0xc9   : > { %3976 = shalt.err (!%p3973_p10)
}
  0xca   : > { %s3977_s6 = scalar_lea.vmem %s366_s19, 4096  ;;  %p3985_p3 = scmp.lt.s32.totalorder %s366_s19, %s366_s19 }
  0xcb   : > { %p3978_p11 = scmp.ne.s32.totalorder %s366_s19, %s3977_s6  ;;  %p3986_p8 = scmp.lt.s32.totalorder %s3977_s6, %s3977_s6 }
  0xcd   : > { %p3980_p13 = pnand %p3978_p11, %p5253_p12  ;;  %p3987_p9 = por %p3986_p8, %p3985_p3 }
  0xcf   : > { %p3981_p1 = pneg %p3980_p13 }
  0xd1   : > { %p3988_p0 = pnand %p3987_p9, %p3981_p1 }
  0xd3   : > { %3991 = shalt.err (!%p3988_p0)
}
  0xd4   : > { %s4254_s3 = smov 128   ;;  %s4255_s16 = smov 8  }
  0xd5   : > { %p5254_p6 = scmp.ne.s32.totalorder %s5233_s29, 0  ;;  %s4256_s1 = smov [#allocation16]  }
  0xd6   : > { %s404_s21 = sshll.u32 %s4256_s1, 4  ;;  %s4257_s5 = smov [#allocation19]   ;;  %s405_s21 = int_to_ptr.vmem [resolvable:$true] %s404_s21 }
  0xd7   : > { %3614 = dma.hbm_to_vmem [thread:$0]  (!%p5254_p6), %s5173_s0, 4096, %s366_s19, [#allocation3], %s4254_s3, %s4254_s3, %s4255_s16  }
  0xd8   : > { %s431_s9 = sshll.u32 %s4257_s5, 4  ;;  %s3992_s24 = scalar_lea.hbm %s5181_s8, 1024  ;;  %s4614_s9 = int_to_ptr.vmem [resolvable:$true] %s431_s9 }
  0xd9   : > { %p3993_p0 = scmp.ne.s32.totalorder %s5181_s8, %s3992_s24  ;;  %p3999_p5 = scmp.lt.u32.totalorder %s3992_s24, %s5181_s8 }
  0xdb   : > { %p3995_p2 = pnand %p3993_p0, %p5253_p12 }
  0xdd   : > { %p3996_p7 = pneg %p3995_p2 }
  0xdf   : > { %p4001_p10 = pnand %p3999_p5, %p3996_p7 }
  0xe1   : > { %4004 = shalt.err (!%p4001_p10)
}
  0xe2   : > { %s4005_s3 = scalar_lea.vmem %s405_s21, 1024  ;;  %p4013_p3 = scmp.lt.s32.totalorder %s405_s21, %s405_s21 }
  0xe3   : > { %p4006_p11 = scmp.ne.s32.totalorder %s405_s21, %s4005_s3  ;;  %p4014_p8 = scmp.lt.s32.totalorder %s4005_s3, %s4005_s3 }
  0xe5   : > { %p4008_p13 = pnand %p4006_p11, %p5253_p12  ;;  %p4015_p9 = por %p4014_p8, %p4013_p3 }
  0xe7   : > { %p4009_p1 = pneg %p4008_p13 }
  0xe9   : > { %p4016_p4 = pnand %p4015_p9, %p4009_p1 }
  0xeb   : > { %4019 = shalt.err (!%p4016_p4)
}
  0xec   : > { %3623 = dma.hbm_to_vmem [thread:$0]  (!%p5254_p6), %s5181_s8, 1024, %s405_s21, [#allocation15], %s5252_s4, %s5252_s4, %s5251_s20  }
  0xed   : > { %s4020_s13 = scalar_lea.hbm %s5183_s10, 16 }
  0xee   : > { %p4021_p0 = scmp.ne.s32.totalorder %s5183_s10, %s4020_s13  ;;  %p4027_p7 = scmp.lt.u32.totalorder %s4020_s13, %s5183_s10 }
  0xf0   : > { %p4023_p4 = pnand %p4021_p0, %p5253_p12 }
  0xf2   : > { %p4024_p2 = pneg %p4023_p4 }
  0xf4   : > { %p4029_p5 = pnand %p4027_p7, %p4024_p2 }
  0xf6   : > { %4032 = shalt.err (!%p4029_p5)
}
  0xf7   : > { %s4033_s21 = scalar_lea.vmem %s4614_s9, 16  ;;  %s4040_s17 = scalar_lea.vmem %s4614_s9, 32 }
  0xf8   : > { %p4034_p10 = scmp.ne.s32.totalorder %s4614_s9, %s4033_s21  ;;  %p4041_p1 = scmp.lt.s32.totalorder %s4614_s9, %s4614_s9 }
  0xf9   : > { %p4042_p3 = scmp.lt.s32.totalorder %s4040_s17, %s4033_s21 }
  0xfa   : > { %p4036_p11 = pnand %p4034_p10, %p5253_p12 }
  0xfb   : > { %p4043_p8 = por %p4042_p3, %p4041_p1 }
  0xfc   : > { %p4037_p13 = pneg %p4036_p11 }
  0xfe   : > { %p4044_p9 = pnand %p4043_p8, %p4037_p13 }
 0x100   : > { %4047 = shalt.err (!%p4044_p9)
}
 0x101   : > { %3629 = dma.hbm_to_vmem [thread:$0]  (!%p5254_p6), %s5183_s10, 16, %s4614_s9, [#allocation18]  }
 0x102   : > { %s4665_s23 = scalar_lea.hbm %s5175_s2, %s4549_s11  ;;  %s5255_s13 = sld [smem:[#allocation42_spill]] }
 0x103   : > { %s4048_s1 = scalar_lea.hbm %s4665_s23, 2048  ;;  %p5256_p0 = scmp.ne.s32.totalorder %s5249_s14, 0 }
 0x104   : > { %p4049_p12 = scmp.ne.s32.totalorder %s4665_s23, %s4048_s1  ;;  %s4053_s22 = scalar_lea.hbm %s5175_s2, 4096 }
 0x105   : > { %p4054_p6 = scmp.lt.u32.totalorder %s4665_s23, %s5175_s2  ;;  %p4055_p7 = scmp.lt.u32.totalorder %s4053_s22, %s4048_s1 }
 0x106   : > { %p4051_p4 = pnand %p4049_p12, %p5256_p0  ;;  %p4057_p10 = scmp.lt.u32.totalorder %s4048_s1, %s4665_s23 }
 0x107   : > { %p4056_p5 = por %p4055_p7, %p4054_p6 }
 0x108   : > { %s4671_s29 = scalar_lea.hbm %s5255_s13, %s4549_s11  ;;  %p4052_p2 = pneg %p4051_p4 }
 0x109   : > { %p4058_p11 = por %p4057_p10, %p4056_p5 }
 0x10b   : > { %p4059_p13 = pnand %p4058_p11, %p4052_p2 }
 0x10d   : > { %4062 = shalt.err (!%p4059_p13)
}
 0x10e   : > { %s4063_s17 = scalar_lea.vmem %s4552_s26, 2048  ;;  %s4258_s19 = smov [#allocation7]  }
 0x10f   : > { %p4064_p1 = scmp.ne.s32.totalorder %s4552_s26, %s4063_s17  ;;  %s4068_s3 = sshll.u32 %s4258_s19, 4  ;;  %s4069_s3 = int_to_ptr.vmem [resolvable:$false] %s4068_s3 }
 0x110   : > { %s4070_s27 = scalar_lea.vmem %s4069_s3, 4096  ;;  %p4071_p9 = scmp.lt.s32.totalorder %s4552_s26, %s4069_s3 }
 0x111   : > { %p4066_p3 = pnand %p4064_p1, %p5256_p0  ;;  %p4072_p12 = scmp.lt.s32.totalorder %s4070_s27, %s4063_s17 }
 0x113   : > { %p4067_p8 = pneg %p4066_p3  ;;  %p4073_p4 = por %p4072_p12, %p4071_p9 }
 0x115   : > { %p4074_p6 = pnand %p4073_p4, %p4067_p8 }
 0x117   : > { %4077 = shalt.err (!%p4074_p6)
}
 0x118   : > { %p5257_p2 = scmp.ne.s32.totalorder %s5248_s7, 0  ;;  %s5258_s12 = scalar_lea.sflag [#allocation6], %s4499_s28 }
 0x119   : > { %s4078_s24 = scalar_lea.hbm %s4671_s29, 2048  ;;  %s4083_s9 = scalar_lea.hbm %s5255_s13, 4096 }
 0x11a   : > { %3636 = dma.hbm_to_vmem [thread:$0]  (!%p5257_p2), %s4665_s23, 2048, %s4552_s26, %s5258_s12, %s5252_s4, %s5252_s4, %s5251_s20  }
 0x11b   : > { %p4079_p7 = scmp.ne.s32.totalorder %s4671_s29, %s4078_s24  ;;  %p4084_p11 = scmp.lt.u32.totalorder %s4671_s29, %s5255_s13 }
 0x11c   : > { %p4085_p13 = scmp.lt.u32.totalorder %s4083_s9, %s4078_s24  ;;  %p4087_p3 = scmp.lt.u32.totalorder %s4078_s24, %s4671_s29 }
 0x11d   : > { %p4081_p5 = pnand %p4079_p7, %p5256_p0 }
 0x11e   : > { %p4086_p1 = por %p4085_p13, %p4084_p11 }
 0x11f   : > { %p4082_p10 = pneg %p4081_p5 }
 0x120   : > { %p4088_p8 = por %p4087_p3, %p4086_p1 }
 0x122   : > { %p4089_p9 = pnand %p4088_p8, %p4082_p10 }
 0x124   : > { %4092 = shalt.err (!%p4089_p9)
}
 0x125   : > { %s4093_s26 = scalar_lea.vmem %s4555_s15, 2048  ;;  %s4259_s23 = smov [#allocation10]  }
 0x126   : > { %p4094_p12 = scmp.ne.s32.totalorder %s4555_s15, %s4093_s26  ;;  %s4098_s6 = sshll.u32 %s4259_s23, 4  ;;  %s4099_s6 = int_to_ptr.vmem [resolvable:$false] %s4098_s6 }
 0x127   : > { %s4100_s21 = scalar_lea.vmem %s4099_s6, 4096  ;;  %p4101_p7 = scmp.lt.s32.totalorder %s4555_s15, %s4099_s6 }
 0x128   : > { %p4096_p4 = pnand %p4094_p12, %p5256_p0  ;;  %p4102_p5 = scmp.lt.s32.totalorder %s4100_s21, %s4093_s26 }
 0x12a   : > { %p4097_p6 = pneg %p4096_p4  ;;  %p4103_p11 = por %p4102_p5, %p4101_p7 }
 0x12c   : > { %p4104_p13 = pnand %p4103_p11, %p4097_p6 }
 0x12e   : > { %4107 = shalt.err (!%p4104_p13)
}
 0x12f   : > { %s5259_s17 = scalar_lea.sflag [#allocation9], %s4499_s28  ;;  %s5260_s27 = sld [smem:[#allocation43_spill]] }
 0x130   : > { %3642 = dma.hbm_to_vmem [thread:$0]  (!%p5257_p2), %s4671_s29, 2048, %s4555_s15, %s5259_s17, %s5252_s4, %s5252_s4, %s5251_s20  }
 0x131   : > { %s530_s24 = scalar_lea.sflag [#allocation12], %s4499_s28 }
 0x135   : > { %s4729_s12 = scalar_lea.hbm %s5260_s27, %s4549_s11  ;;  %s4113_s5 = scalar_lea.hbm %s5260_s27, 4096 }
 0x136   : > { %s4108_s16 = scalar_lea.hbm %s4729_s12, 2048  ;;  %p4114_p8 = scmp.lt.u32.totalorder %s4729_s12, %s5260_s27 }
 0x137   : > { %p4109_p10 = scmp.ne.s32.totalorder %s4729_s12, %s4108_s16  ;;  %p4115_p9 = scmp.lt.u32.totalorder %s4113_s5, %s4108_s16 }
 0x138   : > { %p4117_p4 = scmp.lt.u32.totalorder %s4108_s16, %s4729_s12 }
 0x139   : > { %p4111_p1 = pnand %p4109_p10, %p5256_p0  ;;  %p4116_p12 = por %p4115_p9, %p4114_p8 }
 0x13b   : > { %p4112_p3 = pneg %p4111_p1  ;;  %p4118_p6 = por %p4117_p4, %p4116_p12 }
 0x13d   : > { %p4119_p7 = pnand %p4118_p6, %p4112_p3 }
 0x13f   : > { %4122 = shalt.err (!%p4119_p7)
}
 0x140   : > { %s4123_s11 = scalar_lea.vmem %s4558_s30, 2048  ;;  %s4260_s22 = smov [#allocation11]  }
 0x141   : > { %p4124_p5 = scmp.ne.s32.totalorder %s4558_s30, %s4123_s11  ;;  %s4128_s26 = sshll.u32 %s4260_s22, 4  ;;  %s4129_s26 = int_to_ptr.vmem [resolvable:$false] %s4128_s26 }
 0x142   : > { %s4130_s23 = scalar_lea.vmem %s4129_s26, 4096  ;;  %p4131_p10 = scmp.lt.s32.totalorder %s4558_s30, %s4129_s26 }
 0x143   : > { %p4126_p11 = pnand %p4124_p5, %p5256_p0  ;;  %p4132_p1 = scmp.lt.s32.totalorder %s4130_s23, %s4123_s11 }
 0x145   : > { %p4127_p13 = pneg %p4126_p11  ;;  %p4133_p8 = por %p4132_p1, %p4131_p10 }
 0x147   : > { %p4134_p9 = pnand %p4133_p8, %p4127_p13 }
 0x149   : > { %4137 = shalt.err (!%p4134_p9)
}
 0x14a   : > { %3645 = dma.hbm_to_vmem [thread:$0]  (!%p5257_p2), %s4729_s12, 2048, %s4558_s30, %s530_s24, %s5252_s4, %s5252_s4, %s5251_s20  }
 0x14b   : > { %s5261_s14 = sld [smem:[#allocation34_spill]] }
 0x151   : > { %p5262_p0 = scmp.ne.s32.totalorder %s5261_s14, 0 }
 0x152   : > { %p5263_p3 = scmp.eq.s32.totalorder (!%p5262_p0), %s4355_s25, 0 }
 0x153   : > { %554 = sbr.rel (%p5262_p0) target bundleno = 780 (0x30c), region = 64 }
 0x15a   : > { %4191 = dma.done.wait (%p5263_p3), [#allocation3], 4096   ;;  %p5264_p12 = pmov %p5263_p3 }
 0x15b   : > { %s5265_s7 = sld [smem:[#allocation36_spill]]  ;;  %s560_s6 = sand.u32 1, %s4355_s25  }
 0x15c   : > { %4193 = vsyncadd (%p5264_p12), [#allocation3], 4294963200  ;;  %s4766_s21 = sand.u32 1, %s4228_s18   ;;  %s561_s17 = scalar_lea.sflag [#allocation6], %s560_s6 }
 0x15d   : > { %s2941_s28 = sshll.u32 %s4766_s21, 2 }
 0x15e   : > { %s564_s19 = scalar_lea.vmem [#allocation5], %s2941_s28 }
 0x161   : > { %p5266_p2 = scmp.ne.s32.totalorder %s5265_s7, 0 }
 0x163   : > { %4195 = dma.done.wait (%p5266_p2), %s561_s17, 2112  }
 0x164   : > { %4197 = vsyncadd (%p5266_p2), %s561_s17, 4294965184  ;;  %s2942_s30 = sshll.u32 %s4766_s21, 7  ;;  %s579_s4 = scalar_lea.sflag [#allocation9], %s560_s6 }
 0x165   : > { %s4774_s20 = scalar_lea.vmem [#allocation7], %s2942_s30  ;;  %s4776_s3 = scalar_lea.vmem [#allocation8], %s2942_s30 }
 0x166   : > { %4199 = dma.done.wait (%p5266_p2), %s579_s4, 4096  }
 0x167   : > { %4201 = vsyncadd (%p5266_p2), %s579_s4, 4294963200  ;;  %s4782_s12 = scalar_lea.vmem [#allocation10], %s2942_s30  ;;  %s597_s24 = scalar_lea.sflag [#allocation12], %s560_s6 }
 0x168   : > { %s4784_s16 = scalar_lea.vmem [#allocation11], %s2942_s30 }
 0x169   : > { %4203 = dma.done.wait (%p5266_p2), %s597_s24, 2048  }
 0x16a   : > { %4205 = vsyncadd (%p5266_p2), %s597_s24, 4294965248  ;;  %p5267_p4 = pmov %p5263_p3 }
 0x16b   : > { %p5268_p6 = pmov %p5263_p3 }
 0x16c   : > { %4207 = dma.done.wait (%p5267_p4), [#allocation12], 1024  }
 0x16d   : > { %4209 = vsyncadd (%p5268_p6), [#allocation12], 4294966272  ;;  %p5269_p7 = pmov %p5263_p3 }
 0x16e   : > { %p5270_p5 = pmov %p5263_p3 }
 0x16f   : > { %4211 = dma.done.wait (%p5269_p7), [#allocation15], 2048  }
 0x170   : > { %4213 = vsyncadd (%p5270_p5), [#allocation15], 4294965248  ;;  %p5271_p11 = pmov %p5263_p3 }
 0x171   : > { %p5272_p13 = pmov %p5263_p3 }
 0x172   : > { %4215 = dma.done.wait (%p5271_p11), [#allocation18], 1040  }
 0x173   : > { %4217 = vsyncadd (%p5272_p13), [#allocation18], 4294966256  ;;  %vm1169_vm0 = vcmask 1043456   ;;  %vm1072_vm1 = vcmask 31744   ;;  %v718_v0 = vld [vmem:[%s564_s19] sm:$0xf] }
 0x174   : > { %v686_v1 = vld [vmem:[#allocation2] sm:$0xff]  ;;  %3269 = vmatprep.subr.msk.mxu1 %vm1169_vm0, %v718_v0  ;;  %v3724_v2 = vld [vmem:[#allocation13] sm:$0xff]   ;;  %v688_v5 = vld [vmem:[#allocation2 + $0x10] sm:$0xff]  ;;  %s2951_s25 = sshll.u32 %s4766_s21, 8  ;;  %s5273_s9 = sld [smem:[#allocation31_spill]] }
 0x175   : > { %3271 = vmatprep.mubr.msk.f32.mxu1 %vm1072_vm1, %v686_v1  ;;  %v687_v3 = vld [vmem:[#allocation2 + $0x8] sm:$0xff]  ;;  %3270 = vmatpush3.msk.msra.mxu1 %vm1169_vm0, %v718_v0  ;;  %v3726_v6 = vld [vmem:[#allocation13 + $0x8] sm:$0xff]   ;;  %v689_v7 = vld [vmem:[#allocation2 + $0x18] sm:$0xff]  ;;  %s5015_s1 = scalar_lea.vmem [#allocation20], %s2951_s25  ;;  %s5274_s29 = sld [smem:[#allocation37_spill]] }
 0x176   : > { %v4803_v4 = vld [vmem:[#allocation16] sm:$0xff]   ;;  %3221 = vmatprep.subr.bf16.mxu0 %v3724_v2  ;;  %3272 = vmatmul.mubr.msk.f32.vlgmr.msra.gmra.mrb[0].mxu1 %vm1072_vm1, %v687_v3  ;;  %v690_v8 = vld [vmem:[#allocation2 + $0x20] sm:$0xff]  ;;  %v3727_v9 = vld [vmem:[#allocation13 + $0x10] sm:$0xff]   ;;  %s2672_s15 = sshll.u32 %s5015_s1, 4  ;;  %s5275_s26 = sld [smem:[#allocation47_spill]]  ;;  %s5120_s15 = int_to_ptr.vmem [resolvable:$true] %s2672_s15 }
 0x177   : > { %3222 = vmatpush3.bf16.msra.mxu0 %v3724_v2  ;;  %3463 = vmatprep.subr.bf16.mxu1 %v4803_v4  ;;  %v4810_v10 = vld [vmem:[#allocation16 + $0x8] sm:$0xff]   ;;  %v691_v11 = vld [vmem:[#allocation2 + $0x28] sm:$0xff]  ;;  %v3729_v13 = vld [vmem:[#allocation13 + $0x18] sm:$0xff]   ;;  %s2657_s14 = scalar_lea.sflag [#allocation4], %s4766_s21  ;;  %s4138_s7 = scalar_lea.vmem %s5120_s15, 4096 }
 0x178   : > { %3274 = vmatprep.mubr.msk.f32.mxu1 %vm1072_vm1, %v688_v5  ;;  %3471 = vmatpush3.bf16.msra.mxu1 %v4803_v4  ;;  %v692_v12 = vld [vmem:[#allocation2 + $0x30] sm:$0xff]  ;;  %v4816_v14 = vld [vmem:[#allocation16 + $0x10] sm:$0xff]   ;;  %v694_v16 = vld [vmem:[#allocation2 + $0x40] sm:$0xff]  ;;  %p4139_p10 = scmp.ne.s32.totalorder %s5120_s15, %s4138_s7  ;;  %s4261_s6 = smov [#allocation20]  }
 0x179   : > { %3223 = vmatprep.subr.bf16.mxu0 %v3726_v6  ;;  %3464 = vmatprep.subr.bf16.mxu1 %v4810_v10  ;;  %v693_v15 = vld [vmem:[#allocation2 + $0x38] sm:$0xff]  ;;  %v3730_v17 = vld [vmem:[#allocation13 + $0x20] sm:$0xff]   ;;  %v4822_v18 = vld [vmem:[#allocation16 + $0x18] sm:$0xff]   ;;  %s4142_s28 = sshll.u32 %s4261_s6, 4  ;;  %s4143_s28 = int_to_ptr.vmem [resolvable:$false] %s4142_s28 }
 0x17a   : > { %3275 = vmatmul.mubr.msk.f32.gmra.mrb[2].mxu1 %vm1072_vm1, %v689_v7  ;;  %v695_v19 = vld [vmem:[#allocation2 + $0x48] sm:$0xff]  ;;  %v696_v20 = vld [vmem:[#allocation2 + $0x50] sm:$0xff]  ;;  %v697_v23 = vld [vmem:[#allocation2 + $0x58] sm:$0xff]  ;;  %s3091_s5 = sshll.u32 %s5273_s9, 12  ;;  %s4144_s17 = scalar_lea.vmem %s4143_s28, 8192 }
 0x17b   : > { %3224 = vmatpush3.bf16.msra.mxu0 %v3726_v6  ;;  %3277 = vmatprep.mubr.msk.f32.mxu1 %vm1072_vm1, %v690_v8  ;;  %v3732_v21 = vld [vmem:[#allocation13 + $0x28] sm:$0xff]   ;;  %v3736_v22 = vld [vmem:[%s4774_s20] sm:$0xff]   ;;  %v698_v24 = vld [vmem:[#allocation2 + $0x60] sm:$0xff]  ;;  %p5276_p1 = scmp.ne.s32.totalorder %s5274_s29, 0  ;;  %p4145_p0 = scmp.lt.s32.totalorder %s5120_s15, %s4143_s28 }
 0x17c   : > { %3225 = vmatprep.subr.bf16.mxu0 %v3727_v9  ;;  %3472 = vmatpush3.bf16.msra.mxu1 %v4810_v10  ;;  %v3733_v25 = vld [vmem:[#allocation13 + $0x30] sm:$0xff]   ;;  %v4830_v26 = vld [vmem:[#allocation16 + $0x20] sm:$0xff]   ;;  %v700_v28 = vld [vmem:[#allocation2 + $0x70] sm:$0xff]  ;;  %s5118_s23 = scalar_lea.hbm %s5275_s26, %s3091_s5  ;;  %p4146_p3 = scmp.lt.s32.totalorder %s4144_s17, %s4138_s7 }
 0x17d   : > { %3465 = vmatprep.subr.bf16.mxu1 %v4816_v14  ;;  %3237 = vmatprep.mubr.bf16.mxu0 %v3736_v22  ;;  %v699_v27 = vld [vmem:[#allocation2 + $0x68] sm:$0xff]  ;;  %v3735_v29 = vld [vmem:[#allocation13 + $0x38] sm:$0xff]   ;;  %v4837_v30 = vld [vmem:[#allocation16 + $0x28] sm:$0xff]   ;;  %p4140_p8 = pnand %p4139_p10, %p5276_p1 }
 0x17e   : > { %3278 = vmatmul.mubr.msk.f32.gmra.mrb[4].mxu1 %vm1072_vm1, %v691_v11  ;;  %v701_v31 = vld [vmem:[#allocation2 + $0x78] sm:$0xff]  ;;  %v702_v32 = vld [vmem:[#allocation2 + $0x80] sm:$0xff]  ;;  %v3738_v33 = vld [vmem:[#allocation14] sm:$0xff]   ;;  %p4147_p12 = por %p4146_p3, %p4145_p0 }
 0x17f   : > { %3226 = vmatpush3.bf16.msra.mxu0 %v3727_v9  ;;  %3280 = vmatprep.mubr.msk.f32.mxu1 %vm1072_vm1, %v692_v12  ;;  %v3737_v34 = vld [vmem:[%s4774_s20 + $0x8] sm:$0xff]   ;;  %v703_v35 = vld [vmem:[#allocation2 + $0x88] sm:$0xff]  ;;  %v4845_v37 = vld [vmem:[#allocation16 + $0x30] sm:$0xff]   ;;  %p4141_p9 = pneg %p4140_p8 }
 0x180   : > { %3227 = vmatprep.subr.bf16.mxu0 %v3729_v13  ;;  %3473 = vmatpush3.bf16.msra.mxu1 %v4816_v14  ;;  %v704_v36 = vld [vmem:[#allocation2 + $0x90] sm:$0xff]  ;;  %v3740_v38 = vld [vmem:[%s4774_s20 + $0x10] sm:$0xff]   ;;  %v706_v41 = vld [vmem:[#allocation2 + $0xa0] sm:$0xff] }
 0x181   : > { %3466 = vmatprep.subr.bf16.mxu1 %v4822_v18  ;;  %v3742_v39 = vld [vmem:[#allocation14 + $0x8] sm:$0xff]   ;;  %v705_v40 = vld [vmem:[#allocation2 + $0x98] sm:$0xff]  ;;  %v3741_v43 = vld [vmem:[%s4774_s20 + $0x18] sm:$0xff]   ;;  %p4148_p2 = pnand %p4147_p12, %p4141_p9 }
 0x182   : > { %3281 = vmatmul.mubr.msk.f32.gmra.mrb[6].mxu1 %vm1072_vm1, %v693_v15  ;;  %v3746_v42 = vld [vmem:[#allocation14 + $0x10] sm:$0xff]   ;;  %v4853_v44 = vld [vmem:[#allocation16 + $0x38] sm:$0xff]   ;;  %v707_v45 = vld [vmem:[#allocation2 + $0xa8] sm:$0xff] }
 0x183   : > { %3228 = vmatpush3.bf16.msra.mxu0 %v3729_v13  ;;  %3283 = vmatprep.mubr.msk.f32.mxu1 %vm1072_vm1, %v694_v16  ;;  %v3744_v46 = vld [vmem:[%s4774_s20 + $0x20] sm:$0xff]   ;;  %v708_v47 = vld [vmem:[#allocation2 + $0xb0] sm:$0xff]  ;;  %v709_v48 = vld [vmem:[#allocation2 + $0xb8] sm:$0xff] }
 0x184   : > { %3229 = vmatprep.subr.bf16.mxu0 %v3730_v17  ;;  %3474 = vmatpush3.bf16.msra.mxu1 %v4822_v18  ;;  %v3750_v49 = vld [vmem:[#allocation14 + $0x18] sm:$0xff]   ;;  %v3757_v51 = vld [vmem:[#allocation17] sm:$0xff]   ;;  %v3745_v52 = vld [vmem:[%s4774_s20 + $0x28] sm:$0xff]  }
 0x185   : > { %3467 = vmatprep.subr.bf16.mxu1 %v4830_v26  ;;  %v710_v50 = vld [vmem:[#allocation2 + $0xc0] sm:$0xff]  ;;  %v3755_v53 = vld [vmem:[#allocation14 + $0x20] sm:$0xff]   ;;  %v3748_v55 = vld [vmem:[%s4774_s20 + $0x30] sm:$0xff]  }
 0x186   : > { %3284 = vmatmul.mubr.msk.f32.gmra.mrb[8].mxu1 %vm1072_vm1, %v695_v19  ;;  %v711_v54 = vld [vmem:[#allocation2 + $0xc8] sm:$0xff]  ;;  %v712_v56 = vld [vmem:[#allocation2 + $0xd0] sm:$0xff]  ;;  %v713_v58 = vld [vmem:[#allocation2 + $0xd8] sm:$0xff] }
 0x187   : > { %3230 = vmatpush3.bf16.msra.mxu0 %v3730_v17  ;;  %3286 = vmatprep.mubr.msk.f32.mxu1 %vm1072_vm1, %v696_v20  ;;  %v3761_v57 = vld [vmem:[#allocation14 + $0x28] sm:$0xff]   ;;  %v714_v59 = vld [vmem:[#allocation2 + $0xe0] sm:$0xff]  ;;  %v715_v61 = vld [vmem:[#allocation2 + $0xe8] sm:$0xff] }
 0x188   : > { %3231 = vmatprep.subr.bf16.mxu0 %v3732_v21  ;;  %3475 = vmatpush3.bf16.msra.mxu1 %v4830_v26  ;;  %v3749_v60 = vld [vmem:[%s4774_s20 + $0x38] sm:$0xff]   ;;  %v3768_v62 = vld [vmem:[#allocation14 + $0x30] sm:$0xff]   ;;  %v3752_v63 = vld [vmem:[%s4774_s20 + $0x40] sm:$0xff]  }
 0x189   : > { %3468 = vmatprep.subr.bf16.mxu1 %v4837_v30  ;;  %v716_v0 = vld [vmem:[#allocation2 + $0xf0] sm:$0xff]  ;;  %v717_v1 = vld [vmem:[#allocation2 + $0xf8] sm:$0xff]  ;;  %v3753_v2 = vld [vmem:[%s4782_s12 + $0x20] sm:$0xff]  }
 0x18a   : > { %3287 = vmatmul.mubr.msk.f32.gmra.mrb[10].mxu1 %vm1072_vm1, %v697_v23  ;;  %v3754_v3 = vld [vmem:[%s4774_s20 + $0x48] sm:$0xff]   ;;  %v3774_v5 = vld [vmem:[#allocation14 + $0x38] sm:$0xff]   ;;  %v3758_v7 = vld [vmem:[%s4774_s20 + $0x50] sm:$0xff]  }
 0x18b   : > { %3232 = vmatpush3.bf16.msra.mxu0 %v3732_v21  ;;  %3289 = vmatprep.mubr.msk.f32.mxu1 %vm1072_vm1, %v698_v24  ;;  %v3756_v6 = vld [vmem:[%s4782_s12 + $0x28] sm:$0xff]   ;;  %v3759_v8 = vld [vmem:[%s4782_s12 + $0x30] sm:$0xff]   ;;  %v3760_v11 = vld [vmem:[%s4774_s20 + $0x58] sm:$0xff]  }
 0x18c   : > { %3233 = vmatprep.subr.bf16.mxu0 %v3733_v25  ;;  %3476 = vmatpush3.bf16.msra.mxu1 %v4837_v30  ;;  %v3763_v9 = vld [vmem:[#allocation17 + $0x8] sm:$0xff]   ;;  %v3764_v12 = vld [vmem:[#allocation17 + $0x10] sm:$0xff]   ;;  %v3762_v13 = vld [vmem:[%s4782_s12 + $0x38] sm:$0xff]  }
 0x18d   : > { %3469 = vmatprep.subr.bf16.mxu1 %v4845_v37  ;;  %v3765_v15 = vld [vmem:[%s4774_s20 + $0x60] sm:$0xff]   ;;  %v3770_v17 = vld [vmem:[#allocation17 + $0x18] sm:$0xff]   ;;  %v3767_v19 = vld [vmem:[%s4774_s20 + $0x68] sm:$0xff]  }
 0x18e   : > { %3290 = vmatmul.mubr.msk.f32.gmra.mrb[12].mxu1 %vm1072_vm1, %v699_v27  ;;  %v3766_v16 = vld [vmem:[%s4782_s12 + $0x40] sm:$0xff]   ;;  %v3769_v20 = vld [vmem:[%s4782_s12 + $0x48] sm:$0xff]   ;;  %v3771_v22 = vld [vmem:[%s4774_s20 + $0x70] sm:$0xff]  }
 0x18f   : > { %3234 = vmatpush3.bf16.msra.mxu0 %v3733_v25  ;;  %3292 = vmatprep.mubr.msk.f32.mxu1 %vm1072_vm1, %v700_v28  ;;  %v3776_v21 = vld [vmem:[#allocation17 + $0x20] sm:$0xff]   ;;  %v3772_v23 = vld [vmem:[%s4782_s12 + $0x50] sm:$0xff]   ;;  %v3781_v24 = vld [vmem:[#allocation17 + $0x28] sm:$0xff]  }
 0x190   : > { %3235 = vmatprep.subr.bf16.mxu0 %v3735_v29  ;;  %3477 = vmatpush3.bf16.msra.mxu1 %v4845_v37  ;;  %v3773_v25 = vld [vmem:[%s4774_s20 + $0x78] sm:$0xff]   ;;  %v3782_v28 = vld [vmem:[#allocation17 + $0x30] sm:$0xff]  }
 0x191   : > { %3470 = vmatprep.subr.bf16.mxu1 %v4853_v44  ;;  %v3775_v27 = vld [vmem:[%s4782_s12 + $0x58] sm:$0xff]  }
 0x192   : > { %3293 = vmatmul.mubr.msk.f32.gmra.mrb[14].mxu1 %vm1072_vm1, %v701_v31  ;;  %v3778_v31 = vld [vmem:[%s4782_s12 + $0x60] sm:$0xff]  }
 0x193   : > { %3236 = vmatpush3.bf16.msra.mxu0 %v3735_v29  ;;  %3295 = vmatprep.mubr.msk.f32.mxu1 %vm1072_vm1, %v702_v32  ;;  %v3777_v29 = vld [vmem:[%s4776_s3] sm:$0xff]   ;;  %v3787_v32 = vld [vmem:[#allocation17 + $0x38] sm:$0xff]  }
 0x194   : > { %3319 = vmatprep.subr.bf16.mxu0 %v3738_v33  ;;  %3478 = vmatpush3.bf16.msra.mxu1 %v4853_v44 }
 0x195   : > { %3415 = vmatprep.subr.bf16.mxu1 %v3757_v51 }
 0x196   : > { %3238 = vmatmul.mubr.bf16.vlgmr.msra.gmra.mrb[0].mxu0 %v3737_v34  ;;  %3296 = vmatmul.mubr.msk.f32.gmra.mrb[16].mxu1 %vm1072_vm1, %v703_v35  ;;  %v3780_v34 = vld [vmem:[%s4782_s12 + $0x68] sm:$0xff]   ;;  %v3783_v35 = vld [vmem:[%s4776_s3 + $0x10] sm:$0xff]  }
 0x197   : > { %3320 = vmatpush3.bf16.msra.mxu0 %v3738_v33  ;;  %3298 = vmatprep.mubr.msk.f32.mxu1 %vm1072_vm1, %v704_v36  ;;  %v3779_v33 = vld [vmem:[%s4776_s3 + $0x8] sm:$0xff]   ;;  %v3784_v36 = vld [vmem:[%s4782_s12 + $0x70] sm:$0xff]  }
 0x198   : > { %3241 = vmatprep.mubr.bf16.mxu0 %v3740_v38  ;;  %3321 = vmatprep.subr.bf16.mxu0 %v3742_v39  ;;  %v3785_v38 = vld [vmem:[%s4776_s3 + $0x18] sm:$0xff]  }
 0x19a   : > { %3299 = vmatmul.mubr.msk.f32.gmra.mrb[18].mxu1 %vm1072_vm1, %v705_v40  ;;  %v3788_v40 = vld [vmem:[%s4776_s3 + $0x20] sm:$0xff]  }
 0x19b   : > { %3301 = vmatprep.mubr.msk.f32.mxu1 %vm1072_vm1, %v706_v41  ;;  %3322 = vmatpush3.bf16.msra.mxu0 %v3742_v39  ;;  %v3786_v39 = vld [vmem:[%s4782_s12 + $0x78] sm:$0xff]   ;;  %v3789_v41 = vld [vmem:[%s4784_s16] sm:$0xff]  }
 0x19c   : > { %3323 = vmatprep.subr.bf16.mxu0 %v3746_v42 }
 0x19e   : > { %3242 = vmatmul.mubr.bf16.gmra.mrb[4].mxu0 %v3741_v43  ;;  %3302 = vmatmul.mubr.msk.f32.gmra.mrb[20].mxu1 %vm1072_vm1, %v707_v45  ;;  %v3792_v43 = vld [vmem:[%s4776_s3 + $0x30] sm:$0xff]  }
 0x19f   : > { %3304 = vmatprep.mubr.msk.f32.mxu1 %vm1072_vm1, %v708_v47  ;;  %3245 = vmatprep.mubr.bf16.mxu0 %v3744_v46  ;;  %v3793_v45 = vld [vmem:[%s4784_s16 + $0x10] sm:$0xff]   ;;  %v3796_v46 = vld [vmem:[%s4776_s3 + $0x40] sm:$0xff]  }
 0x1a0   : > { %3324 = vmatpush3.bf16.msra.mxu0 %v3746_v42  ;;  %v3791_v42 = vld [vmem:[%s4784_s16 + $0x8] sm:$0xff]   ;;  %v3797_v47 = vld [vmem:[%s4784_s16 + $0x20] sm:$0xff]  }
 0x1a1   : > { %3325 = vmatprep.subr.bf16.mxu0 %v3750_v49 }
 0x1a2   : > { %3305 = vmatmul.mubr.msk.f32.gmra.mrb[22].mxu1 %vm1072_vm1, %v709_v48  ;;  %v3800_v48 = vld [vmem:[%s4776_s3 + $0x50] sm:$0xff]  }
 0x1a3   : > { %3307 = vmatprep.mubr.msk.f32.mxu1 %vm1072_vm1, %v710_v50  ;;  %v3803_v50 = vld [vmem:[%s4784_s16 + $0x38] sm:$0xff]  }
 0x1a4   : > { %3326 = vmatpush3.bf16.msra.mxu0 %v3750_v49  ;;  %v3802_v49 = vld [vmem:[%s4776_s3 + $0x58] sm:$0xff]  }
 0x1a5   : > { %3327 = vmatprep.subr.bf16.mxu0 %v3755_v53 }
 0x1a6   : > { %3246 = vmatmul.mubr.bf16.gmra.mrb[8].mxu0 %v3745_v52  ;;  %3308 = vmatmul.mubr.msk.f32.gmra.mrb[24].mxu1 %vm1072_vm1, %v711_v54  ;;  %v3806_v52 = vld [vmem:[%s4776_s3 + $0x68] sm:$0xff]   ;;  %v3809_v54 = vld [vmem:[%s4784_s16 + $0x50] sm:$0xff]  }
 0x1a7   : > { %3310 = vmatprep.mubr.msk.f32.mxu1 %vm1072_vm1, %v712_v56  ;;  %3249 = vmatprep.mubr.bf16.mxu0 %v3748_v55  ;;  %v3810_v55 = vld [vmem:[%s4776_s3 + $0x78] sm:$0xff]  }
 0x1a8   : > { %3328 = vmatpush3.bf16.msra.mxu0 %v3755_v53  ;;  %v3808_v53 = vld [vmem:[%s4776_s3 + $0x70] sm:$0xff]   ;;  %v3811_v56 = vld [vmem:[%s4784_s16 + $0x58] sm:$0xff]  }
 0x1a9   : > { %3329 = vmatprep.subr.bf16.mxu0 %v3761_v57 }
 0x1aa   : > { %3311 = vmatmul.mubr.msk.f32.gmra.mrb[26].mxu1 %vm1072_vm1, %v713_v58  ;;  %v3813_v58 = vld [vmem:[%s4784_s16 + $0x60] sm:$0xff]  }
 0x1ab   : > { %3313 = vmatprep.mubr.msk.f32.mxu1 %vm1072_vm1, %v714_v59  ;;  %v3814_v59 = vld [vmem:[%s4782_s12 + $0x8] sm:$0xff]  }
 0x1ac   : > { %3330 = vmatpush3.bf16.msra.mxu0 %v3761_v57  ;;  %v3812_v57 = vld [vmem:[%s4782_s12] sm:$0xff]  }
 0x1ad   : > { %3331 = vmatprep.subr.bf16.mxu0 %v3768_v62 }
 0x1ae   : > { %3250 = vmatmul.mubr.bf16.gmra.mrb[12].mxu0 %v3749_v60  ;;  %3314 = vmatmul.mubr.msk.f32.gmra.mrb[28].mxu1 %vm1072_vm1, %v715_v61  ;;  %v3815_v60 = vld [vmem:[%s4784_s16 + $0x68] sm:$0xff]   ;;  %v3816_v61 = vld [vmem:[%s4782_s12 + $0x10] sm:$0xff]  }
 0x1af   : > { %3316 = vmatprep.mubr.msk.f32.mxu1 %vm1072_vm1, %v716_v0  ;;  %3253 = vmatprep.mubr.bf16.mxu0 %v3752_v63  ;;  %v3818_v63 = vld [vmem:[%s4782_s12 + $0x18] sm:$0xff]  }
 0x1b0   : > { %3332 = vmatpush3.bf16.msra.mxu0 %v3768_v62  ;;  %v3817_v62 = vld [vmem:[%s4784_s16 + $0x70] sm:$0xff]   ;;  %v3819_v0 = vld [vmem:[%s4784_s16 + $0x78] sm:$0xff]  }
 0x1b1   : > { %3333 = vmatprep.subr.bf16.mxu0 %v3774_v5 }
 0x1b2   : > { %3317 = vmatmul.mubr.msk.f32.gmra.mrb[30].mxu1 %vm1072_vm1, %v717_v1 }
 0x1b3   : > { %3391 = vmatprep.mubr.bf16.mxu1 %v3753_v2 }
 0x1b4   : > { %3334 = vmatpush3.bf16.msra.mxu0 %v3774_v5 }
 0x1b5   : > { %3367 = vmatprep.subr.bf16.mxu0 %v4803_v4 }
 0x1b6   : > { %3254 = vmatmul.mubr.bf16.gmra.mrb[16].mxu0 %v3754_v3  ;;  %3392 = vmatmul.mubr.bf16.vlgmr.msra.gmra.mrb[32].mxu1 %v3756_v6 }
 0x1b7   : > { %3416 = vmatpush3.bf16.msra.mxu1 %v3757_v51  ;;  %3257 = vmatprep.mubr.bf16.mxu0 %v3758_v7  ;;  %v3805_v51 = vld [vmem:[%s4784_s16 + $0x40] sm:$0xff]  }
 0x1b8   : > { %3395 = vmatprep.mubr.bf16.mxu1 %v3759_v8  ;;  %3417 = vmatprep.subr.bf16.mxu1 %v3763_v9 }
 0x1bb   : > { %3418 = vmatpush3.bf16.msra.mxu1 %v3763_v9 }
 0x1bc   : > { %3419 = vmatprep.subr.bf16.mxu1 %v3764_v12 }
 0x1be   : > { %3258 = vmatmul.mubr.bf16.gmra.mrb[20].mxu0 %v3760_v11  ;;  %3396 = vmatmul.mubr.bf16.gmra.mrb[36].mxu1 %v3762_v13 }
 0x1bf   : > { %3261 = vmatprep.mubr.bf16.mxu0 %v3765_v15  ;;  %3399 = vmatprep.mubr.bf16.mxu1 %v3766_v16 }
 0x1c0   : > { %3420 = vmatpush3.bf16.msra.mxu1 %v3764_v12 }
 0x1c1   : > { %3421 = vmatprep.subr.bf16.mxu1 %v3770_v17 }
 0x1c4   : > { %3422 = vmatpush3.bf16.msra.mxu1 %v3770_v17 }
 0x1c5   : > { %3423 = vmatprep.subr.bf16.mxu1 %v3776_v21 }
 0x1c6   : > { %3262 = vmatmul.mubr.bf16.gmra.mrb[24].mxu0 %v3767_v19  ;;  %3400 = vmatmul.mubr.bf16.gmra.mrb[40].mxu1 %v3769_v20 }
 0x1c7   : > { %3265 = vmatprep.mubr.bf16.mxu0 %v3771_v22  ;;  %3403 = vmatprep.mubr.bf16.mxu1 %v3772_v23 }
 0x1c8   : > { %3424 = vmatpush3.bf16.msra.mxu1 %v3776_v21 }
 0x1c9   : > { %3425 = vmatprep.subr.bf16.mxu1 %v3781_v24 }
 0x1cc   : > { %3426 = vmatpush3.bf16.msra.mxu1 %v3781_v24 }
 0x1cd   : > { %3427 = vmatprep.subr.bf16.mxu1 %v3782_v28 }
 0x1ce   : > { %3266 = vmatmul.mubr.bf16.gmra.mrb[28].mxu0 %v3773_v25  ;;  %3404 = vmatmul.mubr.bf16.gmra.mrb[44].mxu1 %v3775_v27 }
 0x1cf   : > { %3335 = vmatprep.mubr.bf16.mxu0 %v3777_v29  ;;  %3407 = vmatprep.mubr.bf16.mxu1 %v3778_v31 }
 0x1d0   : > { %3428 = vmatpush3.bf16.msra.mxu1 %v3782_v28 }
 0x1d1   : > { %3429 = vmatprep.subr.bf16.mxu1 %v3787_v32 }
 0x1d4   : > { %3430 = vmatpush3.bf16.msra.mxu1 %v3787_v32 }
 0x1d6   : > { %3336 = vmatmul.mubr.bf16.vlgmr.msra.gmra.mrb[32].mxu0 %v3779_v33  ;;  %3408 = vmatmul.mubr.bf16.gmra.mrb[48].mxu1 %v3780_v34 }
 0x1d7   : > { %3368 = vmatpush3.bf16.msra.mxu0 %v4803_v4  ;;  %3339 = vmatprep.mubr.bf16.mxu0 %v3783_v35  ;;  %v3790_v4 = vld [vmem:[%s4776_s3 + $0x28] sm:$0xff]  }
 0x1d8   : > { %3411 = vmatprep.mubr.bf16.mxu1 %v3784_v36  ;;  %3369 = vmatprep.subr.bf16.mxu0 %v4810_v10 }
 0x1db   : > { %3370 = vmatpush3.bf16.msra.mxu0 %v4810_v10  ;;  %v3794_v10 = vld [vmem:[%s4776_s3 + $0x38] sm:$0xff]  }
 0x1dc   : > { %3371 = vmatprep.subr.bf16.mxu0 %v4816_v14 }
 0x1de   : > { %3340 = vmatmul.mubr.bf16.gmra.mrb[36].mxu0 %v3785_v38  ;;  %3412 = vmatmul.mubr.bf16.gmra.mrb[52].mxu1 %v3786_v39 }
 0x1df   : > { %3343 = vmatprep.mubr.bf16.mxu0 %v3788_v40  ;;  %3431 = vmatprep.mubr.bf16.mxu1 %v3789_v41 }
 0x1e0   : > { %3372 = vmatpush3.bf16.msra.mxu0 %v4816_v14  ;;  %v3795_v14 = vld [vmem:[%s4784_s16 + $0x18] sm:$0xff]  }
 0x1e1   : > { %3373 = vmatprep.subr.bf16.mxu0 %v4822_v18 }
 0x1e4   : > { %3374 = vmatpush3.bf16.msra.mxu0 %v4822_v18  ;;  %v3798_v18 = vld [vmem:[%s4776_s3 + $0x48] sm:$0xff]  }
 0x1e5   : > { %3375 = vmatprep.subr.bf16.mxu0 %v4830_v26 }
 0x1e6   : > { %3344 = vmatmul.mubr.bf16.gmra.mrb[40].mxu0 %v3790_v4  ;;  %3432 = vmatmul.mubr.bf16.vlgmr.msra.gmra.mrb[56].mxu1 %v3791_v42 }
 0x1e7   : > { %3347 = vmatprep.mubr.bf16.mxu0 %v3792_v43  ;;  %3435 = vmatprep.mubr.bf16.mxu1 %v3793_v45 }
 0x1e8   : > { %3376 = vmatpush3.bf16.msra.mxu0 %v4830_v26  ;;  %v3799_v26 = vld [vmem:[%s4784_s16 + $0x28] sm:$0xff]  }
 0x1e9   : > { %3377 = vmatprep.subr.bf16.mxu0 %v4837_v30 }
 0x1ec   : > { %3378 = vmatpush3.bf16.msra.mxu0 %v4837_v30  ;;  %v3801_v30 = vld [vmem:[%s4784_s16 + $0x30] sm:$0xff]  }
 0x1ed   : > { %3379 = vmatprep.subr.bf16.mxu0 %v4845_v37 }
 0x1ee   : > { %3348 = vmatmul.mubr.bf16.gmra.mrb[44].mxu0 %v3794_v10  ;;  %3436 = vmatmul.mubr.bf16.gmra.mrb[60].mxu1 %v3795_v14 }
 0x1ef   : > { %3351 = vmatprep.mubr.bf16.mxu0 %v3796_v46  ;;  %3439 = vmatprep.mubr.bf16.mxu1 %v3797_v47 }
 0x1f0   : > { %3380 = vmatpush3.bf16.msra.mxu0 %v4845_v37  ;;  %v3804_v37 = vld [vmem:[%s4776_s3 + $0x60] sm:$0xff]  }
 0x1f1   : > { %3381 = vmatprep.subr.bf16.mxu0 %v4853_v44 }
 0x1f4   : > { %3382 = vmatpush3.bf16.msra.mxu0 %v4853_v44  ;;  %v3807_v44 = vld [vmem:[%s4784_s16 + $0x48] sm:$0xff]  }
 0x1f6   : > { %3352 = vmatmul.mubr.bf16.gmra.mrb[48].mxu0 %v3798_v18  ;;  %3440 = vmatmul.mubr.bf16.gmra.mrb[32].mxu1 %v3799_v26 }
 0x1f7   : > { %3355 = vmatprep.mubr.bf16.mxu0 %v3800_v48  ;;  %3443 = vmatprep.mubr.bf16.mxu1 %v3801_v30 }
 0x1fe   : > { %3356 = vmatmul.mubr.bf16.gmra.mrb[52].mxu0 %v3802_v49  ;;  %3444 = vmatmul.mubr.bf16.gmra.mrb[36].mxu1 %v3803_v50 }
 0x1ff   : > { %3359 = vmatprep.mubr.bf16.mxu0 %v3804_v37  ;;  %3447 = vmatprep.mubr.bf16.mxu1 %v3805_v51 }
 0x206   : > { %3360 = vmatmul.mubr.bf16.gmra.mrb[56].mxu0 %v3806_v52  ;;  %3448 = vmatmul.mubr.bf16.gmra.mrb[40].mxu1 %v3807_v44 }
 0x207   : > { %3363 = vmatprep.mubr.bf16.mxu0 %v3808_v53  ;;  %3451 = vmatprep.mubr.bf16.mxu1 %v3809_v54 }
 0x20e   : > { %3364 = vmatmul.mubr.bf16.gmra.mrb[60].mxu0 %v3810_v55  ;;  %3452 = vmatmul.mubr.bf16.gmra.mrb[44].mxu1 %v3811_v56 }
 0x20f   : > { %3383 = vmatprep.mubr.bf16.mxu0 %v3812_v57  ;;  %3455 = vmatprep.mubr.bf16.mxu1 %v3813_v58 }
 0x216   : > { %3384 = vmatmul.mubr.bf16.vlgmr.msra.gmra.mrb[32].mxu0 %v3814_v59  ;;  %3456 = vmatmul.mubr.bf16.gmra.mrb[48].mxu1 %v3815_v60 }
 0x217   : > { %3387 = vmatprep.mubr.bf16.mxu0 %v3816_v61  ;;  %3459 = vmatprep.mubr.bf16.mxu1 %v3817_v62 }
 0x21e   : > { %3388 = vmatmul.mubr.bf16.gmra.mrb[36].mxu0 %v3818_v63  ;;  %3460 = vmatmul.mubr.bf16.gmra.mrb[52].mxu1 %v3819_v0 }
 0x249   : > { %v3273_v1 = vpop.f32.mrb[0].mxu1 }
 0x24a   : > { %v1239_v2 = vpop.f32.mrb[1].mxu1 }
 0x24d   : > { %v3276_v3 = vpop.f32.mrb[2].mxu1 }
 0x24e   : > { %v1249_v5 = vpop.f32.mrb[3].mxu1 }
 0x251   : > { %v3279_v6 = vpop.f32.mrb[4].mxu1 }
 0x252   : > { %v1259_v7 = vpop.f32.mrb[5].mxu1 }
 0x255   : > { %v3282_v8 = vpop.f32.mrb[6].mxu1 }
 0x256   : > { %v1269_v9 = vpop.f32.mrb[7].mxu1 }
 0x259   : > { %v3285_v11 = vpop.f32.mrb[8].mxu1 }
 0x25a   : > { %v1279_v12 = vpop.f32.mrb[9].mxu1 }
 0x25d   : > { %v3288_v13 = vpop.f32.mrb[10].mxu1 }
 0x25e   : > { %v1289_v15 = vpop.f32.mrb[11].mxu1 }
 0x261   : > { %v3291_v16 = vpop.f32.mrb[12].mxu1 }
 0x262   : > { %v1299_v17 = vpop.f32.mrb[13].mxu1 }
 0x265   : > { %v3294_v19 = vpop.f32.mrb[14].mxu1 }
 0x266   : > { %v1309_v20 = vpop.f32.mrb[15].mxu1 }
 0x269   : > { %v3239_v21 = vpop.f32.mrb[0].mxu0  ;;  %v3297_v22 = vpop.f32.mrb[16].mxu1 }
 0x26a   : > { %v4946_v23 = vadd.f32 %v3239_v21, %v1249_v5  ;;  %v945_v24 = vpop.f32.mrb[1].mxu0  ;;  %v1319_v25 = vpop.f32.mrb[17].mxu1 }
 0x26b   : > { %v4948_v27 = vadd.f32 %v1239_v2, %v945_v24  ;;  %v3240_v28 = vpop.f32.mrb[2].mxu0 }
 0x26c   : > { %v4950_v29 = vadd.f32 %v3276_v3, %v3240_v28  ;;  %v948_v31 = vpop.f32.mrb[3].mxu0 }
 0x26d   : > { %v4952_v32 = vadd.f32 %v3273_v1, %v948_v31  ;;  %v3300_v33 = vpop.f32.mrb[18].mxu1 }
 0x26e   : > { %v1329_v34 = vpop.f32.mrb[19].mxu1 }
 0x271   : > { %v3243_v35 = vpop.f32.mrb[4].mxu0  ;;  %v3303_v36 = vpop.f32.mrb[20].mxu1 }
 0x272   : > { %v4954_v38 = vadd.f32 %v3243_v35, %v1269_v9  ;;  %v961_v39 = vpop.f32.mrb[5].mxu0  ;;  %v1339_v40 = vpop.f32.mrb[21].mxu1 }
 0x273   : > { %v4956_v41 = vadd.f32 %v1259_v7, %v961_v39  ;;  %v3244_v4 = vpop.f32.mrb[6].mxu0 }
 0x274   : > { %v4958_v42 = vadd.f32 %v3282_v8, %v3244_v4  ;;  %v964_v43 = vpop.f32.mrb[7].mxu0 }
 0x275   : > { %v4960_v45 = vadd.f32 %v3279_v6, %v964_v43  ;;  %v3306_v10 = vpop.f32.mrb[22].mxu1 }
 0x276   : > { %v1349_v14 = vpop.f32.mrb[23].mxu1 }
 0x279   : > { %v3247_v46 = vpop.f32.mrb[8].mxu0  ;;  %v3309_v47 = vpop.f32.mrb[24].mxu1 }
 0x27a   : > { %v1290_v18 = vadd.f32 %v3247_v46, %v1289_v15  ;;  %v977_v26 = vpop.f32.mrb[9].mxu0  ;;  %v1359_v48 = vpop.f32.mrb[25].mxu1 }
 0x27b   : > { %v1280_v30 = vadd.f32 %v1279_v12, %v977_v26  ;;  %v3248_v49 = vpop.f32.mrb[10].mxu0 }
 0x27c   : > { %v1295_v50 = vadd.f32 %v3288_v13, %v3248_v49  ;;  %v980_v37 = vpop.f32.mrb[11].mxu0 }
 0x27d   : > { %v1285_v51 = vadd.f32 %v3285_v11, %v980_v37  ;;  %v3312_v52 = vpop.f32.mrb[26].mxu1 }
 0x27e   : > { %v1369_v44 = vpop.f32.mrb[27].mxu1 }
 0x281   : > { %v3251_v53 = vpop.f32.mrb[12].mxu0  ;;  %v3315_v54 = vpop.f32.mrb[28].mxu1 }
 0x282   : > { %v1310_v55 = vadd.f32 %v3251_v53, %v1309_v20  ;;  %v993_v56 = vpop.f32.mrb[13].mxu0  ;;  %v1379_v57 = vpop.f32.mrb[29].mxu1 }
 0x283   : > { %v1300_v58 = vadd.f32 %v1299_v17, %v993_v56  ;;  %v3252_v59 = vpop.f32.mrb[14].mxu0 }
 0x284   : > { %v1315_v60 = vadd.f32 %v3294_v19, %v3252_v59  ;;  %v996_v61 = vpop.f32.mrb[15].mxu0 }
 0x285   : > { %v1305_v62 = vadd.f32 %v3291_v16, %v996_v61  ;;  %v3318_v63 = vpop.f32.mrb[30].mxu1 }
 0x286   : > { %v1389_v0 = vpop.f32.mrb[31].mxu1 }
 0x289   : > { %v3255_v1 = vpop.f32.mrb[16].mxu0 }
 0x28a   : > { %v1330_v2 = vadd.f32 %v3255_v1, %v1329_v34  ;;  %v1009_v3 = vpop.f32.mrb[17].mxu0 }
 0x28b   : > { %v1320_v5 = vadd.f32 %v1319_v25, %v1009_v3  ;;  %v3256_v6 = vpop.f32.mrb[18].mxu0 }
 0x28c   : > { %v4962_v7 = vadd.f32 %v3300_v33, %v3256_v6  ;;  %v1012_v8 = vpop.f32.mrb[19].mxu0 }
 0x28d   : > { %v4964_v9 = vadd.f32 %v3297_v22, %v1012_v8 }
 0x291   : > { %v3259_v11 = vpop.f32.mrb[20].mxu0 }
 0x292   : > { %v4966_v12 = vadd.f32 %v3259_v11, %v1349_v14  ;;  %v1025_v13 = vpop.f32.mrb[21].mxu0 }
 0x293   : > { %v4968_v15 = vadd.f32 %v1339_v40, %v1025_v13  ;;  %v3260_v17 = vpop.f32.mrb[22].mxu0 }
 0x294   : > { %v4970_v16 = vadd.f32 %v3306_v10, %v3260_v17  ;;  %v1028_v19 = vpop.f32.mrb[23].mxu0 }
 0x295   : > { %v4972_v20 = vadd.f32 %v3303_v36, %v1028_v19 }
 0x299   : > { %v3263_v21 = vpop.f32.mrb[24].mxu0 }
 0x29a   : > { %v4974_v24 = vadd.f32 %v3263_v21, %v1369_v44  ;;  %v1041_v25 = vpop.f32.mrb[25].mxu0 }
 0x29b   : > { %v4976_v28 = vadd.f32 %v1359_v48, %v1041_v25  ;;  %v3264_v22 = vpop.f32.mrb[26].mxu0 }
 0x29c   : > { %v4978_v31 = vadd.f32 %v3312_v52, %v3264_v22  ;;  %v1044_v33 = vpop.f32.mrb[27].mxu0 }
 0x29d   : > { %v4980_v34 = vadd.f32 %v3309_v47, %v1044_v33 }
 0x2a1   : > { %v3267_v35 = vpop.f32.mrb[28].mxu0 }
 0x2a2   : > { %v4982_v39 = vadd.f32 %v3267_v35, %v1389_v0  ;;  %v1057_v40 = vpop.f32.mrb[29].mxu0 }
 0x2a3   : > { %v4984_v4 = vadd.f32 %v1379_v57, %v1057_v40  ;;  %v3268_v36 = vpop.f32.mrb[30].mxu0 }
 0x2a4   : > { %v4986_v43 = vadd.f32 %v3318_v63, %v3268_v36  ;;  %v1060_v10 = vpop.f32.mrb[31].mxu0 }
 0x2a5   : > { %v4988_v14 = vadd.f32 %v3315_v54, %v1060_v10 }
 0x2b9   : > { %v3345_v46 = vpop.f32.mrb[40].mxu0  ;;  %v4990_v26 = vpop.f32.mrb[56].mxu1 }
 0x2ba   : > { %v1761_v48 = vadd.f32 %v3345_v46, %v1290_v18  ;;  %v1656_v49 = vpop.f32.mrb[41].mxu0  ;;  %v4992_v37 = vpop.f32.mrb[57].mxu1 }
 0x2bb   : > { %v1759_v47 = vadd.f32 %v1656_v49, %v1280_v30  ;;  %v3346_v52 = vpop.f32.mrb[42].mxu0  ;;  %v4994_v44 = vpop.f32.mrb[58].mxu1 }
 0x2bc   : > { %v1762_v53 = vadd.f32 %v3346_v52, %v1295_v50  ;;  %v1659_v56 = vpop.f32.mrb[43].mxu0  ;;  %v4996_v57 = vpop.f32.mrb[59].mxu1 }
 0x2bd   : > { %v1760_v59 = vadd.f32 %v1659_v56, %v1285_v51  ;;  %v5006_v51 = vld [vmem:[#allocation19] ss:$0 sm:$0xff] }
 0x2c1   : > { %v3349_v61 = vpop.f32.mrb[44].mxu0  ;;  %v4998_v54 = vpop.f32.mrb[60].mxu1 }
 0x2c2   : > { %v1765_v63 = vadd.f32 %v3349_v61, %v1310_v55  ;;  %v1672_v0 = vpop.f32.mrb[45].mxu0  ;;  %v5000_v1 = vpop.f32.mrb[61].mxu1 }
 0x2c3   : > { %v1763_v18 = vadd.f32 %v1672_v0, %v1300_v58  ;;  %v3350_v3 = vpop.f32.mrb[46].mxu0  ;;  %v5002_v6 = vpop.f32.mrb[62].mxu1 }
 0x2c4   : > { %v1766_v30 = vadd.f32 %v3350_v3, %v1315_v60  ;;  %v1675_v8 = vpop.f32.mrb[47].mxu0  ;;  %v5004_v11 = vpop.f32.mrb[63].mxu1 }
 0x2c5   : > { %v1764_v50 = vadd.f32 %v1675_v8, %v1305_v62 }
 0x2c9   : > { %v3353_v13 = vpop.f32.mrb[48].mxu0  ;;  %v3441_v17 = vpop.f32.mrb[32].mxu1 }
 0x2ca   : > { %v1769_v19 = vadd.f32 %v3353_v13, %v1330_v2  ;;  %v3496_v21 = vadd.f32 %v3441_v17, %v1761_v48  ;;  %v1688_v55 = vpop.f32.mrb[49].mxu0  ;;  %v2426_v25 = vpop.f32.mrb[33].mxu1 }
 0x2cb   : > { %v1767_v22 = vadd.f32 %v1688_v55, %v1320_v5  ;;  %v3498_v33 = vadd.f32 %v2426_v25, %v1759_v47  ;;  %v3354_v58 = vpop.f32.mrb[50].mxu0  ;;  %v3442_v35 = vpop.f32.mrb[34].mxu1 }
 0x2cc   : > { %v2570_v40 = vadd.f32 %v3496_v21, %v5006_v51  ;;  %v1770_v60 = vadd.f32 %v3354_v58, %v4962_v7  ;;  %v3500_v36 = vadd.f32 %v3442_v35, %v1762_v53  ;;  %v1691_v10 = vpop.f32.mrb[51].mxu0  ;;  %v2429_v62 = vpop.f32.mrb[35].mxu1 }
 0x2cd   : > { %v2568_v46 = vadd.f32 %v3498_v33, %v5006_v51  ;;  %v1768_v49 = vadd.f32 %v1691_v10, %v4964_v9  ;;  %v3502_v2 = vadd.f32 %v2429_v62, %v1760_v59 }
 0x2ce   : > { %v2602_v52 = vmax.f32 %v2570_v40, 0.0  ;;  %v2571_v48 = vadd.f32 %v3500_v36, %v5006_v51 }
 0x2cf   : > { %v2600_v56 = vmax.f32 %v2568_v46, 0.0  ;;  %v2569_v5 = vadd.f32 %v3502_v2, %v5006_v51 }
 0x2d0   : > { %2634 = vst [vmem:[%s5015_s1 + $0x50] sm:$0xff] %v2602_v52  ;;  %v2603_v7 = vmax.f32 %v2571_v48, 0.0 }
 0x2d1   : > { %2632 = vst [vmem:[%s5015_s1 + $0x40] sm:$0xff] %v2600_v56  ;;  %v2601_v47 = vmax.f32 %v2569_v5, 0.0  ;;  %v3357_v53 = vpop.f32.mrb[52].mxu0  ;;  %v3445_v61 = vpop.f32.mrb[36].mxu1 }
 0x2d2   : > { %2635 = vst [vmem:[%s5015_s1 + $0x58] sm:$0xff] %v2603_v7  ;;  %v1773_v9 = vadd.f32 %v3357_v53, %v4966_v12  ;;  %v3504_v59 = vadd.f32 %v3445_v61, %v1765_v63  ;;  %v1704_v0 = vpop.f32.mrb[53].mxu0  ;;  %v2442_v3 = vpop.f32.mrb[37].mxu1 }
 0x2d3   : > { %2633 = vst [vmem:[%s5015_s1 + $0x48] sm:$0xff] %v2601_v47  ;;  %v1771_v8 = vadd.f32 %v1704_v0, %v4968_v15  ;;  %v3506_v13 = vadd.f32 %v2442_v3, %v1763_v18  ;;  %v3358_v17 = vpop.f32.mrb[54].mxu0  ;;  %v3446_v21 = vpop.f32.mrb[38].mxu1 }
 0x2d4   : > { %v2574_v55 = vadd.f32 %v3504_v59, %v5006_v51  ;;  %v1774_v25 = vadd.f32 %v3358_v17, %v4970_v16  ;;  %v3508_v33 = vadd.f32 %v3446_v21, %v1766_v30  ;;  %v1707_v58 = vpop.f32.mrb[55].mxu0  ;;  %v2445_v35 = vpop.f32.mrb[39].mxu1 }
 0x2d5   : > { %v2572_v12 = vadd.f32 %v3506_v13, %v5006_v51  ;;  %v1772_v63 = vadd.f32 %v1707_v58, %v4972_v20  ;;  %v3510_v40 = vadd.f32 %v2445_v35, %v1764_v50 }
 0x2d6   : > { %v2606_v15 = vmax.f32 %v2574_v55, 0.0  ;;  %v2575_v18 = vadd.f32 %v3508_v33, %v5006_v51 }
 0x2d7   : > { %v2604_v36 = vmax.f32 %v2572_v12, 0.0  ;;  %v2573_v10 = vadd.f32 %v3510_v40, %v5006_v51 }
 0x2d8   : > { %2638 = vst [vmem:[%s5015_s1 + $0x70] sm:$0xff] %v2606_v15  ;;  %v2607_v62 = vmax.f32 %v2575_v18, 0.0 }
 0x2d9   : > { %2636 = vst [vmem:[%s5015_s1 + $0x60] sm:$0xff] %v2604_v36  ;;  %v2605_v16 = vmax.f32 %v2573_v10, 0.0  ;;  %v3361_v30 = vpop.f32.mrb[56].mxu0  ;;  %v3449_v46 = vpop.f32.mrb[40].mxu1 }
 0x2da   : > { %2639 = vst [vmem:[%s5015_s1 + $0x78] sm:$0xff] %v2607_v62  ;;  %v1777_v2 = vadd.f32 %v3361_v30, %v4974_v24  ;;  %v3512_v52 = vadd.f32 %v3449_v46, %v1769_v19  ;;  %v1720_v48 = vpop.f32.mrb[57].mxu0  ;;  %v2458_v20 = vpop.f32.mrb[41].mxu1 }
 0x2db   : > { %2637 = vst [vmem:[%s5015_s1 + $0x68] sm:$0xff] %v2605_v16  ;;  %v1775_v50 = vadd.f32 %v1720_v48, %v4976_v28  ;;  %v3514_v56 = vadd.f32 %v2458_v20, %v1767_v22  ;;  %v3362_v5 = vpop.f32.mrb[58].mxu0  ;;  %v3450_v7 = vpop.f32.mrb[42].mxu1 }
 0x2dc   : > { %v2578_v47 = vadd.f32 %v3512_v52, %v5006_v51  ;;  %v1778_v53 = vadd.f32 %v3362_v5, %v4978_v31  ;;  %v3516_v61 = vadd.f32 %v3450_v7, %v1770_v60  ;;  %v1723_v59 = vpop.f32.mrb[59].mxu0  ;;  %v2461_v0 = vpop.f32.mrb[43].mxu1 }
 0x2dd   : > { %v2576_v24 = vadd.f32 %v3514_v56, %v5006_v51  ;;  %v1776_v19 = vadd.f32 %v1723_v59, %v4980_v34  ;;  %v3518_v3 = vadd.f32 %v2461_v0, %v1768_v49 }
 0x2de   : > { %v2610_v28 = vmax.f32 %v2578_v47, 0.0  ;;  %v2579_v22 = vadd.f32 %v3516_v61, %v5006_v51 }
 0x2df   : > { %v2608_v13 = vmax.f32 %v2576_v24, 0.0  ;;  %v2577_v17 = vadd.f32 %v3518_v3, %v5006_v51 }
 0x2e0   : > { %2642 = vst [vmem:[%s5015_s1 + $0x90] sm:$0xff] %v2610_v28  ;;  %v2611_v21 = vmax.f32 %v2579_v22, 0.0 }
 0x2e1   : > { %2640 = vst [vmem:[%s5015_s1 + $0x80] sm:$0xff] %v2608_v13  ;;  %v2609_v31 = vmax.f32 %v2577_v17, 0.0  ;;  %v3365_v60 = vpop.f32.mrb[60].mxu0  ;;  %v3453_v55 = vpop.f32.mrb[44].mxu1 }
 0x2e2   : > { %2643 = vst [vmem:[%s5015_s1 + $0x98] sm:$0xff] %v2611_v21  ;;  %v5045_v33 = vadd.f32 %v3365_v60, %v4982_v39  ;;  %v3520_v58 = vadd.f32 %v3453_v55, %v1773_v9  ;;  %v1736_v34 = vpop.f32.mrb[61].mxu0  ;;  %v2474_v49 = vpop.f32.mrb[45].mxu1 }
 0x2e3   : > { %2641 = vst [vmem:[%s5015_s1 + $0x88] sm:$0xff] %v2609_v31  ;;  %v5049_v35 = vadd.f32 %v1736_v34, %v4984_v4  ;;  %v3522_v12 = vadd.f32 %v2474_v49, %v1771_v8  ;;  %v3366_v40 = vpop.f32.mrb[62].mxu0  ;;  %v3454_v15 = vpop.f32.mrb[46].mxu1 }
 0x2e4   : > { %v2582_v18 = vadd.f32 %v3520_v58, %v5006_v51  ;;  %v5053_v36 = vadd.f32 %v3366_v40, %v4986_v43  ;;  %v3524_v10 = vadd.f32 %v3454_v15, %v1774_v25  ;;  %v1739_v39 = vpop.f32.mrb[63].mxu0  ;;  %v2477_v9 = vpop.f32.mrb[47].mxu1 }
 0x2e5   : > { %v2580_v62 = vadd.f32 %v3522_v12, %v5006_v51  ;;  %v5057_v16 = vadd.f32 %v1739_v39, %v4988_v14  ;;  %v3526_v4 = vadd.f32 %v2477_v9, %v1772_v63 }
 0x2e6   : > { %v2614_v8 = vmax.f32 %v2582_v18, 0.0  ;;  %v2583_v30 = vadd.f32 %v3524_v10, %v5006_v51 }
 0x2e7   : > { %v2612_v46 = vmax.f32 %v2580_v62, 0.0  ;;  %v2581_v52 = vadd.f32 %v3526_v4, %v5006_v51 }
 0x2e8   : > { %2646 = vst [vmem:[%s5015_s1 + $0xb0] sm:$0xff] %v2614_v8  ;;  %v2615_v43 = vmax.f32 %v2583_v30, 0.0 }
 0x2e9   : > { %2644 = vst [vmem:[%s5015_s1 + $0xa0] sm:$0xff] %v2612_v46  ;;  %v2613_v25 = vmax.f32 %v2581_v52, 0.0  ;;  %v3385_v48 = vpop.f32.mrb[32].mxu0  ;;  %v3457_v20 = vpop.f32.mrb[48].mxu1 }
 0x2ea   : > { %2647 = vst [vmem:[%s5015_s1 + $0xb8] sm:$0xff] %v2615_v43  ;;  %v3479_v56 = vadd.f32 %v3385_v48, %v4946_v23  ;;  %v3528_v5 = vadd.f32 %v3457_v20, %v1777_v2  ;;  %v2009_v14 = vpop.f32.mrb[33].mxu0  ;;  %v2490_v7 = vpop.f32.mrb[49].mxu1 }
 0x2eb   : > { %2645 = vst [vmem:[%s5015_s1 + $0xa8] sm:$0xff] %v2613_v25  ;;  %v3481_v63 = vadd.f32 %v2009_v14, %v4948_v27  ;;  %v3530_v47 = vadd.f32 %v2490_v7, %v1775_v50  ;;  %v3386_v61 = vpop.f32.mrb[34].mxu0  ;;  %v3458_v59 = vpop.f32.mrb[50].mxu1 }
 0x2ec   : > { %v3480_v0 = vadd.f32 %v3479_v56, %v4990_v26  ;;  %v2586_v24 = vadd.f32 %v3528_v5, %v5006_v51  ;;  %v3483_v3 = vadd.f32 %v3386_v61, %v4950_v29  ;;  %v3532_v28 = vadd.f32 %v3458_v59, %v1778_v53  ;;  %v2012_v22 = vpop.f32.mrb[35].mxu0  ;;  %v2493_v13 = vpop.f32.mrb[51].mxu1 }
 0x2ed   : > { %v3482_v23 = vadd.f32 %v3481_v63, %v4992_v37  ;;  %v2584_v2 = vadd.f32 %v3530_v47, %v5006_v51  ;;  %v3485_v27 = vadd.f32 %v2012_v22, %v4952_v32  ;;  %v3534_v50 = vadd.f32 %v2493_v13, %v1776_v19 }
 0x2ee   : > { %v2562_v17 = vadd.f32 %v3480_v0, %v5006_v51  ;;  %v2618_v21 = vmax.f32 %v2586_v24, 0.0  ;;  %v3484_v26 = vadd.f32 %v3483_v3, %v4994_v44  ;;  %v2587_v29 = vadd.f32 %v3532_v28, %v5006_v51 }
 0x2ef   : > { %v2560_v53 = vadd.f32 %v3482_v23, %v5006_v51  ;;  %v2616_v31 = vmax.f32 %v2584_v2, 0.0  ;;  %v3486_v37 = vadd.f32 %v3485_v27, %v4996_v57  ;;  %v2585_v60 = vadd.f32 %v3534_v50, %v5006_v51 }
 0x2f0   : > { %v2594_v55 = vmax.f32 %v2562_v17, 0.0  ;;  %2650 = vst [vmem:[%s5015_s1 + $0xd0] sm:$0xff] %v2618_v21  ;;  %v2563_v32 = vadd.f32 %v3484_v26, %v5006_v51  ;;  %v2619_v19 = vmax.f32 %v2587_v29, 0.0 }
 0x2f1   : > { %v2592_v58 = vmax.f32 %v2560_v53, 0.0  ;;  %2648 = vst [vmem:[%s5015_s1 + $0xc0] sm:$0xff] %v2616_v31  ;;  %v2561_v44 = vadd.f32 %v3486_v37, %v5006_v51  ;;  %v2617_v34 = vmax.f32 %v2585_v60, 0.0  ;;  %v3389_v49 = vpop.f32.mrb[36].mxu0  ;;  %v3461_v12 = vpop.f32.mrb[52].mxu1 }
 0x2f2   : > { %2626 = vst [vmem:[%s5015_s1 + $0x10] sm:$0xff] %v2594_v55  ;;  %v2595_v40 = vmax.f32 %v2563_v32, 0.0  ;;  %2651 = vst [vmem:[%s5015_s1 + $0xd8] sm:$0xff] %v2619_v19  ;;  %v3487_v57 = vadd.f32 %v3389_v49, %v4954_v38  ;;  %v3536_v15 = vadd.f32 %v3461_v12, %v5045_v33  ;;  %v2025_v18 = vpop.f32.mrb[37].mxu0  ;;  %v2506_v10 = vpop.f32.mrb[53].mxu1 }
 0x2f3   : > { %2624 = vst [vmem:[%s5015_s1] sm:$0xff] %v2592_v58  ;;  %v2593_v39 = vmax.f32 %v2561_v44, 0.0  ;;  %2649 = vst [vmem:[%s5015_s1 + $0xc8] sm:$0xff] %v2617_v34  ;;  %v3489_v9 = vadd.f32 %v2025_v18, %v4956_v41  ;;  %v3538_v62 = vadd.f32 %v2506_v10, %v5049_v35  ;;  %v3390_v4 = vpop.f32.mrb[38].mxu0  ;;  %v3462_v8 = vpop.f32.mrb[54].mxu1 }
 0x2f4   : > { %2627 = vst [vmem:[%s5015_s1 + $0x18] sm:$0xff] %v2595_v40  ;;  %v3488_v30 = vadd.f32 %v3487_v57, %v4998_v54  ;;  %v2590_v46 = vadd.f32 %v3536_v15, %v5006_v51  ;;  %v3491_v38 = vadd.f32 %v3390_v4, %v4958_v42  ;;  %v3540_v33 = vadd.f32 %v3462_v8, %v5053_v36  ;;  %v2028_v52 = vpop.f32.mrb[39].mxu0  ;;  %v2509_v43 = vpop.f32.mrb[55].mxu1 }
 0x2f5   : > { %2625 = vst [vmem:[%s5015_s1 + $0x8] sm:$0xff] %v2593_v39  ;;  %v3490_v41 = vadd.f32 %v3489_v9, %v5000_v1  ;;  %v2588_v35 = vadd.f32 %v3538_v62, %v5006_v51  ;;  %v3493_v25 = vadd.f32 %v2028_v52, %v4960_v45  ;;  %v3542_v54 = vadd.f32 %v2509_v43, %v5057_v16 }
 0x2f6   : > { %v2566_v48 = vadd.f32 %v3488_v30, %v5006_v51  ;;  %v2622_v42 = vmax.f32 %v2590_v46, 0.0  ;;  %v3492_v36 = vadd.f32 %v3491_v38, %v5002_v6  ;;  %v2591_v20 = vadd.f32 %v3540_v33, %v5006_v51 }
 0x2f7   : > { %v2564_v56 = vadd.f32 %v3490_v41, %v5006_v51  ;;  %v2620_v5 = vmax.f32 %v2588_v35, 0.0  ;;  %v3494_v1 = vadd.f32 %v3493_v25, %v5004_v11  ;;  %v2589_v14 = vadd.f32 %v3542_v54, %v5006_v51 }
 0x2f8   : > { %v2598_v45 = vmax.f32 %v2566_v48, 0.0  ;;  %2654 = vst [vmem:[%s5015_s1 + $0xf0] sm:$0xff] %v2622_v42  ;;  %v2567_v6 = vadd.f32 %v3492_v36, %v5006_v51  ;;  %v2623_v16 = vmax.f32 %v2591_v20, 0.0 }
 0x2f9   : > { %v2596_v7 = vmax.f32 %v2564_v56, 0.0  ;;  %2652 = vst [vmem:[%s5015_s1 + $0xe0] sm:$0xff] %v2620_v5  ;;  %v2565_v63 = vadd.f32 %v3494_v1, %v5006_v51  ;;  %v2621_v11 = vmax.f32 %v2589_v14, 0.0 }
 0x2fa   : > { %2630 = vst [vmem:[%s5015_s1 + $0x30] sm:$0xff] %v2598_v45  ;;  %v2599_v47 = vmax.f32 %v2567_v6, 0.0  ;;  %2655 = vst [vmem:[%s5015_s1 + $0xf8] sm:$0xff] %v2623_v16 }
 0x2fb   : > { %2628 = vst [vmem:[%s5015_s1 + $0x20] sm:$0xff] %v2596_v7  ;;  %v2597_v61 = vmax.f32 %v2565_v63, 0.0  ;;  %2653 = vst [vmem:[%s5015_s1 + $0xe8] sm:$0xff] %v2621_v11 }
 0x2fc   : > { %2631 = vst [vmem:[%s5015_s1 + $0x38] sm:$0xff] %v2599_v47 }
 0x2fd   : > { %2629 = vst [vmem:[%s5015_s1 + $0x28] sm:$0xff] %v2597_v61 }
 0x2fe   : > { %4151 = shalt.err (!%p4148_p2)
}
 0x2ff   : > { %s4152_s19 = scalar_lea.hbm %s5118_s23, 4096  ;;  %s4156_s4 = scalar_lea.hbm %s5275_s26, 8192 }
 0x300   : > { %p4153_p4 = scmp.ne.s32.totalorder %s5118_s23, %s4152_s19  ;;  %p4157_p5 = scmp.lt.u32.totalorder %s5118_s23, %s5275_s26 }
 0x301   : > { %p4158_p11 = scmp.lt.u32.totalorder %s4156_s4, %s4152_s19  ;;  %p4160_p10 = scmp.lt.u32.totalorder %s4152_s19, %s5118_s23 }
 0x302   : > { %p4154_p6 = pnand %p4153_p4, %p5276_p1 }
 0x303   : > { %p4159_p13 = por %p4158_p11, %p4157_p5 }
 0x304   : > { %p4155_p7 = pneg %p4154_p6 }
 0x305   : > { %p4161_p8 = por %p4160_p10, %p4159_p13 }
 0x307   : > { %p4162_p9 = pnand %p4161_p8, %p4155_p7 }
 0x309   : > { %4165 = shalt.err (!%p4162_p9)
}
 0x30a   : > { %s4262_s24 = smov 128   ;;  %s4263_s16 = smov 8  }
 0x30b   : > { %3609 = dma.vmem_to_hbm [thread:$0]  (%p5276_p1), %s5120_s15, 4096, %s5118_s23, %s2657_s14, %s4262_s24, %s4262_s24, %s4263_s16  }
 0x30c PF: > { %s5277_s25 = sld [smem:[#allocation29_spill]]  ;;  %s5278_s1 = sld [smem:[#allocation39_spill]] }
 0x30d   : > { %s5279_s9 = sld [smem:[#allocation33_spill]] }
 0x312   : > { %s2687_s5 = sand.u32 1, %s5277_s25   ;;  %p5280_p0 = scmp.ne.s32.totalorder %s5278_s1, 0 }
 0x313   : > { %p5281_p3 = scmp.ge.s32.totalorder %s5279_s9, 2  ;;  %s2688_s11 = scalar_lea.sflag [#allocation4], %s2687_s5 }
 0x315   : > { %p3647_p12 = pnand %p5281_p3, %p5280_p0 }
 0x317   : > { %4219 = dma.done.wait (!%p3647_p12), %s2688_s11, 4096  }
 0x318   : > { %4221 = vsyncadd (!%p3647_p12), %s2688_s11, 4294963200  ;;  %s36_s22 = sadd.s32 1, %s5279_s9   ;;  %s5282_s7 = sld [smem:[#allocation30_spill]] }
 0x319   : > { %p33_p2 = scmp.ge.s32.totalorder %s36_s22, 4   ;;  %s5283_s19 = sld [smem:[#allocation38_spill]] }
 0x31a   : > { %s5284_s20 = sld [smem:[#allocation32_spill]]  ;;  %s5285_s21 = sld [smem:[#allocation35_spill]] }
 0x31b   : > { %s5286_s17 = smov %s4228_s18  ;;  %35 = sbr.rel (!%p33_p2) target bundleno = 22 (0x16), region = 183 }
 0x31e   : > { %s5287_s18 = smov %s5282_s7 }
 0x322   :  { %2693 = vsyncpa [#allocation3], 1 }
 0x323   :  { %2695 = vsyncpa [#allocation3 + $0x1], 1 }
 0x324   :  { %2696 = vsyncpa [#allocation6], 1 }
 0x325   :  { %2698 = vsyncpa [#allocation6 + $0x1], 1 }
 0x326   :  { %2699 = vsyncpa [#allocation9], 1 }
 0x327   :  { %2701 = vsyncpa [#allocation9 + $0x1], 1 }
 0x328   :  { %2702 = vsyncpa [#allocation12], 1 }
 0x329   :  { %2704 = vsyncpa [#allocation12 + $0x1], 1 }
 0x32a   :  { %2705 = vsyncpa [#allocation15], 1 }
 0x32b   :  { %2706 = vsyncpa [#allocation18], 1 }
 0x32c   :  { %2707 = vsyncpa [#allocation4], 1 }
 0x32d   :  { %2709 = vsyncpa [#allocation4 + $0x1], 1 }

</bundles_post_ra>
